<compile_context>
chip_gen: v5e
topology: v5e:2x2
jax: 0.10.0
libtpu: 0.0.40
codegen_flags: <defaults>
</compile_context>

<pallas_src>
import math
import functools

import numpy as np
import jax
import jax.numpy as jnp
from jax.experimental import pallas as pl
from jax.experimental.pallas import tpu as pltpu


WINDOW_SIZE = 11
SIGMA = 1.5


def _gaussian_1d(window_size: int, sigma: float):
    """Deterministic re-implementation of gaussian() (normalized 1D window)."""
    g = np.array(
        [math.exp(-((x - window_size // 2) ** 2) / float(2 * sigma ** 2))
         for x in range(window_size)],
        dtype=np.float64,
    )
    g = g / g.sum()
    return tuple(float(v) for v in g)


def _ssim_kernel(c_ref, x1_ref, x2_ref, o_ref, *, g1d, ho, wo):
    """One grid step == `bc` (n, c) channel images of shape (H, W).

    c_ref  : SMEM (2,) f32        -> [C1, C2]
    x1_ref : VMEM (bc, H, W) f32
    x2_ref : VMEM (bc, H, W) f32
    o_ref  : VMEM (1, 1, 1) f32   -> partial sum of the SSIM map for this step
    """
    C1 = c_ref[0]
    C2 = c_ref[1]

    x1 = x1_ref[...]   # (bc, H, W) f32
    x2 = x2_ref[...]

    # Hoisted product maps: 3 multiplies per input pixel (not 3 per tap).
    p11 = x1 * x1
    p22 = x2 * x2
    p12 = x1 * x2

    ws = len(g1d)

    # Separable Gaussian (w2d = outer(g, g)): unrolled 11-tap pass along W
    # (lanes), then along H (sublanes).  Weights are baked-in constants; the
    # multiply-adds are the only VALU work per tap.
    def conv_w(m):                       # (bc, H, W) -> (bc, H, wo)
        acc = g1d[0] * m[:, :, 0:wo]
        for j in range(1, ws):
            acc = acc + g1d[j] * m[:, :, j:j + wo]
        return acc

    def conv_h(m):                       # (bc, H, wo) -> (bc, ho, wo)
        acc = g1d[0] * m[:, 0:ho, :]
        for i in range(1, ws):
            acc = acc + g1d[i] * m[:, i:i + ho, :]
        return acc

    def gconv(m):
        return conv_h(conv_w(m))

    mu1 = gconv(x1)
    mu2 = gconv(x2)
    e11 = gconv(p11)
    e22 = gconv(p22)
    e12 = gconv(p12)

    mu1_sq = mu1 * mu1
    mu2_sq = mu2 * mu2
    mu1_mu2 = mu1 * mu2
    sigma1_sq = e11 - mu1_sq
    sigma2_sq = e22 - mu2_sq
    sigma12 = e12 - mu1_mu2

    v1 = 2.0 * sigma12 + C2
    v2 = sigma1_sq + sigma2_sq + C2
    num = (2.0 * mu1_mu2 + C1) * v1
    den = (mu1_sq + mu2_sq + C1) * v2
    # Multiply-by-reciprocal instead of a divide.  (approx=True would route
    # the reciprocal to the EUP approximation; kept exact to match the f32
    # PyTorch reference within tight tolerance.)
    ssim_map = num * pl.reciprocal(den, approx=False)

    # Per-step partial sum (no cross-step accumulator -> grid axis is parallel).
    s = jnp.sum(ssim_map, axis=2, keepdims=True)   # (bc, ho, 1)  lane reduce
    s = jnp.sum(s, axis=1, keepdims=True)          # (bc, 1, 1)   sublane reduce
    total = jnp.sum(s)                             # scalar
    o_ref[...] = jnp.broadcast_to(total, o_ref.shape)


def _choose_block_channels(N, C, H, W, size_average):
    """Batch several (n, c) channels per grid step when images are small.

    The chosen bc always divides C (so per-sample sums can be regrouped when
    size_average=False); when size_average=True whole-image multiples of C are
    also allowed.  Keeps the per-step working set (inputs double-buffered +
    f32 intermediates) within a small VMEM budget.
    """
    budget = 4 * 1024 * 1024                 # bytes of per-step working set
    per_chan = 20 * H * W * 4                # rough: 4x DMA-buffered inputs + ~16 temps
    cands = [d for d in range(1, C + 1) if C % d == 0]
    if size_average:
        cands += [C * d for d in range(2, N + 1) if N % d == 0]
    best = 1
    for d in sorted(cands):
        if d * per_chan <= budget:
            best = d
    return best


def ssim_loss(img1, img2, window_size=WINDOW_SIZE, size_average=True, val_range=None):
    """JAX/Pallas equivalent of SSIM_loss().forward(img1, img2)."""
    N, C, H, W = img1.shape
    assert img2.shape == img1.shape
    # SSIM_loss always passes an 11x11 window, so valid conv requires this.
    assert H >= window_size and W >= window_size, "spatial dims must be >= window_size"

    img1 = img1.astype(jnp.float32)
    img2 = img2.astype(jnp.float32)

    # Data-dependent dynamic range L (same logic as the torch reference).
    if val_range is None:
        max_val = jnp.where(jnp.max(img1) > 128.0, 255.0, 1.0)
        min_val = jnp.where(jnp.min(img1) < -0.5, -1.0, 0.0)
        L = max_val - min_val
    else:
        L = jnp.float32(val_range)
    C1 = (0.01 * L) ** 2
    C2 = (0.03 * L) ** 2
    consts = jnp.stack([C1, C2]).astype(jnp.float32)   # (2,) -> SMEM

    g1d = _gaussian_1d(window_size, SIGMA)              # separable window (baked in)
    ho = H - window_size + 1
    wo = W - window_size + 1
    n_blocks = N * C

    bc = _choose_block_channels(N, C, H, W, size_average)
    n_steps = n_blocks // bc

    x1 = img1.reshape(n_blocks, H, W)
    x2 = img2.reshape(n_blocks, H, W)

    kernel = functools.partial(_ssim_kernel, g1d=g1d, ho=ho, wo=wo)

    # Raise the scoped VMEM limit only if the per-step footprint needs it
    # (cap at 64 MiB so it is valid on v7x as well as v5e/v6e).
    est_bytes = (2 * 2 + 16) * bc * H * W * 4
    vmem_limit = None
    if est_bytes > (32 << 20):
        vmem_limit = min(int(est_bytes), 64 << 20)
    # TODO(synk): for very large H/W (>~1400 at f32) additionally tile H across
    # the grid with a (window_size-1)-row halo to keep double-buffered DMA
    # within v7x's 64 MiB VMEM and bound vreg pressure.

    step_sums = pl.pallas_call(
        kernel,
        out_shape=jax.ShapeDtypeStruct((n_steps, 1, 1), jnp.float32),
        grid_spec=pltpu.PrefetchScalarGridSpec(
            num_scalar_prefetch=0,
            grid=(n_steps,),
            in_specs=[
                pl.BlockSpec(memory_space=pltpu.MemorySpace.SMEM),     # [C1, C2]
                pl.BlockSpec((bc, H, W), lambda i: (i, 0, 0)),         # img1 channels
                pl.BlockSpec((bc, H, W), lambda i: (i, 0, 0)),         # img2 channels
            ],
            out_specs=pl.BlockSpec((1, 1, 1), lambda i: (i, 0, 0)),    # per-step partial sum
        ),
        compiler_params=pltpu.CompilerParams(
            dimension_semantics=("parallel",),                         # v7x megacore
            vmem_limit_bytes=vmem_limit,
        ),
    )(consts, x1, x2)

    step_sums = step_sums.reshape(n_steps)

    if size_average:
        # loss = 1 - mean(ssim_map) over everything
        return 1.0 - jnp.sum(step_sums) / float(n_blocks * ho * wo)
    else:
        # per-sample mean over (C, ho, wo); bc divides C by construction.
        steps_per_img = C // bc
        per_img = step_sums.reshape(N, steps_per_img).sum(axis=1)
        return 1.0 - per_img / float(C * ho * wo)


# ------------------------- pure numpy reference -------------------------
def _ssim_loss_ref(img1, img2, window_size=WINDOW_SIZE, size_average=True):
    img1 = np.asarray(img1, dtype=np.float64)
    img2 = np.asarray(img2, dtype=np.float64)
    N, C, H, W = img1.shape

    max_val = 255.0 if img1.max() > 128 else 1.0
    min_val = -1.0 if img1.min() < -0.5 else 0.0
    L = max_val - min_val
    C1 = (0.01 * L) ** 2
    C2 = (0.03 * L) ** 2

    g = np.asarray(_gaussian_1d(window_size, SIGMA), dtype=np.float64)
    w = np.outer(g, g)
    ho, wo = H - window_size + 1, W - window_size + 1

    def dwconv(x):
        out = np.zeros((N, C, ho, wo), dtype=np.float64)
        for i in range(window_size):
            for j in range(window_size):
                out += w[i, j] * x[:, :, i:i + ho, j:j + wo]
        return out

    mu1 = dwconv(img1)
    mu2 = dwconv(img2)
    mu1_sq, mu2_sq, mu1_mu2 = mu1 ** 2, mu2 ** 2, mu1 * mu2
    sigma1_sq = dwconv(img1 * img1) - mu1_sq
    sigma2_sq = dwconv(img2 * img2) - mu2_sq
    sigma12 = dwconv(img1 * img2) - mu1_mu2
    v1 = 2.0 * sigma12 + C2
    v2 = sigma1_sq + sigma2_sq + C2
    ssim_map = (2 * mu1_mu2 + C1) * v1 / ((mu1_sq + mu2_sq + C1) * v2)
    if size_average:
        return 1.0 - ssim_map.mean()
    return 1.0 - ssim_map.mean(axis=(1, 2, 3))


if __name__ == "__main__":
    key = jax.random.PRNGKey(0)
    k1, k2 = jax.random.split(key)
    N, C, H, W = 2, 3, 16, 16
    img1 = jax.random.normal(k1, (N, C, H, W), dtype=jnp.float32)
    # make img2 a noisy version of img1 so SSIM is non-trivial
    img2 = img1 + 0.1 * jax.random.normal(k2, (N, C, H, W), dtype=jnp.float32)

    # default path: size_average=True -> scalar loss
    loss = jax.jit(ssim_loss)(img1, img2)
    loss = jax.block_until_ready(loss)
    ref = _ssim_loss_ref(np.asarray(img1), np.asarray(img2))
    assert np.allclose(float(loss), ref, rtol=1e-3, atol=1e-3), (float(loss), ref)

    # size_average=False path -> per-sample loss vector
    loss_ps = jax.jit(functools.partial(ssim_loss, size_average=False))(img1, img2)
    loss_ps = jax.block_until_ready(loss_ps)
    ref_ps = _ssim_loss_ref(np.asarray(img1), np.asarray(img2), size_average=False)
    assert np.allclose(np.asarray(loss_ps), ref_ps, rtol=1e-3, atol=1e-3), (loss_ps, ref_ps)

    print("KERNEL_OK")
</pallas_src>

<mosaic_0001>
module attributes {stable_mosaic.version = 11 : i64} {
  func.func @_ssim_kernel(%arg0: i32, %arg1: memref<2xf32, #tpu.memory_space<smem>>, %arg2: memref<6x16x16xf32, #tpu.memory_space<vmem>>, %arg3: memref<6x16x16xf32, #tpu.memory_space<vmem>>, %arg4: memref<1x1x1xf32, #tpu.memory_space<vmem>>) attributes {dimension_semantics = [#tpu.dimension_semantics<parallel>], iteration_bounds = array<i64: 1>, scalar_prefetch = 0 : i64, scratch_operands = 0 : i64, tpu.core_type = #tpu.core_type<tc>, window_params = [{transform_indices = @transform_0, window_bounds = array<i64: 2>}, {transform_indices = @transform_1, window_bounds = array<i64: 6, 16, 16>}, {transform_indices = @transform_2, window_bounds = array<i64: 6, 16, 16>}, {transform_indices = @transform_3, window_bounds = array<i64: 1, 1, 1>}]} {
    %c0 = arith.constant 0 : index
    %0 = memref.load %arg1[%c0] : memref<2xf32, #tpu.memory_space<smem>>
    %c1 = arith.constant 1 : index
    %1 = memref.load %arg1[%c1] : memref<2xf32, #tpu.memory_space<smem>>
    %c0_0 = arith.constant 0 : index
    %c0_1 = arith.constant 0 : index
    %c0_2 = arith.constant 0 : index
    %2 = vector.load %arg2[%c0_0, %c0_1, %c0_2] : memref<6x16x16xf32, #tpu.memory_space<vmem>>, vector<6x16x16xf32>
    %c0_3 = arith.constant 0 : index
    %c0_4 = arith.constant 0 : index
    %c0_5 = arith.constant 0 : index
    %3 = vector.load %arg3[%c0_3, %c0_4, %c0_5] : memref<6x16x16xf32, #tpu.memory_space<vmem>>, vector<6x16x16xf32>
    %4 = arith.mulf %2, %2 : vector<6x16x16xf32>
    %5 = arith.mulf %3, %3 : vector<6x16x16xf32>
    %6 = arith.mulf %2, %3 : vector<6x16x16xf32>
    %7 = vector.extract_strided_slice %2 {offsets = [0, 0, 0], sizes = [6, 16, 6], strides = [1, 1, 1]} : vector<6x16x16xf32> to vector<6x16x6xf32>
    %cst = arith.constant 0.00102838012 : f32
    %8 = vector.broadcast %cst : f32 to vector<6x16x6xf32>
    %9 = arith.mulf %8, %7 : vector<6x16x6xf32>
    %10 = vector.extract_strided_slice %2 {offsets = [0, 0, 1], sizes = [6, 16, 6], strides = [1, 1, 1]} : vector<6x16x16xf32> to vector<6x16x6xf32>
    %cst_6 = arith.constant 0.00759875821 : f32
    %11 = vector.broadcast %cst_6 : f32 to vector<6x16x6xf32>
    %12 = arith.mulf %11, %10 : vector<6x16x6xf32>
    %13 = arith.addf %9, %12 : vector<6x16x6xf32>
    %14 = vector.extract_strided_slice %2 {offsets = [0, 0, 2], sizes = [6, 16, 6], strides = [1, 1, 1]} : vector<6x16x16xf32> to vector<6x16x6xf32>
    %cst_7 = arith.constant 0.0360007733 : f32
    %15 = vector.broadcast %cst_7 : f32 to vector<6x16x6xf32>
    %16 = arith.mulf %15, %14 : vector<6x16x6xf32>
    %17 = arith.addf %13, %16 : vector<6x16x6xf32>
    %18 = vector.extract_strided_slice %2 {offsets = [0, 0, 3], sizes = [6, 16, 6], strides = [1, 1, 1]} : vector<6x16x16xf32> to vector<6x16x6xf32>
    %cst_8 = arith.constant 0.109360687 : f32
    %19 = vector.broadcast %cst_8 : f32 to vector<6x16x6xf32>
    %20 = arith.mulf %19, %18 : vector<6x16x6xf32>
    %21 = arith.addf %17, %20 : vector<6x16x6xf32>
    %22 = vector.extract_strided_slice %2 {offsets = [0, 0, 4], sizes = [6, 16, 6], strides = [1, 1, 1]} : vector<6x16x16xf32> to vector<6x16x6xf32>
    %cst_9 = arith.constant 0.213005543 : f32
    %23 = vector.broadcast %cst_9 : f32 to vector<6x16x6xf32>
    %24 = arith.mulf %23, %22 : vector<6x16x6xf32>
    %25 = arith.addf %21, %24 : vector<6x16x6xf32>
    %26 = vector.extract_strided_slice %2 {offsets = [0, 0, 5], sizes = [6, 16, 6], strides = [1, 1, 1]} : vector<6x16x16xf32> to vector<6x16x6xf32>
    %cst_10 = arith.constant 0.266011715 : f32
    %27 = vector.broadcast %cst_10 : f32 to vector<6x16x6xf32>
    %28 = arith.mulf %27, %26 : vector<6x16x6xf32>
    %29 = arith.addf %25, %28 : vector<6x16x6xf32>
    %30 = vector.extract_strided_slice %2 {offsets = [0, 0, 6], sizes = [6, 16, 6], strides = [1, 1, 1]} : vector<6x16x16xf32> to vector<6x16x6xf32>
    %cst_11 = arith.constant 0.213005543 : f32
    %31 = vector.broadcast %cst_11 : f32 to vector<6x16x6xf32>
    %32 = arith.mulf %31, %30 : vector<6x16x6xf32>
    %33 = arith.addf %29, %32 : vector<6x16x6xf32>
    %34 = vector.extract_strided_slice %2 {offsets = [0, 0, 7], sizes = [6, 16, 6], strides = [1, 1, 1]} : vector<6x16x16xf32> to vector<6x16x6xf32>
    %cst_12 = arith.constant 0.109360687 : f32
    %35 = vector.broadcast %cst_12 : f32 to vector<6x16x6xf32>
    %36 = arith.mulf %35, %34 : vector<6x16x6xf32>
    %37 = arith.addf %33, %36 : vector<6x16x6xf32>
    %38 = vector.extract_strided_slice %2 {offsets = [0, 0, 8], sizes = [6, 16, 6], strides = [1, 1, 1]} : vector<6x16x16xf32> to vector<6x16x6xf32>
    %cst_13 = arith.constant 0.0360007733 : f32
    %39 = vector.broadcast %cst_13 : f32 to vector<6x16x6xf32>
    %40 = arith.mulf %39, %38 : vector<6x16x6xf32>
    %41 = arith.addf %37, %40 : vector<6x16x6xf32>
    %42 = vector.extract_strided_slice %2 {offsets = [0, 0, 9], sizes = [6, 16, 6], strides = [1, 1, 1]} : vector<6x16x16xf32> to vector<6x16x6xf32>
    %cst_14 = arith.constant 0.00759875821 : f32
    %43 = vector.broadcast %cst_14 : f32 to vector<6x16x6xf32>
    %44 = arith.mulf %43, %42 : vector<6x16x6xf32>
    %45 = arith.addf %41, %44 : vector<6x16x6xf32>
    %46 = vector.extract_strided_slice %2 {offsets = [0, 0, 10], sizes = [6, 16, 6], strides = [1, 1, 1]} : vector<6x16x16xf32> to vector<6x16x6xf32>
    %cst_15 = arith.constant 0.00102838012 : f32
    %47 = vector.broadcast %cst_15 : f32 to vector<6x16x6xf32>
    %48 = arith.mulf %47, %46 : vector<6x16x6xf32>
    %49 = arith.addf %45, %48 : vector<6x16x6xf32>
    %50 = vector.extract_strided_slice %49 {offsets = [0, 0, 0], sizes = [6, 6, 6], strides = [1, 1, 1]} : vector<6x16x6xf32> to vector<6x6x6xf32>
    %cst_16 = arith.constant 0.00102838012 : f32
    %51 = vector.broadcast %cst_16 : f32 to vector<6x6x6xf32>
    %52 = arith.mulf %51, %50 : vector<6x6x6xf32>
    %53 = vector.extract_strided_slice %49 {offsets = [0, 1, 0], sizes = [6, 6, 6], strides = [1, 1, 1]} : vector<6x16x6xf32> to vector<6x6x6xf32>
    %cst_17 = arith.constant 0.00759875821 : f32
    %54 = vector.broadcast %cst_17 : f32 to vector<6x6x6xf32>
    %55 = arith.mulf %54, %53 : vector<6x6x6xf32>
    %56 = arith.addf %52, %55 : vector<6x6x6xf32>
    %57 = vector.extract_strided_slice %49 {offsets = [0, 2, 0], sizes = [6, 6, 6], strides = [1, 1, 1]} : vector<6x16x6xf32> to vector<6x6x6xf32>
    %cst_18 = arith.constant 0.0360007733 : f32
    %58 = vector.broadcast %cst_18 : f32 to vector<6x6x6xf32>
    %59 = arith.mulf %58, %57 : vector<6x6x6xf32>
    %60 = arith.addf %56, %59 : vector<6x6x6xf32>
    %61 = vector.extract_strided_slice %49 {offsets = [0, 3, 0], sizes = [6, 6, 6], strides = [1, 1, 1]} : vector<6x16x6xf32> to vector<6x6x6xf32>
    %cst_19 = arith.constant 0.109360687 : f32
    %62 = vector.broadcast %cst_19 : f32 to vector<6x6x6xf32>
    %63 = arith.mulf %62, %61 : vector<6x6x6xf32>
    %64 = arith.addf %60, %63 : vector<6x6x6xf32>
    %65 = vector.extract_strided_slice %49 {offsets = [0, 4, 0], sizes = [6, 6, 6], strides = [1, 1, 1]} : vector<6x16x6xf32> to vector<6x6x6xf32>
    %cst_20 = arith.constant 0.213005543 : f32
    %66 = vector.broadcast %cst_20 : f32 to vector<6x6x6xf32>
    %67 = arith.mulf %66, %65 : vector<6x6x6xf32>
    %68 = arith.addf %64, %67 : vector<6x6x6xf32>
    %69 = vector.extract_strided_slice %49 {offsets = [0, 5, 0], sizes = [6, 6, 6], strides = [1, 1, 1]} : vector<6x16x6xf32> to vector<6x6x6xf32>
    %cst_21 = arith.constant 0.266011715 : f32
    %70 = vector.broadcast %cst_21 : f32 to vector<6x6x6xf32>
    %71 = arith.mulf %70, %69 : vector<6x6x6xf32>
    %72 = arith.addf %68, %71 : vector<6x6x6xf32>
    %73 = vector.extract_strided_slice %49 {offsets = [0, 6, 0], sizes = [6, 6, 6], strides = [1, 1, 1]} : vector<6x16x6xf32> to vector<6x6x6xf32>
    %cst_22 = arith.constant 0.213005543 : f32
    %74 = vector.broadcast %cst_22 : f32 to vector<6x6x6xf32>
    %75 = arith.mulf %74, %73 : vector<6x6x6xf32>
    %76 = arith.addf %72, %75 : vector<6x6x6xf32>
    %77 = vector.extract_strided_slice %49 {offsets = [0, 7, 0], sizes = [6, 6, 6], strides = [1, 1, 1]} : vector<6x16x6xf32> to vector<6x6x6xf32>
    %cst_23 = arith.constant 0.109360687 : f32
    %78 = vector.broadcast %cst_23 : f32 to vector<6x6x6xf32>
    %79 = arith.mulf %78, %77 : vector<6x6x6xf32>
    %80 = arith.addf %76, %79 : vector<6x6x6xf32>
    %81 = vector.extract_strided_slice %49 {offsets = [0, 8, 0], sizes = [6, 6, 6], strides = [1, 1, 1]} : vector<6x16x6xf32> to vector<6x6x6xf32>
    %cst_24 = arith.constant 0.0360007733 : f32
    %82 = vector.broadcast %cst_24 : f32 to vector<6x6x6xf32>
    %83 = arith.mulf %82, %81 : vector<6x6x6xf32>
    %84 = arith.addf %80, %83 : vector<6x6x6xf32>
    %85 = vector.extract_strided_slice %49 {offsets = [0, 9, 0], sizes = [6, 6, 6], strides = [1, 1, 1]} : vector<6x16x6xf32> to vector<6x6x6xf32>
    %cst_25 = arith.constant 0.00759875821 : f32
    %86 = vector.broadcast %cst_25 : f32 to vector<6x6x6xf32>
    %87 = arith.mulf %86, %85 : vector<6x6x6xf32>
    %88 = arith.addf %84, %87 : vector<6x6x6xf32>
    %89 = vector.extract_strided_slice %49 {offsets = [0, 10, 0], sizes = [6, 6, 6], strides = [1, 1, 1]} : vector<6x16x6xf32> to vector<6x6x6xf32>
    %cst_26 = arith.constant 0.00102838012 : f32
    %90 = vector.broadcast %cst_26 : f32 to vector<6x6x6xf32>
    %91 = arith.mulf %90, %89 : vector<6x6x6xf32>
    %92 = arith.addf %88, %91 : vector<6x6x6xf32>
    %93 = vector.extract_strided_slice %3 {offsets = [0, 0, 0], sizes = [6, 16, 6], strides = [1, 1, 1]} : vector<6x16x16xf32> to vector<6x16x6xf32>
    %cst_27 = arith.constant 0.00102838012 : f32
    %94 = vector.broadcast %cst_27 : f32 to vector<6x16x6xf32>
    %95 = arith.mulf %94, %93 : vector<6x16x6xf32>
    %96 = vector.extract_strided_slice %3 {offsets = [0, 0, 1], sizes = [6, 16, 6], strides = [1, 1, 1]} : vector<6x16x16xf32> to vector<6x16x6xf32>
    %cst_28 = arith.constant 0.00759875821 : f32
    %97 = vector.broadcast %cst_28 : f32 to vector<6x16x6xf32>
    %98 = arith.mulf %97, %96 : vector<6x16x6xf32>
    %99 = arith.addf %95, %98 : vector<6x16x6xf32>
    %100 = vector.extract_strided_slice %3 {offsets = [0, 0, 2], sizes = [6, 16, 6], strides = [1, 1, 1]} : vector<6x16x16xf32> to vector<6x16x6xf32>
    %cst_29 = arith.constant 0.0360007733 : f32
    %101 = vector.broadcast %cst_29 : f32 to vector<6x16x6xf32>
    %102 = arith.mulf %101, %100 : vector<6x16x6xf32>
    %103 = arith.addf %99, %102 : vector<6x16x6xf32>
    %104 = vector.extract_strided_slice %3 {offsets = [0, 0, 3], sizes = [6, 16, 6], strides = [1, 1, 1]} : vector<6x16x16xf32> to vector<6x16x6xf32>
    %cst_30 = arith.constant 0.109360687 : f32
    %105 = vector.broadcast %cst_30 : f32 to vector<6x16x6xf32>
    %106 = arith.mulf %105, %104 : vector<6x16x6xf32>
    %107 = arith.addf %103, %106 : vector<6x16x6xf32>
    %108 = vector.extract_strided_slice %3 {offsets = [0, 0, 4], sizes = [6, 16, 6], strides = [1, 1, 1]} : vector<6x16x16xf32> to vector<6x16x6xf32>
    %cst_31 = arith.constant 0.213005543 : f32
    %109 = vector.broadcast %cst_31 : f32 to vector<6x16x6xf32>
    %110 = arith.mulf %109, %108 : vector<6x16x6xf32>
    %111 = arith.addf %107, %110 : vector<6x16x6xf32>
    %112 = vector.extract_strided_slice %3 {offsets = [0, 0, 5], sizes = [6, 16, 6], strides = [1, 1, 1]} : vector<6x16x16xf32> to vector<6x16x6xf32>
    %cst_32 = arith.constant 0.266011715 : f32
    %113 = vector.broadcast %cst_32 : f32 to vector<6x16x6xf32>
    %114 = arith.mulf %113, %112 : vector<6x16x6xf32>
    %115 = arith.addf %111, %114 : vector<6x16x6xf32>
    %116 = vector.extract_strided_slice %3 {offsets = [0, 0, 6], sizes = [6, 16, 6], strides = [1, 1, 1]} : vector<6x16x16xf32> to vector<6x16x6xf32>
    %cst_33 = arith.constant 0.213005543 : f32
    %117 = vector.broadcast %cst_33 : f32 to vector<6x16x6xf32>
    %118 = arith.mulf %117, %116 : vector<6x16x6xf32>
    %119 = arith.addf %115, %118 : vector<6x16x6xf32>
    %120 = vector.extract_strided_slice %3 {offsets = [0, 0, 7], sizes = [6, 16, 6], strides = [1, 1, 1]} : vector<6x16x16xf32> to vector<6x16x6xf32>
    %cst_34 = arith.constant 0.109360687 : f32
    %121 = vector.broadcast %cst_34 : f32 to vector<6x16x6xf32>
    %122 = arith.mulf %121, %120 : vector<6x16x6xf32>
    %123 = arith.addf %119, %122 : vector<6x16x6xf32>
    %124 = vector.extract_strided_slice %3 {offsets = [0, 0, 8], sizes = [6, 16, 6], strides = [1, 1, 1]} : vector<6x16x16xf32> to vector<6x16x6xf32>
    %cst_35 = arith.constant 0.0360007733 : f32
    %125 = vector.broadcast %cst_35 : f32 to vector<6x16x6xf32>
    %126 = arith.mulf %125, %124 : vector<6x16x6xf32>
    %127 = arith.addf %123, %126 : vector<6x16x6xf32>
    %128 = vector.extract_strided_slice %3 {offsets = [0, 0, 9], sizes = [6, 16, 6], strides = [1, 1, 1]} : vector<6x16x16xf32> to vector<6x16x6xf32>
    %cst_36 = arith.constant 0.00759875821 : f32
    %129 = vector.broadcast %cst_36 : f32 to vector<6x16x6xf32>
    %130 = arith.mulf %129, %128 : vector<6x16x6xf32>
    %131 = arith.addf %127, %130 : vector<6x16x6xf32>
    %132 = vector.extract_strided_slice %3 {offsets = [0, 0, 10], sizes = [6, 16, 6], strides = [1, 1, 1]} : vector<6x16x16xf32> to vector<6x16x6xf32>
    %cst_37 = arith.constant 0.00102838012 : f32
    %133 = vector.broadcast %cst_37 : f32 to vector<6x16x6xf32>
    %134 = arith.mulf %133, %132 : vector<6x16x6xf32>
    %135 = arith.addf %131, %134 : vector<6x16x6xf32>
    %136 = vector.extract_strided_slice %135 {offsets = [0, 0, 0], sizes = [6, 6, 6], strides = [1, 1, 1]} : vector<6x16x6xf32> to vector<6x6x6xf32>
    %cst_38 = arith.constant 0.00102838012 : f32
    %137 = vector.broadcast %cst_38 : f32 to vector<6x6x6xf32>
    %138 = arith.mulf %137, %136 : vector<6x6x6xf32>
    %139 = vector.extract_strided_slice %135 {offsets = [0, 1, 0], sizes = [6, 6, 6], strides = [1, 1, 1]} : vector<6x16x6xf32> to vector<6x6x6xf32>
    %cst_39 = arith.constant 0.00759875821 : f32
    %140 = vector.broadcast %cst_39 : f32 to vector<6x6x6xf32>
    %141 = arith.mulf %140, %139 : vector<6x6x6xf32>
    %142 = arith.addf %138, %141 : vector<6x6x6xf32>
    %143 = vector.extract_strided_slice %135 {offsets = [0, 2, 0], sizes = [6, 6, 6], strides = [1, 1, 1]} : vector<6x16x6xf32> to vector<6x6x6xf32>
    %cst_40 = arith.constant 0.0360007733 : f32
    %144 = vector.broadcast %cst_40 : f32 to vector<6x6x6xf32>
    %145 = arith.mulf %144, %143 : vector<6x6x6xf32>
    %146 = arith.addf %142, %145 : vector<6x6x6xf32>
    %147 = vector.extract_strided_slice %135 {offsets = [0, 3, 0], sizes = [6, 6, 6], strides = [1, 1, 1]} : vector<6x16x6xf32> to vector<6x6x6xf32>
    %cst_41 = arith.constant 0.109360687 : f32
    %148 = vector.broadcast %cst_41 : f32 to vector<6x6x6xf32>
    %149 = arith.mulf %148, %147 : vector<6x6x6xf32>
    %150 = arith.addf %146, %149 : vector<6x6x6xf32>
    %151 = vector.extract_strided_slice %135 {offsets = [0, 4, 0], sizes = [6, 6, 6], strides = [1, 1, 1]} : vector<6x16x6xf32> to vector<6x6x6xf32>
    %cst_42 = arith.constant 0.213005543 : f32
    %152 = vector.broadcast %cst_42 : f32 to vector<6x6x6xf32>
    %153 = arith.mulf %152, %151 : vector<6x6x6xf32>
    %154 = arith.addf %150, %153 : vector<6x6x6xf32>
    %155 = vector.extract_strided_slice %135 {offsets = [0, 5, 0], sizes = [6, 6, 6], strides = [1, 1, 1]} : vector<6x16x6xf32> to vector<6x6x6xf32>
    %cst_43 = arith.constant 0.266011715 : f32
    %156 = vector.broadcast %cst_43 : f32 to vector<6x6x6xf32>
    %157 = arith.mulf %156, %155 : vector<6x6x6xf32>
    %158 = arith.addf %154, %157 : vector<6x6x6xf32>
    %159 = vector.extract_strided_slice %135 {offsets = [0, 6, 0], sizes = [6, 6, 6], strides = [1, 1, 1]} : vector<6x16x6xf32> to vector<6x6x6xf32>
    %cst_44 = arith.constant 0.213005543 : f32
    %160 = vector.broadcast %cst_44 : f32 to vector<6x6x6xf32>
    %161 = arith.mulf %160, %159 : vector<6x6x6xf32>
    %162 = arith.addf %158, %161 : vector<6x6x6xf32>
    %163 = vector.extract_strided_slice %135 {offsets = [0, 7, 0], sizes = [6, 6, 6], strides = [1, 1, 1]} : vector<6x16x6xf32> to vector<6x6x6xf32>
    %cst_45 = arith.constant 0.109360687 : f32
    %164 = vector.broadcast %cst_45 : f32 to vector<6x6x6xf32>
    %165 = arith.mulf %164, %163 : vector<6x6x6xf32>
    %166 = arith.addf %162, %165 : vector<6x6x6xf32>
    %167 = vector.extract_strided_slice %135 {offsets = [0, 8, 0], sizes = [6, 6, 6], strides = [1, 1, 1]} : vector<6x16x6xf32> to vector<6x6x6xf32>
    %cst_46 = arith.constant 0.0360007733 : f32
    %168 = vector.broadcast %cst_46 : f32 to vector<6x6x6xf32>
    %169 = arith.mulf %168, %167 : vector<6x6x6xf32>
    %170 = arith.addf %166, %169 : vector<6x6x6xf32>
    %171 = vector.extract_strided_slice %135 {offsets = [0, 9, 0], sizes = [6, 6, 6], strides = [1, 1, 1]} : vector<6x16x6xf32> to vector<6x6x6xf32>
    %cst_47 = arith.constant 0.00759875821 : f32
    %172 = vector.broadcast %cst_47 : f32 to vector<6x6x6xf32>
    %173 = arith.mulf %172, %171 : vector<6x6x6xf32>
    %174 = arith.addf %170, %173 : vector<6x6x6xf32>
    %175 = vector.extract_strided_slice %135 {offsets = [0, 10, 0], sizes = [6, 6, 6], strides = [1, 1, 1]} : vector<6x16x6xf32> to vector<6x6x6xf32>
    %cst_48 = arith.constant 0.00102838012 : f32
    %176 = vector.broadcast %cst_48 : f32 to vector<6x6x6xf32>
    %177 = arith.mulf %176, %175 : vector<6x6x6xf32>
    %178 = arith.addf %174, %177 : vector<6x6x6xf32>
    %179 = vector.extract_strided_slice %4 {offsets = [0, 0, 0], sizes = [6, 16, 6], strides = [1, 1, 1]} : vector<6x16x16xf32> to vector<6x16x6xf32>
    %cst_49 = arith.constant 0.00102838012 : f32
    %180 = vector.broadcast %cst_49 : f32 to vector<6x16x6xf32>
    %181 = arith.mulf %180, %179 : vector<6x16x6xf32>
    %182 = vector.extract_strided_slice %4 {offsets = [0, 0, 1], sizes = [6, 16, 6], strides = [1, 1, 1]} : vector<6x16x16xf32> to vector<6x16x6xf32>
    %cst_50 = arith.constant 0.00759875821 : f32
    %183 = vector.broadcast %cst_50 : f32 to vector<6x16x6xf32>
    %184 = arith.mulf %183, %182 : vector<6x16x6xf32>
    %185 = arith.addf %181, %184 : vector<6x16x6xf32>
    %186 = vector.extract_strided_slice %4 {offsets = [0, 0, 2], sizes = [6, 16, 6], strides = [1, 1, 1]} : vector<6x16x16xf32> to vector<6x16x6xf32>
    %cst_51 = arith.constant 0.0360007733 : f32
    %187 = vector.broadcast %cst_51 : f32 to vector<6x16x6xf32>
    %188 = arith.mulf %187, %186 : vector<6x16x6xf32>
    %189 = arith.addf %185, %188 : vector<6x16x6xf32>
    %190 = vector.extract_strided_slice %4 {offsets = [0, 0, 3], sizes = [6, 16, 6], strides = [1, 1, 1]} : vector<6x16x16xf32> to vector<6x16x6xf32>
    %cst_52 = arith.constant 0.109360687 : f32
    %191 = vector.broadcast %cst_52 : f32 to vector<6x16x6xf32>
    %192 = arith.mulf %191, %190 : vector<6x16x6xf32>
    %193 = arith.addf %189, %192 : vector<6x16x6xf32>
    %194 = vector.extract_strided_slice %4 {offsets = [0, 0, 4], sizes = [6, 16, 6], strides = [1, 1, 1]} : vector<6x16x16xf32> to vector<6x16x6xf32>
    %cst_53 = arith.constant 0.213005543 : f32
    %195 = vector.broadcast %cst_53 : f32 to vector<6x16x6xf32>
    %196 = arith.mulf %195, %194 : vector<6x16x6xf32>
    %197 = arith.addf %193, %196 : vector<6x16x6xf32>
    %198 = vector.extract_strided_slice %4 {offsets = [0, 0, 5], sizes = [6, 16, 6], strides = [1, 1, 1]} : vector<6x16x16xf32> to vector<6x16x6xf32>
    %cst_54 = arith.constant 0.266011715 : f32
    %199 = vector.broadcast %cst_54 : f32 to vector<6x16x6xf32>
    %200 = arith.mulf %199, %198 : vector<6x16x6xf32>
    %201 = arith.addf %197, %200 : vector<6x16x6xf32>
    %202 = vector.extract_strided_slice %4 {offsets = [0, 0, 6], sizes = [6, 16, 6], strides = [1, 1, 1]} : vector<6x16x16xf32> to vector<6x16x6xf32>
    %cst_55 = arith.constant 0.213005543 : f32
    %203 = vector.broadcast %cst_55 : f32 to vector<6x16x6xf32>
    %204 = arith.mulf %203, %202 : vector<6x16x6xf32>
    %205 = arith.addf %201, %204 : vector<6x16x6xf32>
    %206 = vector.extract_strided_slice %4 {offsets = [0, 0, 7], sizes = [6, 16, 6], strides = [1, 1, 1]} : vector<6x16x16xf32> to vector<6x16x6xf32>
    %cst_56 = arith.constant 0.109360687 : f32
    %207 = vector.broadcast %cst_56 : f32 to vector<6x16x6xf32>
    %208 = arith.mulf %207, %206 : vector<6x16x6xf32>
    %209 = arith.addf %205, %208 : vector<6x16x6xf32>
    %210 = vector.extract_strided_slice %4 {offsets = [0, 0, 8], sizes = [6, 16, 6], strides = [1, 1, 1]} : vector<6x16x16xf32> to vector<6x16x6xf32>
    %cst_57 = arith.constant 0.0360007733 : f32
    %211 = vector.broadcast %cst_57 : f32 to vector<6x16x6xf32>
    %212 = arith.mulf %211, %210 : vector<6x16x6xf32>
    %213 = arith.addf %209, %212 : vector<6x16x6xf32>
    %214 = vector.extract_strided_slice %4 {offsets = [0, 0, 9], sizes = [6, 16, 6], strides = [1, 1, 1]} : vector<6x16x16xf32> to vector<6x16x6xf32>
    %cst_58 = arith.constant 0.00759875821 : f32
    %215 = vector.broadcast %cst_58 : f32 to vector<6x16x6xf32>
    %216 = arith.mulf %215, %214 : vector<6x16x6xf32>
    %217 = arith.addf %213, %216 : vector<6x16x6xf32>
    %218 = vector.extract_strided_slice %4 {offsets = [0, 0, 10], sizes = [6, 16, 6], strides = [1, 1, 1]} : vector<6x16x16xf32> to vector<6x16x6xf32>
    %cst_59 = arith.constant 0.00102838012 : f32
    %219 = vector.broadcast %cst_59 : f32 to vector<6x16x6xf32>
    %220 = arith.mulf %219, %218 : vector<6x16x6xf32>
    %221 = arith.addf %217, %220 : vector<6x16x6xf32>
    %222 = vector.extract_strided_slice %221 {offsets = [0, 0, 0], sizes = [6, 6, 6], strides = [1, 1, 1]} : vector<6x16x6xf32> to vector<6x6x6xf32>
    %cst_60 = arith.constant 0.00102838012 : f32
    %223 = vector.broadcast %cst_60 : f32 to vector<6x6x6xf32>
    %224 = arith.mulf %223, %222 : vector<6x6x6xf32>
    %225 = vector.extract_strided_slice %221 {offsets = [0, 1, 0], sizes = [6, 6, 6], strides = [1, 1, 1]} : vector<6x16x6xf32> to vector<6x6x6xf32>
    %cst_61 = arith.constant 0.00759875821 : f32
    %226 = vector.broadcast %cst_61 : f32 to vector<6x6x6xf32>
    %227 = arith.mulf %226, %225 : vector<6x6x6xf32>
    %228 = arith.addf %224, %227 : vector<6x6x6xf32>
    %229 = vector.extract_strided_slice %221 {offsets = [0, 2, 0], sizes = [6, 6, 6], strides = [1, 1, 1]} : vector<6x16x6xf32> to vector<6x6x6xf32>
    %cst_62 = arith.constant 0.0360007733 : f32
    %230 = vector.broadcast %cst_62 : f32 to vector<6x6x6xf32>
    %231 = arith.mulf %230, %229 : vector<6x6x6xf32>
    %232 = arith.addf %228, %231 : vector<6x6x6xf32>
    %233 = vector.extract_strided_slice %221 {offsets = [0, 3, 0], sizes = [6, 6, 6], strides = [1, 1, 1]} : vector<6x16x6xf32> to vector<6x6x6xf32>
    %cst_63 = arith.constant 0.109360687 : f32
    %234 = vector.broadcast %cst_63 : f32 to vector<6x6x6xf32>
    %235 = arith.mulf %234, %233 : vector<6x6x6xf32>
    %236 = arith.addf %232, %235 : vector<6x6x6xf32>
    %237 = vector.extract_strided_slice %221 {offsets = [0, 4, 0], sizes = [6, 6, 6], strides = [1, 1, 1]} : vector<6x16x6xf32> to vector<6x6x6xf32>
    %cst_64 = arith.constant 0.213005543 : f32
    %238 = vector.broadcast %cst_64 : f32 to vector<6x6x6xf32>
    %239 = arith.mulf %238, %237 : vector<6x6x6xf32>
    %240 = arith.addf %236, %239 : vector<6x6x6xf32>
    %241 = vector.extract_strided_slice %221 {offsets = [0, 5, 0], sizes = [6, 6, 6], strides = [1, 1, 1]} : vector<6x16x6xf32> to vector<6x6x6xf32>
    %cst_65 = arith.constant 0.266011715 : f32
    %242 = vector.broadcast %cst_65 : f32 to vector<6x6x6xf32>
    %243 = arith.mulf %242, %241 : vector<6x6x6xf32>
    %244 = arith.addf %240, %243 : vector<6x6x6xf32>
    %245 = vector.extract_strided_slice %221 {offsets = [0, 6, 0], sizes = [6, 6, 6], strides = [1, 1, 1]} : vector<6x16x6xf32> to vector<6x6x6xf32>
    %cst_66 = arith.constant 0.213005543 : f32
    %246 = vector.broadcast %cst_66 : f32 to vector<6x6x6xf32>
    %247 = arith.mulf %246, %245 : vector<6x6x6xf32>
    %248 = arith.addf %244, %247 : vector<6x6x6xf32>
    %249 = vector.extract_strided_slice %221 {offsets = [0, 7, 0], sizes = [6, 6, 6], strides = [1, 1, 1]} : vector<6x16x6xf32> to vector<6x6x6xf32>
    %cst_67 = arith.constant 0.109360687 : f32
    %250 = vector.broadcast %cst_67 : f32 to vector<6x6x6xf32>
    %251 = arith.mulf %250, %249 : vector<6x6x6xf32>
    %252 = arith.addf %248, %251 : vector<6x6x6xf32>
    %253 = vector.extract_strided_slice %221 {offsets = [0, 8, 0], sizes = [6, 6, 6], strides = [1, 1, 1]} : vector<6x16x6xf32> to vector<6x6x6xf32>
    %cst_68 = arith.constant 0.0360007733 : f32
    %254 = vector.broadcast %cst_68 : f32 to vector<6x6x6xf32>
    %255 = arith.mulf %254, %253 : vector<6x6x6xf32>
    %256 = arith.addf %252, %255 : vector<6x6x6xf32>
    %257 = vector.extract_strided_slice %221 {offsets = [0, 9, 0], sizes = [6, 6, 6], strides = [1, 1, 1]} : vector<6x16x6xf32> to vector<6x6x6xf32>
    %cst_69 = arith.constant 0.00759875821 : f32
    %258 = vector.broadcast %cst_69 : f32 to vector<6x6x6xf32>
    %259 = arith.mulf %258, %257 : vector<6x6x6xf32>
    %260 = arith.addf %256, %259 : vector<6x6x6xf32>
    %261 = vector.extract_strided_slice %221 {offsets = [0, 10, 0], sizes = [6, 6, 6], strides = [1, 1, 1]} : vector<6x16x6xf32> to vector<6x6x6xf32>
    %cst_70 = arith.constant 0.00102838012 : f32
    %262 = vector.broadcast %cst_70 : f32 to vector<6x6x6xf32>
    %263 = arith.mulf %262, %261 : vector<6x6x6xf32>
    %264 = arith.addf %260, %263 : vector<6x6x6xf32>
    %265 = vector.extract_strided_slice %5 {offsets = [0, 0, 0], sizes = [6, 16, 6], strides = [1, 1, 1]} : vector<6x16x16xf32> to vector<6x16x6xf32>
    %cst_71 = arith.constant 0.00102838012 : f32
    %266 = vector.broadcast %cst_71 : f32 to vector<6x16x6xf32>
    %267 = arith.mulf %266, %265 : vector<6x16x6xf32>
    %268 = vector.extract_strided_slice %5 {offsets = [0, 0, 1], sizes = [6, 16, 6], strides = [1, 1, 1]} : vector<6x16x16xf32> to vector<6x16x6xf32>
    %cst_72 = arith.constant 0.00759875821 : f32
    %269 = vector.broadcast %cst_72 : f32 to vector<6x16x6xf32>
    %270 = arith.mulf %269, %268 : vector<6x16x6xf32>
    %271 = arith.addf %267, %270 : vector<6x16x6xf32>
    %272 = vector.extract_strided_slice %5 {offsets = [0, 0, 2], sizes = [6, 16, 6], strides = [1, 1, 1]} : vector<6x16x16xf32> to vector<6x16x6xf32>
    %cst_73 = arith.constant 0.0360007733 : f32
    %273 = vector.broadcast %cst_73 : f32 to vector<6x16x6xf32>
    %274 = arith.mulf %273, %272 : vector<6x16x6xf32>
    %275 = arith.addf %271, %274 : vector<6x16x6xf32>
    %276 = vector.extract_strided_slice %5 {offsets = [0, 0, 3], sizes = [6, 16, 6], strides = [1, 1, 1]} : vector<6x16x16xf32> to vector<6x16x6xf32>
    %cst_74 = arith.constant 0.109360687 : f32
    %277 = vector.broadcast %cst_74 : f32 to vector<6x16x6xf32>
    %278 = arith.mulf %277, %276 : vector<6x16x6xf32>
    %279 = arith.addf %275, %278 : vector<6x16x6xf32>
    %280 = vector.extract_strided_slice %5 {offsets = [0, 0, 4], sizes = [6, 16, 6], strides = [1, 1, 1]} : vector<6x16x16xf32> to vector<6x16x6xf32>
    %cst_75 = arith.constant 0.213005543 : f32
    %281 = vector.broadcast %cst_75 : f32 to vector<6x16x6xf32>
    %282 = arith.mulf %281, %280 : vector<6x16x6xf32>
    %283 = arith.addf %279, %282 : vector<6x16x6xf32>
    %284 = vector.extract_strided_slice %5 {offsets = [0, 0, 5], sizes = [6, 16, 6], strides = [1, 1, 1]} : vector<6x16x16xf32> to vector<6x16x6xf32>
    %cst_76 = arith.constant 0.266011715 : f32
    %285 = vector.broadcast %cst_76 : f32 to vector<6x16x6xf32>
    %286 = arith.mulf %285, %284 : vector<6x16x6xf32>
    %287 = arith.addf %283, %286 : vector<6x16x6xf32>
    %288 = vector.extract_strided_slice %5 {offsets = [0, 0, 6], sizes = [6, 16, 6], strides = [1, 1, 1]} : vector<6x16x16xf32> to vector<6x16x6xf32>
    %cst_77 = arith.constant 0.213005543 : f32
    %289 = vector.broadcast %cst_77 : f32 to vector<6x16x6xf32>
    %290 = arith.mulf %289, %288 : vector<6x16x6xf32>
    %291 = arith.addf %287, %290 : vector<6x16x6xf32>
    %292 = vector.extract_strided_slice %5 {offsets = [0, 0, 7], sizes = [6, 16, 6], strides = [1, 1, 1]} : vector<6x16x16xf32> to vector<6x16x6xf32>
    %cst_78 = arith.constant 0.109360687 : f32
    %293 = vector.broadcast %cst_78 : f32 to vector<6x16x6xf32>
    %294 = arith.mulf %293, %292 : vector<6x16x6xf32>
    %295 = arith.addf %291, %294 : vector<6x16x6xf32>
    %296 = vector.extract_strided_slice %5 {offsets = [0, 0, 8], sizes = [6, 16, 6], strides = [1, 1, 1]} : vector<6x16x16xf32> to vector<6x16x6xf32>
    %cst_79 = arith.constant 0.0360007733 : f32
    %297 = vector.broadcast %cst_79 : f32 to vector<6x16x6xf32>
    %298 = arith.mulf %297, %296 : vector<6x16x6xf32>
    %299 = arith.addf %295, %298 : vector<6x16x6xf32>
    %300 = vector.extract_strided_slice %5 {offsets = [0, 0, 9], sizes = [6, 16, 6], strides = [1, 1, 1]} : vector<6x16x16xf32> to vector<6x16x6xf32>
    %cst_80 = arith.constant 0.00759875821 : f32
    %301 = vector.broadcast %cst_80 : f32 to vector<6x16x6xf32>
    %302 = arith.mulf %301, %300 : vector<6x16x6xf32>
    %303 = arith.addf %299, %302 : vector<6x16x6xf32>
    %304 = vector.extract_strided_slice %5 {offsets = [0, 0, 10], sizes = [6, 16, 6], strides = [1, 1, 1]} : vector<6x16x16xf32> to vector<6x16x6xf32>
    %cst_81 = arith.constant 0.00102838012 : f32
    %305 = vector.broadcast %cst_81 : f32 to vector<6x16x6xf32>
    %306 = arith.mulf %305, %304 : vector<6x16x6xf32>
    %307 = arith.addf %303, %306 : vector<6x16x6xf32>
    %308 = vector.extract_strided_slice %307 {offsets = [0, 0, 0], sizes = [6, 6, 6], strides = [1, 1, 1]} : vector<6x16x6xf32> to vector<6x6x6xf32>
    %cst_82 = arith.constant 0.00102838012 : f32
    %309 = vector.broadcast %cst_82 : f32 to vector<6x6x6xf32>
    %310 = arith.mulf %309, %308 : vector<6x6x6xf32>
    %311 = vector.extract_strided_slice %307 {offsets = [0, 1, 0], sizes = [6, 6, 6], strides = [1, 1, 1]} : vector<6x16x6xf32> to vector<6x6x6xf32>
    %cst_83 = arith.constant 0.00759875821 : f32
    %312 = vector.broadcast %cst_83 : f32 to vector<6x6x6xf32>
    %313 = arith.mulf %312, %311 : vector<6x6x6xf32>
    %314 = arith.addf %310, %313 : vector<6x6x6xf32>
    %315 = vector.extract_strided_slice %307 {offsets = [0, 2, 0], sizes = [6, 6, 6], strides = [1, 1, 1]} : vector<6x16x6xf32> to vector<6x6x6xf32>
    %cst_84 = arith.constant 0.0360007733 : f32
    %316 = vector.broadcast %cst_84 : f32 to vector<6x6x6xf32>
    %317 = arith.mulf %316, %315 : vector<6x6x6xf32>
    %318 = arith.addf %314, %317 : vector<6x6x6xf32>
    %319 = vector.extract_strided_slice %307 {offsets = [0, 3, 0], sizes = [6, 6, 6], strides = [1, 1, 1]} : vector<6x16x6xf32> to vector<6x6x6xf32>
    %cst_85 = arith.constant 0.109360687 : f32
    %320 = vector.broadcast %cst_85 : f32 to vector<6x6x6xf32>
    %321 = arith.mulf %320, %319 : vector<6x6x6xf32>
    %322 = arith.addf %318, %321 : vector<6x6x6xf32>
    %323 = vector.extract_strided_slice %307 {offsets = [0, 4, 0], sizes = [6, 6, 6], strides = [1, 1, 1]} : vector<6x16x6xf32> to vector<6x6x6xf32>
    %cst_86 = arith.constant 0.213005543 : f32
    %324 = vector.broadcast %cst_86 : f32 to vector<6x6x6xf32>
    %325 = arith.mulf %324, %323 : vector<6x6x6xf32>
    %326 = arith.addf %322, %325 : vector<6x6x6xf32>
    %327 = vector.extract_strided_slice %307 {offsets = [0, 5, 0], sizes = [6, 6, 6], strides = [1, 1, 1]} : vector<6x16x6xf32> to vector<6x6x6xf32>
    %cst_87 = arith.constant 0.266011715 : f32
    %328 = vector.broadcast %cst_87 : f32 to vector<6x6x6xf32>
    %329 = arith.mulf %328, %327 : vector<6x6x6xf32>
    %330 = arith.addf %326, %329 : vector<6x6x6xf32>
    %331 = vector.extract_strided_slice %307 {offsets = [0, 6, 0], sizes = [6, 6, 6], strides = [1, 1, 1]} : vector<6x16x6xf32> to vector<6x6x6xf32>
    %cst_88 = arith.constant 0.213005543 : f32
    %332 = vector.broadcast %cst_88 : f32 to vector<6x6x6xf32>
    %333 = arith.mulf %332, %331 : vector<6x6x6xf32>
    %334 = arith.addf %330, %333 : vector<6x6x6xf32>
    %335 = vector.extract_strided_slice %307 {offsets = [0, 7, 0], sizes = [6, 6, 6], strides = [1, 1, 1]} : vector<6x16x6xf32> to vector<6x6x6xf32>
    %cst_89 = arith.constant 0.109360687 : f32
    %336 = vector.broadcast %cst_89 : f32 to vector<6x6x6xf32>
    %337 = arith.mulf %336, %335 : vector<6x6x6xf32>
    %338 = arith.addf %334, %337 : vector<6x6x6xf32>
    %339 = vector.extract_strided_slice %307 {offsets = [0, 8, 0], sizes = [6, 6, 6], strides = [1, 1, 1]} : vector<6x16x6xf32> to vector<6x6x6xf32>
    %cst_90 = arith.constant 0.0360007733 : f32
    %340 = vector.broadcast %cst_90 : f32 to vector<6x6x6xf32>
    %341 = arith.mulf %340, %339 : vector<6x6x6xf32>
    %342 = arith.addf %338, %341 : vector<6x6x6xf32>
    %343 = vector.extract_strided_slice %307 {offsets = [0, 9, 0], sizes = [6, 6, 6], strides = [1, 1, 1]} : vector<6x16x6xf32> to vector<6x6x6xf32>
    %cst_91 = arith.constant 0.00759875821 : f32
    %344 = vector.broadcast %cst_91 : f32 to vector<6x6x6xf32>
    %345 = arith.mulf %344, %343 : vector<6x6x6xf32>
    %346 = arith.addf %342, %345 : vector<6x6x6xf32>
    %347 = vector.extract_strided_slice %307 {offsets = [0, 10, 0], sizes = [6, 6, 6], strides = [1, 1, 1]} : vector<6x16x6xf32> to vector<6x6x6xf32>
    %cst_92 = arith.constant 0.00102838012 : f32
    %348 = vector.broadcast %cst_92 : f32 to vector<6x6x6xf32>
    %349 = arith.mulf %348, %347 : vector<6x6x6xf32>
    %350 = arith.addf %346, %349 : vector<6x6x6xf32>
    %351 = vector.extract_strided_slice %6 {offsets = [0, 0, 0], sizes = [6, 16, 6], strides = [1, 1, 1]} : vector<6x16x16xf32> to vector<6x16x6xf32>
    %cst_93 = arith.constant 0.00102838012 : f32
    %352 = vector.broadcast %cst_93 : f32 to vector<6x16x6xf32>
    %353 = arith.mulf %352, %351 : vector<6x16x6xf32>
    %354 = vector.extract_strided_slice %6 {offsets = [0, 0, 1], sizes = [6, 16, 6], strides = [1, 1, 1]} : vector<6x16x16xf32> to vector<6x16x6xf32>
    %cst_94 = arith.constant 0.00759875821 : f32
    %355 = vector.broadcast %cst_94 : f32 to vector<6x16x6xf32>
    %356 = arith.mulf %355, %354 : vector<6x16x6xf32>
    %357 = arith.addf %353, %356 : vector<6x16x6xf32>
    %358 = vector.extract_strided_slice %6 {offsets = [0, 0, 2], sizes = [6, 16, 6], strides = [1, 1, 1]} : vector<6x16x16xf32> to vector<6x16x6xf32>
    %cst_95 = arith.constant 0.0360007733 : f32
    %359 = vector.broadcast %cst_95 : f32 to vector<6x16x6xf32>
    %360 = arith.mulf %359, %358 : vector<6x16x6xf32>
    %361 = arith.addf %357, %360 : vector<6x16x6xf32>
    %362 = vector.extract_strided_slice %6 {offsets = [0, 0, 3], sizes = [6, 16, 6], strides = [1, 1, 1]} : vector<6x16x16xf32> to vector<6x16x6xf32>
    %cst_96 = arith.constant 0.109360687 : f32
    %363 = vector.broadcast %cst_96 : f32 to vector<6x16x6xf32>
    %364 = arith.mulf %363, %362 : vector<6x16x6xf32>
    %365 = arith.addf %361, %364 : vector<6x16x6xf32>
    %366 = vector.extract_strided_slice %6 {offsets = [0, 0, 4], sizes = [6, 16, 6], strides = [1, 1, 1]} : vector<6x16x16xf32> to vector<6x16x6xf32>
    %cst_97 = arith.constant 0.213005543 : f32
    %367 = vector.broadcast %cst_97 : f32 to vector<6x16x6xf32>
    %368 = arith.mulf %367, %366 : vector<6x16x6xf32>
    %369 = arith.addf %365, %368 : vector<6x16x6xf32>
    %370 = vector.extract_strided_slice %6 {offsets = [0, 0, 5], sizes = [6, 16, 6], strides = [1, 1, 1]} : vector<6x16x16xf32> to vector<6x16x6xf32>
    %cst_98 = arith.constant 0.266011715 : f32
    %371 = vector.broadcast %cst_98 : f32 to vector<6x16x6xf32>
    %372 = arith.mulf %371, %370 : vector<6x16x6xf32>
    %373 = arith.addf %369, %372 : vector<6x16x6xf32>
    %374 = vector.extract_strided_slice %6 {offsets = [0, 0, 6], sizes = [6, 16, 6], strides = [1, 1, 1]} : vector<6x16x16xf32> to vector<6x16x6xf32>
    %cst_99 = arith.constant 0.213005543 : f32
    %375 = vector.broadcast %cst_99 : f32 to vector<6x16x6xf32>
    %376 = arith.mulf %375, %374 : vector<6x16x6xf32>
    %377 = arith.addf %373, %376 : vector<6x16x6xf32>
    %378 = vector.extract_strided_slice %6 {offsets = [0, 0, 7], sizes = [6, 16, 6], strides = [1, 1, 1]} : vector<6x16x16xf32> to vector<6x16x6xf32>
    %cst_100 = arith.constant 0.109360687 : f32
    %379 = vector.broadcast %cst_100 : f32 to vector<6x16x6xf32>
    %380 = arith.mulf %379, %378 : vector<6x16x6xf32>
    %381 = arith.addf %377, %380 : vector<6x16x6xf32>
    %382 = vector.extract_strided_slice %6 {offsets = [0, 0, 8], sizes = [6, 16, 6], strides = [1, 1, 1]} : vector<6x16x16xf32> to vector<6x16x6xf32>
    %cst_101 = arith.constant 0.0360007733 : f32
    %383 = vector.broadcast %cst_101 : f32 to vector<6x16x6xf32>
    %384 = arith.mulf %383, %382 : vector<6x16x6xf32>
    %385 = arith.addf %381, %384 : vector<6x16x6xf32>
    %386 = vector.extract_strided_slice %6 {offsets = [0, 0, 9], sizes = [6, 16, 6], strides = [1, 1, 1]} : vector<6x16x16xf32> to vector<6x16x6xf32>
    %cst_102 = arith.constant 0.00759875821 : f32
    %387 = vector.broadcast %cst_102 : f32 to vector<6x16x6xf32>
    %388 = arith.mulf %387, %386 : vector<6x16x6xf32>
    %389 = arith.addf %385, %388 : vector<6x16x6xf32>
    %390 = vector.extract_strided_slice %6 {offsets = [0, 0, 10], sizes = [6, 16, 6], strides = [1, 1, 1]} : vector<6x16x16xf32> to vector<6x16x6xf32>
    %cst_103 = arith.constant 0.00102838012 : f32
    %391 = vector.broadcast %cst_103 : f32 to vector<6x16x6xf32>
    %392 = arith.mulf %391, %390 : vector<6x16x6xf32>
    %393 = arith.addf %389, %392 : vector<6x16x6xf32>
    %394 = vector.extract_strided_slice %393 {offsets = [0, 0, 0], sizes = [6, 6, 6], strides = [1, 1, 1]} : vector<6x16x6xf32> to vector<6x6x6xf32>
    %cst_104 = arith.constant 0.00102838012 : f32
    %395 = vector.broadcast %cst_104 : f32 to vector<6x6x6xf32>
    %396 = arith.mulf %395, %394 : vector<6x6x6xf32>
    %397 = vector.extract_strided_slice %393 {offsets = [0, 1, 0], sizes = [6, 6, 6], strides = [1, 1, 1]} : vector<6x16x6xf32> to vector<6x6x6xf32>
    %cst_105 = arith.constant 0.00759875821 : f32
    %398 = vector.broadcast %cst_105 : f32 to vector<6x6x6xf32>
    %399 = arith.mulf %398, %397 : vector<6x6x6xf32>
    %400 = arith.addf %396, %399 : vector<6x6x6xf32>
    %401 = vector.extract_strided_slice %393 {offsets = [0, 2, 0], sizes = [6, 6, 6], strides = [1, 1, 1]} : vector<6x16x6xf32> to vector<6x6x6xf32>
    %cst_106 = arith.constant 0.0360007733 : f32
    %402 = vector.broadcast %cst_106 : f32 to vector<6x6x6xf32>
    %403 = arith.mulf %402, %401 : vector<6x6x6xf32>
    %404 = arith.addf %400, %403 : vector<6x6x6xf32>
    %405 = vector.extract_strided_slice %393 {offsets = [0, 3, 0], sizes = [6, 6, 6], strides = [1, 1, 1]} : vector<6x16x6xf32> to vector<6x6x6xf32>
    %cst_107 = arith.constant 0.109360687 : f32
    %406 = vector.broadcast %cst_107 : f32 to vector<6x6x6xf32>
    %407 = arith.mulf %406, %405 : vector<6x6x6xf32>
    %408 = arith.addf %404, %407 : vector<6x6x6xf32>
    %409 = vector.extract_strided_slice %393 {offsets = [0, 4, 0], sizes = [6, 6, 6], strides = [1, 1, 1]} : vector<6x16x6xf32> to vector<6x6x6xf32>
    %cst_108 = arith.constant 0.213005543 : f32
    %410 = vector.broadcast %cst_108 : f32 to vector<6x6x6xf32>
    %411 = arith.mulf %410, %409 : vector<6x6x6xf32>
    %412 = arith.addf %408, %411 : vector<6x6x6xf32>
    %413 = vector.extract_strided_slice %393 {offsets = [0, 5, 0], sizes = [6, 6, 6], strides = [1, 1, 1]} : vector<6x16x6xf32> to vector<6x6x6xf32>
    %cst_109 = arith.constant 0.266011715 : f32
    %414 = vector.broadcast %cst_109 : f32 to vector<6x6x6xf32>
    %415 = arith.mulf %414, %413 : vector<6x6x6xf32>
    %416 = arith.addf %412, %415 : vector<6x6x6xf32>
    %417 = vector.extract_strided_slice %393 {offsets = [0, 6, 0], sizes = [6, 6, 6], strides = [1, 1, 1]} : vector<6x16x6xf32> to vector<6x6x6xf32>
    %cst_110 = arith.constant 0.213005543 : f32
    %418 = vector.broadcast %cst_110 : f32 to vector<6x6x6xf32>
    %419 = arith.mulf %418, %417 : vector<6x6x6xf32>
    %420 = arith.addf %416, %419 : vector<6x6x6xf32>
    %421 = vector.extract_strided_slice %393 {offsets = [0, 7, 0], sizes = [6, 6, 6], strides = [1, 1, 1]} : vector<6x16x6xf32> to vector<6x6x6xf32>
    %cst_111 = arith.constant 0.109360687 : f32
    %422 = vector.broadcast %cst_111 : f32 to vector<6x6x6xf32>
    %423 = arith.mulf %422, %421 : vector<6x6x6xf32>
    %424 = arith.addf %420, %423 : vector<6x6x6xf32>
    %425 = vector.extract_strided_slice %393 {offsets = [0, 8, 0], sizes = [6, 6, 6], strides = [1, 1, 1]} : vector<6x16x6xf32> to vector<6x6x6xf32>
    %cst_112 = arith.constant 0.0360007733 : f32
    %426 = vector.broadcast %cst_112 : f32 to vector<6x6x6xf32>
    %427 = arith.mulf %426, %425 : vector<6x6x6xf32>
    %428 = arith.addf %424, %427 : vector<6x6x6xf32>
    %429 = vector.extract_strided_slice %393 {offsets = [0, 9, 0], sizes = [6, 6, 6], strides = [1, 1, 1]} : vector<6x16x6xf32> to vector<6x6x6xf32>
    %cst_113 = arith.constant 0.00759875821 : f32
    %430 = vector.broadcast %cst_113 : f32 to vector<6x6x6xf32>
    %431 = arith.mulf %430, %429 : vector<6x6x6xf32>
    %432 = arith.addf %428, %431 : vector<6x6x6xf32>
    %433 = vector.extract_strided_slice %393 {offsets = [0, 10, 0], sizes = [6, 6, 6], strides = [1, 1, 1]} : vector<6x16x6xf32> to vector<6x6x6xf32>
    %cst_114 = arith.constant 0.00102838012 : f32
    %434 = vector.broadcast %cst_114 : f32 to vector<6x6x6xf32>
    %435 = arith.mulf %434, %433 : vector<6x6x6xf32>
    %436 = arith.addf %432, %435 : vector<6x6x6xf32>
    %437 = arith.mulf %92, %92 : vector<6x6x6xf32>
    %438 = arith.mulf %178, %178 : vector<6x6x6xf32>
    %439 = arith.mulf %92, %178 : vector<6x6x6xf32>
    %440 = arith.subf %264, %437 : vector<6x6x6xf32>
    %441 = arith.subf %350, %438 : vector<6x6x6xf32>
    %442 = arith.subf %436, %439 : vector<6x6x6xf32>
    %cst_115 = arith.constant 2.000000e+00 : f32
    %443 = vector.broadcast %cst_115 : f32 to vector<6x6x6xf32>
    %444 = arith.mulf %443, %442 : vector<6x6x6xf32>
    %445 = vector.broadcast %1 : f32 to vector<6x6x6xf32>
    %446 = arith.addf %444, %445 : vector<6x6x6xf32>
    %447 = arith.addf %440, %441 : vector<6x6x6xf32>
    %448 = vector.broadcast %1 : f32 to vector<6x6x6xf32>
    %449 = arith.addf %447, %448 : vector<6x6x6xf32>
    %cst_116 = arith.constant 2.000000e+00 : f32
    %450 = vector.broadcast %cst_116 : f32 to vector<6x6x6xf32>
    %451 = arith.mulf %450, %439 : vector<6x6x6xf32>
    %452 = vector.broadcast %0 : f32 to vector<6x6x6xf32>
    %453 = arith.addf %451, %452 : vector<6x6x6xf32>
    %454 = arith.mulf %453, %446 : vector<6x6x6xf32>
    %455 = arith.addf %437, %438 : vector<6x6x6xf32>
    %456 = vector.broadcast %0 : f32 to vector<6x6x6xf32>
    %457 = arith.addf %455, %456 : vector<6x6x6xf32>
    %458 = arith.mulf %457, %449 : vector<6x6x6xf32>
    %459 = tpu.reciprocal %458 : vector<6x6x6xf32> -> vector<6x6x6xf32>
    %460 = arith.mulf %454, %459 : vector<6x6x6xf32>
    %cst_117 = arith.constant dense<0.000000e+00> : vector<6x6xf32>
    %461 = vector.multi_reduction <add>, %460, %cst_117 [2] : vector<6x6x6xf32> to vector<6x6xf32>
    %462 = vector.shape_cast %461 : vector<6x6xf32> to vector<6x6x1xf32>
    %cst_118 = arith.constant dense<0.000000e+00> : vector<6x1xf32>
    %463 = vector.multi_reduction <add>, %462, %cst_118 [1] : vector<6x6x1xf32> to vector<6x1xf32>
    %464 = vector.shape_cast %463 : vector<6x1xf32> to vector<6x1x1xf32>
    %465 = vector.shape_cast %464 : vector<6x1x1xf32> to vector<1x6x1x1xf32>
    %cst_119 = arith.constant dense<0.000000e+00> : vector<1xf32>
    %466 = vector.multi_reduction <add>, %465, %cst_119 [1, 2, 3] : vector<1x6x1x1xf32> to vector<1xf32>
    %467 = vector.shape_cast %466 : vector<1xf32> to vector<1x1x1x1xf32>
    %468 = vector.extract %467[0, 0, 0, 0] : f32 from vector<1x1x1x1xf32>
    %469 = vector.broadcast %468 : f32 to vector<1x1x1xf32>
    %c0_120 = arith.constant 0 : index
    %c0_121 = arith.constant 0 : index
    %c0_122 = arith.constant 0 : index
    %470 = vector.load %arg4[%c0_120, %c0_121, %c0_122] : memref<1x1x1xf32, #tpu.memory_space<vmem>>, vector<1x1x1xf32>
    tpu.vector_store %arg4[%c0_120, %c0_121, %c0_122], %469 {strides = array<i32>} : memref<1x1x1xf32, #tpu.memory_space<vmem>>, vector<1x1x1xf32>,
    return
  }
  func.func @transform_0(%arg0: i32) -> i32 {
    %c0_i32 = arith.constant 0 : i32
    %c0_i32_0 = arith.constant 0 : i32
    return %c0_i32 : i32
  }
  func.func @transform_1(%arg0: i32) -> (i32, i32, i32) {
    %c0_i32 = arith.constant 0 : i32
    %c0_i32_0 = arith.constant 0 : i32
    %c0_i32_1 = arith.constant 0 : i32
    return %arg0, %c0_i32, %c0_i32_0 : i32, i32, i32
  }
  func.func @transform_2(%arg0: i32) -> (i32, i32, i32) {
    %c0_i32 = arith.constant 0 : i32
    %c0_i32_0 = arith.constant 0 : i32
    %c0_i32_1 = arith.constant 0 : i32
    return %arg0, %c0_i32, %c0_i32_0 : i32, i32, i32
  }
  func.func @transform_3(%arg0: i32) -> (i32, i32, i32) {
    %c0_i32 = arith.constant 0 : i32
    %c0_i32_0 = arith.constant 0 : i32
    %c0_i32_1 = arith.constant 0 : i32
    return %arg0, %c0_i32, %c0_i32_0 : i32, i32, i32
  }
}

</mosaic_0001>

<bundles_post_ra>
// kernel: ssim_loss.1
= control target key start
LH: loop header
LB: loop body
LE: loop exit
PB: predicated region body
PF: predicated region fallthrough
CT: control target
= control target key end

     0   :  { %8 = vsyncpa [#allocation5], 0  ;;  %s11442_s0 = inlined_call_operand.vmem [shape: f32[2], index: 0, kind: input, shape index: {}]   ;;  %s11443_s1 = inlined_call_operand.vmem [shape: f32[6,16,16], index: 1, kind: input, shape index: {}]   ;;  %s11444_s2 = inlined_call_operand.hbm [shape: f32[6,16,16], index: 2, kind: input, shape index: {}]   ;;  %s11445_s3 = inlined_call_operand.hbm [shape: f32[1,1,1], index: 3, kind: output, shape index: {}]  }
   0x1   :  { %9 = vsyncpa [#allocation3], 0 }
   0x2   :  { %10 = vsyncpa [#allocation4], 0  ;;  %s16_s14 = sshll.u32 %s11442_s0, 4  ;;  %s26_s17 = sshll.u32 %s11444_s2, 4  ;;  %s17_s14 = int_to_ptr.vmem [resolvable:$true] %s16_s14  ;;  %s27_s17 = int_to_ptr.hbm [resolvable:$true] %s26_s17 }
   0x3   :  { %s5462_s18 = smov [#allocation2]   ;;  %s5463_s19 = smov [#allocation6]  }
   0x4   :  { %19 = dma.vmem_to_smem %s17_s14, 16, %s5462_s18, [#allocation5]  }
   0x5   :  { %s28_s20 = sshll.u32 %s5463_s19, 4  ;;  %s5464_s21 = smov 128   ;;  %s29_s20 = int_to_ptr.vmem [resolvable:$true] %s28_s20 }
   0x6   :  { %s5465_s22 = smov 8  }
   0x7   :  { %34 = dma.hbm_to_vmem [thread:$0]  %s27_s17, 1536, %s29_s20, [#allocation3], %s5464_s21, %s5464_s21, %s5465_s22  }
   0x8   :  { %5456 = dma.done.wait [#allocation5], 16  }
   0x9   :  { %5457 = vsyncadd [#allocation5], 4294967280 }
   0xa   :  { %5458 = dma.done.wait [#allocation3], 1536  }
   0xb   :  { %5459 = vsyncadd [#allocation3], 4294965760 }
   0xc   :  { %43 = sfence }
   0xd   :  { %v5506_v0 = vld [vmem:[%s11443_s1 + $0x20] sm:$0xff]  ;;  %v5511_v1 = vld [vmem:[%s11443_s1 + $0x10] sm:$0xff]  ;;  %s5466_s27 = smov 127   ;;  %v5536_v6 = vld [vmem:[%s11443_s1 + $0x28] sm:$0xff]  ;;  %s5467_s19 = smov 126   ;;  %vm820_vm0 = vcmask 1044480  }
   0xe   :  { %11669 = vst [vmem:[#allocation11_spill] sm:$0xff] %v5511_v1  ;;  %v5516_v2 = vld [vmem:[%s11443_s1] sm:$0xff]  ;;  %v5519_v3 = vmul.f32 0.007598758, %v5506_v0  ;;  %v5522_v4 = vmul.f32 0.007598758, %v5511_v1 }
   0xf   :  { %v5525_v5 = vmul.f32 0.007598758, %v5516_v2  ;;  %v5541_v7 = vld [vmem:[%s11443_s1 + $0x18] sm:$0xff]  ;;  %v5546_v8 = vld [vmem:[%s11443_s1 + $0x8] sm:$0xff]  ;;  %v5549_v9 = vmul.f32 0.007598758, %v5536_v6 }
  0x10   :  { %150 = vrot.lane.b32.xlu2 %v5519_v3, %s5466_s27  ;;  %146 = vrot.lane.b32.xlu1 %v5522_v4, %s5466_s27  ;;  %11670 = vst [vmem:[#allocation12_spill] sm:$0xff] %v5546_v8  ;;  %v5552_v10 = vmul.f32 0.007598758, %v5541_v7  ;;  %v5555_v11 = vmul.f32 0.007598758, %v5546_v8  ;;  %v5566_v12 = vld [vmem:[%s11443_s1 + $0x40] sm:$0xff] }
  0x11   :  { %142 = vrot.lane.b32.xlu0 %v5525_v5, %s5466_s27  ;;  %v5571_v13 = vld [vmem:[%s11443_s1 + $0x38] sm:$0xff]  ;;  %v5576_v14 = vld [vmem:[%s11443_s1 + $0x30] sm:$0xff]  ;;  %v5579_v15 = vmul.f32 0.007598758, %v5566_v12  ;;  %v5606_v20 = vld [vmem:[%s11443_s1 + $0x48] sm:$0xff]  ;;  %s5468_s20 = smov 125  }
  0x12   :  { %v5582_v16 = vmul.f32 0.007598758, %v5571_v13  ;;  %v5585_v17 = vmul.f32 0.007598758, %v5576_v14  ;;  %v5596_v18 = vld [vmem:[%s11443_s1 + $0x58] sm:$0xff]  ;;  %v5601_v19 = vld [vmem:[%s11443_s1 + $0x50] sm:$0xff] }
  0x13   :  { %v5609_v21 = vmul.f32 0.007598758, %v5596_v18  ;;  %v5612_v22 = vmul.f32 0.007598758, %v5601_v19  ;;  %v5615_v23 = vmul.f32 0.007598758, %v5606_v20 }
  0x14   :  { %v5624_v24 = vmul.f32 0.036000773, %v5511_v1  ;;  %v5627_v25 = vmul.f32 0.036000773, %v5546_v8  ;;  %v5630_v26 = vmul.f32 0.036000773, %v5516_v2 }
  0x15   :  { %11671 = vst [vmem:[#allocation13_spill] sm:$0xff] %v5609_v21  ;;  %v5639_v27 = vmul.f32 0.036000773, %v5536_v6  ;;  %v5642_v28 = vmul.f32 0.036000773, %v5506_v0  ;;  %s5469_s21 = smov 124  }
  0x16   :  { %11672 = vst [vmem:[#allocation14_spill] sm:$0xff] %v5612_v22  ;;  %v5645_v29 = vmul.f32 0.036000773, %v5541_v7  ;;  %v5654_v30 = vmul.f32 0.036000773, %v5566_v12  ;;  %s5470_s22 = smov 123  }
  0x17   :  { %11673 = vst [vmem:[#allocation15_spill] sm:$0xff] %v5615_v23  ;;  %v5657_v31 = vmul.f32 0.036000773, %v5571_v13  ;;  %v5660_v32 = vmul.f32 0.036000773, %v5576_v14  ;;  %s5471_s0 = smov 122  }
  0x18   :  { %152 = vrot.lane.b32.xlu2 %v5549_v9, %s5466_s27  ;;  %148 = vrot.lane.b32.xlu1 %v5552_v10, %s5466_s27  ;;  %v5669_v33 = vmul.f32 0.036000773, %v5596_v18  ;;  %v5672_v34 = vmul.f32 0.036000773, %v5601_v19  ;;  %v5675_v35 = vmul.f32 0.036000773, %v5606_v20 }
  0x19   :  { %144 = vrot.lane.b32.xlu0 %v5555_v11, %s5466_s27  ;;  %v5684_v36 = vmul.f32 0.10936069, %v5511_v1  ;;  %v5687_v37 = vmul.f32 0.10936069, %v5546_v8  ;;  %v5690_v38 = vmul.f32 0.10936069, %v5516_v2 }
  0x1a   :  { %v5699_v39 = vmul.f32 0.10936069, %v5536_v6  ;;  %v5702_v40 = vmul.f32 0.10936069, %v5506_v0  ;;  %v5705_v41 = vmul.f32 0.10936069, %v5541_v7 }
  0x1b   :  { %v5714_v42 = vmul.f32 0.10936069, %v5566_v12  ;;  %v5717_v43 = vmul.f32 0.10936069, %v5571_v13  ;;  %v5720_v44 = vmul.f32 0.10936069, %v5576_v14 }
  0x1c   :  { %v5729_v45 = vmul.f32 0.10936069, %v5596_v18  ;;  %v5732_v46 = vmul.f32 0.10936069, %v5601_v19  ;;  %v5735_v47 = vmul.f32 0.10936069, %v5606_v20 }
  0x1d   :  { %v5746_v49 = vmul.f32 0.21300554, %v5511_v1  ;;  %v5749_v50 = vmul.f32 0.21300554, %v5546_v8  ;;  %v5752_v51 = vmul.f32 0.21300554, %v5516_v2 }
  0x1e   :  { %v5763_v53 = vmul.f32 0.21300554, %v5536_v6  ;;  %v5766_v54 = vmul.f32 0.21300554, %v5506_v0  ;;  %v5769_v55 = vmul.f32 0.21300554, %v5541_v7 }
  0x1f   :  { %v5780_v57 = vmul.f32 0.21300554, %v5566_v12  ;;  %v5783_v58 = vmul.f32 0.21300554, %v5571_v13  ;;  %v5786_v59 = vmul.f32 0.21300554, %v5576_v14 }
  0x20   :  { %158 = vrot.lane.b32.xlu2 %v5579_v15, %s5466_s27  ;;  %156 = vrot.lane.b32.xlu1 %v5582_v16, %s5466_s27  ;;  %v5801_v63 = vmul.f32 0.21300554, %v5596_v18  ;;  %s5472_s23 = smov 121   ;;  %s5473_s2 = smov 120   ;;  %vm875_vm1 = vcmask 1043456   ;;  %vm930_vm2 = vcmask 1042432  }
  0x21   :  { %154 = vrot.lane.b32.xlu0 %v5585_v17, %s5466_s27  ;;  %s5474_s24 = smov 119   ;;  %s5475_s25 = smov 118   ;;  %vm961_vm3 = vcmask 1041408   ;;  %vm992_vm4 = vcmask 1040384  }
  0x28   :  { %164 = vrot.lane.b32.xlu2 %v5609_v21, %s5466_s27  ;;  %162 = vrot.lane.b32.xlu1 %v5612_v22, %s5466_s27  ;;  %v406_v22 = vmul.f32 0.26601171, %v5516_v2 }
  0x29   :  { %160 = vrot.lane.b32.xlu0 %v5615_v23, %s5466_s27  ;;  %v407_v23 = vmul.f32 0.26601171, %v5546_v8  ;;  %v409_v8 = vmul.f32 0.26601171, %v5541_v7 }
  0x30   :  { %218 = vrot.lane.b32.xlu2 %v5624_v24, %s5467_s19  ;;  %216 = vrot.lane.b32.xlu1 %v5627_v25, %s5467_s19 }
  0x31   :  { %214 = vrot.lane.b32.xlu0 %v5630_v26, %s5467_s19 }
  0x38   :  { %224 = vrot.lane.b32.xlu2 %v5639_v27, %s5467_s19  ;;  %222 = vrot.lane.b32.xlu1 %v5642_v28, %s5467_s19 }
  0x39   :  { %220 = vrot.lane.b32.xlu0 %v5645_v29, %s5467_s19 }
  0x40   :  { %230 = vrot.lane.b32.xlu2 %v5654_v30, %s5467_s19  ;;  %228 = vrot.lane.b32.xlu1 %v5657_v31, %s5467_s19 }
  0x41   :  { %226 = vrot.lane.b32.xlu0 %v5660_v32, %s5467_s19 }
  0x48   :  { %236 = vrot.lane.b32.xlu2 %v5669_v33, %s5467_s19  ;;  %234 = vrot.lane.b32.xlu1 %v5672_v34, %s5467_s19 }
  0x49   :  { %232 = vrot.lane.b32.xlu0 %v5675_v35, %s5467_s19 }
  0x50   :  { %290 = vrot.lane.b32.xlu2 %v5684_v36, %s5468_s20  ;;  %288 = vrot.lane.b32.xlu1 %v5687_v37, %s5468_s20 }
  0x51   :  { %286 = vrot.lane.b32.xlu0 %v5690_v38, %s5468_s20 }
  0x58   :  { %296 = vrot.lane.b32.xlu2 %v5699_v39, %s5468_s20  ;;  %294 = vrot.lane.b32.xlu1 %v5702_v40, %s5468_s20 }
  0x59   :  { %292 = vrot.lane.b32.xlu0 %v5705_v41, %s5468_s20 }
  0x60   :  { %302 = vrot.lane.b32.xlu2 %v5714_v42, %s5468_s20  ;;  %300 = vrot.lane.b32.xlu1 %v5717_v43, %s5468_s20 }
  0x61   :  { %298 = vrot.lane.b32.xlu0 %v5720_v44, %s5468_s20 }
  0x68   :  { %308 = vrot.lane.b32.xlu2 %v5729_v45, %s5468_s20  ;;  %306 = vrot.lane.b32.xlu1 %v5732_v46, %s5468_s20 }
  0x69   :  { %304 = vrot.lane.b32.xlu0 %v5735_v47, %s5468_s20 }
  0x6a   :  { %v5743_v48 = vpop.permute.xlu2 %150 }
  0x6b   :  { %11674 = vst [vmem:[#allocation16_spill] sm:$0xff] %v5743_v48 }
  0x70   :  { %362 = vrot.lane.b32.xlu2 %v5746_v49, %s5469_s21  ;;  %360 = vrot.lane.b32.xlu1 %v5749_v50, %s5469_s21 }
  0x71   :  { %358 = vrot.lane.b32.xlu0 %v5752_v51, %s5469_s21 }
  0x72   :  { %v5760_v52 = vpop.permute.xlu2 %152 }
  0x73   :  { %11675 = vst [vmem:[#allocation17_spill] sm:$0xff] %v5760_v52  ;;  %v5807_v52 = vmul.f32 0.21300554, %v5606_v20 }
  0x78   :  { %368 = vrot.lane.b32.xlu2 %v5763_v53, %s5469_s21  ;;  %366 = vrot.lane.b32.xlu1 %v5766_v54, %s5469_s21 }
  0x79   :  { %364 = vrot.lane.b32.xlu0 %v5769_v55, %s5469_s21 }
  0x7a   :  { %v5777_v56 = vpop.permute.xlu2 %158 }
  0x7b   :  { %11676 = vst [vmem:[#allocation18_spill] sm:$0xff] %v5777_v56  ;;  %v5804_v56 = vmul.f32 0.21300554, %v5601_v19 }
  0x80   :  { %374 = vrot.lane.b32.xlu2 %v5780_v57, %s5469_s21  ;;  %372 = vrot.lane.b32.xlu1 %v5783_v58, %s5469_s21 }
  0x81   :  { %370 = vrot.lane.b32.xlu0 %v5786_v59, %s5469_s21 }
  0x82   :  { %v5794_v60 = vpop.permute.xlu2 %164  ;;  %v5796_v61 = vpop.permute.xlu1 %146 }
  0x83   :  { %11677 = vst [vmem:[#allocation19_spill] sm:$0xff] %v5794_v60  ;;  %v5798_v62 = vpop.permute.xlu0 %142 }
  0x84   :  { %11678 = vst [vmem:[#allocation20_spill] sm:$0xff] %v5796_v61  ;;  %v408_v61 = vmul.f32 0.26601171, %v5511_v1  ;;  %v410_v1 = vmul.f32 0.26601171, %v5506_v0 }
  0x85   :  { %11679 = vst [vmem:[#allocation21_spill] sm:$0xff] %v5798_v62 }
  0x88   :  { %380 = vrot.lane.b32.xlu2 %v5801_v63, %s5469_s21  ;;  %378 = vrot.lane.b32.xlu1 %v5804_v56, %s5469_s21 }
  0x89   :  { %376 = vrot.lane.b32.xlu0 %v5807_v52, %s5469_s21 }
  0x8a   :  { %v5815_v60 = vpop.permute.xlu2 %218  ;;  %v5817_v62 = vpop.permute.xlu1 %148 }
  0x8b   :  { %11680 = vst [vmem:[#allocation22_spill] sm:$0xff] %v5815_v60  ;;  %v5819_v48 = vpop.permute.xlu0 %144 }
  0x8c   :  { %11681 = vst [vmem:[#allocation23_spill] sm:$0xff] %v5817_v62 }
  0x8d   :  { %11682 = vst [vmem:[#allocation24_spill] sm:$0xff] %v5819_v48  ;;  %v411_v48 = vmul.f32 0.26601171, %v5536_v6 }
  0x90   :  { %434 = vrot.lane.b32.xlu2 %v408_v61, %s5470_s22  ;;  %432 = vrot.lane.b32.xlu1 %v407_v23, %s5470_s22 }
  0x91   :  { %430 = vrot.lane.b32.xlu0 %v406_v22, %s5470_s22 }
  0x92   :  { %v5827_v21 = vpop.permute.xlu2 %224  ;;  %v5829_v60 = vpop.permute.xlu1 %156 }
  0x93   :  { %11683 = vst [vmem:[#allocation25_spill] sm:$0xff] %v5827_v21  ;;  %v5831_v62 = vpop.permute.xlu0 %154  ;;  %v412_v21 = vmul.f32 0.26601171, %v5576_v14 }
  0x94   :  { %11684 = vst [vmem:[#allocation26_spill] sm:$0xff] %v5829_v60  ;;  %v413_v60 = vmul.f32 0.26601171, %v5571_v13 }
  0x95   :  { %11685 = vst [vmem:[#allocation27_spill] sm:$0xff] %v5831_v62  ;;  %v414_v62 = vmul.f32 0.26601171, %v5566_v12 }
  0x98   :  { %440 = vrot.lane.b32.xlu2 %v411_v48, %s5470_s22  ;;  %438 = vrot.lane.b32.xlu1 %v410_v1, %s5470_s22 }
  0x99   :  { %436 = vrot.lane.b32.xlu0 %v409_v8, %s5470_s22 }
  0x9a   :  { %v5839_v23 = vpop.permute.xlu2 %230  ;;  %v5841_v22 = vpop.permute.xlu1 %162 }
  0x9b   :  { %11686 = vst [vmem:[#allocation28_spill] sm:$0xff] %v5839_v23  ;;  %v5843_v61 = vpop.permute.xlu0 %160  ;;  %v415_v23 = vmul.f32 0.26601171, %v5606_v20 }
  0x9c   :  { %11687 = vst [vmem:[#allocation29_spill] sm:$0xff] %v5841_v22  ;;  %v416_v22 = vmul.f32 0.26601171, %v5601_v19 }
  0x9d   :  { %11688 = vst [vmem:[#allocation30_spill] sm:$0xff] %v5843_v61  ;;  %v417_v61 = vmul.f32 0.26601171, %v5596_v18 }
  0xa0   :  { %446 = vrot.lane.b32.xlu2 %v414_v62, %s5470_s22  ;;  %444 = vrot.lane.b32.xlu1 %v413_v60, %s5470_s22 }
  0xa1   :  { %442 = vrot.lane.b32.xlu0 %v412_v21, %s5470_s22 }
  0xa2   :  { %v5851_v1 = vpop.permute.xlu2 %236  ;;  %v5853_v8 = vpop.permute.xlu1 %216 }
  0xa3   :  { %11689 = vst [vmem:[#allocation31_spill] sm:$0xff] %v5851_v1  ;;  %v5855_v48 = vpop.permute.xlu0 %214 }
  0xa4   :  { %11690 = vst [vmem:[#allocation32_spill] sm:$0xff] %v5853_v8 }
  0xa5   :  { %11691 = vst [vmem:[#allocation33_spill] sm:$0xff] %v5855_v48 }
  0xa8   :  { %452 = vrot.lane.b32.xlu2 %v417_v61, %s5470_s22  ;;  %450 = vrot.lane.b32.xlu1 %v416_v22, %s5470_s22 }
  0xa9   :  { %448 = vrot.lane.b32.xlu0 %v415_v23, %s5470_s22 }
  0xaa   :  { %v5863_v60 = vpop.permute.xlu2 %290  ;;  %v5865_v21 = vpop.permute.xlu1 %222 }
  0xab   :  { %11692 = vst [vmem:[#allocation34_spill] sm:$0xff] %v5863_v60  ;;  %v5867_v62 = vpop.permute.xlu0 %220 }
  0xac   :  { %11693 = vst [vmem:[#allocation35_spill] sm:$0xff] %v5865_v21 }
  0xad   :  { %11694 = vst [vmem:[#allocation36_spill] sm:$0xff] %v5867_v62 }
  0xb0   :  { %482 = vrot.lane.b32.xlu2 %v5746_v49, %s5471_s0  ;;  %480 = vrot.lane.b32.xlu1 %v5749_v50, %s5471_s0 }
  0xb1   :  { %478 = vrot.lane.b32.xlu0 %v5752_v51, %s5471_s0 }
  0xb2   :  { %v5875_v61 = vpop.permute.xlu2 %296  ;;  %v5877_v22 = vpop.permute.xlu1 %228 }
  0xb3   :  { %11695 = vst [vmem:[#allocation37_spill] sm:$0xff] %v5875_v61  ;;  %v5879_v23 = vpop.permute.xlu0 %226 }
  0xb4   :  { %11696 = vst [vmem:[#allocation38_spill] sm:$0xff] %v5877_v22 }
  0xb5   :  { %11697 = vst [vmem:[#allocation39_spill] sm:$0xff] %v5879_v23 }
  0xb8   :  { %488 = vrot.lane.b32.xlu2 %v5763_v53, %s5471_s0  ;;  %486 = vrot.lane.b32.xlu1 %v5766_v54, %s5471_s0 }
  0xb9   :  { %484 = vrot.lane.b32.xlu0 %v5769_v55, %s5471_s0 }
  0xba   :  { %v5887_v49 = vpop.permute.xlu2 %302  ;;  %v5889_v50 = vpop.permute.xlu1 %234 }
  0xbb   :  { %11698 = vst [vmem:[#allocation40_spill] sm:$0xff] %v5887_v49  ;;  %v5891_v51 = vpop.permute.xlu0 %232 }
  0xbc   :  { %11699 = vst [vmem:[#allocation41_spill] sm:$0xff] %v5889_v50 }
  0xbd   :  { %11700 = vst [vmem:[#allocation42_spill] sm:$0xff] %v5891_v51 }
  0xc0   :  { %494 = vrot.lane.b32.xlu2 %v5780_v57, %s5471_s0  ;;  %492 = vrot.lane.b32.xlu1 %v5783_v58, %s5471_s0 }
  0xc1   :  { %490 = vrot.lane.b32.xlu0 %v5786_v59, %s5471_s0 }
  0xc2   :  { %v5899_v53 = vpop.permute.xlu2 %308  ;;  %v5901_v54 = vpop.permute.xlu1 %288 }
  0xc3   :  { %11701 = vst [vmem:[#allocation43_spill] sm:$0xff] %v5899_v53  ;;  %v5903_v55 = vpop.permute.xlu0 %286 }
  0xc4   :  { %11702 = vst [vmem:[#allocation44_spill] sm:$0xff] %v5901_v54 }
  0xc5   :  { %11703 = vst [vmem:[#allocation45_spill] sm:$0xff] %v5903_v55 }
  0xc8   :  { %500 = vrot.lane.b32.xlu2 %v5801_v63, %s5471_s0  ;;  %498 = vrot.lane.b32.xlu1 %v5804_v56, %s5471_s0 }
  0xc9   :  { %496 = vrot.lane.b32.xlu0 %v5807_v52, %s5471_s0 }
  0xca   :  { %v5911_v57 = vpop.permute.xlu2 %362  ;;  %v5913_v58 = vpop.permute.xlu1 %294 }
  0xcb   :  { %11704 = vst [vmem:[#allocation46_spill] sm:$0xff] %v5911_v57  ;;  %v5915_v59 = vpop.permute.xlu0 %292 }
  0xcc   :  { %11705 = vst [vmem:[#allocation47_spill] sm:$0xff] %v5913_v58 }
  0xcd   :  { %11706 = vst [vmem:[#allocation48_spill] sm:$0xff] %v5915_v59 }
  0xd0   :  { %530 = vrot.lane.b32.xlu2 %v5684_v36, %s5472_s23  ;;  %528 = vrot.lane.b32.xlu1 %v5687_v37, %s5472_s23 }
  0xd1   :  { %526 = vrot.lane.b32.xlu0 %v5690_v38, %s5472_s23 }
  0xd2   :  { %v5923_v56 = vpop.permute.xlu2 %368  ;;  %v5925_v63 = vpop.permute.xlu1 %300 }
  0xd3   :  { %11707 = vst [vmem:[#allocation49_spill] sm:$0xff] %v5923_v56  ;;  %v5927_v52 = vpop.permute.xlu0 %298 }
  0xd4   :  { %11708 = vst [vmem:[#allocation50_spill] sm:$0xff] %v5925_v63 }
  0xd5   :  { %11709 = vst [vmem:[#allocation51_spill] sm:$0xff] %v5927_v52 }
  0xd8   :  { %536 = vrot.lane.b32.xlu2 %v5699_v39, %s5472_s23  ;;  %534 = vrot.lane.b32.xlu1 %v5702_v40, %s5472_s23 }
  0xd9   :  { %532 = vrot.lane.b32.xlu0 %v5705_v41, %s5472_s23 }
  0xda   :  { %v5935_v36 = vpop.permute.xlu2 %374  ;;  %v5937_v37 = vpop.permute.xlu1 %306 }
  0xdb   :  { %11710 = vst [vmem:[#allocation52_spill] sm:$0xff] %v5935_v36  ;;  %v5939_v38 = vpop.permute.xlu0 %304 }
  0xdc   :  { %11711 = vst [vmem:[#allocation53_spill] sm:$0xff] %v5937_v37 }
  0xdd   :  { %11712 = vst [vmem:[#allocation54_spill] sm:$0xff] %v5939_v38 }
  0xe0   :  { %542 = vrot.lane.b32.xlu2 %v5714_v42, %s5472_s23  ;;  %540 = vrot.lane.b32.xlu1 %v5717_v43, %s5472_s23 }
  0xe1   :  { %538 = vrot.lane.b32.xlu0 %v5720_v44, %s5472_s23 }
  0xe2   :  { %v5947_v39 = vpop.permute.xlu2 %380  ;;  %v5949_v40 = vpop.permute.xlu1 %360 }
  0xe3   :  { %11713 = vst [vmem:[#allocation55_spill] sm:$0xff] %v5947_v39  ;;  %v5951_v41 = vpop.permute.xlu0 %358 }
  0xe4   :  { %11714 = vst [vmem:[#allocation56_spill] sm:$0xff] %v5949_v40 }
  0xe5   :  { %11715 = vst [vmem:[#allocation57_spill] sm:$0xff] %v5951_v41 }
  0xe8   :  { %548 = vrot.lane.b32.xlu2 %v5729_v45, %s5472_s23  ;;  %546 = vrot.lane.b32.xlu1 %v5732_v46, %s5472_s23 }
  0xe9   :  { %544 = vrot.lane.b32.xlu0 %v5735_v47, %s5472_s23 }
  0xea   :  { %v5959_v42 = vpop.permute.xlu2 %434  ;;  %v5961_v43 = vpop.permute.xlu1 %366 }
  0xeb   :  { %11716 = vst [vmem:[#allocation58_spill] sm:$0xff] %v5959_v42  ;;  %v5963_v44 = vpop.permute.xlu0 %364 }
  0xec   :  { %11717 = vst [vmem:[#allocation59_spill] sm:$0xff] %v5961_v43  ;;  %v6228_v43 = vld [vmem:[#allocation6 + $0x48] sm:$0xff] }
  0xed   :  { %11718 = vst [vmem:[#allocation60_spill] sm:$0xff] %v5963_v44  ;;  %v6239_v38 = vmul.f32 0.007598758, %v6228_v43  ;;  %v6323_v53 = vmul.f32 0.036000773, %v6228_v43 }
  0xee   :  { %v6407_v1 = vmul.f32 0.10936069, %v6228_v43 }
  0xef   :  { %11785 = vst [vmem:[#allocation117_spill] sm:$0xff] %v6239_v38 }
  0xf0   :  { %578 = vrot.lane.b32.xlu2 %v5624_v24, %s5473_s2  ;;  %576 = vrot.lane.b32.xlu1 %v5627_v25, %s5473_s2 }
  0xf1   :  { %574 = vrot.lane.b32.xlu0 %v5630_v26, %s5473_s2 }
  0xf2   :  { %v5971_v45 = vpop.permute.xlu2 %440  ;;  %v5973_v46 = vpop.permute.xlu1 %372 }
  0xf3   :  { %11719 = vst [vmem:[#allocation61_spill] sm:$0xff] %v5971_v45  ;;  %v5975_v47 = vpop.permute.xlu0 %370 }
  0xf4   :  { %11720 = vst [vmem:[#allocation62_spill] sm:$0xff] %v5973_v46 }
  0xf5   :  { %11721 = vst [vmem:[#allocation63_spill] sm:$0xff] %v5975_v47 }
  0xf8   :  { %584 = vrot.lane.b32.xlu2 %v5639_v27, %s5473_s2  ;;  %582 = vrot.lane.b32.xlu1 %v5642_v28, %s5473_s2 }
  0xf9   :  { %580 = vrot.lane.b32.xlu0 %v5645_v29, %s5473_s2 }
  0xfa   :  { %v5983_v24 = vpop.permute.xlu2 %446  ;;  %v5985_v25 = vpop.permute.xlu1 %378 }
  0xfb   :  { %11722 = vst [vmem:[#allocation64_spill] sm:$0xff] %v5983_v24  ;;  %v5987_v26 = vpop.permute.xlu0 %376  ;;  %v6201_v24 = vld [vmem:[#allocation6 + $0x30] sm:$0xff] }
  0xfc   :  { %11723 = vst [vmem:[#allocation65_spill] sm:$0xff] %v5985_v25  ;;  %v6302_v42 = vmul.f32 0.036000773, %v6201_v24  ;;  %v6386_v21 = vmul.f32 0.10936069, %v6201_v24 }
  0xfd   :  { %11724 = vst [vmem:[#allocation66_spill] sm:$0xff] %v5987_v26 }
 0x100   :  { %590 = vrot.lane.b32.xlu2 %v5654_v30, %s5473_s2  ;;  %588 = vrot.lane.b32.xlu1 %v5657_v31, %s5473_s2 }
 0x101   :  { %586 = vrot.lane.b32.xlu0 %v5660_v32, %s5473_s2 }
 0x102   :  { %v5995_v27 = vpop.permute.xlu2 %452  ;;  %v5997_v28 = vpop.permute.xlu1 %432 }
 0x103   :  { %11725 = vst [vmem:[#allocation67_spill] sm:$0xff] %v5995_v27  ;;  %v5999_v29 = vpop.permute.xlu0 %430 }
 0x104   :  { %11726 = vst [vmem:[#allocation68_spill] sm:$0xff] %v5997_v28 }
 0x105   :  { %11727 = vst [vmem:[#allocation69_spill] sm:$0xff] %v5999_v29  ;;  %v6174_v29 = vld [vmem:[#allocation6 + $0x18] sm:$0xff] }
 0x106   :  { %v6185_v26 = vmul.f32 0.007598758, %v6174_v29  ;;  %v6281_v56 = vmul.f32 0.036000773, %v6174_v29  ;;  %v6365_v22 = vmul.f32 0.10936069, %v6174_v29 }
 0x108   :  { %596 = vrot.lane.b32.xlu2 %v5669_v33, %s5473_s2  ;;  %594 = vrot.lane.b32.xlu1 %v5672_v34, %s5473_s2 }
 0x109   :  { %592 = vrot.lane.b32.xlu0 %v5675_v35, %s5473_s2 }
 0x10a   :  { %v6007_v30 = vpop.permute.xlu2 %482  ;;  %v6009_v31 = vpop.permute.xlu1 %438 }
 0x10b   :  { %11728 = vst [vmem:[#allocation70_spill] sm:$0xff] %v6007_v30  ;;  %v6011_v32 = vpop.permute.xlu0 %436 }
 0x10c   :  { %11729 = vst [vmem:[#allocation71_spill] sm:$0xff] %v6009_v31 }
 0x10d   :  { %11730 = vst [vmem:[#allocation72_spill] sm:$0xff] %v6011_v32 }
 0x110   :  { %626 = vrot.lane.b32.xlu2 %v5522_v4, %s5474_s24  ;;  %624 = vrot.lane.b32.xlu1 %v5555_v11, %s5474_s24 }
 0x111   :  { %622 = vrot.lane.b32.xlu0 %v5525_v5, %s5474_s24 }
 0x112   :  { %v6019_v33 = vpop.permute.xlu2 %488  ;;  %v6021_v34 = vpop.permute.xlu1 %444 }
 0x113   :  { %11731 = vst [vmem:[#allocation73_spill] sm:$0xff] %v6019_v33  ;;  %v6023_v35 = vpop.permute.xlu0 %442 }
 0x114   :  { %11732 = vst [vmem:[#allocation74_spill] sm:$0xff] %v6021_v34 }
 0x115   :  { %11733 = vst [vmem:[#allocation75_spill] sm:$0xff] %v6023_v35 }
 0x118   :  { %632 = vrot.lane.b32.xlu2 %v5549_v9, %s5474_s24  ;;  %630 = vrot.lane.b32.xlu1 %v5519_v3, %s5474_s24 }
 0x119   :  { %628 = vrot.lane.b32.xlu0 %v5552_v10, %s5474_s24 }
 0x11a   :  { %v6031_v4 = vpop.permute.xlu2 %494  ;;  %v6033_v11 = vpop.permute.xlu1 %450 }
 0x11b   :  { %11734 = vst [vmem:[#allocation76_spill] sm:$0xff] %v6031_v4  ;;  %v6035_v5 = vpop.permute.xlu0 %448  ;;  %v11740_v4 = vld [vmem:[#allocation13_spill] sm:$0xff] }
 0x11c   :  { %11735 = vst [vmem:[#allocation77_spill] sm:$0xff] %v6033_v11 }
 0x11d   :  { %11736 = vst [vmem:[#allocation78_spill] sm:$0xff] %v6035_v5  ;;  %v11741_v5 = vld [vmem:[#allocation14_spill] sm:$0xff] }
 0x120   :  { %638 = vrot.lane.b32.xlu2 %v5579_v15, %s5474_s24  ;;  %636 = vrot.lane.b32.xlu1 %v5582_v16, %s5474_s24  ;;  %v11742_v15 = vld [vmem:[#allocation15_spill] sm:$0xff] }
 0x121   :  { %634 = vrot.lane.b32.xlu0 %v5585_v17, %s5474_s24 }
 0x122   :  { %v6043_v9 = vpop.permute.xlu2 %500  ;;  %v6045_v3 = vpop.permute.xlu1 %480 }
 0x123   :  { %11737 = vst [vmem:[#allocation79_spill] sm:$0xff] %v6043_v9  ;;  %v6047_v10 = vpop.permute.xlu0 %478  ;;  %v11746_v9 = vld [vmem:[#allocation11_spill] sm:$0xff] }
 0x124   :  { %11738 = vst [vmem:[#allocation80_spill] sm:$0xff] %v6045_v3  ;;  %v6062_v35 = vmul.f32 0.0010283801, %v11746_v9  ;;  %v11748_v3 = vld [vmem:[#allocation12_spill] sm:$0xff] }
 0x125   :  { %11739 = vst [vmem:[#allocation81_spill] sm:$0xff] %v6047_v10  ;;  %v6065_v10 = vmul.f32 0.0010283801, %v11748_v3  ;;  %v6083_v3 = vmul.f32 0.0010283801, %v5506_v0 }
 0x126   :  { %11747 = vst [vmem:[#allocation11_spill] sm:$0xff] %v6062_v35 }
 0x127   :  { %11749 = vst [vmem:[#allocation12_spill] sm:$0xff] %v6065_v10 }
 0x128   :  { %644 = vrot.lane.b32.xlu2 %v11740_v4, %s5474_s24  ;;  %642 = vrot.lane.b32.xlu1 %v11741_v5, %s5474_s24  ;;  %v6068_v4 = vmul.f32 0.0010283801, %v5516_v2  ;;  %11754 = vst [vmem:[#allocation86_spill] sm:$0xff] %v6083_v3  ;;  %v6086_v2 = vmul.f32 0.0010283801, %v5536_v6 }
 0x129   :  { %640 = vrot.lane.b32.xlu0 %v11742_v15, %s5474_s24  ;;  %v6104_v6 = vmul.f32 0.0010283801, %v5566_v12 }
 0x12a   :  { %v6055_v11 = vpop.permute.xlu2 %530  ;;  %v6057_v16 = vpop.permute.xlu1 %486  ;;  %11750 = vst [vmem:[#allocation82_spill] sm:$0xff] %v6068_v4 }
 0x12b   :  { %11743 = vst [vmem:[#allocation13_spill] sm:$0xff] %v6055_v11  ;;  %v6059_v17 = vpop.permute.xlu0 %484  ;;  %v6212_v11 = vmul.f32 0.007598758, %v6201_v24 }
 0x12c   :  { %11744 = vst [vmem:[#allocation14_spill] sm:$0xff] %v6057_v16 }
 0x12d   :  { %11745 = vst [vmem:[#allocation15_spill] sm:$0xff] %v6059_v17  ;;  %v6089_v17 = vmul.f32 0.0010283801, %v5541_v7  ;;  %v6107_v7 = vmul.f32 0.0010283801, %v5571_v13 }
 0x12e   :  { %11755 = vst [vmem:[#allocation87_spill] sm:$0xff] %v6086_v2  ;;  %v6125_v13 = vmul.f32 0.0010283801, %v5596_v18 }
 0x12f   :  { %11756 = vst [vmem:[#allocation88_spill] sm:$0xff] %v6089_v17 }
 0x130   :  { %686 = vrot.lane.b32.xlu2 %v6062_v35, %s5475_s25  ;;  %684 = vrot.lane.b32.xlu1 %v6065_v10, %s5475_s25  ;;  %11760 = vst [vmem:[#allocation92_spill] sm:$0xff] %v6104_v6  ;;  %v6449_v10 = vmul.f32 0.21300554, %v6174_v29 }
 0x131   :  { %682 = vrot.lane.b32.xlu0 %v6068_v4, %s5475_s25  ;;  %11761 = vst [vmem:[#allocation93_spill] sm:$0xff] %v6107_v7 }
 0x132   :  { %v6076_v5 = vpop.permute.xlu2 %536  ;;  %v6078_v9 = vpop.permute.xlu1 %492  ;;  %11766 = vst [vmem:[#allocation98_spill] sm:$0xff] %v6125_v13 }
 0x133   :  { %11751 = vst [vmem:[#allocation83_spill] sm:$0xff] %v6076_v5  ;;  %v6080_v15 = vpop.permute.xlu0 %490  ;;  %v6110_v5 = vmul.f32 0.0010283801, %v5576_v14  ;;  %v6128_v14 = vmul.f32 0.0010283801, %v5601_v19 }
 0x134   :  { %11752 = vst [vmem:[#allocation84_spill] sm:$0xff] %v6078_v9 }
 0x135   :  { %11753 = vst [vmem:[#allocation85_spill] sm:$0xff] %v6080_v15 }
 0x136   :  { %11762 = vst [vmem:[#allocation94_spill] sm:$0xff] %v6110_v5 }
 0x137   :  { %11767 = vst [vmem:[#allocation99_spill] sm:$0xff] %v6128_v14 }
 0x138   :  { %692 = vrot.lane.b32.xlu2 %v6086_v2, %s5475_s25  ;;  %690 = vrot.lane.b32.xlu1 %v6083_v3, %s5475_s25  ;;  %11779 = vst [vmem:[#allocation111_spill] sm:$0xff] %v6212_v11  ;;  %v1332_v3 = vmul.f32 0.21300554, %v6228_v43 }
 0x139   :  { %688 = vrot.lane.b32.xlu0 %v6089_v17, %s5475_s25 }
 0x13a   :  { %v6097_v9 = vpop.permute.xlu2 %542  ;;  %v6099_v15 = vpop.permute.xlu1 %498 }
 0x13b   :  { %11757 = vst [vmem:[#allocation89_spill] sm:$0xff] %v6097_v9  ;;  %v6101_v0 = vpop.permute.xlu0 %496  ;;  %v6131_v9 = vmul.f32 0.0010283801, %v5606_v20 }
 0x13c   :  { %11758 = vst [vmem:[#allocation90_spill] sm:$0xff] %v6099_v15 }
 0x13d   :  { %11759 = vst [vmem:[#allocation91_spill] sm:$0xff] %v6101_v0 }
 0x13e   :  { %11768 = vst [vmem:[#allocation100_spill] sm:$0xff] %v6131_v9 }
 0x140   :  { %698 = vrot.lane.b32.xlu2 %v6104_v6, %s5475_s25  ;;  %696 = vrot.lane.b32.xlu1 %v6107_v7, %s5475_s25 }
 0x141   :  { %694 = vrot.lane.b32.xlu0 %v6110_v5, %s5475_s25 }
 0x142   :  { %v6118_v15 = vpop.permute.xlu2 %548  ;;  %v6120_v0 = vpop.permute.xlu1 %528 }
 0x143   :  { %11763 = vst [vmem:[#allocation95_spill] sm:$0xff] %v6118_v15  ;;  %v6122_v12 = vpop.permute.xlu0 %526  ;;  %v6147_v15 = vld [vmem:[#allocation6] sm:$0xff] }
 0x144   :  { %11764 = vst [vmem:[#allocation96_spill] sm:$0xff] %v6120_v0  ;;  %v6139_v0 = vld [vmem:[#allocation6 + $0x10] sm:$0xff]  ;;  %v6158_v33 = vmul.f32 0.007598758, %v6147_v15  ;;  %v6260_v36 = vmul.f32 0.036000773, %v6147_v15 }
 0x145   :  { %11765 = vst [vmem:[#allocation97_spill] sm:$0xff] %v6122_v12  ;;  %v6141_v12 = vld [vmem:[#allocation6 + $0x8] sm:$0xff]  ;;  %v6152_v16 = vmul.f32 0.007598758, %v6139_v0  ;;  %v6254_v30 = vmul.f32 0.036000773, %v6139_v0 }
 0x146   :  { %11769 = vst [vmem:[#allocation101_spill] sm:$0xff] %v6141_v12  ;;  %v6155_v34 = vmul.f32 0.007598758, %v6141_v12  ;;  %v6257_v37 = vmul.f32 0.036000773, %v6141_v12 }
 0x147   :  { %v6338_v51 = vmul.f32 0.10936069, %v6139_v0  ;;  %v6341_v50 = vmul.f32 0.10936069, %v6141_v12  ;;  %v6344_v49 = vmul.f32 0.10936069, %v6147_v15 }
 0x148   :  { %704 = vrot.lane.b32.xlu2 %v6125_v13, %s5475_s25  ;;  %702 = vrot.lane.b32.xlu1 %v6128_v14, %s5475_s25  ;;  %v6422_v60 = vmul.f32 0.21300554, %v6139_v0  ;;  %v6428_v14 = vmul.f32 0.21300554, %v6147_v15  ;;  %v6470_v13 = vmul.f32 0.21300554, %v6201_v24 }
 0x149   :  { %700 = vrot.lane.b32.xlu0 %v6131_v9, %s5475_s25  ;;  %v6425_v9 = vmul.f32 0.21300554, %v6141_v12 }
 0x14a   :  { %v6143_v18 = vpop.permute.xlu2 %578  ;;  %v6145_v19 = vpop.permute.xlu1 %534 }
 0x14b   :  { %11770 = vst [vmem:[#allocation102_spill] sm:$0xff] %v6143_v18  ;;  %v6149_v20 = vpop.permute.xlu0 %532 }
 0x14c   :  { %11771 = vst [vmem:[#allocation103_spill] sm:$0xff] %v6145_v19  ;;  %v6166_v19 = vld [vmem:[#allocation6 + $0x28] sm:$0xff] }
 0x14d   :  { %11772 = vst [vmem:[#allocation104_spill] sm:$0xff] %v6149_v20  ;;  %v6168_v20 = vld [vmem:[#allocation6 + $0x20] sm:$0xff]  ;;  %v6179_v18 = vmul.f32 0.007598758, %v6166_v19  ;;  %v6275_v52 = vmul.f32 0.036000773, %v6166_v19 }
 0x14e   :  { %v6182_v27 = vmul.f32 0.007598758, %v6168_v20  ;;  %v6278_v63 = vmul.f32 0.036000773, %v6168_v20  ;;  %v6359_v23 = vmul.f32 0.10936069, %v6166_v19 }
 0x14f   :  { %v6362_v57 = vmul.f32 0.10936069, %v6168_v20  ;;  %v6443_v5 = vmul.f32 0.21300554, %v6166_v19  ;;  %v6446_v7 = vmul.f32 0.21300554, %v6168_v20 }
 0x150   :  { %1135 = vrot.lane.b32.xlu2 %v6152_v16, %s5466_s27  ;;  %1133 = vrot.lane.b32.xlu1 %v6155_v34, %s5466_s27 }
 0x151   :  { %1131 = vrot.lane.b32.xlu0 %v6158_v33, %s5466_s27 }
 0x152   :  { %v6170_v32 = vpop.permute.xlu2 %584  ;;  %v6172_v31 = vpop.permute.xlu1 %540 }
 0x153   :  { %11773 = vst [vmem:[#allocation105_spill] sm:$0xff] %v6170_v32  ;;  %v6176_v28 = vpop.permute.xlu0 %538 }
 0x154   :  { %11774 = vst [vmem:[#allocation106_spill] sm:$0xff] %v6172_v31  ;;  %v6193_v31 = vld [vmem:[#allocation6 + $0x40] sm:$0xff] }
 0x155   :  { %11775 = vst [vmem:[#allocation107_spill] sm:$0xff] %v6176_v28  ;;  %v6195_v28 = vld [vmem:[#allocation6 + $0x38] sm:$0xff]  ;;  %v6206_v46 = vmul.f32 0.007598758, %v6193_v31  ;;  %v6296_v59 = vmul.f32 0.036000773, %v6193_v31 }
 0x156   :  { %v6209_v45 = vmul.f32 0.007598758, %v6195_v28  ;;  %v6299_v58 = vmul.f32 0.036000773, %v6195_v28  ;;  %v6380_v61 = vmul.f32 0.10936069, %v6193_v31 }
 0x157   :  { %v6383_v62 = vmul.f32 0.10936069, %v6195_v28  ;;  %v6464_v17 = vmul.f32 0.21300554, %v6193_v31  ;;  %v6467_v4 = vmul.f32 0.21300554, %v6195_v28 }
 0x158   :  { %1141 = vrot.lane.b32.xlu2 %v6179_v18, %s5466_s27  ;;  %1139 = vrot.lane.b32.xlu1 %v6182_v27, %s5466_s27 }
 0x159   :  { %1137 = vrot.lane.b32.xlu0 %v6185_v26, %s5466_s27 }
 0x15a   :  { %v6197_v32 = vpop.permute.xlu2 %590  ;;  %v6199_v25 = vpop.permute.xlu1 %546 }
 0x15b   :  { %11776 = vst [vmem:[#allocation108_spill] sm:$0xff] %v6197_v32  ;;  %v6203_v47 = vpop.permute.xlu0 %544 }
 0x15c   :  { %11777 = vst [vmem:[#allocation109_spill] sm:$0xff] %v6199_v25  ;;  %v6220_v25 = vld [vmem:[#allocation6 + $0x58] sm:$0xff] }
 0x15d   :  { %11778 = vst [vmem:[#allocation110_spill] sm:$0xff] %v6203_v47  ;;  %v6222_v47 = vld [vmem:[#allocation6 + $0x50] sm:$0xff]  ;;  %v6233_v40 = vmul.f32 0.007598758, %v6220_v25  ;;  %v6317_v55 = vmul.f32 0.036000773, %v6220_v25 }
 0x15e   :  { %v6236_v39 = vmul.f32 0.007598758, %v6222_v47  ;;  %v6320_v54 = vmul.f32 0.036000773, %v6222_v47  ;;  %v6401_v48 = vmul.f32 0.10936069, %v6220_v25 }
 0x15f   :  { %11783 = vst [vmem:[#allocation115_spill] sm:$0xff] %v6233_v40  ;;  %v6404_v8 = vmul.f32 0.10936069, %v6222_v47  ;;  %v1334_v6 = vmul.f32 0.21300554, %v6220_v25 }
 0x160   :  { %1147 = vrot.lane.b32.xlu2 %v6206_v46, %s5466_s27  ;;  %1145 = vrot.lane.b32.xlu1 %v6209_v45, %s5466_s27  ;;  %11784 = vst [vmem:[#allocation116_spill] sm:$0xff] %v6236_v39  ;;  %v1333_v2 = vmul.f32 0.21300554, %v6222_v47 }
 0x161   :  { %1143 = vrot.lane.b32.xlu0 %v6212_v11, %s5466_s27 }
 0x162   :  { %v6224_v32 = vpop.permute.xlu2 %596  ;;  %v6226_v44 = vpop.permute.xlu1 %576 }
 0x163   :  { %11780 = vst [vmem:[#allocation112_spill] sm:$0xff] %v6224_v32  ;;  %v6230_v41 = vpop.permute.xlu0 %574 }
 0x164   :  { %11781 = vst [vmem:[#allocation113_spill] sm:$0xff] %v6226_v44 }
 0x165   :  { %11782 = vst [vmem:[#allocation114_spill] sm:$0xff] %v6230_v41 }
 0x168   :  { %1153 = vrot.lane.b32.xlu2 %v6233_v40, %s5466_s27  ;;  %1151 = vrot.lane.b32.xlu1 %v6236_v39, %s5466_s27  ;;  %v1395_v39 = vmul.f32 0.26601171, %v6147_v15 }
 0x169   :  { %1149 = vrot.lane.b32.xlu0 %v6239_v38, %s5466_s27 }
 0x16a   :  { %v6247_v44 = vpop.permute.xlu2 %626  ;;  %v6249_v41 = vpop.permute.xlu1 %582 }
 0x16b   :  { %11786 = vst [vmem:[#allocation118_spill] sm:$0xff] %v6247_v44  ;;  %v6251_v32 = vpop.permute.xlu0 %580 }
 0x16c   :  { %11787 = vst [vmem:[#allocation119_spill] sm:$0xff] %v6249_v41 }
 0x16d   :  { %11788 = vst [vmem:[#allocation120_spill] sm:$0xff] %v6251_v32 }
 0x170   :  { %1207 = vrot.lane.b32.xlu2 %v6254_v30, %s5467_s19  ;;  %1205 = vrot.lane.b32.xlu1 %v6257_v37, %s5467_s19 }
 0x171   :  { %1203 = vrot.lane.b32.xlu0 %v6260_v36, %s5467_s19 }
 0x172   :  { %v6268_v41 = vpop.permute.xlu2 %632  ;;  %v6270_v32 = vpop.permute.xlu1 %588 }
 0x173   :  { %11789 = vst [vmem:[#allocation121_spill] sm:$0xff] %v6268_v41  ;;  %v6272_v44 = vpop.permute.xlu0 %586 }
 0x174   :  { %11790 = vst [vmem:[#allocation122_spill] sm:$0xff] %v6270_v32 }
 0x175   :  { %11791 = vst [vmem:[#allocation123_spill] sm:$0xff] %v6272_v44 }
 0x178   :  { %1213 = vrot.lane.b32.xlu2 %v6275_v52, %s5467_s19  ;;  %1211 = vrot.lane.b32.xlu1 %v6278_v63, %s5467_s19 }
 0x179   :  { %1209 = vrot.lane.b32.xlu0 %v6281_v56, %s5467_s19 }
 0x17a   :  { %v6289_v32 = vpop.permute.xlu2 %638  ;;  %v6291_v44 = vpop.permute.xlu1 %594 }
 0x17b   :  { %11792 = vst [vmem:[#allocation124_spill] sm:$0xff] %v6289_v32  ;;  %v6293_v41 = vpop.permute.xlu0 %592 }
 0x17c   :  { %11793 = vst [vmem:[#allocation125_spill] sm:$0xff] %v6291_v44 }
 0x17d   :  { %11794 = vst [vmem:[#allocation126_spill] sm:$0xff] %v6293_v41 }
 0x180   :  { %1219 = vrot.lane.b32.xlu2 %v6296_v59, %s5467_s19  ;;  %1217 = vrot.lane.b32.xlu1 %v6299_v58, %s5467_s19 }
 0x181   :  { %1215 = vrot.lane.b32.xlu0 %v6302_v42, %s5467_s19 }
 0x182   :  { %v6310_v44 = vpop.permute.xlu2 %644  ;;  %v6312_v41 = vpop.permute.xlu1 %624 }
 0x183   :  { %11795 = vst [vmem:[#allocation127_spill] sm:$0xff] %v6310_v44  ;;  %v6314_v32 = vpop.permute.xlu0 %622 }
 0x184   :  { %11796 = vst [vmem:[#allocation128_spill] sm:$0xff] %v6312_v41 }
 0x185   :  { %11797 = vst [vmem:[#allocation129_spill] sm:$0xff] %v6314_v32 }
 0x188   :  { %1225 = vrot.lane.b32.xlu2 %v6317_v55, %s5467_s19  ;;  %1223 = vrot.lane.b32.xlu1 %v6320_v54, %s5467_s19 }
 0x189   :  { %1221 = vrot.lane.b32.xlu0 %v6323_v53, %s5467_s19 }
 0x18a   :  { %v6331_v41 = vpop.permute.xlu2 %686  ;;  %v6333_v32 = vpop.permute.xlu1 %630 }
 0x18b   :  { %11798 = vst [vmem:[#allocation130_spill] sm:$0xff] %v6331_v41  ;;  %v6335_v44 = vpop.permute.xlu0 %628 }
 0x18c   :  { %11799 = vst [vmem:[#allocation131_spill] sm:$0xff] %v6333_v32 }
 0x18d   :  { %11800 = vst [vmem:[#allocation132_spill] sm:$0xff] %v6335_v44 }
 0x190   :  { %1279 = vrot.lane.b32.xlu2 %v6338_v51, %s5468_s20  ;;  %1277 = vrot.lane.b32.xlu1 %v6341_v50, %s5468_s20 }
 0x191   :  { %1275 = vrot.lane.b32.xlu0 %v6344_v49, %s5468_s20 }
 0x192   :  { %v6352_v32 = vpop.permute.xlu2 %692  ;;  %v6354_v44 = vpop.permute.xlu1 %636 }
 0x193   :  { %11801 = vst [vmem:[#allocation133_spill] sm:$0xff] %v6352_v32  ;;  %v6356_v41 = vpop.permute.xlu0 %634 }
 0x194   :  { %11802 = vst [vmem:[#allocation134_spill] sm:$0xff] %v6354_v44 }
 0x195   :  { %11803 = vst [vmem:[#allocation135_spill] sm:$0xff] %v6356_v41 }
 0x198   :  { %1285 = vrot.lane.b32.xlu2 %v6359_v23, %s5468_s20  ;;  %1283 = vrot.lane.b32.xlu1 %v6362_v57, %s5468_s20 }
 0x199   :  { %1281 = vrot.lane.b32.xlu0 %v6365_v22, %s5468_s20 }
 0x19a   :  { %v6373_v44 = vpop.permute.xlu2 %698  ;;  %v6375_v41 = vpop.permute.xlu1 %642 }
 0x19b   :  { %11804 = vst [vmem:[#allocation136_spill] sm:$0xff] %v6373_v44  ;;  %v6377_v32 = vpop.permute.xlu0 %640 }
 0x19c   :  { %11805 = vst [vmem:[#allocation137_spill] sm:$0xff] %v6375_v41 }
 0x19d   :  { %11806 = vst [vmem:[#allocation138_spill] sm:$0xff] %v6377_v32 }
 0x1a0   :  { %1291 = vrot.lane.b32.xlu2 %v6380_v61, %s5468_s20  ;;  %1289 = vrot.lane.b32.xlu1 %v6383_v62, %s5468_s20 }
 0x1a1   :  { %1287 = vrot.lane.b32.xlu0 %v6386_v21, %s5468_s20 }
 0x1a2   :  { %v6394_v41 = vpop.permute.xlu2 %704  ;;  %v6396_v32 = vpop.permute.xlu1 %684 }
 0x1a3   :  { %11807 = vst [vmem:[#allocation139_spill] sm:$0xff] %v6394_v41  ;;  %v6398_v44 = vpop.permute.xlu0 %682 }
 0x1a4   :  { %11808 = vst [vmem:[#allocation140_spill] sm:$0xff] %v6396_v32 }
 0x1a5   :  { %11809 = vst [vmem:[#allocation141_spill] sm:$0xff] %v6398_v44 }
 0x1a8   :  { %1297 = vrot.lane.b32.xlu2 %v6401_v48, %s5468_s20  ;;  %1295 = vrot.lane.b32.xlu1 %v6404_v8, %s5468_s20 }
 0x1a9   :  { %1293 = vrot.lane.b32.xlu0 %v6407_v1, %s5468_s20 }
 0x1aa   :  { %v6415_v32 = vpop.permute.xlu2 %1135  ;;  %v6417_v44 = vpop.permute.xlu1 %690 }
 0x1ab   :  { %11810 = vst [vmem:[#allocation142_spill] sm:$0xff] %v6415_v32  ;;  %v6419_v41 = vpop.permute.xlu0 %688 }
 0x1ac   :  { %11811 = vst [vmem:[#allocation143_spill] sm:$0xff] %v6417_v44 }
 0x1ad   :  { %11812 = vst [vmem:[#allocation144_spill] sm:$0xff] %v6419_v41 }
 0x1b0   :  { %1351 = vrot.lane.b32.xlu2 %v6422_v60, %s5469_s21  ;;  %1349 = vrot.lane.b32.xlu1 %v6425_v9, %s5469_s21 }
 0x1b1   :  { %1347 = vrot.lane.b32.xlu0 %v6428_v14, %s5469_s21 }
 0x1b2   :  { %v6436_v32 = vpop.permute.xlu2 %1141  ;;  %v6438_v41 = vpop.permute.xlu1 %696 }
 0x1b3   :  { %11813 = vst [vmem:[#allocation145_spill] sm:$0xff] %v6436_v32  ;;  %v6440_v44 = vpop.permute.xlu0 %694 }
 0x1b4   :  { %11814 = vst [vmem:[#allocation146_spill] sm:$0xff] %v6438_v41 }
 0x1b5   :  { %11815 = vst [vmem:[#allocation147_spill] sm:$0xff] %v6440_v44 }
 0x1b8   :  { %1357 = vrot.lane.b32.xlu2 %v6443_v5, %s5469_s21  ;;  %1355 = vrot.lane.b32.xlu1 %v6446_v7, %s5469_s21 }
 0x1b9   :  { %1353 = vrot.lane.b32.xlu0 %v6449_v10, %s5469_s21 }
 0x1ba   :  { %v6457_v32 = vpop.permute.xlu2 %1147  ;;  %v6459_v41 = vpop.permute.xlu1 %702 }
 0x1bb   :  { %11816 = vst [vmem:[#allocation148_spill] sm:$0xff] %v6457_v32  ;;  %v6461_v44 = vpop.permute.xlu0 %700 }
 0x1bc   :  { %11817 = vst [vmem:[#allocation149_spill] sm:$0xff] %v6459_v41 }
 0x1bd   :  { %11818 = vst [vmem:[#allocation150_spill] sm:$0xff] %v6461_v44 }
 0x1c0   :  { %1363 = vrot.lane.b32.xlu2 %v6464_v17, %s5469_s21  ;;  %1361 = vrot.lane.b32.xlu1 %v6467_v4, %s5469_s21 }
 0x1c1   :  { %1359 = vrot.lane.b32.xlu0 %v6470_v13, %s5469_s21 }
 0x1c2   :  { %v6478_v32 = vpop.permute.xlu2 %1153  ;;  %v6480_v44 = vpop.permute.xlu1 %1133 }
 0x1c3   :  { %11819 = vst [vmem:[#allocation151_spill] sm:$0xff] %v6478_v32  ;;  %v6482_v41 = vpop.permute.xlu0 %1131 }
 0x1c4   :  { %11820 = vst [vmem:[#allocation152_spill] sm:$0xff] %v6480_v44  ;;  %v1396_v44 = vmul.f32 0.26601171, %v6141_v12  ;;  %v1398_v12 = vmul.f32 0.26601171, %v6174_v29 }
 0x1c5   :  { %11821 = vst [vmem:[#allocation153_spill] sm:$0xff] %v6482_v41  ;;  %v1397_v41 = vmul.f32 0.26601171, %v6139_v0 }
 0x1c8   :  { %1369 = vrot.lane.b32.xlu2 %v1334_v6, %s5469_s21  ;;  %1367 = vrot.lane.b32.xlu1 %v1333_v2, %s5469_s21 }
 0x1c9   :  { %1365 = vrot.lane.b32.xlu0 %v1332_v3, %s5469_s21 }
 0x1ca   :  { %v6490_v35 = vpop.permute.xlu2 %1207  ;;  %v6492_v38 = vpop.permute.xlu1 %1139 }
 0x1cb   :  { %11822 = vst [vmem:[#allocation154_spill] sm:$0xff] %v6490_v35  ;;  %v6494_v32 = vpop.permute.xlu0 %1137 }
 0x1cc   :  { %11823 = vst [vmem:[#allocation155_spill] sm:$0xff] %v6492_v38  ;;  %v1399_v38 = vmul.f32 0.26601171, %v6168_v20 }
 0x1cd   :  { %11824 = vst [vmem:[#allocation156_spill] sm:$0xff] %v6494_v32  ;;  %v1400_v32 = vmul.f32 0.26601171, %v6166_v19 }
 0x1d0   :  { %1423 = vrot.lane.b32.xlu2 %v1397_v41, %s5470_s22  ;;  %1421 = vrot.lane.b32.xlu1 %v1396_v44, %s5470_s22 }
 0x1d1   :  { %1419 = vrot.lane.b32.xlu0 %v1395_v39, %s5470_s22 }
 0x1d2   :  { %v6502_v40 = vpop.permute.xlu2 %1213  ;;  %v6504_v11 = vpop.permute.xlu1 %1145 }
 0x1d3   :  { %11825 = vst [vmem:[#allocation157_spill] sm:$0xff] %v6502_v40  ;;  %v6506_v35 = vpop.permute.xlu0 %1143  ;;  %v1401_v40 = vmul.f32 0.26601171, %v6201_v24 }
 0x1d4   :  { %11826 = vst [vmem:[#allocation158_spill] sm:$0xff] %v6504_v11  ;;  %v1402_v11 = vmul.f32 0.26601171, %v6195_v28 }
 0x1d5   :  { %11827 = vst [vmem:[#allocation159_spill] sm:$0xff] %v6506_v35  ;;  %v1403_v35 = vmul.f32 0.26601171, %v6193_v31 }
 0x1d8   :  { %1429 = vrot.lane.b32.xlu2 %v1400_v32, %s5470_s22  ;;  %1427 = vrot.lane.b32.xlu1 %v1399_v38, %s5470_s22 }
 0x1d9   :  { %1425 = vrot.lane.b32.xlu0 %v1398_v12, %s5470_s22 }
 0x1da   :  { %v6514_v41 = vpop.permute.xlu2 %1219  ;;  %v6516_v39 = vpop.permute.xlu1 %1151 }
 0x1db   :  { %11828 = vst [vmem:[#allocation160_spill] sm:$0xff] %v6514_v41  ;;  %v6518_v44 = vpop.permute.xlu0 %1149  ;;  %v1404_v41 = vmul.f32 0.26601171, %v6228_v43 }
 0x1dc   :  { %11829 = vst [vmem:[#allocation161_spill] sm:$0xff] %v6516_v39  ;;  %v1405_v39 = vmul.f32 0.26601171, %v6222_v47 }
 0x1dd   :  { %11830 = vst [vmem:[#allocation162_spill] sm:$0xff] %v6518_v44  ;;  %v1406_v44 = vmul.f32 0.26601171, %v6220_v25 }
 0x1e0   :  { %1435 = vrot.lane.b32.xlu2 %v1403_v35, %s5470_s22  ;;  %1433 = vrot.lane.b32.xlu1 %v1402_v11, %s5470_s22 }
 0x1e1   :  { %1431 = vrot.lane.b32.xlu0 %v1401_v40, %s5470_s22 }
 0x1e2   :  { %v6526_v38 = vpop.permute.xlu2 %1225  ;;  %v6528_v32 = vpop.permute.xlu1 %1205 }
 0x1e3   :  { %11831 = vst [vmem:[#allocation163_spill] sm:$0xff] %v6526_v38  ;;  %v6530_v12 = vpop.permute.xlu0 %1203 }
 0x1e4   :  { %11832 = vst [vmem:[#allocation164_spill] sm:$0xff] %v6528_v32 }
 0x1e5   :  { %11833 = vst [vmem:[#allocation165_spill] sm:$0xff] %v6530_v12 }
 0x1e8   :  { %1441 = vrot.lane.b32.xlu2 %v1406_v44, %s5470_s22  ;;  %1439 = vrot.lane.b32.xlu1 %v1405_v39, %s5470_s22 }
 0x1e9   :  { %1437 = vrot.lane.b32.xlu0 %v1404_v41, %s5470_s22 }
 0x1ea   :  { %v6538_v35 = vpop.permute.xlu2 %1279  ;;  %v6540_v40 = vpop.permute.xlu1 %1211 }
 0x1eb   :  { %11834 = vst [vmem:[#allocation166_spill] sm:$0xff] %v6538_v35  ;;  %v6542_v11 = vpop.permute.xlu0 %1209 }
 0x1ec   :  { %11835 = vst [vmem:[#allocation167_spill] sm:$0xff] %v6540_v40 }
 0x1ed   :  { %11836 = vst [vmem:[#allocation168_spill] sm:$0xff] %v6542_v11 }
 0x1f0   :  { %1471 = vrot.lane.b32.xlu2 %v6422_v60, %s5471_s0  ;;  %1469 = vrot.lane.b32.xlu1 %v6425_v9, %s5471_s0 }
 0x1f1   :  { %1467 = vrot.lane.b32.xlu0 %v6428_v14, %s5471_s0 }
 0x1f2   :  { %v6550_v44 = vpop.permute.xlu2 %1285  ;;  %v6552_v39 = vpop.permute.xlu1 %1217 }
 0x1f3   :  { %11837 = vst [vmem:[#allocation169_spill] sm:$0xff] %v6550_v44  ;;  %v6554_v41 = vpop.permute.xlu0 %1215 }
 0x1f4   :  { %11838 = vst [vmem:[#allocation170_spill] sm:$0xff] %v6552_v39 }
 0x1f5   :  { %11839 = vst [vmem:[#allocation171_spill] sm:$0xff] %v6554_v41 }
 0x1f8   :  { %1477 = vrot.lane.b32.xlu2 %v6443_v5, %s5471_s0  ;;  %1475 = vrot.lane.b32.xlu1 %v6446_v7, %s5471_s0 }
 0x1f9   :  { %1473 = vrot.lane.b32.xlu0 %v6449_v10, %s5471_s0 }
 0x1fa   :  { %v6562_v60 = vpop.permute.xlu2 %1291  ;;  %v6564_v9 = vpop.permute.xlu1 %1223 }
 0x1fb   :  { %11840 = vst [vmem:[#allocation172_spill] sm:$0xff] %v6562_v60  ;;  %v6566_v14 = vpop.permute.xlu0 %1221 }
 0x1fc   :  { %11841 = vst [vmem:[#allocation173_spill] sm:$0xff] %v6564_v9 }
 0x1fd   :  { %11842 = vst [vmem:[#allocation174_spill] sm:$0xff] %v6566_v14 }
 0x200   :  { %1483 = vrot.lane.b32.xlu2 %v6464_v17, %s5471_s0  ;;  %1481 = vrot.lane.b32.xlu1 %v6467_v4, %s5471_s0 }
 0x201   :  { %1479 = vrot.lane.b32.xlu0 %v6470_v13, %s5471_s0  ;;  %v11879_v13 = vld [vmem:[#allocation111_spill] sm:$0xff] }
 0x202   :  { %v6574_v5 = vpop.permute.xlu2 %1297  ;;  %v6576_v7 = vpop.permute.xlu1 %1277 }
 0x203   :  { %11843 = vst [vmem:[#allocation175_spill] sm:$0xff] %v6574_v5  ;;  %v6578_v10 = vpop.permute.xlu0 %1275 }
 0x204   :  { %11844 = vst [vmem:[#allocation176_spill] sm:$0xff] %v6576_v7 }
 0x205   :  { %11845 = vst [vmem:[#allocation177_spill] sm:$0xff] %v6578_v10 }
 0x208   :  { %1489 = vrot.lane.b32.xlu2 %v1334_v6, %s5471_s0  ;;  %1487 = vrot.lane.b32.xlu1 %v1333_v2, %s5471_s0 }
 0x209   :  { %1485 = vrot.lane.b32.xlu0 %v1332_v3, %s5471_s0 }
 0x20a   :  { %v6583_v14 = vpop.permute.xlu2 %1351  ;;  %v6585_v17 = vpop.permute.xlu1 %1283 }
 0x20b   :  { %11846 = vst [vmem:[#allocation178_spill] sm:$0xff] %v6583_v14  ;;  %v6587_v4 = vpop.permute.xlu0 %1281 }
 0x20c   :  { %11847 = vst [vmem:[#allocation179_spill] sm:$0xff] %v6585_v17 }
 0x20d   :  { %11848 = vst [vmem:[#allocation180_spill] sm:$0xff] %v6587_v4 }
 0x210   :  { %1519 = vrot.lane.b32.xlu2 %v6338_v51, %s5472_s23  ;;  %1517 = vrot.lane.b32.xlu1 %v6341_v50, %s5472_s23 }
 0x211   :  { %1515 = vrot.lane.b32.xlu0 %v6344_v49, %s5472_s23 }
 0x212   :  { %v6595_v6 = vpop.permute.xlu2 %1357  ;;  %v6597_v2 = vpop.permute.xlu1 %1289 }
 0x213   :  { %11849 = vst [vmem:[#allocation181_spill] sm:$0xff] %v6595_v6  ;;  %v6599_v3 = vpop.permute.xlu0 %1287 }
 0x214   :  { %11850 = vst [vmem:[#allocation182_spill] sm:$0xff] %v6597_v2 }
 0x215   :  { %11851 = vst [vmem:[#allocation183_spill] sm:$0xff] %v6599_v3 }
 0x218   :  { %1525 = vrot.lane.b32.xlu2 %v6359_v23, %s5472_s23  ;;  %1523 = vrot.lane.b32.xlu1 %v6362_v57, %s5472_s23 }
 0x219   :  { %1521 = vrot.lane.b32.xlu0 %v6365_v22, %s5472_s23 }
 0x21a   :  { %v6607_v51 = vpop.permute.xlu2 %1363  ;;  %v6609_v50 = vpop.permute.xlu1 %1295 }
 0x21b   :  { %11852 = vst [vmem:[#allocation184_spill] sm:$0xff] %v6607_v51  ;;  %v6611_v49 = vpop.permute.xlu0 %1293 }
 0x21c   :  { %11853 = vst [vmem:[#allocation185_spill] sm:$0xff] %v6609_v50 }
 0x21d   :  { %11854 = vst [vmem:[#allocation186_spill] sm:$0xff] %v6611_v49 }
 0x220   :  { %1531 = vrot.lane.b32.xlu2 %v6380_v61, %s5472_s23  ;;  %1529 = vrot.lane.b32.xlu1 %v6383_v62, %s5472_s23 }
 0x221   :  { %1527 = vrot.lane.b32.xlu0 %v6386_v21, %s5472_s23 }
 0x222   :  { %v6619_v23 = vpop.permute.xlu2 %1369  ;;  %v6621_v57 = vpop.permute.xlu1 %1349 }
 0x223   :  { %11855 = vst [vmem:[#allocation187_spill] sm:$0xff] %v6619_v23  ;;  %v6623_v22 = vpop.permute.xlu0 %1347 }
 0x224   :  { %11856 = vst [vmem:[#allocation188_spill] sm:$0xff] %v6621_v57 }
 0x225   :  { %11857 = vst [vmem:[#allocation189_spill] sm:$0xff] %v6623_v22 }
 0x228   :  { %1537 = vrot.lane.b32.xlu2 %v6401_v48, %s5472_s23  ;;  %1535 = vrot.lane.b32.xlu1 %v6404_v8, %s5472_s23 }
 0x229   :  { %1533 = vrot.lane.b32.xlu0 %v6407_v1, %s5472_s23 }
 0x22a   :  { %v6631_v61 = vpop.permute.xlu2 %1423  ;;  %v6633_v62 = vpop.permute.xlu1 %1355 }
 0x22b   :  { %11858 = vst [vmem:[#allocation190_spill] sm:$0xff] %v6631_v61  ;;  %v6635_v21 = vpop.permute.xlu0 %1353 }
 0x22c   :  { %11859 = vst [vmem:[#allocation191_spill] sm:$0xff] %v6633_v62 }
 0x22d   :  { %11860 = vst [vmem:[#allocation192_spill] sm:$0xff] %v6635_v21  ;;  %v5363_v21 = vld [vmem:[%s11443_s1 + $0x48] sm:$0xff] }
 0x22e   :  { %v6932_v62 = vmul.f32 %v5363_v21, %v5363_v21 }
 0x230   :  { %1567 = vrot.lane.b32.xlu2 %v6254_v30, %s5473_s2  ;;  %1565 = vrot.lane.b32.xlu1 %v6257_v37, %s5473_s2  ;;  %v7031_v14 = vmul.f32 0.036000773, %v6932_v62  ;;  %v7115_v32 = vmul.f32 0.10936069, %v6932_v62 }
 0x231   :  { %1563 = vrot.lane.b32.xlu0 %v6260_v36, %s5473_s2 }
 0x232   :  { %v6643_v48 = vpop.permute.xlu2 %1429  ;;  %v6645_v8 = vpop.permute.xlu1 %1361 }
 0x233   :  { %11861 = vst [vmem:[#allocation193_spill] sm:$0xff] %v6643_v48  ;;  %v6647_v1 = vpop.permute.xlu0 %1359 }
 0x234   :  { %11862 = vst [vmem:[#allocation194_spill] sm:$0xff] %v6645_v8 }
 0x235   :  { %11863 = vst [vmem:[#allocation195_spill] sm:$0xff] %v6647_v1 }
 0x238   :  { %1573 = vrot.lane.b32.xlu2 %v6275_v52, %s5473_s2  ;;  %1571 = vrot.lane.b32.xlu1 %v6278_v63, %s5473_s2 }
 0x239   :  { %1569 = vrot.lane.b32.xlu0 %v6281_v56, %s5473_s2 }
 0x23a   :  { %v6655_v30 = vpop.permute.xlu2 %1435  ;;  %v6657_v37 = vpop.permute.xlu1 %1367 }
 0x23b   :  { %11864 = vst [vmem:[#allocation196_spill] sm:$0xff] %v6655_v30  ;;  %v6659_v36 = vpop.permute.xlu0 %1365 }
 0x23c   :  { %11865 = vst [vmem:[#allocation197_spill] sm:$0xff] %v6657_v37  ;;  %v5360_v37 = vld [vmem:[%s11443_s1 + $0x30] sm:$0xff] }
 0x23d   :  { %11866 = vst [vmem:[#allocation198_spill] sm:$0xff] %v6659_v36  ;;  %v6896_v30 = vmul.f32 %v5360_v37, %v5360_v37  ;;  %v5361_v37 = vld [vmem:[%s11443_s1 + $0x58] sm:$0xff] }
 0x23f   :  { %v7010_v4 = vmul.f32 0.036000773, %v6896_v30  ;;  %v7094_v40 = vmul.f32 0.10936069, %v6896_v30 }
 0x240   :  { %1579 = vrot.lane.b32.xlu2 %v6296_v59, %s5473_s2  ;;  %1577 = vrot.lane.b32.xlu1 %v6299_v58, %s5473_s2 }
 0x241   :  { %1575 = vrot.lane.b32.xlu0 %v6302_v42, %s5473_s2 }
 0x242   :  { %v6667_v52 = vpop.permute.xlu2 %1441  ;;  %v6669_v63 = vpop.permute.xlu1 %1421 }
 0x243   :  { %11867 = vst [vmem:[#allocation199_spill] sm:$0xff] %v6667_v52  ;;  %v6671_v56 = vpop.permute.xlu0 %1419 }
 0x244   :  { %11868 = vst [vmem:[#allocation200_spill] sm:$0xff] %v6669_v63 }
 0x245   :  { %11869 = vst [vmem:[#allocation201_spill] sm:$0xff] %v6671_v56 }
 0x248   :  { %1585 = vrot.lane.b32.xlu2 %v6317_v55, %s5473_s2  ;;  %1583 = vrot.lane.b32.xlu1 %v6320_v54, %s5473_s2 }
 0x249   :  { %1581 = vrot.lane.b32.xlu0 %v6323_v53, %s5473_s2 }
 0x24a   :  { %v6679_v59 = vpop.permute.xlu2 %1471  ;;  %v6681_v58 = vpop.permute.xlu1 %1427 }
 0x24b   :  { %11870 = vst [vmem:[#allocation202_spill] sm:$0xff] %v6679_v59  ;;  %v6683_v42 = vpop.permute.xlu0 %1425 }
 0x24c   :  { %11871 = vst [vmem:[#allocation203_spill] sm:$0xff] %v6681_v58  ;;  %v5357_v58 = vld [vmem:[%s11443_s1 + $0x18] sm:$0xff] }
 0x24d   :  { %11872 = vst [vmem:[#allocation204_spill] sm:$0xff] %v6683_v42  ;;  %v6860_v56 = vmul.f32 %v5357_v58, %v5357_v58  ;;  %v5358_v58 = vld [vmem:[%s11443_s1 + $0x40] sm:$0xff] }
 0x24f   :  { %v6989_v3 = vmul.f32 0.036000773, %v6860_v56  ;;  %v7073_v39 = vmul.f32 0.10936069, %v6860_v56 }
 0x250   :  { %1615 = vrot.lane.b32.xlu2 %v6152_v16, %s5474_s24  ;;  %1613 = vrot.lane.b32.xlu1 %v6155_v34, %s5474_s24 }
 0x251   :  { %1611 = vrot.lane.b32.xlu0 %v6158_v33, %s5474_s24 }
 0x252   :  { %v6691_v55 = vpop.permute.xlu2 %1477  ;;  %v6693_v54 = vpop.permute.xlu1 %1433 }
 0x253   :  { %11873 = vst [vmem:[#allocation205_spill] sm:$0xff] %v6691_v55  ;;  %v6695_v53 = vpop.permute.xlu0 %1431 }
 0x254   :  { %11874 = vst [vmem:[#allocation206_spill] sm:$0xff] %v6693_v54 }
 0x255   :  { %11875 = vst [vmem:[#allocation207_spill] sm:$0xff] %v6695_v53 }
 0x258   :  { %1621 = vrot.lane.b32.xlu2 %v6179_v18, %s5474_s24  ;;  %1619 = vrot.lane.b32.xlu1 %v6182_v27, %s5474_s24 }
 0x259   :  { %1617 = vrot.lane.b32.xlu0 %v6185_v26, %s5474_s24 }
 0x25a   :  { %v6703_v16 = vpop.permute.xlu2 %1483  ;;  %v6705_v34 = vpop.permute.xlu1 %1439 }
 0x25b   :  { %11876 = vst [vmem:[#allocation208_spill] sm:$0xff] %v6703_v16  ;;  %v6707_v33 = vpop.permute.xlu0 %1437  ;;  %v11883_v16 = vld [vmem:[#allocation115_spill] sm:$0xff] }
 0x25c   :  { %11877 = vst [vmem:[#allocation209_spill] sm:$0xff] %v6705_v34 }
 0x25d   :  { %11878 = vst [vmem:[#allocation210_spill] sm:$0xff] %v6707_v33  ;;  %v11884_v33 = vld [vmem:[#allocation116_spill] sm:$0xff] }
 0x260   :  { %1627 = vrot.lane.b32.xlu2 %v6206_v46, %s5474_s24  ;;  %1625 = vrot.lane.b32.xlu1 %v6209_v45, %s5474_s24  ;;  %v11885_v46 = vld [vmem:[#allocation117_spill] sm:$0xff] }
 0x261   :  { %1623 = vrot.lane.b32.xlu0 %v11879_v13, %s5474_s24 }
 0x262   :  { %v6715_v18 = vpop.permute.xlu2 %1489  ;;  %v6717_v27 = vpop.permute.xlu1 %1469 }
 0x263   :  { %11880 = vst [vmem:[#allocation111_spill] sm:$0xff] %v6715_v18  ;;  %v6719_v26 = vpop.permute.xlu0 %1467  ;;  %v6734_v18 = vmul.f32 0.0010283801, %v6139_v0 }
 0x264   :  { %11881 = vst [vmem:[#allocation211_spill] sm:$0xff] %v6717_v27  ;;  %v11890_v27 = vld [vmem:[#allocation101_spill] sm:$0xff] }
 0x265   :  { %11882 = vst [vmem:[#allocation212_spill] sm:$0xff] %v6719_v26  ;;  %v6737_v26 = vmul.f32 0.0010283801, %v11890_v27  ;;  %v6755_v27 = vmul.f32 0.0010283801, %v6166_v19 }
 0x266   :  { %11889 = vst [vmem:[#allocation213_spill] sm:$0xff] %v6734_v18 }
 0x267   :  { %11891 = vst [vmem:[#allocation101_spill] sm:$0xff] %v6737_v26 }
 0x268   :  { %1633 = vrot.lane.b32.xlu2 %v11883_v16, %s5474_s24  ;;  %1631 = vrot.lane.b32.xlu1 %v11884_v33, %s5474_s24  ;;  %v6740_v16 = vmul.f32 0.0010283801, %v6147_v15  ;;  %11896 = vst [vmem:[#allocation218_spill] sm:$0xff] %v6755_v27  ;;  %v6758_v15 = vmul.f32 0.0010283801, %v6168_v20 }
 0x269   :  { %1629 = vrot.lane.b32.xlu0 %v11885_v46, %s5474_s24  ;;  %v6776_v20 = vmul.f32 0.0010283801, %v6193_v31 }
 0x26a   :  { %v6727_v34 = vpop.permute.xlu2 %1519  ;;  %v6729_v45 = vpop.permute.xlu1 %1475  ;;  %11892 = vst [vmem:[#allocation214_spill] sm:$0xff] %v6740_v16 }
 0x26b   :  { %11886 = vst [vmem:[#allocation115_spill] sm:$0xff] %v6727_v34  ;;  %v6731_v13 = vpop.permute.xlu0 %1473 }
 0x26c   :  { %11887 = vst [vmem:[#allocation116_spill] sm:$0xff] %v6729_v45 }
 0x26d   :  { %11888 = vst [vmem:[#allocation117_spill] sm:$0xff] %v6731_v13  ;;  %v6761_v13 = vmul.f32 0.0010283801, %v6174_v29  ;;  %v6779_v29 = vmul.f32 0.0010283801, %v6195_v28 }
 0x26e   :  { %11897 = vst [vmem:[#allocation219_spill] sm:$0xff] %v6758_v15  ;;  %v6797_v28 = vmul.f32 0.0010283801, %v6220_v25  ;;  %v5354_v25 = vld [vmem:[%s11443_s1] sm:$0xff] }
 0x26f   :  { %11898 = vst [vmem:[#allocation220_spill] sm:$0xff] %v6761_v13 }
 0x270   :  { %1675 = vrot.lane.b32.xlu2 %v6734_v18, %s5475_s25  ;;  %1673 = vrot.lane.b32.xlu1 %v6737_v26, %s5475_s25  ;;  %11902 = vst [vmem:[#allocation224_spill] sm:$0xff] %v6776_v20  ;;  %v7178_v26 = vmul.f32 0.21300554, %v6896_v30 }
 0x271   :  { %1671 = vrot.lane.b32.xlu0 %v6740_v16, %s5475_s25  ;;  %11903 = vst [vmem:[#allocation225_spill] sm:$0xff] %v6779_v29 }
 0x272   :  { %v6748_v33 = vpop.permute.xlu2 %1525  ;;  %v6750_v46 = vpop.permute.xlu1 %1481  ;;  %11908 = vst [vmem:[#allocation230_spill] sm:$0xff] %v6797_v28 }
 0x273   :  { %11893 = vst [vmem:[#allocation215_spill] sm:$0xff] %v6748_v33  ;;  %v6752_v0 = vpop.permute.xlu0 %1479  ;;  %v6782_v33 = vmul.f32 0.0010283801, %v6201_v24  ;;  %v6800_v24 = vmul.f32 0.0010283801, %v6222_v47 }
 0x274   :  { %11894 = vst [vmem:[#allocation216_spill] sm:$0xff] %v6750_v46 }
 0x275   :  { %11895 = vst [vmem:[#allocation217_spill] sm:$0xff] %v6752_v0 }
 0x276   :  { %11904 = vst [vmem:[#allocation226_spill] sm:$0xff] %v6782_v33 }
 0x277   :  { %11909 = vst [vmem:[#allocation231_spill] sm:$0xff] %v6800_v24 }
 0x278   :  { %1681 = vrot.lane.b32.xlu2 %v6755_v27, %s5475_s25  ;;  %1679 = vrot.lane.b32.xlu1 %v6758_v15, %s5475_s25  ;;  %v2316_v27 = vmul.f32 0.21300554, %v6932_v62 }
 0x279   :  { %1677 = vrot.lane.b32.xlu0 %v6761_v13, %s5475_s25  ;;  %v7157_v13 = vmul.f32 0.21300554, %v6860_v56 }
 0x27a   :  { %v6769_v46 = vpop.permute.xlu2 %1531  ;;  %v6771_v0 = vpop.permute.xlu1 %1487 }
 0x27b   :  { %11899 = vst [vmem:[#allocation221_spill] sm:$0xff] %v6769_v46  ;;  %v6773_v19 = vpop.permute.xlu0 %1485  ;;  %v6803_v46 = vmul.f32 0.0010283801, %v6228_v43  ;;  %v5353_v43 = vld [vmem:[%s11443_s1 + $0x8] sm:$0xff] }
 0x27c   :  { %11900 = vst [vmem:[#allocation222_spill] sm:$0xff] %v6771_v0  ;;  %v6819_v47 = vmul.f32 %v5353_v43, %v5353_v43 }
 0x27d   :  { %11901 = vst [vmem:[#allocation223_spill] sm:$0xff] %v6773_v19 }
 0x27e   :  { %11910 = vst [vmem:[#allocation232_spill] sm:$0xff] %v6803_v46  ;;  %v6836_v55 = vmul.f32 0.007598758, %v6819_v47  ;;  %v6965_v49 = vmul.f32 0.036000773, %v6819_v47 }
 0x27f   :  { %11911 = vst [vmem:[#allocation233_spill] sm:$0xff] %v6819_v47  ;;  %v7049_v5 = vmul.f32 0.10936069, %v6819_v47 }
 0x280   :  { %1687 = vrot.lane.b32.xlu2 %v6776_v20, %s5475_s25  ;;  %1685 = vrot.lane.b32.xlu1 %v6779_v29, %s5475_s25 }
 0x281   :  { %1683 = vrot.lane.b32.xlu0 %v6782_v33, %s5475_s25 }
 0x282   :  { %v6790_v0 = vpop.permute.xlu2 %1537  ;;  %v6792_v19 = vpop.permute.xlu1 %1517 }
 0x283   :  { %11905 = vst [vmem:[#allocation227_spill] sm:$0xff] %v6790_v0  ;;  %v6794_v31 = vpop.permute.xlu0 %1515  ;;  %v5352_v0 = vld [vmem:[%s11443_s1 + $0x10] sm:$0xff] }
 0x284   :  { %11906 = vst [vmem:[#allocation228_spill] sm:$0xff] %v6792_v19  ;;  %v6810_v45 = vmul.f32 %v5352_v0, %v5352_v0 }
 0x285   :  { %11907 = vst [vmem:[#allocation229_spill] sm:$0xff] %v6794_v31  ;;  %v6824_v31 = vmul.f32 %v5354_v25, %v5354_v25  ;;  %v5355_v25 = vld [vmem:[%s11443_s1 + $0x28] sm:$0xff] }
 0x286   :  { %v6833_v54 = vmul.f32 0.007598758, %v6810_v45  ;;  %v6846_v42 = vmul.f32 %v5355_v25, %v5355_v25  ;;  %v7046_v7 = vmul.f32 0.10936069, %v6810_v45  ;;  %v7130_v38 = vmul.f32 0.21300554, %v6810_v45 }
 0x287   :  { %v6839_v43 = vmul.f32 0.007598758, %v6824_v31  ;;  %v6968_v50 = vmul.f32 0.036000773, %v6824_v31  ;;  %v7052_v9 = vmul.f32 0.10936069, %v6824_v31 }
 0x288   :  { %1693 = vrot.lane.b32.xlu2 %v6797_v28, %s5475_s25  ;;  %1691 = vrot.lane.b32.xlu1 %v6800_v24, %s5475_s25  ;;  %v6869_v52 = vmul.f32 0.007598758, %v6846_v42  ;;  %v6983_v51 = vmul.f32 0.036000773, %v6846_v42  ;;  %v7067_v60 = vmul.f32 0.10936069, %v6846_v42 }
 0x289   :  { %1689 = vrot.lane.b32.xlu0 %v6803_v46, %s5475_s25  ;;  %v7133_v46 = vmul.f32 0.21300554, %v6819_v47  ;;  %v7136_v24 = vmul.f32 0.21300554, %v6824_v31  ;;  %v7151_v33 = vmul.f32 0.21300554, %v6846_v42 }
 0x28a   :  { %v6826_v0 = vpop.permute.xlu2 %1567  ;;  %v6828_v19 = vpop.permute.xlu1 %1523 }
 0x28b   :  { %11912 = vst [vmem:[#allocation234_spill] sm:$0xff] %v6826_v0  ;;  %v6830_v53 = vpop.permute.xlu0 %1521 }
 0x28c   :  { %11913 = vst [vmem:[#allocation235_spill] sm:$0xff] %v6828_v19 }
 0x28d   :  { %11914 = vst [vmem:[#allocation236_spill] sm:$0xff] %v6830_v53  ;;  %v5356_v53 = vld [vmem:[%s11443_s1 + $0x20] sm:$0xff] }
 0x28e   :  { %v6855_v19 = vmul.f32 %v5356_v53, %v5356_v53  ;;  %v6875_v53 = vmul.f32 0.007598758, %v6860_v56 }
 0x290   :  { %2119 = vrot.lane.b32.xlu2 %v6833_v54, %s5466_s27  ;;  %2117 = vrot.lane.b32.xlu1 %v6836_v55, %s5466_s27  ;;  %v6872_v36 = vmul.f32 0.007598758, %v6855_v19  ;;  %v6986_v61 = vmul.f32 0.036000773, %v6855_v19  ;;  %v7070_v41 = vmul.f32 0.10936069, %v6855_v19 }
 0x291   :  { %2115 = vrot.lane.b32.xlu0 %v6839_v43, %s5466_s27  ;;  %v7154_v29 = vmul.f32 0.21300554, %v6855_v19 }
 0x292   :  { %v6862_v25 = vpop.permute.xlu2 %1573  ;;  %v6864_v63 = vpop.permute.xlu1 %1529 }
 0x293   :  { %11915 = vst [vmem:[#allocation237_spill] sm:$0xff] %v6862_v25  ;;  %v6866_v0 = vpop.permute.xlu0 %1527  ;;  %v6882_v25 = vmul.f32 %v5358_v58, %v5358_v58 }
 0x294   :  { %11916 = vst [vmem:[#allocation238_spill] sm:$0xff] %v6864_v63 }
 0x295   :  { %11917 = vst [vmem:[#allocation239_spill] sm:$0xff] %v6866_v0  ;;  %v5359_v0 = vld [vmem:[%s11443_s1 + $0x38] sm:$0xff]  ;;  %v6905_v48 = vmul.f32 0.007598758, %v6882_v25  ;;  %v7004_v2 = vmul.f32 0.036000773, %v6882_v25 }
 0x296   :  { %v6891_v63 = vmul.f32 %v5359_v0, %v5359_v0  ;;  %v6911_v0 = vmul.f32 0.007598758, %v6896_v30  ;;  %v7088_v44 = vmul.f32 0.10936069, %v6882_v25  ;;  %v7172_v15 = vmul.f32 0.21300554, %v6882_v25 }
 0x298   :  { %2125 = vrot.lane.b32.xlu2 %v6869_v52, %s5466_s27  ;;  %2123 = vrot.lane.b32.xlu1 %v6872_v36, %s5466_s27  ;;  %v6908_v34 = vmul.f32 0.007598758, %v6891_v63  ;;  %11921 = vst [vmem:[#allocation243_spill] sm:$0xff] %v6911_v0  ;;  %v7007_v6 = vmul.f32 0.036000773, %v6891_v63 }
 0x299   :  { %2121 = vrot.lane.b32.xlu0 %v6875_v53, %s5466_s27  ;;  %v7091_v11 = vmul.f32 0.10936069, %v6891_v63  ;;  %v7175_v16 = vmul.f32 0.21300554, %v6891_v63 }
 0x29a   :  { %v6898_v58 = vpop.permute.xlu2 %1579  ;;  %v6900_v1 = vpop.permute.xlu1 %1535 }
 0x29b   :  { %11918 = vst [vmem:[#allocation240_spill] sm:$0xff] %v6898_v58  ;;  %v6902_v8 = vpop.permute.xlu0 %1533  ;;  %v6918_v58 = vmul.f32 %v5361_v37, %v5361_v37 }
 0x29c   :  { %11919 = vst [vmem:[#allocation241_spill] sm:$0xff] %v6900_v1 }
 0x29d   :  { %11920 = vst [vmem:[#allocation242_spill] sm:$0xff] %v6902_v8  ;;  %v5362_v8 = vld [vmem:[%s11443_s1 + $0x50] sm:$0xff]  ;;  %v6941_v57 = vmul.f32 0.007598758, %v6918_v58  ;;  %v7025_v17 = vmul.f32 0.036000773, %v6918_v58 }
 0x29e   :  { %v6927_v1 = vmul.f32 %v5362_v8, %v5362_v8  ;;  %v6947_v8 = vmul.f32 0.007598758, %v6932_v62  ;;  %v7109_v35 = vmul.f32 0.10936069, %v6918_v58  ;;  %v2318_v28 = vmul.f32 0.21300554, %v6918_v58 }
 0x29f   :  { %11925 = vst [vmem:[#allocation247_spill] sm:$0xff] %v6941_v57 }
 0x2a0   :  { %2131 = vrot.lane.b32.xlu2 %v6905_v48, %s5466_s27  ;;  %2129 = vrot.lane.b32.xlu1 %v6908_v34, %s5466_s27  ;;  %v6944_v23 = vmul.f32 0.007598758, %v6927_v1  ;;  %11927 = vst [vmem:[#allocation249_spill] sm:$0xff] %v6947_v8  ;;  %v7028_v10 = vmul.f32 0.036000773, %v6927_v1 }
 0x2a1   :  { %2127 = vrot.lane.b32.xlu0 %v6911_v0, %s5466_s27  ;;  %v7112_v12 = vmul.f32 0.10936069, %v6927_v1  ;;  %v2317_v20 = vmul.f32 0.21300554, %v6927_v1 }
 0x2a2   :  { %v6934_v37 = vpop.permute.xlu2 %1585  ;;  %v6936_v22 = vpop.permute.xlu1 %1565  ;;  %11926 = vst [vmem:[#allocation248_spill] sm:$0xff] %v6944_v23 }
 0x2a3   :  { %11922 = vst [vmem:[#allocation244_spill] sm:$0xff] %v6934_v37  ;;  %v6938_v59 = vpop.permute.xlu0 %1563  ;;  %v6962_v37 = vmul.f32 0.036000773, %v6810_v45 }
 0x2a4   :  { %11923 = vst [vmem:[#allocation245_spill] sm:$0xff] %v6936_v22 }
 0x2a5   :  { %11924 = vst [vmem:[#allocation246_spill] sm:$0xff] %v6938_v59 }
 0x2a8   :  { %2137 = vrot.lane.b32.xlu2 %v6941_v57, %s5466_s27  ;;  %2135 = vrot.lane.b32.xlu1 %v6944_v23, %s5466_s27  ;;  %v2379_v23 = vmul.f32 0.26601171, %v6824_v31 }
 0x2a9   :  { %2133 = vrot.lane.b32.xlu0 %v6947_v8, %s5466_s27 }
 0x2aa   :  { %v6955_v21 = vpop.permute.xlu2 %1615  ;;  %v6957_v59 = vpop.permute.xlu1 %1571 }
 0x2ab   :  { %11928 = vst [vmem:[#allocation250_spill] sm:$0xff] %v6955_v21  ;;  %v6959_v22 = vpop.permute.xlu0 %1569 }
 0x2ac   :  { %11929 = vst [vmem:[#allocation251_spill] sm:$0xff] %v6957_v59 }
 0x2ad   :  { %11930 = vst [vmem:[#allocation252_spill] sm:$0xff] %v6959_v22 }
 0x2b0   :  { %2191 = vrot.lane.b32.xlu2 %v6962_v37, %s5467_s19  ;;  %2189 = vrot.lane.b32.xlu1 %v6965_v49, %s5467_s19 }
 0x2b1   :  { %2187 = vrot.lane.b32.xlu0 %v6968_v50, %s5467_s19 }
 0x2b2   :  { %v6976_v59 = vpop.permute.xlu2 %1621  ;;  %v6978_v22 = vpop.permute.xlu1 %1577 }
 0x2b3   :  { %11931 = vst [vmem:[#allocation253_spill] sm:$0xff] %v6976_v59  ;;  %v6980_v21 = vpop.permute.xlu0 %1575 }
 0x2b4   :  { %11932 = vst [vmem:[#allocation254_spill] sm:$0xff] %v6978_v22 }
 0x2b5   :  { %11933 = vst [vmem:[#allocation255_spill] sm:$0xff] %v6980_v21 }
 0x2b8   :  { %2197 = vrot.lane.b32.xlu2 %v6983_v51, %s5467_s19  ;;  %2195 = vrot.lane.b32.xlu1 %v6986_v61, %s5467_s19 }
 0x2b9   :  { %2193 = vrot.lane.b32.xlu0 %v6989_v3, %s5467_s19 }
 0x2ba   :  { %v6997_v22 = vpop.permute.xlu2 %1627  ;;  %v6999_v21 = vpop.permute.xlu1 %1583 }
 0x2bb   :  { %11934 = vst [vmem:[#allocation256_spill] sm:$0xff] %v6997_v22  ;;  %v7001_v59 = vpop.permute.xlu0 %1581 }
 0x2bc   :  { %11935 = vst [vmem:[#allocation257_spill] sm:$0xff] %v6999_v21 }
 0x2bd   :  { %11936 = vst [vmem:[#allocation258_spill] sm:$0xff] %v7001_v59 }
 0x2c0   :  { %2203 = vrot.lane.b32.xlu2 %v7004_v2, %s5467_s19  ;;  %2201 = vrot.lane.b32.xlu1 %v7007_v6, %s5467_s19 }
 0x2c1   :  { %2199 = vrot.lane.b32.xlu0 %v7010_v4, %s5467_s19 }
 0x2c2   :  { %v7018_v21 = vpop.permute.xlu2 %1633  ;;  %v7020_v59 = vpop.permute.xlu1 %1613 }
 0x2c3   :  { %11937 = vst [vmem:[#allocation259_spill] sm:$0xff] %v7018_v21  ;;  %v7022_v22 = vpop.permute.xlu0 %1611 }
 0x2c4   :  { %11938 = vst [vmem:[#allocation260_spill] sm:$0xff] %v7020_v59 }
 0x2c5   :  { %11939 = vst [vmem:[#allocation261_spill] sm:$0xff] %v7022_v22 }
 0x2c8   :  { %2209 = vrot.lane.b32.xlu2 %v7025_v17, %s5467_s19  ;;  %2207 = vrot.lane.b32.xlu1 %v7028_v10, %s5467_s19 }
 0x2c9   :  { %2205 = vrot.lane.b32.xlu0 %v7031_v14, %s5467_s19 }
 0x2ca   :  { %v7039_v59 = vpop.permute.xlu2 %1675  ;;  %v7041_v22 = vpop.permute.xlu1 %1619 }
 0x2cb   :  { %11940 = vst [vmem:[#allocation262_spill] sm:$0xff] %v7039_v59  ;;  %v7043_v21 = vpop.permute.xlu0 %1617 }
 0x2cc   :  { %11941 = vst [vmem:[#allocation263_spill] sm:$0xff] %v7041_v22 }
 0x2cd   :  { %11942 = vst [vmem:[#allocation264_spill] sm:$0xff] %v7043_v21 }
 0x2d0   :  { %2263 = vrot.lane.b32.xlu2 %v7046_v7, %s5468_s20  ;;  %2261 = vrot.lane.b32.xlu1 %v7049_v5, %s5468_s20 }
 0x2d1   :  { %2259 = vrot.lane.b32.xlu0 %v7052_v9, %s5468_s20 }
 0x2d2   :  { %v7060_v22 = vpop.permute.xlu2 %1681  ;;  %v7062_v21 = vpop.permute.xlu1 %1625 }
 0x2d3   :  { %11943 = vst [vmem:[#allocation265_spill] sm:$0xff] %v7060_v22  ;;  %v7064_v59 = vpop.permute.xlu0 %1623 }
 0x2d4   :  { %11944 = vst [vmem:[#allocation266_spill] sm:$0xff] %v7062_v21 }
 0x2d5   :  { %11945 = vst [vmem:[#allocation267_spill] sm:$0xff] %v7064_v59 }
 0x2d8   :  { %2269 = vrot.lane.b32.xlu2 %v7067_v60, %s5468_s20  ;;  %2267 = vrot.lane.b32.xlu1 %v7070_v41, %s5468_s20 }
 0x2d9   :  { %2265 = vrot.lane.b32.xlu0 %v7073_v39, %s5468_s20 }
 0x2da   :  { %v7081_v21 = vpop.permute.xlu2 %1687  ;;  %v7083_v59 = vpop.permute.xlu1 %1631 }
 0x2db   :  { %11946 = vst [vmem:[#allocation268_spill] sm:$0xff] %v7081_v21  ;;  %v7085_v22 = vpop.permute.xlu0 %1629 }
 0x2dc   :  { %11947 = vst [vmem:[#allocation269_spill] sm:$0xff] %v7083_v59 }
 0x2dd   :  { %11948 = vst [vmem:[#allocation270_spill] sm:$0xff] %v7085_v22 }
 0x2e0   :  { %2275 = vrot.lane.b32.xlu2 %v7088_v44, %s5468_s20  ;;  %2273 = vrot.lane.b32.xlu1 %v7091_v11, %s5468_s20 }
 0x2e1   :  { %2271 = vrot.lane.b32.xlu0 %v7094_v40, %s5468_s20 }
 0x2e2   :  { %v7102_v59 = vpop.permute.xlu2 %1693  ;;  %v7104_v22 = vpop.permute.xlu1 %1673 }
 0x2e3   :  { %11949 = vst [vmem:[#allocation271_spill] sm:$0xff] %v7102_v59  ;;  %v7106_v21 = vpop.permute.xlu0 %1671 }
 0x2e4   :  { %11950 = vst [vmem:[#allocation272_spill] sm:$0xff] %v7104_v22 }
 0x2e5   :  { %11951 = vst [vmem:[#allocation273_spill] sm:$0xff] %v7106_v21 }
 0x2e8   :  { %2281 = vrot.lane.b32.xlu2 %v7109_v35, %s5468_s20  ;;  %2279 = vrot.lane.b32.xlu1 %v7112_v12, %s5468_s20 }
 0x2e9   :  { %2277 = vrot.lane.b32.xlu0 %v7115_v32, %s5468_s20 }
 0x2ea   :  { %v7123_v22 = vpop.permute.xlu2 %2119  ;;  %v7125_v21 = vpop.permute.xlu1 %1679 }
 0x2eb   :  { %11952 = vst [vmem:[#allocation274_spill] sm:$0xff] %v7123_v22  ;;  %v7127_v59 = vpop.permute.xlu0 %1677 }
 0x2ec   :  { %11953 = vst [vmem:[#allocation275_spill] sm:$0xff] %v7125_v21 }
 0x2ed   :  { %11954 = vst [vmem:[#allocation276_spill] sm:$0xff] %v7127_v59 }
 0x2f0   :  { %2335 = vrot.lane.b32.xlu2 %v7130_v38, %s5469_s21  ;;  %2333 = vrot.lane.b32.xlu1 %v7133_v46, %s5469_s21 }
 0x2f1   :  { %2331 = vrot.lane.b32.xlu0 %v7136_v24, %s5469_s21 }
 0x2f2   :  { %v7144_v22 = vpop.permute.xlu2 %2125  ;;  %v7146_v59 = vpop.permute.xlu1 %1685 }
 0x2f3   :  { %11955 = vst [vmem:[#allocation277_spill] sm:$0xff] %v7144_v22  ;;  %v7148_v21 = vpop.permute.xlu0 %1683 }
 0x2f4   :  { %11956 = vst [vmem:[#allocation278_spill] sm:$0xff] %v7146_v59 }
 0x2f5   :  { %11957 = vst [vmem:[#allocation279_spill] sm:$0xff] %v7148_v21 }
 0x2f8   :  { %2341 = vrot.lane.b32.xlu2 %v7151_v33, %s5469_s21  ;;  %2339 = vrot.lane.b32.xlu1 %v7154_v29, %s5469_s21 }
 0x2f9   :  { %2337 = vrot.lane.b32.xlu0 %v7157_v13, %s5469_s21 }
 0x2fa   :  { %v7165_v22 = vpop.permute.xlu2 %2131  ;;  %v7167_v59 = vpop.permute.xlu1 %1691 }
 0x2fb   :  { %11958 = vst [vmem:[#allocation280_spill] sm:$0xff] %v7165_v22  ;;  %v7169_v21 = vpop.permute.xlu0 %1689 }
 0x2fc   :  { %11959 = vst [vmem:[#allocation281_spill] sm:$0xff] %v7167_v59 }
 0x2fd   :  { %11960 = vst [vmem:[#allocation282_spill] sm:$0xff] %v7169_v21 }
 0x300   :  { %2347 = vrot.lane.b32.xlu2 %v7172_v15, %s5469_s21  ;;  %2345 = vrot.lane.b32.xlu1 %v7175_v16, %s5469_s21 }
 0x301   :  { %2343 = vrot.lane.b32.xlu0 %v7178_v26, %s5469_s21 }
 0x302   :  { %v7186_v22 = vpop.permute.xlu2 %2137  ;;  %v7188_v21 = vpop.permute.xlu1 %2117 }
 0x303   :  { %11961 = vst [vmem:[#allocation283_spill] sm:$0xff] %v7186_v22  ;;  %v7190_v59 = vpop.permute.xlu0 %2115 }
 0x304   :  { %11962 = vst [vmem:[#allocation284_spill] sm:$0xff] %v7188_v21  ;;  %v2380_v21 = vmul.f32 0.26601171, %v6819_v47  ;;  %v2382_v47 = vmul.f32 0.26601171, %v6860_v56 }
 0x305   :  { %11963 = vst [vmem:[#allocation285_spill] sm:$0xff] %v7190_v59  ;;  %v2381_v59 = vmul.f32 0.26601171, %v6810_v45 }
 0x308   :  { %2353 = vrot.lane.b32.xlu2 %v2318_v28, %s5469_s21  ;;  %2351 = vrot.lane.b32.xlu1 %v2317_v20, %s5469_s21 }
 0x309   :  { %2349 = vrot.lane.b32.xlu0 %v2316_v27, %s5469_s21 }
 0x30a   :  { %v7198_v18 = vpop.permute.xlu2 %2191  ;;  %v7200_v8 = vpop.permute.xlu1 %2123 }
 0x30b   :  { %11964 = vst [vmem:[#allocation286_spill] sm:$0xff] %v7198_v18  ;;  %v7202_v22 = vpop.permute.xlu0 %2121 }
 0x30c   :  { %11965 = vst [vmem:[#allocation287_spill] sm:$0xff] %v7200_v8  ;;  %v2383_v8 = vmul.f32 0.26601171, %v6855_v19 }
 0x30d   :  { %11966 = vst [vmem:[#allocation288_spill] sm:$0xff] %v7202_v22  ;;  %v2384_v22 = vmul.f32 0.26601171, %v6846_v42 }
 0x310   :  { %2407 = vrot.lane.b32.xlu2 %v2381_v59, %s5470_s22  ;;  %2405 = vrot.lane.b32.xlu1 %v2380_v21, %s5470_s22 }
 0x311   :  { %2403 = vrot.lane.b32.xlu0 %v2379_v23, %s5470_s22 }
 0x312   :  { %v7210_v57 = vpop.permute.xlu2 %2197  ;;  %v7212_v0 = vpop.permute.xlu1 %2129 }
 0x313   :  { %11967 = vst [vmem:[#allocation289_spill] sm:$0xff] %v7210_v57  ;;  %v7214_v18 = vpop.permute.xlu0 %2127  ;;  %v2385_v57 = vmul.f32 0.26601171, %v6896_v30 }
 0x314   :  { %11968 = vst [vmem:[#allocation290_spill] sm:$0xff] %v7212_v0  ;;  %v2386_v0 = vmul.f32 0.26601171, %v6891_v63 }
 0x315   :  { %11969 = vst [vmem:[#allocation291_spill] sm:$0xff] %v7214_v18  ;;  %v2387_v18 = vmul.f32 0.26601171, %v6882_v25 }
 0x318   :  { %2413 = vrot.lane.b32.xlu2 %v2384_v22, %s5470_s22  ;;  %2411 = vrot.lane.b32.xlu1 %v2383_v8, %s5470_s22 }
 0x319   :  { %2409 = vrot.lane.b32.xlu0 %v2382_v47, %s5470_s22 }
 0x31a   :  { %v7222_v59 = vpop.permute.xlu2 %2203  ;;  %v7224_v23 = vpop.permute.xlu1 %2135 }
 0x31b   :  { %11970 = vst [vmem:[#allocation292_spill] sm:$0xff] %v7222_v59  ;;  %v7226_v21 = vpop.permute.xlu0 %2133  ;;  %v2388_v59 = vmul.f32 0.26601171, %v6932_v62 }
 0x31c   :  { %11971 = vst [vmem:[#allocation293_spill] sm:$0xff] %v7224_v23  ;;  %v2389_v23 = vmul.f32 0.26601171, %v6927_v1 }
 0x31d   :  { %11972 = vst [vmem:[#allocation294_spill] sm:$0xff] %v7226_v21  ;;  %v2390_v21 = vmul.f32 0.26601171, %v6918_v58 }
 0x320   :  { %2419 = vrot.lane.b32.xlu2 %v2387_v18, %s5470_s22  ;;  %2417 = vrot.lane.b32.xlu1 %v2386_v0, %s5470_s22 }
 0x321   :  { %2415 = vrot.lane.b32.xlu0 %v2385_v57, %s5470_s22 }
 0x322   :  { %v7234_v22 = vpop.permute.xlu2 %2209  ;;  %v7236_v47 = vpop.permute.xlu1 %2189 }
 0x323   :  { %11973 = vst [vmem:[#allocation295_spill] sm:$0xff] %v7234_v22  ;;  %v7238_v8 = vpop.permute.xlu0 %2187 }
 0x324   :  { %11974 = vst [vmem:[#allocation296_spill] sm:$0xff] %v7236_v47 }
 0x325   :  { %11975 = vst [vmem:[#allocation297_spill] sm:$0xff] %v7238_v8 }
 0x328   :  { %2425 = vrot.lane.b32.xlu2 %v2390_v21, %s5470_s22  ;;  %2423 = vrot.lane.b32.xlu1 %v2389_v23, %s5470_s22 }
 0x329   :  { %2421 = vrot.lane.b32.xlu0 %v2388_v59, %s5470_s22 }
 0x32a   :  { %v7246_v18 = vpop.permute.xlu2 %2263  ;;  %v7248_v57 = vpop.permute.xlu1 %2195 }
 0x32b   :  { %11976 = vst [vmem:[#allocation298_spill] sm:$0xff] %v7246_v18  ;;  %v7250_v0 = vpop.permute.xlu0 %2193 }
 0x32c   :  { %11977 = vst [vmem:[#allocation299_spill] sm:$0xff] %v7248_v57 }
 0x32d   :  { %11978 = vst [vmem:[#allocation300_spill] sm:$0xff] %v7250_v0 }
 0x330   :  { %2455 = vrot.lane.b32.xlu2 %v7130_v38, %s5471_s0  ;;  %2453 = vrot.lane.b32.xlu1 %v7133_v46, %s5471_s0 }
 0x331   :  { %2451 = vrot.lane.b32.xlu0 %v7136_v24, %s5471_s0 }
 0x332   :  { %v7258_v21 = vpop.permute.xlu2 %2269  ;;  %v7260_v23 = vpop.permute.xlu1 %2201 }
 0x333   :  { %11979 = vst [vmem:[#allocation301_spill] sm:$0xff] %v7258_v21  ;;  %v7262_v59 = vpop.permute.xlu0 %2199 }
 0x334   :  { %11980 = vst [vmem:[#allocation302_spill] sm:$0xff] %v7260_v23 }
 0x335   :  { %11981 = vst [vmem:[#allocation303_spill] sm:$0xff] %v7262_v59 }
 0x338   :  { %2461 = vrot.lane.b32.xlu2 %v7151_v33, %s5471_s0  ;;  %2459 = vrot.lane.b32.xlu1 %v7154_v29, %s5471_s0 }
 0x339   :  { %2457 = vrot.lane.b32.xlu0 %v7157_v13, %s5471_s0 }
 0x33a   :  { %v7270_v38 = vpop.permute.xlu2 %2275  ;;  %v7272_v46 = vpop.permute.xlu1 %2207 }
 0x33b   :  { %11982 = vst [vmem:[#allocation304_spill] sm:$0xff] %v7270_v38  ;;  %v7274_v24 = vpop.permute.xlu0 %2205 }
 0x33c   :  { %11983 = vst [vmem:[#allocation305_spill] sm:$0xff] %v7272_v46 }
 0x33d   :  { %11984 = vst [vmem:[#allocation306_spill] sm:$0xff] %v7274_v24 }
 0x340   :  { %2467 = vrot.lane.b32.xlu2 %v7172_v15, %s5471_s0  ;;  %2465 = vrot.lane.b32.xlu1 %v7175_v16, %s5471_s0 }
 0x341   :  { %2463 = vrot.lane.b32.xlu0 %v7178_v26, %s5471_s0 }
 0x342   :  { %v7282_v33 = vpop.permute.xlu2 %2281  ;;  %v7284_v29 = vpop.permute.xlu1 %2261 }
 0x343   :  { %11985 = vst [vmem:[#allocation307_spill] sm:$0xff] %v7282_v33  ;;  %v7286_v13 = vpop.permute.xlu0 %2259 }
 0x344   :  { %11986 = vst [vmem:[#allocation308_spill] sm:$0xff] %v7284_v29 }
 0x345   :  { %11987 = vst [vmem:[#allocation309_spill] sm:$0xff] %v7286_v13 }
 0x348   :  { %2473 = vrot.lane.b32.xlu2 %v2318_v28, %s5471_s0  ;;  %2471 = vrot.lane.b32.xlu1 %v2317_v20, %s5471_s0 }
 0x349   :  { %2469 = vrot.lane.b32.xlu0 %v2316_v27, %s5471_s0 }
 0x34a   :  { %v7291_v24 = vpop.permute.xlu2 %2335  ;;  %v7293_v15 = vpop.permute.xlu1 %2267 }
 0x34b   :  { %11988 = vst [vmem:[#allocation310_spill] sm:$0xff] %v7291_v24  ;;  %v7295_v16 = vpop.permute.xlu0 %2265 }
 0x34c   :  { %11989 = vst [vmem:[#allocation311_spill] sm:$0xff] %v7293_v15 }
 0x34d   :  { %11990 = vst [vmem:[#allocation312_spill] sm:$0xff] %v7295_v16 }
 0x350   :  { %2503 = vrot.lane.b32.xlu2 %v7046_v7, %s5472_s23  ;;  %2501 = vrot.lane.b32.xlu1 %v7049_v5, %s5472_s23 }
 0x351   :  { %2499 = vrot.lane.b32.xlu0 %v7052_v9, %s5472_s23 }
 0x352   :  { %v7303_v26 = vpop.permute.xlu2 %2341  ;;  %v7305_v20 = vpop.permute.xlu1 %2273 }
 0x353   :  { %11991 = vst [vmem:[#allocation313_spill] sm:$0xff] %v7303_v26  ;;  %v7307_v27 = vpop.permute.xlu0 %2271 }
 0x354   :  { %11992 = vst [vmem:[#allocation314_spill] sm:$0xff] %v7305_v20 }
 0x355   :  { %11993 = vst [vmem:[#allocation315_spill] sm:$0xff] %v7307_v27 }
 0x358   :  { %2509 = vrot.lane.b32.xlu2 %v7067_v60, %s5472_s23  ;;  %2507 = vrot.lane.b32.xlu1 %v7070_v41, %s5472_s23 }
 0x359   :  { %2505 = vrot.lane.b32.xlu0 %v7073_v39, %s5472_s23 }
 0x35a   :  { %v7315_v7 = vpop.permute.xlu2 %2347  ;;  %v7317_v5 = vpop.permute.xlu1 %2279 }
 0x35b   :  { %11994 = vst [vmem:[#allocation316_spill] sm:$0xff] %v7315_v7  ;;  %v7319_v9 = vpop.permute.xlu0 %2277 }
 0x35c   :  { %11995 = vst [vmem:[#allocation317_spill] sm:$0xff] %v7317_v5 }
 0x35d   :  { %11996 = vst [vmem:[#allocation318_spill] sm:$0xff] %v7319_v9 }
 0x360   :  { %2515 = vrot.lane.b32.xlu2 %v7088_v44, %s5472_s23  ;;  %2513 = vrot.lane.b32.xlu1 %v7091_v11, %s5472_s23 }
 0x361   :  { %2511 = vrot.lane.b32.xlu0 %v7094_v40, %s5472_s23 }
 0x362   :  { %v7327_v60 = vpop.permute.xlu2 %2353  ;;  %v7329_v41 = vpop.permute.xlu1 %2333 }
 0x363   :  { %11997 = vst [vmem:[#allocation319_spill] sm:$0xff] %v7327_v60  ;;  %v7331_v39 = vpop.permute.xlu0 %2331 }
 0x364   :  { %11998 = vst [vmem:[#allocation320_spill] sm:$0xff] %v7329_v41 }
 0x365   :  { %11999 = vst [vmem:[#allocation321_spill] sm:$0xff] %v7331_v39 }
 0x368   :  { %2521 = vrot.lane.b32.xlu2 %v7109_v35, %s5472_s23  ;;  %2519 = vrot.lane.b32.xlu1 %v7112_v12, %s5472_s23 }
 0x369   :  { %2517 = vrot.lane.b32.xlu0 %v7115_v32, %s5472_s23 }
 0x36a   :  { %v7339_v44 = vpop.permute.xlu2 %2407  ;;  %v7341_v11 = vpop.permute.xlu1 %2339 }
 0x36b   :  { %12000 = vst [vmem:[#allocation322_spill] sm:$0xff] %v7339_v44  ;;  %v7343_v40 = vpop.permute.xlu0 %2337 }
 0x36c   :  { %12001 = vst [vmem:[#allocation323_spill] sm:$0xff] %v7341_v11 }
 0x36d   :  { %12002 = vst [vmem:[#allocation324_spill] sm:$0xff] %v7343_v40 }
 0x370   :  { %2551 = vrot.lane.b32.xlu2 %v6962_v37, %s5473_s2  ;;  %2549 = vrot.lane.b32.xlu1 %v6965_v49, %s5473_s2 }
 0x371   :  { %2547 = vrot.lane.b32.xlu0 %v6968_v50, %s5473_s2 }
 0x372   :  { %v7351_v35 = vpop.permute.xlu2 %2413  ;;  %v7353_v12 = vpop.permute.xlu1 %2345 }
 0x373   :  { %12003 = vst [vmem:[#allocation325_spill] sm:$0xff] %v7351_v35  ;;  %v7355_v32 = vpop.permute.xlu0 %2343 }
 0x374   :  { %12004 = vst [vmem:[#allocation326_spill] sm:$0xff] %v7353_v12 }
 0x375   :  { %12005 = vst [vmem:[#allocation327_spill] sm:$0xff] %v7355_v32 }
 0x378   :  { %2557 = vrot.lane.b32.xlu2 %v6983_v51, %s5473_s2  ;;  %2555 = vrot.lane.b32.xlu1 %v6986_v61, %s5473_s2 }
 0x379   :  { %2553 = vrot.lane.b32.xlu0 %v6989_v3, %s5473_s2 }
 0x37a   :  { %v7363_v28 = vpop.permute.xlu2 %2419  ;;  %v7365_v49 = vpop.permute.xlu1 %2351 }
 0x37b   :  { %12006 = vst [vmem:[#allocation328_spill] sm:$0xff] %v7363_v28  ;;  %v7367_v50 = vpop.permute.xlu0 %2349 }
 0x37c   :  { %12007 = vst [vmem:[#allocation329_spill] sm:$0xff] %v7365_v49 }
 0x37d   :  { %12008 = vst [vmem:[#allocation330_spill] sm:$0xff] %v7367_v50 }
 0x380   :  { %2563 = vrot.lane.b32.xlu2 %v7004_v2, %s5473_s2  ;;  %2561 = vrot.lane.b32.xlu1 %v7007_v6, %s5473_s2 }
 0x381   :  { %2559 = vrot.lane.b32.xlu0 %v7010_v4, %s5473_s2 }
 0x382   :  { %v7375_v51 = vpop.permute.xlu2 %2425  ;;  %v7377_v61 = vpop.permute.xlu1 %2405 }
 0x383   :  { %12009 = vst [vmem:[#allocation331_spill] sm:$0xff] %v7375_v51  ;;  %v7379_v3 = vpop.permute.xlu0 %2403 }
 0x384   :  { %12010 = vst [vmem:[#allocation332_spill] sm:$0xff] %v7377_v61 }
 0x385   :  { %12011 = vst [vmem:[#allocation333_spill] sm:$0xff] %v7379_v3  ;;  %v5367_v3 = vld [vmem:[#allocation6 + $0x28] sm:$0xff] }
 0x386   :  { %v7554_v61 = vmul.f32 %v5367_v3, %v5367_v3 }
 0x388   :  { %2569 = vrot.lane.b32.xlu2 %v7025_v17, %s5473_s2  ;;  %2567 = vrot.lane.b32.xlu1 %v7028_v10, %s5473_s2  ;;  %v7575_v28 = vmul.f32 0.007598758, %v7554_v61  ;;  %v7671_v26 = vmul.f32 0.036000773, %v7554_v61  ;;  %v7755_v0 = vmul.f32 0.10936069, %v7554_v61 }
 0x389   :  { %2565 = vrot.lane.b32.xlu0 %v7031_v14, %s5473_s2 }
 0x38a   :  { %v7387_v2 = vpop.permute.xlu2 %2455  ;;  %v7389_v6 = vpop.permute.xlu1 %2411 }
 0x38b   :  { %12012 = vst [vmem:[#allocation334_spill] sm:$0xff] %v7387_v2  ;;  %v7391_v4 = vpop.permute.xlu0 %2409 }
 0x38c   :  { %12013 = vst [vmem:[#allocation335_spill] sm:$0xff] %v7389_v6 }
 0x38d   :  { %12014 = vst [vmem:[#allocation336_spill] sm:$0xff] %v7391_v4 }
 0x390   :  { %2599 = vrot.lane.b32.xlu2 %v6833_v54, %s5474_s24  ;;  %2597 = vrot.lane.b32.xlu1 %v6836_v55, %s5474_s24 }
 0x391   :  { %2595 = vrot.lane.b32.xlu0 %v6839_v43, %s5474_s24 }
 0x392   :  { %v7399_v17 = vpop.permute.xlu2 %2461  ;;  %v7401_v10 = vpop.permute.xlu1 %2417 }
 0x393   :  { %12015 = vst [vmem:[#allocation337_spill] sm:$0xff] %v7399_v17  ;;  %v7403_v14 = vpop.permute.xlu0 %2415 }
 0x394   :  { %12016 = vst [vmem:[#allocation338_spill] sm:$0xff] %v7401_v10 }
 0x395   :  { %12017 = vst [vmem:[#allocation339_spill] sm:$0xff] %v7403_v14 }
 0x398   :  { %2605 = vrot.lane.b32.xlu2 %v6869_v52, %s5474_s24  ;;  %2603 = vrot.lane.b32.xlu1 %v6872_v36, %s5474_s24  ;;  %v12021_v52 = vld [vmem:[#allocation243_spill] sm:$0xff] }
 0x399   :  { %2601 = vrot.lane.b32.xlu0 %v6875_v53, %s5474_s24 }
 0x39a   :  { %v7411_v54 = vpop.permute.xlu2 %2467  ;;  %v7413_v55 = vpop.permute.xlu1 %2423 }
 0x39b   :  { %12018 = vst [vmem:[#allocation340_spill] sm:$0xff] %v7411_v54  ;;  %v7415_v43 = vpop.permute.xlu0 %2421  ;;  %v12025_v54 = vld [vmem:[#allocation247_spill] sm:$0xff] }
 0x39c   :  { %12019 = vst [vmem:[#allocation341_spill] sm:$0xff] %v7413_v55 }
 0x39d   :  { %12020 = vst [vmem:[#allocation342_spill] sm:$0xff] %v7415_v43  ;;  %v12026_v43 = vld [vmem:[#allocation248_spill] sm:$0xff] }
 0x3a0   :  { %2611 = vrot.lane.b32.xlu2 %v6905_v48, %s5474_s24  ;;  %2609 = vrot.lane.b32.xlu1 %v6908_v34, %s5474_s24  ;;  %v12027_v48 = vld [vmem:[#allocation249_spill] sm:$0xff] }
 0x3a1   :  { %2607 = vrot.lane.b32.xlu0 %v12021_v52, %s5474_s24 }
 0x3a2   :  { %v7423_v37 = vpop.permute.xlu2 %2473  ;;  %v7425_v36 = vpop.permute.xlu1 %2453 }
 0x3a3   :  { %12022 = vst [vmem:[#allocation243_spill] sm:$0xff] %v7423_v37  ;;  %v7427_v53 = vpop.permute.xlu0 %2451  ;;  %v7442_v37 = vmul.f32 0.0010283801, %v6810_v45 }
 0x3a4   :  { %12023 = vst [vmem:[#allocation343_spill] sm:$0xff] %v7425_v36  ;;  %v12032_v36 = vld [vmem:[#allocation233_spill] sm:$0xff] }
 0x3a5   :  { %12024 = vst [vmem:[#allocation344_spill] sm:$0xff] %v7427_v53  ;;  %v7445_v53 = vmul.f32 0.0010283801, %v12032_v36  ;;  %v7463_v36 = vmul.f32 0.0010283801, %v6846_v42 }
 0x3a6   :  { %12031 = vst [vmem:[#allocation345_spill] sm:$0xff] %v7442_v37 }
 0x3a7   :  { %12033 = vst [vmem:[#allocation233_spill] sm:$0xff] %v7445_v53 }
 0x3a8   :  { %2617 = vrot.lane.b32.xlu2 %v12025_v54, %s5474_s24  ;;  %2615 = vrot.lane.b32.xlu1 %v12026_v43, %s5474_s24  ;;  %v7448_v54 = vmul.f32 0.0010283801, %v6824_v31  ;;  %12038 = vst [vmem:[#allocation350_spill] sm:$0xff] %v7463_v36  ;;  %v7466_v31 = vmul.f32 0.0010283801, %v6855_v19 }
 0x3a9   :  { %2613 = vrot.lane.b32.xlu0 %v12027_v48, %s5474_s24  ;;  %v7484_v19 = vmul.f32 0.0010283801, %v6882_v25 }
 0x3aa   :  { %v7435_v55 = vpop.permute.xlu2 %2503  ;;  %v7437_v34 = vpop.permute.xlu1 %2459  ;;  %12034 = vst [vmem:[#allocation346_spill] sm:$0xff] %v7448_v54 }
 0x3ab   :  { %12028 = vst [vmem:[#allocation247_spill] sm:$0xff] %v7435_v55  ;;  %v7439_v52 = vpop.permute.xlu0 %2457 }
 0x3ac   :  { %12029 = vst [vmem:[#allocation248_spill] sm:$0xff] %v7437_v34  ;;  %v7515_v34 = vld [vmem:[#allocation6 + $0x10] sm:$0xff] }
 0x3ad   :  { %12030 = vst [vmem:[#allocation249_spill] sm:$0xff] %v7439_v52  ;;  %v7469_v52 = vmul.f32 0.0010283801, %v6860_v56  ;;  %v7487_v56 = vmul.f32 0.0010283801, %v6891_v63 }
 0x3ae   :  { %12039 = vst [vmem:[#allocation351_spill] sm:$0xff] %v7466_v31  ;;  %v7505_v63 = vmul.f32 0.0010283801, %v6918_v58  ;;  %v7531_v58 = vld [vmem:[#allocation6] sm:$0xff] }
 0x3af   :  { %12040 = vst [vmem:[#allocation352_spill] sm:$0xff] %v7469_v52 }
 0x3b0   :  { %2659 = vrot.lane.b32.xlu2 %v7442_v37, %s5475_s25  ;;  %2657 = vrot.lane.b32.xlu1 %v7445_v53, %s5475_s25  ;;  %12044 = vst [vmem:[#allocation356_spill] sm:$0xff] %v7484_v19 }
 0x3b1   :  { %2655 = vrot.lane.b32.xlu0 %v7448_v54, %s5475_s25  ;;  %12045 = vst [vmem:[#allocation357_spill] sm:$0xff] %v7487_v56 }
 0x3b2   :  { %v7456_v43 = vpop.permute.xlu2 %2509  ;;  %v7458_v48 = vpop.permute.xlu1 %2465  ;;  %12050 = vst [vmem:[#allocation362_spill] sm:$0xff] %v7505_v63 }
 0x3b3   :  { %12035 = vst [vmem:[#allocation347_spill] sm:$0xff] %v7456_v43  ;;  %v7460_v45 = vpop.permute.xlu0 %2463  ;;  %v7490_v43 = vmul.f32 0.0010283801, %v6896_v30  ;;  %v7508_v30 = vmul.f32 0.0010283801, %v6927_v1  ;;  %v7525_v1 = vld [vmem:[#allocation6 + $0x8] sm:$0xff] }
 0x3b4   :  { %12036 = vst [vmem:[#allocation348_spill] sm:$0xff] %v7458_v48 }
 0x3b5   :  { %12037 = vst [vmem:[#allocation349_spill] sm:$0xff] %v7460_v45 }
 0x3b6   :  { %12046 = vst [vmem:[#allocation358_spill] sm:$0xff] %v7490_v43 }
 0x3b7   :  { %12051 = vst [vmem:[#allocation363_spill] sm:$0xff] %v7508_v30 }
 0x3b8   :  { %2665 = vrot.lane.b32.xlu2 %v7463_v36, %s5475_s25  ;;  %2663 = vrot.lane.b32.xlu1 %v7466_v31, %s5475_s25  ;;  %12053 = vst [vmem:[#allocation365_spill] sm:$0xff] %v7515_v34 }
 0x3b9   :  { %2661 = vrot.lane.b32.xlu0 %v7469_v52, %s5475_s25  ;;  %12054 = vst [vmem:[#allocation366_spill] sm:$0xff] %v7525_v1 }
 0x3ba   :  { %v7477_v48 = vpop.permute.xlu2 %2515  ;;  %v7479_v45 = vpop.permute.xlu1 %2471  ;;  %12056 = vst [vmem:[#allocation368_spill] sm:$0xff] %v7531_v58 }
 0x3bb   :  { %12041 = vst [vmem:[#allocation353_spill] sm:$0xff] %v7477_v48  ;;  %v7481_v42 = vpop.permute.xlu0 %2469  ;;  %v7511_v48 = vmul.f32 0.0010283801, %v6932_v62  ;;  %v7529_v62 = vmul.f32 %v7525_v1, %v7525_v1 }
 0x3bc   :  { %12042 = vst [vmem:[#allocation354_spill] sm:$0xff] %v7479_v45 }
 0x3bd   :  { %12043 = vst [vmem:[#allocation355_spill] sm:$0xff] %v7481_v42  ;;  %v7547_v4 = vmul.f32 0.007598758, %v7529_v62  ;;  %v7737_v23 = vmul.f32 0.10936069, %v7529_v62 }
 0x3be   :  { %12052 = vst [vmem:[#allocation364_spill] sm:$0xff] %v7511_v48  ;;  %v7821_v52 = vmul.f32 0.21300554, %v7529_v62 }
 0x3bf   :  { %12055 = vst [vmem:[#allocation367_spill] sm:$0xff] %v7529_v62 }
 0x3c0   :  { %2671 = vrot.lane.b32.xlu2 %v7484_v19, %s5475_s25  ;;  %2669 = vrot.lane.b32.xlu1 %v7487_v56, %s5475_s25 }
 0x3c1   :  { %2667 = vrot.lane.b32.xlu0 %v7490_v43, %s5475_s25 }
 0x3c2   :  { %v7498_v45 = vpop.permute.xlu2 %2521  ;;  %v7500_v42 = vpop.permute.xlu1 %2501 }
 0x3c3   :  { %12047 = vst [vmem:[#allocation359_spill] sm:$0xff] %v7498_v45  ;;  %v7502_v25 = vpop.permute.xlu0 %2499  ;;  %v7519_v45 = vmul.f32 %v7515_v34, %v7515_v34 }
 0x3c4   :  { %12048 = vst [vmem:[#allocation360_spill] sm:$0xff] %v7500_v42 }
 0x3c5   :  { %12049 = vst [vmem:[#allocation361_spill] sm:$0xff] %v7502_v25  ;;  %v7535_v25 = vmul.f32 %v7531_v58, %v7531_v58  ;;  %v7544_v17 = vmul.f32 0.007598758, %v7519_v45  ;;  %v7734_v59 = vmul.f32 0.10936069, %v7519_v45 }
 0x3c6   :  { %v7818_v56 = vmul.f32 0.21300554, %v7519_v45 }
 0x3c7   :  { %v7550_v6 = vmul.f32 0.007598758, %v7535_v25  ;;  %v7656_v44 = vmul.f32 0.036000773, %v7535_v25  ;;  %v7740_v21 = vmul.f32 0.10936069, %v7535_v25 }
 0x3c8   :  { %2677 = vrot.lane.b32.xlu2 %v7505_v63, %s5475_s25  ;;  %2675 = vrot.lane.b32.xlu1 %v7508_v30, %s5475_s25  ;;  %v7824_v31 = vmul.f32 0.21300554, %v7535_v25 }
 0x3c9   :  { %2673 = vrot.lane.b32.xlu0 %v7511_v48, %s5475_s25 }
 0x3ca   :  { %v7537_v42 = vpop.permute.xlu2 %2551  ;;  %v7539_v14 = vpop.permute.xlu1 %2507 }
 0x3cb   :  { %12057 = vst [vmem:[#allocation369_spill] sm:$0xff] %v7537_v42  ;;  %v7541_v10 = vpop.permute.xlu0 %2505  ;;  %v5369_v42 = vld [vmem:[#allocation6 + $0x18] sm:$0xff] }
 0x3cc   :  { %12058 = vst [vmem:[#allocation370_spill] sm:$0xff] %v7539_v14  ;;  %v7566_v51 = vmul.f32 %v5369_v42, %v5369_v42  ;;  %v5370_v42 = vld [vmem:[#allocation6 + $0x40] sm:$0xff] }
 0x3cd   :  { %12059 = vst [vmem:[#allocation371_spill] sm:$0xff] %v7541_v10  ;;  %v7560_v10 = vld [vmem:[#allocation6 + $0x20] sm:$0xff]  ;;  %v7585_v12 = vmul.f32 %v5370_v42, %v5370_v42 }
 0x3ce   :  { %12060 = vst [vmem:[#allocation372_spill] sm:$0xff] %v7560_v10  ;;  %v7564_v14 = vmul.f32 %v7560_v10, %v7560_v10  ;;  %v7581_v32 = vmul.f32 0.007598758, %v7566_v51  ;;  %v7677_v15 = vmul.f32 0.036000773, %v7566_v51 }
 0x3cf   :  { %v7602_v42 = vmul.f32 0.007598758, %v7585_v12  ;;  %v7692_v13 = vmul.f32 0.036000773, %v7585_v12  ;;  %v7761_v18 = vmul.f32 0.10936069, %v7566_v51 }
 0x3d0   :  { %3103 = vrot.lane.b32.xlu2 %v7544_v17, %s5466_s27  ;;  %3101 = vrot.lane.b32.xlu1 %v7547_v4, %s5466_s27  ;;  %12061 = vst [vmem:[#allocation373_spill] sm:$0xff] %v7564_v14  ;;  %v7578_v55 = vmul.f32 0.007598758, %v7564_v14  ;;  %v7674_v16 = vmul.f32 0.036000773, %v7564_v14 }
 0x3d1   :  { %3099 = vrot.lane.b32.xlu0 %v7550_v6, %s5466_s27  ;;  %v7758_v57 = vmul.f32 0.10936069, %v7564_v14  ;;  %v7776_v8 = vmul.f32 0.10936069, %v7585_v12  ;;  %v7851_v10 = vmul.f32 0.21300554, %v7554_v61 }
 0x3d2   :  { %v7568_v50 = vpop.permute.xlu2 %2557  ;;  %v7570_v49 = vpop.permute.xlu1 %2513 }
 0x3d3   :  { %12062 = vst [vmem:[#allocation374_spill] sm:$0xff] %v7568_v50  ;;  %v7572_v3 = vpop.permute.xlu0 %2511  ;;  %v5372_v50 = vld [vmem:[#allocation6 + $0x30] sm:$0xff] }
 0x3d4   :  { %12063 = vst [vmem:[#allocation375_spill] sm:$0xff] %v7570_v49  ;;  %v7593_v35 = vmul.f32 %v5372_v50, %v5372_v50  ;;  %v5373_v50 = vld [vmem:[#allocation6 + $0x58] sm:$0xff] }
 0x3d5   :  { %12064 = vst [vmem:[#allocation376_spill] sm:$0xff] %v7572_v3  ;;  %v5371_v3 = vld [vmem:[#allocation6 + $0x38] sm:$0xff] }
 0x3d6   :  { %v7591_v49 = vmul.f32 %v5371_v3, %v5371_v3  ;;  %v7608_v41 = vmul.f32 0.007598758, %v7593_v35  ;;  %v7612_v3 = vmul.f32 %v5373_v50, %v5373_v50  ;;  %v7698_v33 = vmul.f32 0.036000773, %v7593_v35 }
 0x3d7   :  { %v7782_v22 = vmul.f32 0.10936069, %v7593_v35  ;;  %v3297_v58 = vmul.f32 0.21300554, %v7593_v35 }
 0x3d8   :  { %3109 = vrot.lane.b32.xlu2 %v7575_v28, %s5466_s27  ;;  %3107 = vrot.lane.b32.xlu1 %v7578_v55, %s5466_s27  ;;  %v7605_v2 = vmul.f32 0.007598758, %v7591_v49  ;;  %12068 = vst [vmem:[#allocation380_spill] sm:$0xff] %v7608_v41  ;;  %v7629_v50 = vmul.f32 0.007598758, %v7612_v3 }
 0x3d9   :  { %3105 = vrot.lane.b32.xlu0 %v7581_v32, %s5466_s27  ;;  %v7695_v29 = vmul.f32 0.036000773, %v7591_v49  ;;  %v7713_v24 = vmul.f32 0.036000773, %v7612_v3  ;;  %v7779_v47 = vmul.f32 0.10936069, %v7591_v49 }
 0x3da   :  { %v7595_v40 = vpop.permute.xlu2 %2563  ;;  %v7597_v11 = vpop.permute.xlu1 %2519  ;;  %12072 = vst [vmem:[#allocation384_spill] sm:$0xff] %v7629_v50  ;;  %v7797_v48 = vmul.f32 0.10936069, %v7612_v3 }
 0x3db   :  { %12065 = vst [vmem:[#allocation377_spill] sm:$0xff] %v7595_v40  ;;  %v7599_v39 = vpop.permute.xlu0 %2517  ;;  %v5375_v40 = vld [vmem:[#allocation6 + $0x48] sm:$0xff] }
 0x3dc   :  { %12066 = vst [vmem:[#allocation378_spill] sm:$0xff] %v7597_v11  ;;  %v7620_v60 = vmul.f32 %v5375_v40, %v5375_v40 }
 0x3dd   :  { %12067 = vst [vmem:[#allocation379_spill] sm:$0xff] %v7599_v39  ;;  %v5374_v39 = vld [vmem:[#allocation6 + $0x50] sm:$0xff] }
 0x3de   :  { %v7618_v11 = vmul.f32 %v5374_v39, %v5374_v39  ;;  %v7635_v20 = vmul.f32 0.007598758, %v7620_v60  ;;  %v7719_v38 = vmul.f32 0.036000773, %v7620_v60  ;;  %v7803_v43 = vmul.f32 0.10936069, %v7620_v60 }
 0x3e0   :  { %3115 = vrot.lane.b32.xlu2 %v7602_v42, %s5466_s27  ;;  %3113 = vrot.lane.b32.xlu1 %v7605_v2, %s5466_s27  ;;  %v7632_v27 = vmul.f32 0.007598758, %v7618_v11  ;;  %12074 = vst [vmem:[#allocation386_spill] sm:$0xff] %v7635_v20  ;;  %v7716_v46 = vmul.f32 0.036000773, %v7618_v11 }
 0x3e1   :  { %3111 = vrot.lane.b32.xlu0 %v7608_v41, %s5466_s27  ;;  %v7800_v30 = vmul.f32 0.10936069, %v7618_v11 }
 0x3e2   :  { %v7622_v9 = vpop.permute.xlu2 %2569  ;;  %v7624_v5 = vpop.permute.xlu1 %2549  ;;  %12073 = vst [vmem:[#allocation385_spill] sm:$0xff] %v7632_v27 }
 0x3e3   :  { %12069 = vst [vmem:[#allocation381_spill] sm:$0xff] %v7622_v9  ;;  %v7626_v7 = vpop.permute.xlu0 %2547  ;;  %v7653_v9 = vmul.f32 0.036000773, %v7529_v62 }
 0x3e4   :  { %12070 = vst [vmem:[#allocation382_spill] sm:$0xff] %v7624_v5  ;;  %v7650_v5 = vmul.f32 0.036000773, %v7519_v45 }
 0x3e5   :  { %12071 = vst [vmem:[#allocation383_spill] sm:$0xff] %v7626_v7 }
 0x3e8   :  { %3121 = vrot.lane.b32.xlu2 %v7629_v50, %s5466_s27  ;;  %3119 = vrot.lane.b32.xlu1 %v7632_v27, %s5466_s27  ;;  %v3363_v27 = vmul.f32 0.26601171, %v7535_v25 }
 0x3e9   :  { %3117 = vrot.lane.b32.xlu0 %v7635_v20, %s5466_s27  ;;  %v3364_v20 = vmul.f32 0.26601171, %v7529_v62  ;;  %v3366_v62 = vmul.f32 0.26601171, %v7566_v51 }
 0x3ea   :  { %v7643_v39 = vpop.permute.xlu2 %2599  ;;  %v7645_v40 = vpop.permute.xlu1 %2555 }
 0x3eb   :  { %12075 = vst [vmem:[#allocation387_spill] sm:$0xff] %v7643_v39  ;;  %v7647_v7 = vpop.permute.xlu0 %2553 }
 0x3ec   :  { %12076 = vst [vmem:[#allocation388_spill] sm:$0xff] %v7645_v40 }
 0x3ed   :  { %12077 = vst [vmem:[#allocation389_spill] sm:$0xff] %v7647_v7 }
 0x3f0   :  { %3175 = vrot.lane.b32.xlu2 %v7650_v5, %s5467_s19  ;;  %3173 = vrot.lane.b32.xlu1 %v7653_v9, %s5467_s19 }
 0x3f1   :  { %3171 = vrot.lane.b32.xlu0 %v7656_v44, %s5467_s19 }
 0x3f2   :  { %v7664_v40 = vpop.permute.xlu2 %2605  ;;  %v7666_v7 = vpop.permute.xlu1 %2561 }
 0x3f3   :  { %12078 = vst [vmem:[#allocation390_spill] sm:$0xff] %v7664_v40  ;;  %v7668_v39 = vpop.permute.xlu0 %2559 }
 0x3f4   :  { %12079 = vst [vmem:[#allocation391_spill] sm:$0xff] %v7666_v7 }
 0x3f5   :  { %12080 = vst [vmem:[#allocation392_spill] sm:$0xff] %v7668_v39 }
 0x3f8   :  { %3181 = vrot.lane.b32.xlu2 %v7671_v26, %s5467_s19  ;;  %3179 = vrot.lane.b32.xlu1 %v7674_v16, %s5467_s19 }
 0x3f9   :  { %3177 = vrot.lane.b32.xlu0 %v7677_v15, %s5467_s19 }
 0x3fa   :  { %v7685_v7 = vpop.permute.xlu2 %2611  ;;  %v7687_v39 = vpop.permute.xlu1 %2567 }
 0x3fb   :  { %12081 = vst [vmem:[#allocation393_spill] sm:$0xff] %v7685_v7  ;;  %v7689_v40 = vpop.permute.xlu0 %2565 }
 0x3fc   :  { %12082 = vst [vmem:[#allocation394_spill] sm:$0xff] %v7687_v39 }
 0x3fd   :  { %12083 = vst [vmem:[#allocation395_spill] sm:$0xff] %v7689_v40 }
 0x400   :  { %3187 = vrot.lane.b32.xlu2 %v7692_v13, %s5467_s19  ;;  %3185 = vrot.lane.b32.xlu1 %v7695_v29, %s5467_s19 }
 0x401   :  { %3183 = vrot.lane.b32.xlu0 %v7698_v33, %s5467_s19 }
 0x402   :  { %v7706_v39 = vpop.permute.xlu2 %2617  ;;  %v7708_v40 = vpop.permute.xlu1 %2597 }
 0x403   :  { %12084 = vst [vmem:[#allocation396_spill] sm:$0xff] %v7706_v39  ;;  %v7710_v7 = vpop.permute.xlu0 %2595 }
 0x404   :  { %12085 = vst [vmem:[#allocation397_spill] sm:$0xff] %v7708_v40 }
 0x405   :  { %12086 = vst [vmem:[#allocation398_spill] sm:$0xff] %v7710_v7 }
 0x408   :  { %3193 = vrot.lane.b32.xlu2 %v7713_v24, %s5467_s19  ;;  %3191 = vrot.lane.b32.xlu1 %v7716_v46, %s5467_s19 }
 0x409   :  { %3189 = vrot.lane.b32.xlu0 %v7719_v38, %s5467_s19 }
 0x40a   :  { %v7727_v40 = vpop.permute.xlu2 %2659  ;;  %v7729_v7 = vpop.permute.xlu1 %2603 }
 0x40b   :  { %12087 = vst [vmem:[#allocation399_spill] sm:$0xff] %v7727_v40  ;;  %v7731_v39 = vpop.permute.xlu0 %2601 }
 0x40c   :  { %12088 = vst [vmem:[#allocation400_spill] sm:$0xff] %v7729_v7 }
 0x40d   :  { %12089 = vst [vmem:[#allocation401_spill] sm:$0xff] %v7731_v39 }
 0x410   :  { %3247 = vrot.lane.b32.xlu2 %v7734_v59, %s5468_s20  ;;  %3245 = vrot.lane.b32.xlu1 %v7737_v23, %s5468_s20 }
 0x411   :  { %3243 = vrot.lane.b32.xlu0 %v7740_v21, %s5468_s20 }
 0x412   :  { %v7748_v7 = vpop.permute.xlu2 %2665  ;;  %v7750_v39 = vpop.permute.xlu1 %2609 }
 0x413   :  { %12090 = vst [vmem:[#allocation402_spill] sm:$0xff] %v7748_v7  ;;  %v7752_v40 = vpop.permute.xlu0 %2607 }
 0x414   :  { %12091 = vst [vmem:[#allocation403_spill] sm:$0xff] %v7750_v39 }
 0x415   :  { %12092 = vst [vmem:[#allocation404_spill] sm:$0xff] %v7752_v40 }
 0x418   :  { %3253 = vrot.lane.b32.xlu2 %v7755_v0, %s5468_s20  ;;  %3251 = vrot.lane.b32.xlu1 %v7758_v57, %s5468_s20 }
 0x419   :  { %3249 = vrot.lane.b32.xlu0 %v7761_v18, %s5468_s20 }
 0x41a   :  { %v7769_v39 = vpop.permute.xlu2 %2671  ;;  %v7771_v40 = vpop.permute.xlu1 %2615 }
 0x41b   :  { %12093 = vst [vmem:[#allocation405_spill] sm:$0xff] %v7769_v39  ;;  %v7773_v7 = vpop.permute.xlu0 %2613 }
 0x41c   :  { %12094 = vst [vmem:[#allocation406_spill] sm:$0xff] %v7771_v40 }
 0x41d   :  { %12095 = vst [vmem:[#allocation407_spill] sm:$0xff] %v7773_v7 }
 0x420   :  { %3259 = vrot.lane.b32.xlu2 %v7776_v8, %s5468_s20  ;;  %3257 = vrot.lane.b32.xlu1 %v7779_v47, %s5468_s20 }
 0x421   :  { %3255 = vrot.lane.b32.xlu0 %v7782_v22, %s5468_s20 }
 0x422   :  { %v7790_v40 = vpop.permute.xlu2 %2677  ;;  %v7792_v7 = vpop.permute.xlu1 %2657 }
 0x423   :  { %12096 = vst [vmem:[#allocation408_spill] sm:$0xff] %v7790_v40  ;;  %v7794_v39 = vpop.permute.xlu0 %2655 }
 0x424   :  { %12097 = vst [vmem:[#allocation409_spill] sm:$0xff] %v7792_v7 }
 0x425   :  { %12098 = vst [vmem:[#allocation410_spill] sm:$0xff] %v7794_v39 }
 0x428   :  { %3265 = vrot.lane.b32.xlu2 %v7797_v48, %s5468_s20  ;;  %3263 = vrot.lane.b32.xlu1 %v7800_v30, %s5468_s20 }
 0x429   :  { %3261 = vrot.lane.b32.xlu0 %v7803_v43, %s5468_s20 }
 0x42a   :  { %v7811_v7 = vpop.permute.xlu2 %3103  ;;  %v7813_v39 = vpop.permute.xlu1 %2663 }
 0x42b   :  { %12099 = vst [vmem:[#allocation411_spill] sm:$0xff] %v7811_v7  ;;  %v7815_v40 = vpop.permute.xlu0 %2661 }
 0x42c   :  { %12100 = vst [vmem:[#allocation412_spill] sm:$0xff] %v7813_v39 }
 0x42d   :  { %12101 = vst [vmem:[#allocation413_spill] sm:$0xff] %v7815_v40 }
 0x430   :  { %3319 = vrot.lane.b32.xlu2 %v7818_v56, %s5469_s21  ;;  %3317 = vrot.lane.b32.xlu1 %v7821_v52, %s5469_s21 }
 0x431   :  { %3315 = vrot.lane.b32.xlu0 %v7824_v31, %s5469_s21 }
 0x432   :  { %v7832_v39 = vpop.permute.xlu2 %3109  ;;  %v7834_v40 = vpop.permute.xlu1 %2669 }
 0x433   :  { %12102 = vst [vmem:[#allocation414_spill] sm:$0xff] %v7832_v39  ;;  %v7836_v54 = vpop.permute.xlu0 %2667  ;;  %v7854_v39 = vmul.f32 0.21300554, %v7564_v14 }
 0x434   :  { %12103 = vst [vmem:[#allocation415_spill] sm:$0xff] %v7834_v40 }
 0x435   :  { %12104 = vst [vmem:[#allocation416_spill] sm:$0xff] %v7836_v54 }
 0x438   :  { %3325 = vrot.lane.b32.xlu2 %v7851_v10, %s5469_s21  ;;  %3323 = vrot.lane.b32.xlu1 %v7854_v39, %s5469_s21 }
 0x43a   :  { %v7838_v53 = vpop.permute.xlu2 %3115  ;;  %v7840_v63 = vpop.permute.xlu1 %2675 }
 0x43b   :  { %12105 = vst [vmem:[#allocation417_spill] sm:$0xff] %v7838_v53  ;;  %v7842_v19 = vpop.permute.xlu0 %2673  ;;  %v3298_v53 = vmul.f32 0.21300554, %v7591_v49 }
 0x43c   :  { %12106 = vst [vmem:[#allocation418_spill] sm:$0xff] %v7840_v63 }
 0x43d   :  { %12107 = vst [vmem:[#allocation419_spill] sm:$0xff] %v7842_v19  ;;  %v7861_v19 = vmul.f32 0.21300554, %v7566_v51 }
 0x43f   :  { %3321 = vrot.lane.b32.xlu0 %v7861_v19, %s5469_s21 }
 0x440   :  { %3329 = vrot.lane.b32.xlu1 %v3298_v53, %s5469_s21 }
 0x442   :  { %v7844_v36 = vpop.permute.xlu2 %3121  ;;  %v7846_v37 = vpop.permute.xlu1 %3101 }
 0x443   :  { %12108 = vst [vmem:[#allocation420_spill] sm:$0xff] %v7844_v36  ;;  %v7848_v7 = vpop.permute.xlu0 %3099  ;;  %v3299_v36 = vmul.f32 0.21300554, %v7585_v12 }
 0x444   :  { %12109 = vst [vmem:[#allocation421_spill] sm:$0xff] %v7846_v37 }
 0x445   :  { %12110 = vst [vmem:[#allocation422_spill] sm:$0xff] %v7848_v7  ;;  %3331 = vrot.lane.b32.xlu2 %v3299_v36, %s5469_s21 }
 0x447   :  { %3327 = vrot.lane.b32.xlu0 %v3297_v58, %s5469_s21 }
 0x44a   :  { %v7865_v63 = vpop.permute.xlu1 %3107  ;;  %v7869_v54 = vpop.permute.xlu2 %3175 }
 0x44b   :  { %12111 = vst [vmem:[#allocation423_spill] sm:$0xff] %v7865_v63  ;;  %v7867_v40 = vpop.permute.xlu0 %3105 }
 0x44c   :  { %12112 = vst [vmem:[#allocation424_spill] sm:$0xff] %v7867_v40  ;;  %v3302_v40 = vmul.f32 0.21300554, %v7612_v3 }
 0x44d   :  { %12113 = vst [vmem:[#allocation425_spill] sm:$0xff] %v7869_v54 }
 0x44e   :  { %3337 = vrot.lane.b32.xlu2 %v3302_v40, %s5469_s21 }
 0x452   :  { %v7871_v7 = vpop.permute.xlu1 %3113  ;;  %v7880_v1 = vpop.permute.xlu2 %3181 }
 0x453   :  { %12114 = vst [vmem:[#allocation426_spill] sm:$0xff] %v7871_v7  ;;  %v7873_v37 = vpop.permute.xlu0 %3111  ;;  %v3301_v7 = vmul.f32 0.21300554, %v7618_v11 }
 0x454   :  { %12115 = vst [vmem:[#allocation427_spill] sm:$0xff] %v7873_v37  ;;  %v3300_v37 = vmul.f32 0.21300554, %v7620_v60 }
 0x455   :  { %12116 = vst [vmem:[#allocation428_spill] sm:$0xff] %v7880_v1  ;;  %3335 = vrot.lane.b32.xlu1 %v3301_v7, %s5469_s21  ;;  %v3365_v1 = vmul.f32 0.26601171, %v7519_v45 }
 0x456   :  { %3333 = vrot.lane.b32.xlu0 %v3300_v37, %s5469_s21 }
 0x457   :  { %3391 = vrot.lane.b32.xlu2 %v3365_v1, %s5470_s22 }
 0x45a   :  { %v7885_v63 = vpop.permute.xlu1 %3119  ;;  %v7893_v34 = vpop.permute.xlu2 %3187 }
 0x45b   :  { %12117 = vst [vmem:[#allocation429_spill] sm:$0xff] %v7885_v63  ;;  %v7888_v54 = vpop.permute.xlu0 %3117 }
 0x45c   :  { %12118 = vst [vmem:[#allocation430_spill] sm:$0xff] %v7888_v54  ;;  %v3368_v54 = vmul.f32 0.26601171, %v7554_v61 }
 0x45d   :  { %12119 = vst [vmem:[#allocation431_spill] sm:$0xff] %v7893_v34  ;;  %3389 = vrot.lane.b32.xlu1 %v3364_v20, %s5470_s22  ;;  %v3367_v34 = vmul.f32 0.26601171, %v7564_v14  ;;  %v3371_v20 = vmul.f32 0.26601171, %v7585_v12 }
 0x45e   :  { %3387 = vrot.lane.b32.xlu0 %v3363_v27, %s5470_s22  ;;  %v3370_v27 = vmul.f32 0.26601171, %v7591_v49 }
 0x45f   :  { %3397 = vrot.lane.b32.xlu2 %v3368_v54, %s5470_s22 }
 0x462   :  { %v7898_v50 = vpop.permute.xlu1 %3173  ;;  %v7907_v41 = vpop.permute.xlu2 %3193 }
 0x463   :  { %12120 = vst [vmem:[#allocation432_spill] sm:$0xff] %v7898_v50  ;;  %v7900_v63 = vpop.permute.xlu0 %3171 }
 0x464   :  { %12121 = vst [vmem:[#allocation433_spill] sm:$0xff] %v7900_v63  ;;  %v3369_v63 = vmul.f32 0.26601171, %v7593_v35 }
 0x465   :  { %12122 = vst [vmem:[#allocation434_spill] sm:$0xff] %v7907_v41  ;;  %3395 = vrot.lane.b32.xlu1 %v3367_v34, %s5470_s22 }
 0x466   :  { %3393 = vrot.lane.b32.xlu0 %v3366_v62, %s5470_s22  ;;  %v3374_v62 = vmul.f32 0.26601171, %v7612_v3 }
 0x467   :  { %3403 = vrot.lane.b32.xlu2 %v3371_v20, %s5470_s22 }
 0x46a   :  { %v7912_v50 = vpop.permute.xlu1 %3179  ;;  %v7920_v14 = vpop.permute.xlu2 %3247 }
 0x46b   :  { %12123 = vst [vmem:[#allocation435_spill] sm:$0xff] %v7912_v50  ;;  %v7915_v1 = vpop.permute.xlu0 %3177  ;;  %v3372_v50 = vmul.f32 0.26601171, %v7620_v60 }
 0x46c   :  { %12124 = vst [vmem:[#allocation436_spill] sm:$0xff] %v7915_v1  ;;  %v3373_v1 = vmul.f32 0.26601171, %v7618_v11 }
 0x46d   :  { %12125 = vst [vmem:[#allocation437_spill] sm:$0xff] %v7920_v14  ;;  %3401 = vrot.lane.b32.xlu1 %v3370_v27, %s5470_s22 }
 0x46e   :  { %3399 = vrot.lane.b32.xlu0 %v3369_v63, %s5470_s22 }
 0x46f   :  { %3409 = vrot.lane.b32.xlu2 %v3374_v62, %s5470_s22 }
 0x472   :  { %v7925_v34 = vpop.permute.xlu1 %3185  ;;  %v7934_v14 = vpop.permute.xlu2 %3253 }
 0x473   :  { %12126 = vst [vmem:[#allocation438_spill] sm:$0xff] %v7925_v34  ;;  %v7927_v54 = vpop.permute.xlu0 %3183 }
 0x474   :  { %12127 = vst [vmem:[#allocation439_spill] sm:$0xff] %v7927_v54 }
 0x475   :  { %3407 = vrot.lane.b32.xlu1 %v3373_v1, %s5470_s22  ;;  %12128 = vst [vmem:[#allocation440_spill] sm:$0xff] %v7934_v14 }
 0x476   :  { %3405 = vrot.lane.b32.xlu0 %v3372_v50, %s5470_s22 }
 0x477   :  { %3439 = vrot.lane.b32.xlu2 %v7818_v56, %s5471_s0 }
 0x47a   :  { %v7937_v20 = vpop.permute.xlu1 %3191  ;;  %v7947_v27 = vpop.permute.xlu2 %3259 }
 0x47b   :  { %12129 = vst [vmem:[#allocation441_spill] sm:$0xff] %v7937_v20  ;;  %v7939_v63 = vpop.permute.xlu0 %3189 }
 0x47c   :  { %12130 = vst [vmem:[#allocation442_spill] sm:$0xff] %v7939_v63 }
 0x47d   :  { %3437 = vrot.lane.b32.xlu1 %v7821_v52, %s5471_s0  ;;  %12131 = vst [vmem:[#allocation443_spill] sm:$0xff] %v7947_v27  ;;  %v12348_v27 = vld [vmem:[#allocation142_spill] sm:$0xff] }
 0x47e   :  { %3435 = vrot.lane.b32.xlu0 %v7824_v31, %s5471_s0 }
 0x47f   :  { %3445 = vrot.lane.b32.xlu2 %v7851_v10, %s5471_s0 }
 0x482   :  { %v7949_v1 = vpop.permute.xlu1 %3245  ;;  %v7959_v56 = vpop.permute.xlu2 %3265 }
 0x483   :  { %12132 = vst [vmem:[#allocation444_spill] sm:$0xff] %v7949_v1  ;;  %v7951_v62 = vpop.permute.xlu0 %3243 }
 0x484   :  { %12133 = vst [vmem:[#allocation445_spill] sm:$0xff] %v7951_v62 }
 0x485   :  { %3443 = vrot.lane.b32.xlu1 %v7854_v39, %s5471_s0  ;;  %12134 = vst [vmem:[#allocation446_spill] sm:$0xff] %v7959_v56  ;;  %v12171_v39 = vld [vmem:[#allocation16_spill] sm:$0xff] }
 0x486   :  { %3441 = vrot.lane.b32.xlu0 %v7861_v19, %s5471_s0 }
 0x487   :  { %3451 = vrot.lane.b32.xlu2 %v3299_v36, %s5471_s0 }
 0x48a   :  { %v7963_v52 = vpop.permute.xlu1 %3251  ;;  %v7968_v50 = vpop.permute.xlu2 %3319 }
 0x48b   :  { %12135 = vst [vmem:[#allocation447_spill] sm:$0xff] %v7963_v52  ;;  %v7966_v31 = vpop.permute.xlu0 %3249  ;;  %v12347_v52 = vld [vmem:[#allocation213_spill] sm:$0xff] }
 0x48c   :  { %12136 = vst [vmem:[#allocation448_spill] sm:$0xff] %v7966_v31  ;;  %v8461_v54 = vadd.f32 %v12348_v27, %v12347_v52  ;;  %v5379_v27 = vld [vmem:[%s11443_s1 + $0x28] sm:$0xff] }
 0x48d   :  { %3449 = vrot.lane.b32.xlu1 %v3298_v53, %s5471_s0  ;;  %12137 = vst [vmem:[#allocation449_spill] sm:$0xff] %v7968_v50  ;;  %v5380_v52 = vld [vmem:[#allocation6 + $0x28] sm:$0xff] }
 0x48e   :  { %3447 = vrot.lane.b32.xlu0 %v3297_v58, %s5471_s0  ;;  %v12170_v58 = vld [vmem:[#allocation86_spill] sm:$0xff] }
 0x48f   :  { %3457 = vrot.lane.b32.xlu2 %v3302_v40, %s5471_s0  ;;  %v182_v40 = vadd.f32 %v12171_v39, %v12170_v58  ;;  %v12185_v39 = vld [vmem:[#allocation25_spill] sm:$0xff] }
 0x492   :  { %v7973_v10 = vpop.permute.xlu1 %3257  ;;  %v7981_v53 = vpop.permute.xlu2 %3325 }
 0x493   :  { %12138 = vst [vmem:[#allocation450_spill] sm:$0xff] %v7973_v10  ;;  %v7975_v19 = vpop.permute.xlu0 %3255 }
 0x494   :  { %12139 = vst [vmem:[#allocation451_spill] sm:$0xff] %v7975_v19  ;;  %v12338_v19 = vld [vmem:[#allocation143_spill] sm:$0xff] }
 0x495   :  { %3455 = vrot.lane.b32.xlu1 %v3301_v7, %s5471_s0  ;;  %12140 = vst [vmem:[#allocation452_spill] sm:$0xff] %v7981_v53 }
 0x496   :  { %3453 = vrot.lane.b32.xlu0 %v3300_v37, %s5471_s0 }
 0x497   :  { %3487 = vrot.lane.b32.xlu2 %v7734_v59, %s5472_s23 }
 0x49a   :  { %v7985_v36 = vpop.permute.xlu1 %3263 }
 0x49b   :  { %12141 = vst [vmem:[#allocation453_spill] sm:$0xff] %v7985_v36  ;;  %v7987_v7 = vpop.permute.xlu0 %3261 }
 0x49c   :  { %12142 = vst [vmem:[#allocation454_spill] sm:$0xff] %v7987_v7 }
 0x49d   :  { %3485 = vrot.lane.b32.xlu1 %v7737_v23, %s5472_s23 }
 0x49e   :  { %3483 = vrot.lane.b32.xlu0 %v7740_v21, %s5472_s23 }
 0x49f   :  { %3493 = vrot.lane.b32.xlu2 %v7755_v0, %s5472_s23  ;;  %v7995_v59 = vpop.permute.xlu2 %3331 }
 0x4a0   :  { %12143 = vst [vmem:[#allocation455_spill] sm:$0xff] %v7995_v59 }
 0x4a2   :  { %v7997_v23 = vpop.permute.xlu1 %3317 }
 0x4a3   :  { %12144 = vst [vmem:[#allocation456_spill] sm:$0xff] %v7997_v23  ;;  %v7999_v37 = vpop.permute.xlu0 %3315  ;;  %v12288_v23 = vld [vmem:[#allocation114_spill] sm:$0xff] }
 0x4a4   :  { %12145 = vst [vmem:[#allocation457_spill] sm:$0xff] %v7999_v37  ;;  %v12222_v37 = vld [vmem:[#allocation53_spill] sm:$0xff] }
 0x4a5   :  { %3491 = vrot.lane.b32.xlu1 %v7758_v57, %s5472_s23 }
 0x4a6   :  { %3489 = vrot.lane.b32.xlu0 %v7761_v18, %s5472_s23 }
 0x4a7   :  { %3499 = vrot.lane.b32.xlu2 %v7776_v8, %s5472_s23 }
 0x4a8   :  { %v8007_v0 = vpop.permute.xlu2 %3337 }
 0x4a9   :  { %12146 = vst [vmem:[#allocation458_spill] sm:$0xff] %v8007_v0  ;;  %v12217_v0 = vld [vmem:[#allocation48_spill] sm:$0xff] }
 0x4aa   :  { %v8013_v18 = vpop.permute.xlu1 %3323 }
 0x4ab   :  { %12147 = vst [vmem:[#allocation459_spill] sm:$0xff] %v8013_v18 }
 0x4ad   :  { %3497 = vrot.lane.b32.xlu1 %v7779_v47, %s5472_s23 }
 0x4ae   :  { %3495 = vrot.lane.b32.xlu0 %v7782_v22, %s5472_s23 }
 0x4af   :  { %3505 = vrot.lane.b32.xlu2 %v7797_v48, %s5472_s23  ;;  %v12169_v48 = vld [vmem:[#allocation20_spill] sm:$0xff] }
 0x4b1   :  { %v8017_v8 = vpop.permute.xlu0 %3321  ;;  %v8019_v57 = vpop.permute.xlu2 %3391 }
 0x4b2   :  { %12148 = vst [vmem:[#allocation460_spill] sm:$0xff] %v8017_v8  ;;  %v8029_v47 = vpop.permute.xlu1 %3329 }
 0x4b3   :  { %12149 = vst [vmem:[#allocation461_spill] sm:$0xff] %v8019_v57 }
 0x4b4   :  { %12151 = vst [vmem:[#allocation463_spill] sm:$0xff] %v8029_v47 }
 0x4b5   :  { %3503 = vrot.lane.b32.xlu1 %v7800_v30, %s5472_s23 }
 0x4b6   :  { %3501 = vrot.lane.b32.xlu0 %v7803_v43, %s5472_s23  ;;  %v12168_v43 = vld [vmem:[#allocation11_spill] sm:$0xff] }
 0x4b7   :  { %3535 = vrot.lane.b32.xlu2 %v7650_v5, %s5473_s2  ;;  %v180_v30 = vadd.f32 %v12169_v48, %v12168_v43  ;;  %v12183_v48 = vld [vmem:[#allocation12_spill] sm:$0xff] }
 0x4b9   :  { %v8027_v22 = vpop.permute.xlu2 %3397  ;;  %v8031_v21 = vpop.permute.xlu0 %3327 }
 0x4ba   :  { %12150 = vst [vmem:[#allocation462_spill] sm:$0xff] %v8027_v22 }
 0x4bb   :  { %12152 = vst [vmem:[#allocation464_spill] sm:$0xff] %v8031_v21 }
 0x4bd   :  { %3533 = vrot.lane.b32.xlu1 %v7653_v9, %s5473_s2 }
 0x4be   :  { %3531 = vrot.lane.b32.xlu0 %v7656_v44, %s5473_s2 }
 0x4bf   :  { %3541 = vrot.lane.b32.xlu2 %v7671_v26, %s5473_s2 }
 0x4c1   :  { %v8039_v5 = vpop.permute.xlu2 %3403 }
 0x4c2   :  { %12153 = vst [vmem:[#allocation465_spill] sm:$0xff] %v8039_v5  ;;  %v12184_v5 = vld [vmem:[#allocation24_spill] sm:$0xff] }
 0x4c3   :  { %v179_v58 = vadd.f32 %v12184_v5, %v12183_v48  ;;  %v12196_v5 = vld [vmem:[#allocation31_spill] sm:$0xff]  ;;  %v12197_v48 = vld [vmem:[#allocation32_spill] sm:$0xff] }
 0x4c5   :  { %3539 = vrot.lane.b32.xlu1 %v7674_v16, %s5473_s2 }
 0x4c6   :  { %3537 = vrot.lane.b32.xlu0 %v7677_v15, %s5473_s2 }
 0x4c7   :  { %v8041_v9 = vpop.permute.xlu1 %3335  ;;  %3547 = vrot.lane.b32.xlu2 %v7692_v13, %s5473_s2 }
 0x4c8   :  { %12154 = vst [vmem:[#allocation466_spill] sm:$0xff] %v8041_v9  ;;  %v8043_v44 = vpop.permute.xlu0 %3333  ;;  %v12182_v9 = vld [vmem:[#allocation23_spill] sm:$0xff] }
 0x4c9   :  { %12155 = vst [vmem:[#allocation467_spill] sm:$0xff] %v8043_v44  ;;  %v8051_v26 = vpop.permute.xlu2 %3409  ;;  %v12181_v44 = vld [vmem:[#allocation88_spill] sm:$0xff] }
 0x4ca   :  { %12156 = vst [vmem:[#allocation468_spill] sm:$0xff] %v8051_v26  ;;  %v12180_v26 = vld [vmem:[#allocation22_spill] sm:$0xff]  ;;  %v181_v43 = vadd.f32 %v12182_v9, %v12181_v44 }
 0x4cb   :  { %v12195_v9 = vld [vmem:[#allocation34_spill] sm:$0xff] }
 0x4cd   :  { %3545 = vrot.lane.b32.xlu1 %v7695_v29, %s5473_s2 }
 0x4ce   :  { %3543 = vrot.lane.b32.xlu0 %v7698_v33, %s5473_s2 }
 0x4cf   :  { %v8053_v16 = vpop.permute.xlu1 %3389  ;;  %3553 = vrot.lane.b32.xlu2 %v7713_v24, %s5473_s2 }
 0x4d0   :  { %12157 = vst [vmem:[#allocation469_spill] sm:$0xff] %v8053_v16  ;;  %v8055_v15 = vpop.permute.xlu0 %3387  ;;  %v12179_v16 = vld [vmem:[#allocation21_spill] sm:$0xff] }
 0x4d1   :  { %12158 = vst [vmem:[#allocation470_spill] sm:$0xff] %v8055_v15  ;;  %v8063_v13 = vpop.permute.xlu2 %3439 }
 0x4d2   :  { %12159 = vst [vmem:[#allocation471_spill] sm:$0xff] %v8063_v13  ;;  %v12191_v13 = vld [vmem:[#allocation99_spill] sm:$0xff] }
 0x4d5   :  { %3551 = vrot.lane.b32.xlu1 %v7716_v46, %s5473_s2 }
 0x4d6   :  { %3549 = vrot.lane.b32.xlu0 %v7719_v38, %s5473_s2 }
 0x4d7   :  { %v8065_v29 = vpop.permute.xlu1 %3395  ;;  %3583 = vrot.lane.b32.xlu2 %v7544_v17, %s5474_s24 }
 0x4d8   :  { %12160 = vst [vmem:[#allocation472_spill] sm:$0xff] %v8065_v29  ;;  %v8067_v33 = vpop.permute.xlu0 %3393  ;;  %v12176_v29 = vld [vmem:[#allocation98_spill] sm:$0xff] }
 0x4d9   :  { %12161 = vst [vmem:[#allocation473_spill] sm:$0xff] %v8067_v33  ;;  %v8075_v24 = vpop.permute.xlu2 %3445 }
 0x4da   :  { %12162 = vst [vmem:[#allocation474_spill] sm:$0xff] %v8075_v24  ;;  %v12174_v24 = vld [vmem:[#allocation92_spill] sm:$0xff] }
 0x4dd   :  { %3581 = vrot.lane.b32.xlu1 %v7547_v4, %s5474_s24 }
 0x4de   :  { %3579 = vrot.lane.b32.xlu0 %v7550_v6, %s5474_s24 }
 0x4df   :  { %v8077_v46 = vpop.permute.xlu1 %3401  ;;  %3589 = vrot.lane.b32.xlu2 %v7575_v28, %s5474_s24  ;;  %v12173_v28 = vld [vmem:[#allocation17_spill] sm:$0xff] }
 0x4e0   :  { %12163 = vst [vmem:[#allocation475_spill] sm:$0xff] %v8077_v46  ;;  %v8079_v38 = vpop.permute.xlu0 %3399 }
 0x4e1   :  { %12164 = vst [vmem:[#allocation476_spill] sm:$0xff] %v8079_v38  ;;  %v8087_v17 = vpop.permute.xlu2 %3451  ;;  %v12172_v38 = vld [vmem:[#allocation87_spill] sm:$0xff] }
 0x4e2   :  { %12165 = vst [vmem:[#allocation477_spill] sm:$0xff] %v8087_v17  ;;  %v183_v46 = vadd.f32 %v12173_v28, %v12172_v38  ;;  %v12178_v17 = vld [vmem:[#allocation82_spill] sm:$0xff]  ;;  %v12186_v38 = vld [vmem:[#allocation93_spill] sm:$0xff] }
 0x4e3   :  { %v12187_v28 = vld [vmem:[#allocation26_spill] sm:$0xff] }
 0x4e4   :  { %v255_v21 = vadd.f32 %v12185_v39, %v183_v46  ;;  %v185_v47 = vadd.f32 %v12187_v28, %v12186_v38  ;;  %v251_v39 = vadd.f32 %v12197_v48, %v179_v58  ;;  %v12198_v38 = vld [vmem:[#allocation33_spill] sm:$0xff]  ;;  %v12199_v28 = vld [vmem:[#allocation35_spill] sm:$0xff] }
 0x4e5   :  { %3587 = vrot.lane.b32.xlu1 %v7578_v55, %s5474_s24  ;;  %v12175_v55 = vld [vmem:[#allocation18_spill] sm:$0xff]  ;;  %v12207_v58 = vld [vmem:[#allocation39_spill] sm:$0xff] }
 0x4e6   :  { %3585 = vrot.lane.b32.xlu0 %v7581_v32, %s5474_s24  ;;  %v186_v33 = vadd.f32 %v12175_v55, %v12174_v24  ;;  %v12177_v32 = vld [vmem:[#allocation19_spill] sm:$0xff]  ;;  %v12188_v24 = vld [vmem:[#allocation94_spill] sm:$0xff] }
 0x4e7   :  { %v8089_v4 = vpop.permute.xlu1 %3407  ;;  %v189_v15 = vadd.f32 %v12177_v32, %v12176_v29  ;;  %v12189_v55 = vld [vmem:[#allocation27_spill] sm:$0xff]  ;;  %v12190_v29 = vld [vmem:[#allocation28_spill] sm:$0xff]  ;;  %3595 = vrot.lane.b32.xlu2 %v7602_v42, %s5474_s24 }
 0x4e8   :  { %12166 = vst [vmem:[#allocation478_spill] sm:$0xff] %v8089_v4  ;;  %v8091_v6 = vpop.permute.xlu0 %3405  ;;  %v178_v4 = vadd.f32 %v12179_v16, %v12178_v17  ;;  %v184_v22 = vadd.f32 %v12189_v55, %v12188_v24  ;;  %v258_v32 = vadd.f32 %v12190_v29, %v186_v33  ;;  %v12192_v16 = vld [vmem:[#allocation29_spill] sm:$0xff]  ;;  %v254_v24 = vadd.f32 %v12199_v28, %v182_v40  ;;  %v12201_v55 = vld [vmem:[#allocation36_spill] sm:$0xff]  ;;  %v12210_v28 = vld [vmem:[#allocation42_spill] sm:$0xff] }
 0x4e9   :  { %12167 = vst [vmem:[#allocation479_spill] sm:$0xff] %v8091_v6  ;;  %v252_v6 = vadd.f32 %v12180_v26, %v180_v30  ;;  %v188_v17 = vadd.f32 %v12192_v16, %v12191_v13  ;;  %v12193_v26 = vld [vmem:[#allocation100_spill] sm:$0xff]  ;;  %v12194_v30 = vld [vmem:[#allocation30_spill] sm:$0xff]  ;;  %v261_v46 = vadd.f32 %v12196_v5, %v189_v15  ;;  %v253_v29 = vadd.f32 %v12201_v55, %v181_v43  ;;  %v12209_v40 = vld [vmem:[#allocation41_spill] sm:$0xff] }
 0x4ea   :  { %v187_v8 = vadd.f32 %v12194_v30, %v12193_v26  ;;  %v250_v33 = vadd.f32 %v12198_v38, %v178_v4  ;;  %v12200_v13 = vld [vmem:[#allocation380_spill] sm:$0xff]  ;;  %v12203_v26 = vld [vmem:[#allocation38_spill] sm:$0xff]  ;;  %v256_v5 = vadd.f32 %v12207_v58, %v184_v22  ;;  %v12212_v43 = vld [vmem:[#allocation43_spill] sm:$0xff] }
 0x4eb   :  { %v324_v44 = vadd.f32 %v12195_v9, %v252_v6  ;;  %v12202_v6 = vld [vmem:[#allocation37_spill] sm:$0xff]  ;;  %v257_v42 = vadd.f32 %v12203_v26, %v185_v47  ;;  %v12204_v30 = vld [vmem:[#allocation46_spill] sm:$0xff]  ;;  %v12208_v4 = vld [vmem:[#allocation40_spill] sm:$0xff]  ;;  %v260_v38 = vadd.f32 %v12209_v40, %v188_v17  ;;  %v325_v22 = vadd.f32 %v12217_v0, %v253_v29 }
 0x4ec   :  { %v327_v16 = vadd.f32 %v12202_v6, %v255_v21  ;;  %v330_v48 = vadd.f32 %v12208_v4, %v258_v32  ;;  %v333_v21 = vadd.f32 %v12212_v43, %v261_v46  ;;  %v12213_v55 = vld [vmem:[#allocation44_spill] sm:$0xff]  ;;  %v12214_v6 = vld [vmem:[#allocation45_spill] sm:$0xff]  ;;  %v12215_v26 = vld [vmem:[#allocation58_spill] sm:$0xff] }
 0x4ed   :  { %3593 = vrot.lane.b32.xlu1 %v7605_v2, %s5474_s24  ;;  %v396_v9 = vadd.f32 %v12204_v30, %v324_v44  ;;  %v8135_v2 = vpop.permute.xlu2 %3457  ;;  %v323_v47 = vadd.f32 %v12213_v55, %v251_v39  ;;  %v322_v44 = vadd.f32 %v12214_v6, %v250_v33  ;;  %v12218_v58 = vld [vmem:[#allocation49_spill] sm:$0xff]  ;;  %v12219_v4 = vld [vmem:[#allocation50_spill] sm:$0xff]  ;;  %v12220_v40 = vld [vmem:[#allocation51_spill] sm:$0xff]  ;;  %v332_v46 = vadd.f32 %v12222_v37, %v260_v38 }
 0x4ee   :  { %3591 = vrot.lane.b32.xlu0 %v12200_v13, %s5474_s24  ;;  %12205 = vst [vmem:[#allocation11_spill] sm:$0xff] %v8135_v2  ;;  %v259_v13 = vadd.f32 %v12210_v28, %v187_v8  ;;  %v12216_v2 = vld [vmem:[#allocation47_spill] sm:$0xff]  ;;  %v399_v32 = vadd.f32 %v12218_v58, %v327_v16  ;;  %v329_v17 = vadd.f32 %v12219_v4, %v257_v42  ;;  %v12221_v28 = vld [vmem:[#allocation52_spill] sm:$0xff]  ;;  %v12223_v43 = vld [vmem:[#allocation70_spill] sm:$0xff] }
 0x4ef   :  { %v8137_v15 = vpop.permute.xlu1 %3437  ;;  %v468_v30 = vadd.f32 %v12215_v26, %v396_v9  ;;  %v328_v8 = vadd.f32 %v12220_v40, %v256_v5  ;;  %v12224_v55 = vld [vmem:[#allocation54_spill] sm:$0xff]  ;;  %v12225_v6 = vld [vmem:[#allocation55_spill] sm:$0xff]  ;;  %v12226_v26 = vld [vmem:[#allocation56_spill] sm:$0xff] }
 0x4f0   :  { %12206 = vst [vmem:[#allocation20_spill] sm:$0xff] %v8137_v15  ;;  %v8143_v18 = vpop.permute.xlu0 %3435  ;;  %v326_v15 = vadd.f32 %v12216_v2, %v254_v24  ;;  %v331_v33 = vadd.f32 %v12224_v55, %v259_v13  ;;  %v405_v9 = vadd.f32 %v12225_v6, %v333_v21  ;;  %v395_v24 = vadd.f32 %v12226_v26, %v323_v47  ;;  %v12227_v2 = vld [vmem:[#allocation57_spill] sm:$0xff]  ;;  %v12228_v29 = vld [vmem:[#allocation59_spill] sm:$0xff]  ;;  %v12229_v58 = vld [vmem:[#allocation60_spill] sm:$0xff] }
 0x4f1   :  { %12211 = vst [vmem:[#allocation86_spill] sm:$0xff] %v8143_v18  ;;  %v402_v18 = vadd.f32 %v12221_v28, %v330_v48  ;;  %v516_v39 = vadd.f32 %v12223_v43, %v468_v30  ;;  %v394_v0 = vadd.f32 %v12227_v2, %v322_v44  ;;  %v397_v42 = vadd.f32 %v12229_v58, %v325_v22  ;;  %v12230_v4 = vld [vmem:[#allocation13_spill] sm:$0xff]  ;;  %v12231_v48 = vld [vmem:[#allocation384_spill] sm:$0xff]  ;;  %v12234_v30 = vld [vmem:[#allocation62_spill] sm:$0xff] }
 0x4f2   :  { %v398_v16 = vadd.f32 %v12228_v29, %v326_v15  ;;  %3601 = vrot.lane.b32.xlu2 %v12231_v48, %s5474_s24  ;;  %v12232_v37 = vld [vmem:[#allocation385_spill] sm:$0xff]  ;;  %v401_v21 = vadd.f32 %v12234_v30, %v329_v17  ;;  %v12235_v40 = vld [vmem:[#allocation63_spill] sm:$0xff]  ;;  %v12236_v28 = vld [vmem:[#allocation64_spill] sm:$0xff] }
 0x4f3   :  { %v564_v5 = vadd.f32 %v12230_v4, %v516_v39  ;;  %v12233_v38 = vld [vmem:[#allocation61_spill] sm:$0xff]  ;;  %v400_v47 = vadd.f32 %v12235_v40, %v328_v8  ;;  %v474_v44 = vadd.f32 %v12236_v28, %v402_v18  ;;  %v12237_v15 = vld [vmem:[#allocation386_spill] sm:$0xff]  ;;  %v12240_v6 = vld [vmem:[#allocation67_spill] sm:$0xff] }
 0x4f4   :  { %v471_v13 = vadd.f32 %v12233_v38, %v399_v32  ;;  %v12238_v22 = vld [vmem:[#allocation65_spill] sm:$0xff]  ;;  %v12239_v39 = vld [vmem:[#allocation66_spill] sm:$0xff]  ;;  %v477_v26 = vadd.f32 %v12240_v6, %v405_v9  ;;  %v12244_v17 = vld [vmem:[#allocation68_spill] sm:$0xff] }
 0x4f5   :  { %3599 = vrot.lane.b32.xlu1 %v12232_v37, %s5474_s24  ;;  %v404_v43 = vadd.f32 %v12238_v22, %v332_v46  ;;  %v403_v55 = vadd.f32 %v12239_v39, %v331_v33  ;;  %v12241_v2 = vld [vmem:[#allocation102_spill] sm:$0xff]  ;;  %v8178_v58 = vpop.permute.xlu2 %3487  ;;  %v467_v4 = vadd.f32 %v12244_v17, %v395_v24  ;;  %v12245_v8 = vld [vmem:[#allocation69_spill] sm:$0xff]  ;;  %v12246_v18 = vld [vmem:[#allocation71_spill] sm:$0xff] }
 0x4f6   :  { %3597 = vrot.lane.b32.xlu0 %v12237_v15, %s5474_s24  ;;  %v612_v29 = vadd.f32 %v12241_v2, %v564_v5  ;;  %12242 = vst [vmem:[#allocation16_spill] sm:$0xff] %v8178_v58  ;;  %v466_v48 = vadd.f32 %v12245_v8, %v394_v0  ;;  %v470_v37 = vadd.f32 %v12246_v18, %v398_v16  ;;  %v12247_v38 = vld [vmem:[#allocation72_spill] sm:$0xff]  ;;  %v12249_v46 = vld [vmem:[#allocation73_spill] sm:$0xff]  ;;  %v12250_v28 = vld [vmem:[#allocation74_spill] sm:$0xff] }
 0x4f7   :  { %v8180_v32 = vpop.permute.xlu1 %3443  ;;  %v469_v30 = vadd.f32 %v12247_v38, %v397_v42  ;;  %v519_v33 = vadd.f32 %v12249_v46, %v471_v13  ;;  %v473_v9 = vadd.f32 %v12250_v28, %v401_v21  ;;  %v12251_v15 = vld [vmem:[#allocation75_spill] sm:$0xff]  ;;  %v12252_v22 = vld [vmem:[#allocation118_spill] sm:$0xff]  ;;  %v12253_v6 = vld [vmem:[#allocation76_spill] sm:$0xff]  ;;  %v8199_v13 = vmul.f32 0.0010283801, %v7519_v45 }
 0x4f8   :  { %12243 = vst [vmem:[#allocation87_spill] sm:$0xff] %v8180_v32  ;;  %v8186_v40 = vpop.permute.xlu0 %3441  ;;  %v472_v5 = vadd.f32 %v12251_v15, %v400_v47  ;;  %v660_v39 = vadd.f32 %v12252_v22, %v612_v29  ;;  %v522_v2 = vadd.f32 %v12253_v6, %v474_v44  ;;  %v12254_v32 = vld [vmem:[#allocation77_spill] sm:$0xff]  ;;  %v12255_v17 = vld [vmem:[#allocation78_spill] sm:$0xff]  ;;  %v12256_v8 = vld [vmem:[#allocation79_spill] sm:$0xff] }
 0x4f9   :  { %12248 = vst [vmem:[#allocation17_spill] sm:$0xff] %v8186_v40  ;;  %v476_v24 = vadd.f32 %v12254_v32, %v404_v43  ;;  %v475_v0 = vadd.f32 %v12255_v17, %v403_v55  ;;  %v525_v16 = vadd.f32 %v12256_v8, %v477_v26  ;;  %v12257_v18 = vld [vmem:[#allocation80_spill] sm:$0xff]  ;;  %v12258_v38 = vld [vmem:[#allocation130_spill] sm:$0xff]  ;;  %v12260_v21 = vld [vmem:[#allocation367_spill] sm:$0xff]  ;;  %v8208_v55 = vmul.f32 0.0010283801, %v7535_v25 }
 0x4fa   :  { %v515_v42 = vadd.f32 %v12257_v18, %v467_v4  ;;  %v720_v40 = vadd.f32 %v12258_v38, %v660_v39  ;;  %12259 = vst [vmem:[#allocation92_spill] sm:$0xff] %v8199_v13  ;;  %v8202_v46 = vmul.f32 0.0010283801, %v12260_v21  ;;  %v12262_v47 = vld [vmem:[#allocation81_spill] sm:$0xff]  ;;  %v12263_v28 = vld [vmem:[#allocation14_spill] sm:$0xff]  ;;  %v12264_v15 = vld [vmem:[#allocation15_spill] sm:$0xff]  ;;  %3643 = vrot.lane.b32.xlu2 %v8199_v13, %s5475_s25 }
 0x4fb   :  { %v514_v29 = vadd.f32 %v12262_v47, %v466_v48  ;;  %v518_v44 = vadd.f32 %v12263_v28, %v470_v37  ;;  %v517_v43 = vadd.f32 %v12264_v15, %v469_v30  ;;  %12265 = vst [vmem:[#allocation98_spill] sm:$0xff] %v8208_v55  ;;  %v12266_v26 = vld [vmem:[#allocation83_spill] sm:$0xff]  ;;  %v12267_v4 = vld [vmem:[#allocation84_spill] sm:$0xff]  ;;  %v12268_v39 = vld [vmem:[#allocation85_spill] sm:$0xff] }
 0x4fc   :  { %12261 = vst [vmem:[#allocation18_spill] sm:$0xff] %v8202_v46  ;;  %v567_v32 = vadd.f32 %v12266_v26, %v519_v33  ;;  %v521_v22 = vadd.f32 %v12267_v4, %v473_v9  ;;  %v520_v6 = vadd.f32 %v12268_v39, %v472_v5  ;;  %v12269_v45 = vld [vmem:[#allocation89_spill] sm:$0xff]  ;;  %v12270_v37 = vld [vmem:[#allocation90_spill] sm:$0xff]  ;;  %v12271_v30 = vld [vmem:[#allocation91_spill] sm:$0xff]  ;;  %v737_v28 = vmul.f32 0.007598758, %v720_v40 }
 0x4fd   :  { %3641 = vrot.lane.b32.xlu1 %v8202_v46, %s5475_s25  ;;  %v570_v48 = vadd.f32 %v12269_v45, %v522_v2  ;;  %v524_v17 = vadd.f32 %v12270_v37, %v476_v24  ;;  %v523_v8 = vadd.f32 %v12271_v30, %v475_v0  ;;  %v12272_v25 = vld [vmem:[#allocation95_spill] sm:$0xff]  ;;  %v12273_v33 = vld [vmem:[#allocation96_spill] sm:$0xff]  ;;  %v12274_v5 = vld [vmem:[#allocation97_spill] sm:$0xff]  ;;  %v8226_v15 = vpop.permute.xlu2 %3493 }
 0x4fe   :  { %v573_v18 = vadd.f32 %v12272_v25, %v525_v16  ;;  %3639 = vrot.lane.b32.xlu0 %v8208_v55, %s5475_s25  ;;  %v563_v9 = vadd.f32 %v12273_v33, %v515_v42  ;;  %v562_v38 = vadd.f32 %v12274_v5, %v514_v29  ;;  %v12275_v21 = vld [vmem:[#allocation103_spill] sm:$0xff]  ;;  %12276 = vst [vmem:[#allocation19_spill] sm:$0xff] %v8226_v15  ;;  %v12278_v2 = vld [vmem:[#allocation104_spill] sm:$0xff]  ;;  %v12279_v4 = vld [vmem:[#allocation105_spill] sm:$0xff] }
 0x4ff   :  { %v566_v47 = vadd.f32 %v12275_v21, %v518_v44  ;;  %v8228_v26 = vpop.permute.xlu1 %3449  ;;  %v565_v24 = vadd.f32 %v12278_v2, %v517_v43  ;;  %v615_v0 = vadd.f32 %v12279_v4, %v567_v32  ;;  %v12280_v39 = vld [vmem:[#allocation106_spill] sm:$0xff]  ;;  %v12281_v45 = vld [vmem:[#allocation107_spill] sm:$0xff]  ;;  %v12283_v42 = vld [vmem:[#allocation108_spill] sm:$0xff] }
 0x500   :  { %12277 = vst [vmem:[#allocation82_spill] sm:$0xff] %v8228_v26  ;;  %v569_v16 = vadd.f32 %v12280_v39, %v521_v22  ;;  %v568_v37 = vadd.f32 %v12281_v45, %v520_v6  ;;  %v8234_v30 = vpop.permute.xlu0 %3447  ;;  %v618_v25 = vadd.f32 %v12283_v42, %v570_v48  ;;  %v12284_v29 = vld [vmem:[#allocation109_spill] sm:$0xff]  ;;  %v12285_v44 = vld [vmem:[#allocation110_spill] sm:$0xff]  ;;  %v12286_v21 = vld [vmem:[#allocation112_spill] sm:$0xff]  ;;  %v610_v43 = vadd.f32 %v12288_v23, %v562_v38 }
 0x501   :  { %12282 = vst [vmem:[#allocation21_spill] sm:$0xff] %v8234_v30  ;;  %v572_v33 = vadd.f32 %v12284_v29, %v524_v17  ;;  %v571_v5 = vadd.f32 %v12285_v44, %v523_v8  ;;  %v621_v15 = vadd.f32 %v12286_v21, %v573_v18  ;;  %v12287_v58 = vld [vmem:[#allocation113_spill] sm:$0xff]  ;;  %v12289_v2 = vld [vmem:[#allocation119_spill] sm:$0xff]  ;;  %v12290_v4 = vld [vmem:[#allocation120_spill] sm:$0xff]  ;;  %v749_v45 = vrot.slane %v737_v28, 1 }
 0x502   :  { %v611_v26 = vadd.f32 %v12287_v58, %v563_v9  ;;  %v614_v32 = vadd.f32 %v12289_v2, %v566_v47  ;;  %v613_v22 = vadd.f32 %v12290_v4, %v565_v24  ;;  %v12291_v39 = vld [vmem:[#allocation121_spill] sm:$0xff]  ;;  %v8246_v30 = vmul.f32 0.0010283801, %v7554_v61  ;;  %v12295_v8 = vld [vmem:[#allocation122_spill] sm:$0xff]  ;;  %v12297_v58 = vld [vmem:[#allocation124_spill] sm:$0xff] }
 0x503   :  { %v663_v6 = vadd.f32 %v12291_v39, %v615_v0  ;;  %v12293_v48 = vld [vmem:[#allocation373_spill] sm:$0xff]  ;;  %v617_v42 = vadd.f32 %v12295_v8, %v569_v16  ;;  %v767_v18 = vmul.f32 0.036000773, %v720_v40  ;;  %v8252_v29 = vmul.f32 0.10936069, %v720_v40  ;;  %v12298_v61 = vld [vmem:[#allocation123_spill] sm:$0xff] }
 0x504   :  { %12292 = vst [vmem:[#allocation22_spill] sm:$0xff] %v8246_v30  ;;  %v8249_v17 = vmul.f32 0.0010283801, %v12293_v48  ;;  %v8255_v23 = vmul.f32 0.0010283801, %v7566_v51  ;;  %v666_v9 = vadd.f32 %v12297_v58, %v618_v25  ;;  %3649 = vrot.lane.b32.xlu2 %v8246_v30, %s5475_s25  ;;  %v616_v24 = vadd.f32 %v12298_v61, %v568_v37  ;;  %v12299_v0 = vld [vmem:[#allocation125_spill] sm:$0xff] }
 0x505   :  { %v731_v38 = vmul.f32 0.0010283801, %v720_v40  ;;  %v8258_v47 = vmul.f32 0.21300554, %v720_v40  ;;  %v8260_v28 = vmul.f32 0.26601171, %v720_v40  ;;  %v620_v16 = vadd.f32 %v12299_v0, %v572_v33  ;;  %v8277_v59 = vpop.permute.xlu2 %3499 }
 0x506   :  { %12294 = vst [vmem:[#allocation88_spill] sm:$0xff] %v8249_v17  ;;  %3647 = vrot.lane.b32.xlu1 %v8249_v17, %s5475_s25  ;;  %v12300_v44 = vld [vmem:[#allocation126_spill] sm:$0xff]  ;;  %v12301_v21 = vld [vmem:[#allocation133_spill] sm:$0xff]  ;;  %3645 = vrot.lane.b32.xlu0 %v8255_v23, %s5475_s25  ;;  %v12302_v40 = vld [vmem:[#allocation127_spill] sm:$0xff] }
 0x507   :  { %12296 = vst [vmem:[#allocation23_spill] sm:$0xff] %v8255_v23  ;;  %v619_v51 = vadd.f32 %v12300_v44, %v571_v5  ;;  %v8270_v2 = vadd.f32 %v12301_v21, %v663_v6  ;;  %v669_v25 = vadd.f32 %v12302_v40, %v621_v15  ;;  %v12303_v4 = vld [vmem:[#allocation128_spill] sm:$0xff]  ;;  %v761_v48 = vadd.f32 %v749_v45, %v731_v38  ;;  %v8279_v37 = vpop.permute.xlu1 %3455  ;;  %v12307_v33 = vld [vmem:[#allocation129_spill] sm:$0xff]  ;;  %v12308_v0 = vld [vmem:[#allocation131_spill] sm:$0xff] }
 0x508   :  { %v659_v39 = vadd.f32 %v12303_v4, %v611_v26  ;;  %v12304_v8 = vld [vmem:[#allocation136_spill] sm:$0xff]  ;;  %12305 = vst [vmem:[#allocation12_spill] sm:$0xff] %v8277_v59  ;;  %v658_v61 = vadd.f32 %v12307_v33, %v610_v43  ;;  %v779_v5 = vrot.slane %v767_v18, 2  ;;  %v8284_v44 = vadd.f32 %v12308_v0, %v614_v32  ;;  %v8286_v21 = vpop.permute.xlu0 %3453  ;;  %v12316_v15 = vld [vmem:[#allocation135_spill] sm:$0xff] }
 0x509   :  { %v726_v58 = vadd.f32 %v12304_v8, %v666_v9  ;;  %12306 = vst [vmem:[#allocation24_spill] sm:$0xff] %v8279_v37  ;;  %v12310_v38 = vld [vmem:[#allocation132_spill] sm:$0xff]  ;;  %v8296_v43 = vmul.f32 0.10936069, %v8270_v2  ;;  %v8299_v18 = vmul.f32 0.21300554, %v8270_v2 }
 0x50a   :  { %12309 = vst [vmem:[#allocation25_spill] sm:$0xff] %v8286_v21  ;;  %v8293_v40 = vadd.f32 %v12310_v38, %v613_v22  ;;  %v8302_v32 = vmul.f32 0.26601171, %v8270_v2  ;;  %v8304_v4 = vadd.f32 %v779_v5, %v761_v48  ;;  %v8307_v33 = vmul.f32 0.0010283801, %v7585_v12  ;;  %v12313_v22 = vld [vmem:[#allocation134_spill] sm:$0xff] }
 0x50b   :  { %v740_v8 = vmul.f32 0.007598758, %v726_v58  ;;  %v8310_v0 = vmul.f32 0.0010283801, %v7591_v49  ;;  %v8313_v38 = vadd.f32 %v12313_v22, %v617_v42  ;;  %v8315_v9 = vmul.f32 0.036000773, %v726_v58 }
 0x50c   :  { %12311 = vst [vmem:[#allocation93_spill] sm:$0xff] %v8307_v33  ;;  %v8317_v45 = vmul.f32 0.10936069, %v726_v58  ;;  %v8320_v26 = vmul.f32 0.0010283801, %v7593_v35  ;;  %v8323_v48 = vadd.f32 %v12316_v15, %v616_v24  ;;  %v12318_v6 = vld [vmem:[#allocation139_spill] sm:$0xff]  ;;  %3655 = vrot.lane.b32.xlu2 %v8307_v33, %s5475_s25  ;;  %v722_v10 = vadd.f32 %v12338_v19, %v8284_v44 }
 0x50d   :  { %12312 = vst [vmem:[#allocation26_spill] sm:$0xff] %v8310_v0  ;;  %v8325_v5 = vmul.f32 0.21300554, %v726_v58  ;;  %v8327_v12 = vmul.f32 0.26601171, %v726_v58  ;;  %v8330_v49 = vadd.f32 %v12318_v6, %v669_v25  ;;  %v12320_v15 = vld [vmem:[#allocation141_spill] sm:$0xff]  ;;  %v8352_v42 = vpop.permute.xlu2 %3505 }
 0x50e   :  { %12314 = vst [vmem:[#allocation94_spill] sm:$0xff] %v8317_v45  ;;  %3653 = vrot.lane.b32.xlu1 %v8310_v0, %s5475_s25  ;;  %v8340_v22 = vadd.f32 %v12320_v15, %v658_v61  ;;  %3651 = vrot.lane.b32.xlu0 %v8320_v26, %s5475_s25  ;;  %v12321_v21 = vld [vmem:[#allocation137_spill] sm:$0xff]  ;;  %v12322_v59 = vld [vmem:[#allocation140_spill] sm:$0xff]  ;;  %v734_v24 = vmul.f32 0.0010283801, %v726_v58  ;;  %v752_v61 = vrot.slane %v740_v8, 1 }
 0x50f   :  { %12315 = vst [vmem:[#allocation27_spill] sm:$0xff] %v8320_v26  ;;  %v8347_v37 = vadd.f32 %v12321_v21, %v620_v16  ;;  %v8350_v53 = vadd.f32 %v12322_v59, %v659_v39  ;;  %v8354_v35 = vpop.permute.xlu1 %3485  ;;  %v782_v15 = vrot.slane %v8315_v9, 2  ;;  %v8363_v21 = vmul.f32 0.10936069, %v8330_v49  ;;  %v12330_v25 = vld [vmem:[#allocation138_spill] sm:$0xff] }
 0x510   :  { %12317 = vst [vmem:[#allocation28_spill] sm:$0xff] %v8327_v12  ;;  %v8358_v7 = vpop.permute.xlu0 %3483  ;;  %v8366_v59 = vmul.f32 0.21300554, %v8330_v49  ;;  %v8371_v9 = vmul.f32 0.26601171, %v8330_v49  ;;  %v8375_v57 = vadd.f32 %v12330_v25, %v619_v51  ;;  %v764_v39 = vadd.f32 %v752_v61, %v734_v24  ;;  %v12336_v61 = vld [vmem:[#allocation366_spill] sm:$0xff] }
 0x511   :  { %12319 = vst [vmem:[#allocation99_spill] sm:$0xff] %v8330_v49  ;;  %v736_v8 = vmul.f32 0.007598758, %v8340_v22  ;;  %v8378_v16 = vmul.f32 0.10936069, %v8350_v53 }
 0x512   :  { %12323 = vst [vmem:[#allocation29_spill] sm:$0xff] %v8350_v53  ;;  %v8381_v6 = vmul.f32 0.0010283801, %v7612_v3  ;;  %v8387_v58 = vmul.f32 0.21300554, %v8350_v53  ;;  %v12335_v3 = vld [vmem:[#allocation365_spill] sm:$0xff]  ;;  %v8432_v44 = vadd.f32 %v782_v15, %v764_v39 }
 0x513   :  { %12324 = vst [vmem:[#allocation100_spill] sm:$0xff] %v8352_v42  ;;  %v8393_v42 = vmul.f32 0.0010283801, %v7620_v60  ;;  %v5377_v60 = vld [vmem:[%s11443_s1 + $0x8] sm:$0xff]  ;;  %v748_v36 = vrot.slane %v736_v8, 1 }
 0x514   :  { %12325 = vst [vmem:[#allocation30_spill] sm:$0xff] %v8354_v35  ;;  %v8390_v35 = vmul.f32 0.26601171, %v8350_v53  ;;  %3661 = vrot.lane.b32.xlu2 %v8381_v6, %s5475_s25  ;;  %v8411_v25 = vmul.f32 %v5377_v60, %v12336_v61  ;;  %v822_v61 = vrot.slane %v8378_v16, 3  ;;  %v766_v8 = vmul.f32 0.036000773, %v8340_v22 }
 0x515   :  { %12326 = vst [vmem:[#allocation34_spill] sm:$0xff] %v8358_v7  ;;  %v8384_v7 = vmul.f32 0.0010283801, %v7618_v11  ;;  %v5376_v11 = vld [vmem:[%s11443_s1 + $0x10] sm:$0xff]  ;;  %v8428_v51 = vpop.permute.xlu2 %3535  ;;  %v730_v50 = vmul.f32 0.0010283801, %v8340_v22 }
 0x516   :  { %12327 = vst [vmem:[#allocation31_spill] sm:$0xff] %v8363_v21  ;;  %v8405_v24 = vmul.f32 %v5376_v11, %v12335_v3  ;;  %3657 = vrot.lane.b32.xlu0 %v8393_v42, %s5475_s25  ;;  %v5378_v11 = vld [vmem:[%s11443_s1] sm:$0xff]  ;;  %v12339_v3 = vld [vmem:[#allocation368_spill] sm:$0xff]  ;;  %v8436_v62 = vmul.f32 0.10936069, %v8340_v22  ;;  %v877_v60 = vrot.slane %v8387_v58, 4 }
 0x517   :  { %12328 = vst [vmem:[#allocation32_spill] sm:$0xff] %v8366_v59  ;;  %3659 = vrot.lane.b32.xlu1 %v8384_v7, %s5475_s25  ;;  %v8422_v31 = vmul.f32 %v5378_v11, %v12339_v3  ;;  %v8430_v19 = vpop.permute.xlu1 %3491  ;;  %v8439_v11 = vmul.f32 0.21300554, %v8340_v22  ;;  %v8449_v15 = vmul.f32 0.007598758, %v8411_v25 }
 0x518   :  { %12329 = vst [vmem:[#allocation33_spill] sm:$0xff] %v8371_v9  ;;  %v8441_v3 = vpop.permute.xlu0 %3489  ;;  %v738_v1 = vmul.f32 0.007598758, %v722_v10  ;;  %v8457_v20 = vmul.f32 0.26601171, %v8340_v22  ;;  %v821_v34 = vrot.slane %v8436_v62, 3  ;;  %v8481_v22 = vmul.f32 %v5380_v52, %v5379_v27 }
 0x519   :  { %12331 = vst [vmem:[#allocation35_spill] sm:$0xff] %v8378_v16  ;;  %v8453_v56 = vmul.f32 0.007598758, %v8422_v31  ;;  %v876_v14 = vrot.slane %v8439_v11, 4  ;;  %v8465_v39 = vmul.f32 0.10936069, %v722_v10 }
 0x51a   :  { %12332 = vst [vmem:[#allocation380_spill] sm:$0xff] %v8381_v6  ;;  %v732_v0 = vmul.f32 0.0010283801, %v722_v10  ;;  %v12368_v6 = vld [vmem:[#allocation145_spill] sm:$0xff] }
 0x51b   :  { %12333 = vst [vmem:[#allocation36_spill] sm:$0xff] %v8384_v7  ;;  %v5383_v7 = vld [vmem:[#allocation6 + $0x18] sm:$0xff] }
 0x51c   :  { %12334 = vst [vmem:[#allocation37_spill] sm:$0xff] %v8393_v42  ;;  %v750_v42 = vrot.slane %v738_v1, 1 }
 0x51d   :  { %12337 = vst [vmem:[#allocation38_spill] sm:$0xff] %v8411_v25 }
 0x51e   :  { %12340 = vst [vmem:[#allocation46_spill] sm:$0xff] %v8428_v51  ;;  %v8446_v51 = vmul.f32 0.007598758, %v8405_v24  ;;  %4083 = vrot.lane.b32.xlu0 %v8453_v56, %s5466_s27 }
 0x51f   :  { %12341 = vst [vmem:[#allocation39_spill] sm:$0xff] %v8430_v19  ;;  %v760_v19 = vadd.f32 %v748_v36, %v730_v50  ;;  %v12349_v50 = vld [vmem:[#allocation144_spill] sm:$0xff]  ;;  %4085 = vrot.lane.b32.xlu1 %v8449_v15, %s5466_s27  ;;  %v8502_v1 = vpop.permute.xlu1 %3497 }
 0x520   :  { %12342 = vst [vmem:[#allocation40_spill] sm:$0xff] %v8436_v62  ;;  %v8469_v36 = vadd.f32 %v12349_v50, %v8293_v40  ;;  %4087 = vrot.lane.b32.xlu2 %v8446_v51, %s5466_s27  ;;  %v5381_v40 = vld [vmem:[%s11443_s1 + $0x20] sm:$0xff]  ;;  %v12351_v50 = vld [vmem:[#allocation372_spill] sm:$0xff] }
 0x521   :  { %12343 = vst [vmem:[#allocation41_spill] sm:$0xff] %v8441_v3  ;;  %v778_v3 = vrot.slane %v766_v8, 2  ;;  %v8472_v8 = vmul.f32 0.21300554, %v722_v10  ;;  %v8487_v63 = vmul.f32 %v5381_v40, %v12351_v50  ;;  %v8498_v40 = vmul.f32 0.26601171, %v722_v10 }
 0x522   :  { %12344 = vst [vmem:[#allocation42_spill] sm:$0xff] %v8446_v51  ;;  %v768_v51 = vmul.f32 0.036000773, %v722_v10  ;;  %v8506_v50 = vsel %vm875_vm1, %v876_v14, %v877_v60  ;;  %v12357_v10 = vld [vmem:[#allocation147_spill] sm:$0xff]  ;;  %v762_v60 = vadd.f32 %v750_v42, %v732_v0  ;;  %v8532_v23 = vmul.f32 0.21300554, %v8469_v36 }
 0x523   :  { %12345 = vst [vmem:[#allocation43_spill] sm:$0xff] %v8449_v15  ;;  %v790_v41 = vadd.f32 %v778_v3, %v760_v19  ;;  %v5382_v15 = vld [vmem:[%s11443_s1 + $0x18] sm:$0xff]  ;;  %v8500_v19 = vpop.permute.xlu2 %3541  ;;  %v823_v3 = vsel %vm820_vm0, %v821_v34, %v822_v61  ;;  %v882_v26 = vrot.slane %v8472_v8, 4  ;;  %v8517_v52 = vadd.f32 %v12357_v10, %v8323_v48 }
 0x524   :  { %12346 = vst [vmem:[#allocation44_spill] sm:$0xff] %v8453_v56  ;;  %v8494_v27 = vmul.f32 %v5383_v7, %v5382_v15  ;;  %v827_v56 = vrot.slane %v8465_v39, 3  ;;  %v8510_v7 = vmul.f32 0.10936069, %v8469_v36  ;;  %v8512_v15 = vpop.permute.xlu0 %3495  ;;  %v8523_v34 = vmul.f32 0.007598758, %v8487_v63 }
 0x525   :  { %12350 = vst [vmem:[#allocation45_spill] sm:$0xff] %v8481_v22  ;;  %v8525_v14 = vadd.f32 %v823_v3, %v790_v41  ;;  %v780_v61 = vrot.slane %v768_v51, 2  ;;  %v8535_v48 = vmul.f32 0.26601171, %v8469_v36  ;;  %v12361_v10 = vld [vmem:[#allocation146_spill] sm:$0xff]  ;;  %v12363_v41 = vrot.slane %v8296_v43, 3 }
 0x526   :  { %12352 = vst [vmem:[#allocation58_spill] sm:$0xff] %v8487_v63  ;;  %v8539_v17 = vadd.f32 %v12361_v10, %v8313_v38  ;;  %v825_v3 = vrot.slane %v8510_v7, 3  ;;  %v739_v46 = vmul.f32 0.007598758, %v8517_v52  ;;  %v5385_v38 = vld [vmem:[#allocation6 + $0x40] sm:$0xff]  ;;  %v12396_v63 = vld [vmem:[#allocation148_spill] sm:$0xff] }
 0x527   :  { %12353 = vst [vmem:[#allocation47_spill] sm:$0xff] %v8494_v27  ;;  %v829_v0 = vsel %vm820_vm0, %v827_v56, %v12363_v41  ;;  %4091 = vrot.lane.b32.xlu1 %v8523_v34, %s5466_s27  ;;  %v5384_v56 = vld [vmem:[%s11443_s1 + $0x40] sm:$0xff]  ;;  %v792_v51 = vadd.f32 %v780_v61, %v762_v60  ;;  %v8588_v42 = vpop.permute.xlu1 %3503  ;;  %v733_v60 = vmul.f32 0.0010283801, %v8517_v52  ;;  %v8613_v9 = vmul.f32 0.10936069, %v8517_v52 }
 0x528   :  { %12354 = vst [vmem:[#allocation48_spill] sm:$0xff] %v8500_v19  ;;  %v8528_v19 = vmul.f32 0.007598758, %v8494_v27  ;;  %v8560_v10 = vmul.f32 %v5385_v38, %v5384_v56  ;;  %v5388_v56 = vld [vmem:[%s11443_s1 + $0x30] sm:$0xff]  ;;  %v8582_v61 = vmul.f32 0.10936069, %v8539_v17 }
 0x529   :  { %12355 = vst [vmem:[#allocation49_spill] sm:$0xff] %v8502_v1  ;;  %v8520_v1 = vmul.f32 0.007598758, %v8481_v22  ;;  %v5389_v38 = vld [vmem:[#allocation6 + $0x30] sm:$0xff] }
 0x52a   :  { %12356 = vst [vmem:[#allocation50_spill] sm:$0xff] %v8512_v15  ;;  %v12364_v15 = vrot.slane %v8299_v18, 4  ;;  %4089 = vrot.lane.b32.xlu0 %v8528_v19, %s5466_s27  ;;  %v8577_v33 = vmul.f32 %v5389_v38, %v5388_v56  ;;  %v8594_v56 = vmul.f32 0.21300554, %v8539_v17  ;;  %v8597_v38 = vmul.f32 0.26601171, %v8539_v17 }
 0x52b   :  { %12358 = vst [vmem:[#allocation51_spill] sm:$0xff] %v8520_v1  ;;  %4093 = vrot.lane.b32.xlu2 %v8520_v1, %s5466_s27  ;;  %v12367_v1 = vld [vmem:[#allocation218_spill] sm:$0xff] }
 0x52c   :  { %12359 = vst [vmem:[#allocation52_spill] sm:$0xff] %v8523_v34  ;;  %v8550_v55 = vsel %vm875_vm1, %v882_v26, %v12364_v15  ;;  %v5386_v26 = vld [vmem:[%s11443_s1 + $0x38] sm:$0xff]  ;;  %v8570_v34 = vadd.f32 %v12368_v6, %v12367_v1  ;;  %v8600_v13 = vpop.permute.xlu0 %3501  ;;  %v8616_v12 = vmul.f32 0.007598758, %v8577_v33 }
 0x52d   :  { %12360 = vst [vmem:[#allocation53_spill] sm:$0xff] %v8528_v19  ;;  %v5387_v15 = vld [vmem:[#allocation6 + $0x38] sm:$0xff]  ;;  %v12375_v19 = vrot.slane %v8252_v29, 3 }
 0x52e   :  { %12362 = vst [vmem:[#allocation70_spill] sm:$0xff] %v8539_v17  ;;  %v8565_v41 = vmul.f32 %v5387_v15, %v5386_v26  ;;  %v880_v26 = vrot.slane %v8532_v23, 4  ;;  %v12372_v6 = vld [vmem:[#allocation149_spill] sm:$0xff]  ;;  %v8586_v15 = vpop.permute.xlu2 %3547 }
 0x52f   :  { %12365 = vst [vmem:[#allocation54_spill] sm:$0xff] %v8560_v10  ;;  %v728_v1 = vadd.f32 %v12372_v6, %v8347_v37  ;;  %v826_v30 = vsel %vm820_vm0, %v12375_v19, %v825_v3  ;;  %v751_v6 = vrot.slane %v739_v46, 1  ;;  %v8609_v19 = vadd.f32 %v829_v0, %v792_v51 }
 0x530   :  { %12366 = vst [vmem:[#allocation55_spill] sm:$0xff] %v8565_v41  ;;  %v769_v3 = vmul.f32 0.036000773, %v8517_v52  ;;  %v831_v46 = vrot.slane %v8582_v61, 3  ;;  %v8621_v37 = vmul.f32 0.21300554, %v8517_v52 }
 0x531   :  { %12369 = vst [vmem:[#allocation56_spill] sm:$0xff] %v8570_v34  ;;  %v741_v17 = vmul.f32 0.007598758, %v728_v1  ;;  %v763_v34 = vadd.f32 %v751_v6, %v733_v60  ;;  %v830_v6 = vrot.slane %v8613_v9, 3  ;;  %v771_v27 = vmul.f32 0.036000773, %v728_v1 }
 0x532   :  { %12370 = vst [vmem:[#allocation57_spill] sm:$0xff] %v8577_v33  ;;  %v781_v60 = vrot.slane %v769_v3, 2  ;;  %v8647_v33 = vmul.f32 0.26601171, %v8517_v52  ;;  %4095 = vrot.lane.b32.xlu0 %v8616_v12, %s5466_s27  ;;  %v8657_v3 = vmul.f32 0.10936069, %v728_v1 }
 0x533   :  { %12371 = vst [vmem:[#allocation59_spill] sm:$0xff] %v8582_v61  ;;  %v8663_v61 = vpop.permute.xlu1 %3533  ;;  %v8673_v62 = vmul.f32 0.26601171, %v728_v1 }
 0x534   :  { %12373 = vst [vmem:[#allocation60_spill] sm:$0xff] %v8586_v15  ;;  %v8604_v15 = vmul.f32 0.007598758, %v8560_v10  ;;  %v12381_v10 = vld [vmem:[#allocation150_spill] sm:$0xff] }
 0x535   :  { %12374 = vst [vmem:[#allocation13_spill] sm:$0xff] %v8588_v42  ;;  %v8607_v42 = vmul.f32 0.007598758, %v8565_v41  ;;  %v886_v41 = vrot.slane %v8594_v56, 4  ;;  %v8628_v49 = vadd.f32 %v12381_v10, %v8375_v57  ;;  %v5392_v57 = vld [vmem:[%s11443_s1 + $0x50] sm:$0xff] }
 0x536   :  { %12376 = vst [vmem:[#allocation384_spill] sm:$0xff] %v8594_v56  ;;  %4099 = vrot.lane.b32.xlu2 %v8604_v15, %s5466_s27  ;;  %v5393_v10 = vld [vmem:[#allocation6 + $0x50] sm:$0xff]  ;;  %v8661_v52 = vpop.permute.xlu2 %3553  ;;  %v735_v56 = vmul.f32 0.0010283801, %v728_v1 }
 0x537   :  { %12377 = vst [vmem:[#allocation385_spill] sm:$0xff] %v8600_v13  ;;  %v846_v13 = vadd.f32 %v826_v30, %v8304_v4  ;;  %4097 = vrot.lane.b32.xlu1 %v8607_v42, %s5466_s27  ;;  %v5390_v30 = vld [vmem:[%s11443_s1 + $0x58] sm:$0xff]  ;;  %v8643_v51 = vmul.f32 %v5393_v10, %v5392_v57  ;;  %v885_v57 = vrot.slane %v8621_v37, 4  ;;  %v753_v10 = vrot.slane %v741_v17, 1 }
 0x538   :  { %12378 = vst [vmem:[#allocation61_spill] sm:$0xff] %v8604_v15  ;;  %v5391_v4 = vld [vmem:[#allocation6 + $0x58] sm:$0xff]  ;;  %v8659_v15 = vmul.f32 0.21300554, %v728_v1  ;;  %v793_v17 = vadd.f32 %v781_v60, %v763_v34  ;;  %v836_v60 = vrot.slane %v8657_v3, 3  ;;  %v12408_v34 = vrot.slane %v8390_v35, 5 }
 0x539   :  { %12379 = vst [vmem:[#allocation62_spill] sm:$0xff] %v8607_v42  ;;  %v8638_v0 = vmul.f32 %v5391_v4, %v5390_v30  ;;  %v5394_v30 = vld [vmem:[%s11443_s1 + $0x48] sm:$0xff]  ;;  %v765_v1 = vadd.f32 %v753_v10, %v735_v56  ;;  %s10225_s1 = sld [smem:[#allocation2]] }
 0x53a   :  { %12380 = vst [vmem:[#allocation63_spill] sm:$0xff] %v8616_v12  ;;  %v5395_v4 = vld [vmem:[#allocation6 + $0x48] sm:$0xff]  ;;  %v12390_v12 = vrot.slane %v8258_v47, 4 }
 0x53b   :  { %12382 = vst [vmem:[#allocation64_spill] sm:$0xff] %v8628_v49  ;;  %v8654_v42 = vmul.f32 %v5395_v4, %v5394_v30  ;;  %v8669_v30 = vmul.f32 0.10936069, %v8628_v49  ;;  %v8671_v4 = vpop.permute.xlu0 %3531  ;;  %v8676_v16 = vmul.f32 0.007598758, %v8638_v0 }
 0x53c   :  { %12383 = vst [vmem:[#allocation386_spill] sm:$0xff] %v8638_v0  ;;  %v881_v53 = vsel %vm875_vm1, %v12390_v12, %v880_v26  ;;  %v12395_v26 = vld [vmem:[#allocation224_spill] sm:$0xff]  ;;  %v832_v0 = vsel %vm820_vm0, %v830_v6, %v831_v46  ;;  %v8725_v46 = vpop.permute.xlu1 %3539 }
 0x53d   :  { %12384 = vst [vmem:[#allocation65_spill] sm:$0xff] %v8643_v51  ;;  %v8685_v22 = vadd.f32 %v12396_v63, %v12395_v26  ;;  %v834_v12 = vrot.slane %v8669_v30, 3  ;;  %v8697_v63 = vmul.f32 0.21300554, %v8628_v49  ;;  %v848_v26 = vadd.f32 %v832_v0, %v793_v17 }
 0x53e   :  { %12385 = vst [vmem:[#allocation66_spill] sm:$0xff] %v8654_v42  ;;  %4105 = vrot.lane.b32.xlu2 %v8676_v16, %s5466_s27  ;;  %v901_v56 = vadd.f32 %v881_v53, %v846_v13  ;;  %v900_v0 = vadd.f32 %v8506_v50, %v8525_v14  ;;  %v12400_v53 = vrot.slane %v8366_v59, 4  ;;  %v8721_v17 = vmul.f32 0.26601171, %v8628_v49  ;;  %v12546_v59 = vld [vmem:[#allocation450_spill] sm:$0xff] }
 0x53f   :  { %12386 = vst [vmem:[#allocation67_spill] sm:$0xff] %v8657_v3  ;;  %v889_v50 = vrot.slane %v8697_v63, 4 }
 0x540   :  { %12387 = vst [vmem:[#allocation102_spill] sm:$0xff] %v8659_v15 }
 0x541   :  { %12388 = vst [vmem:[#allocation68_spill] sm:$0xff] %v8661_v52  ;;  %v8679_v52 = vmul.f32 0.007598758, %v8643_v51  ;;  %v891_v51 = vrot.slane %v8659_v15, 4 }
 0x542   :  { %12389 = vst [vmem:[#allocation69_spill] sm:$0xff] %v8663_v61  ;;  %v887_v61 = vsel %vm875_vm1, %v885_v57, %v886_v41  ;;  %v12399_v57 = vrot.slane %v8363_v21, 3  ;;  %v8723_v41 = vpop.permute.xlu2 %3583 }
 0x543   :  { %12391 = vst [vmem:[#allocation71_spill] sm:$0xff] %v8669_v30  ;;  %4103 = vrot.lane.b32.xlu1 %v8679_v52, %s5466_s27  ;;  %v8718_v13 = vsel %vm875_vm1, %v891_v51, %v12400_v53  ;;  %v8731_v14 = vpop.permute.xlu0 %3537  ;;  %v12403_v51 = vrot.slane %v8498_v40, 5  ;;  %v12539_v30 = vld [vmem:[#allocation442_spill] sm:$0xff] }
 0x544   :  { %12392 = vst [vmem:[#allocation72_spill] sm:$0xff] %v8671_v4  ;;  %v8688_v4 = vmul.f32 0.007598758, %v8654_v42  ;;  %v838_v10 = vsel %vm820_vm0, %v836_v60, %v12399_v57  ;;  %v12404_v60 = vrot.slane %v8535_v48, 5  ;;  %v12405_v57 = vrot.slane %v8260_v28, 5  ;;  %v12529_v3 = vld [vmem:[#allocation65_spill] sm:$0xff] }
 0x545   :  { %12393 = vst [vmem:[#allocation73_spill] sm:$0xff] %v8676_v16  ;;  %v8744_v42 = vmul.f32 0.036000773, %v8405_v24  ;;  %v8759_v28 = vmul.f32 0.036000773, %v8422_v31 }
 0x546   :  { %12394 = vst [vmem:[#allocation74_spill] sm:$0xff] %v8679_v52  ;;  %4101 = vrot.lane.b32.xlu0 %v8688_v4, %s5466_s27  ;;  %v936_v53 = vsel %vm930_vm2, %v12405_v57, %v12404_v60  ;;  %v1025_v16 = vmul.f32 0.036000773, %v8270_v2  ;;  %v8989_v21 = vmul.f32 0.036000773, %v12529_v3  ;;  %s10874_s27 = sld [smem:[#allocation2 + $0x1]] }
 0x547   :  { %12397 = vst [vmem:[#allocation75_spill] sm:$0xff] %v8685_v22  ;;  %v783_v22 = vrot.slane %v771_v27, 2  ;;  %v902_v27 = vadd.f32 %v8550_v55, %v8609_v19  ;;  %v12401_v55 = vrot.slane %v8317_v45, 3  ;;  %v12402_v19 = vrot.slane %v8302_v32, 5  ;;  %4159 = vrot.lane.b32.xlu2 %v8744_v42, %s5467_s19 }
 0x548   :  { %12398 = vst [vmem:[#allocation118_spill] sm:$0xff] %v8688_v4  ;;  %v12409_v32 = vrot.slane %v8457_v20, 5  ;;  %v903_v20 = vadd.f32 %v887_v61, %v848_v26  ;;  %v12421_v61 = vrot.slane %v8472_v8, 6  ;;  %v12427_v8 = vrot.slane %v8597_v38, 5 }
 0x549   :  { %v795_v6 = vadd.f32 %v783_v22, %v765_v1  ;;  %v835_v22 = vsel %vm820_vm0, %v12401_v55, %v834_v12  ;;  %v939_v1 = vsel %vm930_vm2, %v12403_v51, %v12402_v19  ;;  %12406 = vst [vmem:[#allocation76_spill] sm:$0xff] %v8744_v42  ;;  %v8747_v12 = vmul.f32 0.036000773, %v8411_v25  ;;  %v12410_v19 = vld [vmem:[#allocation230_spill] sm:$0xff]  ;;  %v12411_v51 = vld [vmem:[#allocation151_spill] sm:$0xff] }
 0x54a   :  { %v956_v55 = vadd.f32 %v936_v53, %v901_v56  ;;  %v933_v40 = vsel %vm930_vm2, %v12409_v32, %v12408_v34  ;;  %v8756_v48 = vadd.f32 %v12411_v51, %v12410_v19  ;;  %12413 = vst [vmem:[#allocation79_spill] sm:$0xff] %v8759_v28  ;;  %v957_v60 = vadd.f32 %v939_v1, %v902_v27  ;;  %v12414_v56 = vld [vmem:[#allocation101_spill] sm:$0xff]  ;;  %v12415_v53 = vld [vmem:[#allocation152_spill] sm:$0xff] }
 0x54b   :  { %12407 = vst [vmem:[#allocation77_spill] sm:$0xff] %v8747_v12  ;;  %v955_v57 = vadd.f32 %v933_v40, %v900_v0  ;;  %v8765_v35 = vadd.f32 %v12415_v53, %v12414_v56  ;;  %v850_v52 = vadd.f32 %v838_v10, %v795_v6  ;;  %v849_v34 = vadd.f32 %v835_v22, %v8432_v44  ;;  %v12424_v22 = vld [vmem:[#allocation214_spill] sm:$0xff] }
 0x54c   :  { %12412 = vst [vmem:[#allocation78_spill] sm:$0xff] %v8756_v48  ;;  %v12417_v32 = vrot.slane %v8325_v5, 4  ;;  %v12418_v51 = vrot.slane %v8532_v23, 6  ;;  %v12419_v27 = vrot.slane %v8258_v47, 6  ;;  %4157 = vrot.lane.b32.xlu1 %v8747_v12, %s5467_s19  ;;  %v12420_v44 = vrot.slane %v8299_v18, 6 }
 0x54d   :  { %12416 = vst [vmem:[#allocation80_spill] sm:$0xff] %v8765_v35  ;;  %v12422_v23 = vrot.slane %v8387_v58, 6  ;;  %v12423_v47 = vrot.slane %v8439_v11, 6  ;;  %v12428_v53 = vrot.slane %v8647_v33, 5  ;;  %v12429_v58 = vld [vmem:[#allocation154_spill] sm:$0xff]  ;;  %v12435_v38 = vrot.slane %v8465_v39, 7 }
 0x54e   :  { %v890_v19 = vsel %vm875_vm1, %v12417_v32, %v889_v50  ;;  %v967_v0 = vsel %vm961_vm3, %v12419_v27, %v12418_v51  ;;  %v970_v26 = vsel %vm961_vm3, %v12421_v61, %v12420_v44  ;;  %v12425_v50 = vld [vmem:[#allocation153_spill] sm:$0xff]  ;;  %4155 = vrot.lane.b32.xlu0 %v8759_v28, %s5467_s19  ;;  %v8804_v11 = vadd.f32 %v12429_v58, %v8461_v54  ;;  %v12431_v32 = vld [vmem:[#allocation219_spill] sm:$0xff]  ;;  %v8812_v44 = vpop.permute.xlu1 %3545  ;;  %v8819_v61 = vpop.permute.xlu0 %3543  ;;  %v12445_v58 = vld [vmem:[#allocation40_spill] sm:$0xff] }
 0x54f   :  { %v987_v6 = vadd.f32 %v967_v0, %v956_v55  ;;  %v964_v10 = vsel %vm961_vm3, %v12423_v47, %v12422_v23  ;;  %v8793_v40 = vadd.f32 %v12425_v50, %v12424_v22  ;;  %v988_v56 = vadd.f32 %v970_v26, %v957_v60  ;;  %v12432_v51 = vld [vmem:[#allocation155_spill] sm:$0xff]  ;;  %v8810_v0 = vpop.permute.xlu2 %3589  ;;  %v12439_v22 = vld [vmem:[#allocation45_spill] sm:$0xff]  ;;  %v12441_v50 = vld [vmem:[#allocation58_spill] sm:$0xff]  ;;  %12530 = vst [vmem:[#allocation120_spill] sm:$0xff] %v8989_v21 }
 0x550   :  { %v986_v18 = vadd.f32 %v964_v10, %v955_v57  ;;  %v942_v55 = vsel %vm930_vm2, %v12428_v53, %v12427_v8  ;;  %12430 = vst [vmem:[#allocation367_spill] sm:$0xff] %v8804_v11  ;;  %v8808_v27 = vadd.f32 %v12432_v51, %v12431_v32  ;;  %v12434_v60 = vrot.slane %v8296_v43, 7  ;;  %v12443_v53 = vld [vmem:[#allocation35_spill] sm:$0xff]  ;;  %v12523_v35 = vld [vmem:[#allocation432_spill] sm:$0xff] }
 0x551   :  { %12426 = vst [vmem:[#allocation130_spill] sm:$0xff] %v8793_v40  ;;  %v958_v57 = vadd.f32 %v942_v55, %v903_v20  ;;  %v1037_v54 = vmul.f32 0.007598758, %v8270_v2  ;;  %v8823_v26 = vmul.f32 0.0010283801, %v8270_v2  ;;  %v12437_v23 = vrot.slane %v8510_v7, 7 }
 0x552   :  { %12433 = vst [vmem:[#allocation81_spill] sm:$0xff] %v8808_v27  ;;  %v1001_v33 = vsel %vm992_vm4, %v12435_v38, %v12434_v60  ;;  %v12438_v47 = vrot.slane %v8252_v29, 7  ;;  %v1036_v43 = vmul.f32 0.007598758, %v8469_v36  ;;  %v8832_v39 = vmul.f32 0.036000773, %v12439_v22 }
 0x553   :  { %12436 = vst [vmem:[#allocation14_spill] sm:$0xff] %v8823_v26  ;;  %v8835_v20 = vmul.f32 0.036000773, %v12441_v50  ;;  %v12444_v55 = vrot.slane %v12443_v53, 7  ;;  %v12446_v32 = vrot.slane %v12445_v58, 7  ;;  %v12447_v7 = vld [vmem:[#allocation47_spill] sm:$0xff]  ;;  %v1019_v29 = vadd.f32 %v1001_v33, %v988_v56 }
 0x554   :  { %v998_v10 = vsel %vm992_vm4, %v12438_v47, %v12437_v23  ;;  %12440 = vst [vmem:[#allocation15_spill] sm:$0xff] %v8832_v39  ;;  %v8843_v60 = vmul.f32 0.036000773, %v12447_v7  ;;  %v12449_v23 = vld [vmem:[#allocation384_spill] sm:$0xff]  ;;  %v12451_v1 = vrot.slane %v8621_v37, 6  ;;  %v1049_v56 = vrot.slane %v1037_v54, 1  ;;  %4165 = vrot.lane.b32.xlu2 %v8832_v39, %s5467_s19 }
 0x555   :  { %12442 = vst [vmem:[#allocation83_spill] sm:$0xff] %v8835_v20  ;;  %v1018_v8 = vadd.f32 %v998_v10, %v987_v6  ;;  %v995_v51 = vsel %vm992_vm4, %v12446_v32, %v12444_v55  ;;  %v12450_v47 = vrot.slane %v12449_v23, 6  ;;  %v1024_v6 = vmul.f32 0.036000773, %v8469_v36  ;;  %v12453_v55 = vld [vmem:[#allocation220_spill] sm:$0xff]  ;;  %v12458_v23 = vld [vmem:[#allocation157_spill] sm:$0xff]  ;;  %4163 = vrot.lane.b32.xlu1 %v8835_v20, %s5467_s19 }
 0x556   :  { %12448 = vst [vmem:[#allocation84_spill] sm:$0xff] %v8843_v60  ;;  %v1017_v38 = vadd.f32 %v995_v51, %v986_v18  ;;  %v8853_v10 = vmul.f32 0.0010283801, %v8469_v36  ;;  %v12454_v58 = vld [vmem:[#allocation156_spill] sm:$0xff]  ;;  %v12456_v18 = vld [vmem:[#allocation29_spill] sm:$0xff]  ;;  %v12461_v54 = vld [vmem:[#allocation158_spill] sm:$0xff]  ;;  %4161 = vrot.lane.b32.xlu0 %v8843_v60, %s5467_s19 }
 0x557   :  { %v973_v4 = vsel %vm961_vm3, %v12451_v1, %v12450_v47  ;;  %v8857_v32 = vadd.f32 %v12454_v58, %v12453_v55  ;;  %v1023_v33 = vmul.f32 0.036000773, %v12456_v18  ;;  %v1035_v51 = vmul.f32 0.007598758, %v12456_v18  ;;  %v12457_v37 = vld [vmem:[#allocation56_spill] sm:$0xff]  ;;  %v12466_v20 = vld [vmem:[#allocation226_spill] sm:$0xff] }
 0x558   :  { %12452 = vst [vmem:[#allocation85_spill] sm:$0xff] %v8853_v10  ;;  %v989_v53 = vadd.f32 %v973_v4, %v958_v57  ;;  %v8863_v1 = vadd.f32 %v12458_v23, %v12457_v37  ;;  %v1030_v36 = vadd.f32 %v1024_v6, %v1018_v8  ;;  %v1048_v4 = vrot.slane %v1036_v43, 1  ;;  %v12460_v57 = vld [vmem:[#allocation225_spill] sm:$0xff]  ;;  %v12463_v37 = vld [vmem:[#allocation59_spill] sm:$0xff]  ;;  %v8885_v43 = vpop.permute.xlu2 %3595  ;;  %v8887_v8 = vpop.permute.xlu1 %3551  ;;  %v12502_v27 = vld [vmem:[#allocation18_spill] sm:$0xff] }
 0x559   :  { %12455 = vst [vmem:[#allocation89_spill] sm:$0xff] %v8857_v32  ;;  %v8872_v47 = vadd.f32 %v12461_v54, %v12460_v57  ;;  %v1031_v55 = vadd.f32 %v1025_v16, %v1019_v29  ;;  %v1029_v58 = vadd.f32 %v1023_v33, %v1017_v38  ;;  %v12464_v23 = vrot.slane %v12463_v37, 7  ;;  %v12467_v28 = vld [vmem:[#allocation159_spill] sm:$0xff]  ;;  %v8890_v16 = vpop.permute.xlu0 %3549  ;;  %v12505_v40 = vld [vmem:[#allocation422_spill] sm:$0xff] }
 0x55a   :  { %12459 = vst [vmem:[#allocation90_spill] sm:$0xff] %v8863_v1  ;;  %v12465_v39 = vrot.slane %v8613_v9, 7  ;;  %v8883_v2 = vadd.f32 %v12467_v28, %v12466_v20  ;;  %v904_v54 = vadd.f32 %v890_v19, %v849_v34  ;;  %v1047_v29 = vrot.slane %v1035_v51, 1  ;;  %v12472_v28 = vld [vmem:[#allocation54_spill] sm:$0xff]  ;;  %v12474_v37 = vld [vmem:[#allocation55_spill] sm:$0xff]  ;;  %v12478_v19 = vld [vmem:[#allocation57_spill] sm:$0xff] }
 0x55b   :  { %12462 = vst [vmem:[#allocation91_spill] sm:$0xff] %v8872_v47  ;;  %v8893_v38 = vmul.f32 0.0010283801, %v12456_v18  ;;  %v905_v9 = vadd.f32 %v8718_v13, %v850_v52  ;;  %v8900_v20 = vmul.f32 0.036000773, %v12472_v28  ;;  %v8905_v6 = vadd.f32 %v1048_v4, %v1030_v36  ;;  %v12483_v13 = vld [vmem:[#allocation28_spill] sm:$0xff] }
 0x55c   :  { %v1004_v12 = vsel %vm992_vm4, %v12465_v39, %v12464_v23  ;;  %12468 = vst [vmem:[#allocation95_spill] sm:$0xff] %v8883_v2  ;;  %v12470_v39 = vld [vmem:[#allocation99_spill] sm:$0xff]  ;;  %v8903_v23 = vmul.f32 0.036000773, %v12474_v37  ;;  %v8911_v18 = vadd.f32 %v1049_v56, %v1031_v55  ;;  %v8913_v51 = vadd.f32 %v1047_v29, %v1029_v58  ;;  %v12490_v56 = vld [vmem:[#allocation33_spill] sm:$0xff]  ;;  %v12493_v29 = vld [vmem:[#allocation92_spill] sm:$0xff] }
 0x55d   :  { %v1020_v57 = vadd.f32 %v1004_v12, %v989_v53  ;;  %12469 = vst [vmem:[#allocation96_spill] sm:$0xff] %v8893_v38  ;;  %v8897_v33 = vmul.f32 0.036000773, %v12470_v39  ;;  %v12477_v12 = vld [vmem:[#allocation70_spill] sm:$0xff]  ;;  %v8909_v53 = vmul.f32 0.036000773, %v12478_v19  ;;  %4171 = vrot.lane.b32.xlu2 %v8900_v20, %s5467_s19 }
 0x55e   :  { %12473 = vst [vmem:[#allocation103_spill] sm:$0xff] %v8900_v20  ;;  %v1026_v34 = vmul.f32 0.036000773, %v12477_v12  ;;  %v12482_v52 = vrot.slane %v8721_v17, 5  ;;  %v12484_v60 = vrot.slane %v12483_v13, 5  ;;  %v12487_v36 = vrot.slane %v8697_v63, 6  ;;  %4169 = vrot.lane.b32.xlu1 %v8903_v23, %s5467_s19 }
 0x55f   :  { %12471 = vst [vmem:[#allocation97_spill] sm:$0xff] %v8897_v33  ;;  %v12488_v4 = vrot.slane %v8325_v5, 6  ;;  %v12491_v55 = vrot.slane %v12490_v56, 5  ;;  %v12492_v58 = vrot.slane %v8673_v62, 5  ;;  %v12494_v13 = vld [vmem:[#allocation411_spill] sm:$0xff]  ;;  %v12500_v5 = vld [vmem:[#allocation380_spill] sm:$0xff]  ;;  %4167 = vrot.lane.b32.xlu0 %v8909_v53, %s5467_s19 }
 0x560   :  { %12475 = vst [vmem:[#allocation104_spill] sm:$0xff] %v8903_v23  ;;  %v945_v42 = vsel %vm930_vm2, %v12484_v60, %v12482_v52  ;;  %v8920_v2 = vadd.f32 %v1026_v34, %v1020_v57  ;;  %v3137_v60 = vadd.f32 %v12494_v13, %v12493_v29  ;;  %v12495_v57 = vld [vmem:[#allocation22_spill] sm:$0xff]  ;;  %v12498_v52 = vld [vmem:[#allocation417_spill] sm:$0xff]  ;;  %v12508_v29 = vld [vmem:[#allocation88_spill] sm:$0xff] }
 0x561   :  { %12476 = vst [vmem:[#allocation105_spill] sm:$0xff] %v8905_v6  ;;  %v8922_v47 = vadd.f32 %v945_v42, %v904_v54  ;;  %v8929_v1 = vsel %vm961_vm3, %v12488_v4, %v12487_v36  ;;  %v948_v17 = vsel %vm930_vm2, %v12492_v58, %v12491_v55  ;;  %v12496_v34 = vld [vmem:[#allocation414_spill] sm:$0xff]  ;;  %v12497_v54 = vld [vmem:[#allocation93_spill] sm:$0xff]  ;;  %v12501_v36 = vld [vmem:[#allocation420_spill] sm:$0xff]  ;;  %v8955_v58 = vmul.f32 0.007598758, %v12470_v39  ;;  %v8981_v49 = vpop.permute.xlu0 %3579 }
 0x562   :  { %12479 = vst [vmem:[#allocation106_spill] sm:$0xff] %v8909_v53  ;;  %v3140_v42 = vadd.f32 %v12496_v34, %v12495_v57  ;;  %v3143_v63 = vadd.f32 %v12498_v52, %v12497_v54  ;;  %v8942_v32 = vadd.f32 %v948_v17, %v905_v9  ;;  %v3146_v4 = vadd.f32 %v12501_v36, %v12500_v5  ;;  %v12503_v56 = vld [vmem:[#allocation421_spill] sm:$0xff]  ;;  %v12504_v62 = vld [vmem:[#allocation98_spill] sm:$0xff]  ;;  %v12509_v13 = vld [vmem:[#allocation423_spill] sm:$0xff] }
 0x563   :  { %12480 = vst [vmem:[#allocation107_spill] sm:$0xff] %v8911_v18  ;;  %v3136_v11 = vadd.f32 %v12503_v56, %v12502_v27  ;;  %v3135_v55 = vadd.f32 %v12505_v40, %v12504_v62  ;;  %v12507_v9 = vld [vmem:[#allocation425_spill] sm:$0xff]  ;;  %v3139_v57 = vadd.f32 %v12509_v13, %v12508_v29  ;;  %v12510_v34 = vld [vmem:[#allocation23_spill] sm:$0xff]  ;;  %v12511_v54 = vld [vmem:[#allocation424_spill] sm:$0xff]  ;;  %v8972_v29 = vpop.permute.xlu2 %3601  ;;  %v8974_v13 = vpop.permute.xlu1 %3581 }
 0x564   :  { %12481 = vst [vmem:[#allocation108_spill] sm:$0xff] %v8913_v51  ;;  %v3209_v17 = vadd.f32 %v12507_v9, %v3137_v60  ;;  %v3138_v27 = vadd.f32 %v12511_v54, %v12510_v34  ;;  %v12512_v52 = vld [vmem:[#allocation428_spill] sm:$0xff]  ;;  %v12513_v40 = vld [vmem:[#allocation26_spill] sm:$0xff]  ;;  %v12515_v62 = vld [vmem:[#allocation27_spill] sm:$0xff] }
 0x565   :  { %12485 = vst [vmem:[#allocation109_spill] sm:$0xff] %v8920_v2  ;;  %v3212_v5 = vadd.f32 %v12512_v52, %v3140_v42  ;;  %v12514_v36 = vld [vmem:[#allocation426_spill] sm:$0xff]  ;;  %v12516_v23 = vld [vmem:[#allocation427_spill] sm:$0xff]  ;;  %v12518_v60 = vld [vmem:[#allocation36_spill] sm:$0xff]  ;;  %v3208_v48 = vadd.f32 %v12523_v35, %v3136_v11 }
 0x566   :  { %12486 = vst [vmem:[#allocation110_spill] sm:$0xff] %v8922_v47  ;;  %v3142_v56 = vadd.f32 %v12514_v36, %v12513_v40  ;;  %v3141_v20 = vadd.f32 %v12516_v23, %v12515_v62  ;;  %v12517_v39 = vld [vmem:[#allocation431_spill] sm:$0xff]  ;;  %v12519_v9 = vld [vmem:[#allocation429_spill] sm:$0xff]  ;;  %v12521_v42 = vld [vmem:[#allocation430_spill] sm:$0xff]  ;;  %4175 = vrot.lane.b32.xlu1 %v8989_v21, %s5467_s19 }
 0x567   :  { %12489 = vst [vmem:[#allocation112_spill] sm:$0xff] %v8929_v1  ;;  %v3145_v33 = vadd.f32 %v12519_v9, %v12518_v60  ;;  %v12520_v34 = vld [vmem:[#allocation37_spill] sm:$0xff]  ;;  %v12522_v52 = vld [vmem:[#allocation434_spill] sm:$0xff]  ;;  %v12531_v2 = vld [vmem:[#allocation436_spill] sm:$0xff] }
 0x568   :  { %12499 = vst [vmem:[#allocation113_spill] sm:$0xff] %v8942_v32  ;;  %v3144_v54 = vadd.f32 %v12521_v42, %v12520_v34  ;;  %v3218_v53 = vadd.f32 %v12522_v52, %v3146_v4  ;;  %v12524_v40 = vld [vmem:[#allocation433_spill] sm:$0xff]  ;;  %v12527_v60 = vld [vmem:[#allocation386_spill] sm:$0xff]  ;;  %v3210_v34 = vadd.f32 %v12531_v2, %v3138_v27  ;;  %v12532_v42 = vld [vmem:[#allocation440_spill] sm:$0xff] }
 0x569   :  { %12506 = vst [vmem:[#allocation114_spill] sm:$0xff] %v8955_v58  ;;  %v3215_v58 = vadd.f32 %v12517_v39, %v3143_v63  ;;  %v3207_v36 = vadd.f32 %v12524_v40, %v3135_v55  ;;  %v12525_v23 = vld [vmem:[#allocation437_spill] sm:$0xff]  ;;  %v12526_v63 = vld [vmem:[#allocation435_spill] sm:$0xff]  ;;  %v8986_v9 = vmul.f32 0.036000773, %v12527_v60  ;;  %v3284_v4 = vadd.f32 %v12532_v42, %v3212_v5  ;;  %v12533_v52 = vld [vmem:[#allocation438_spill] sm:$0xff] }
 0x56a   :  { %v3281_v39 = vadd.f32 %v12525_v23, %v3209_v17  ;;  %v3211_v62 = vadd.f32 %v12526_v63, %v3139_v57  ;;  %v3214_v35 = vadd.f32 %v12533_v52, %v3142_v56  ;;  %v12534_v11 = vld [vmem:[#allocation66_spill] sm:$0xff]  ;;  %v12536_v40 = vld [vmem:[#allocation439_spill] sm:$0xff]  ;;  %v12538_v57 = vld [vmem:[#allocation441_spill] sm:$0xff]  ;;  %v3216_v51 = vadd.f32 %v12539_v30, %v3144_v54 }
 0x56b   :  { %12528 = vst [vmem:[#allocation119_spill] sm:$0xff] %v8986_v9  ;;  %v8995_v55 = vmul.f32 0.036000773, %v12534_v11  ;;  %v3213_v45 = vadd.f32 %v12536_v40, %v3141_v20  ;;  %v12537_v17 = vld [vmem:[#allocation443_spill] sm:$0xff]  ;;  %v3217_v63 = vadd.f32 %v12538_v57, %v3145_v33  ;;  %v12540_v26 = vld [vmem:[#allocation446_spill] sm:$0xff]  ;;  %v12541_v32 = vld [vmem:[#allocation444_spill] sm:$0xff]  ;;  %4177 = vrot.lane.b32.xlu2 %v8986_v9, %s5467_s19  ;;  %v3644_v57 = vpop.permute.xlu2 %3643 }
 0x56c   :  { %v3287_v23 = vadd.f32 %v12537_v17, %v3215_v58  ;;  %v3290_v18 = vadd.f32 %v12540_v26, %v3218_v53  ;;  %v3280_v10 = vadd.f32 %v12541_v32, %v3208_v48  ;;  %v12542_v2 = vld [vmem:[#allocation445_spill] sm:$0xff]  ;;  %v12544_v56 = vld [vmem:[#allocation447_spill] sm:$0xff]  ;;  %v12545_v6 = vld [vmem:[#allocation448_spill] sm:$0xff]  ;;  %v3286_v20 = vadd.f32 %v12546_v59, %v3214_v35 }
 0x56d   :  { %12535 = vst [vmem:[#allocation121_spill] sm:$0xff] %v8995_v55  ;;  %v3279_v27 = vadd.f32 %v12542_v2, %v3207_v36  ;;  %v12543_v5 = vld [vmem:[#allocation449_spill] sm:$0xff]  ;;  %v3283_v52 = vadd.f32 %v12544_v56, %v3211_v62  ;;  %v3282_v15 = vadd.f32 %v12545_v6, %v3210_v34  ;;  %v12547_v26 = vld [vmem:[#allocation451_spill] sm:$0xff]  ;;  %v12549_v53 = vld [vmem:[#allocation454_spill] sm:$0xff]  ;;  %4173 = vrot.lane.b32.xlu0 %v8995_v55, %s5467_s19  ;;  %v9023_v2 = vpop.permute.xlu1 %3587 }
 0x56e   :  { %v3353_v42 = vadd.f32 %v12543_v5, %v3281_v39  ;;  %v3285_v48 = vadd.f32 %v12547_v26, %v3213_v45  ;;  %v12548_v32 = vld [vmem:[#allocation453_spill] sm:$0xff]  ;;  %v3288_v58 = vadd.f32 %v12549_v53, %v3216_v51  ;;  %v12551_v59 = vld [vmem:[#allocation452_spill] sm:$0xff]  ;;  %v12552_v39 = vld [vmem:[#allocation455_spill] sm:$0xff]  ;;  %v9029_v53 = vpop.permute.xlu0 %3585 }
 0x56f   :  { %v3289_v33 = vadd.f32 %v12548_v32, %v3217_v63  ;;  %v12550_v54 = vld [vmem:[#allocation461_spill] sm:$0xff]  ;;  %v3356_v6 = vadd.f32 %v12551_v59, %v3284_v4  ;;  %v3359_v62 = vadd.f32 %v12552_v39, %v3287_v23  ;;  %v12553_v34 = vld [vmem:[#allocation456_spill] sm:$0xff]  ;;  %v12555_v45 = vld [vmem:[#allocation458_spill] sm:$0xff] }
 0x570   :  { %v3425_v36 = vadd.f32 %v12550_v54, %v3353_v42  ;;  %v3352_v35 = vadd.f32 %v12553_v34, %v3280_v10  ;;  %v12554_v40 = vld [vmem:[#allocation457_spill] sm:$0xff]  ;;  %v3362_v63 = vadd.f32 %v12555_v45, %v3290_v18  ;;  %v12556_v5 = vld [vmem:[#allocation459_spill] sm:$0xff]  ;;  %v12557_v56 = vld [vmem:[#allocation460_spill] sm:$0xff]  ;;  %v9034_v10 = vmul.f32 0.10936069, %v8405_v24 }
 0x571   :  { %v3351_v17 = vadd.f32 %v12554_v40, %v3279_v27  ;;  %v3355_v51 = vadd.f32 %v12556_v5, %v3283_v52  ;;  %v3354_v42 = vadd.f32 %v12557_v56, %v3282_v15  ;;  %v12558_v26 = vld [vmem:[#allocation471_spill] sm:$0xff]  ;;  %v12559_v4 = vld [vmem:[#allocation462_spill] sm:$0xff]  ;;  %v9037_v27 = vmul.f32 0.10936069, %v8411_v25  ;;  %v12563_v39 = vld [vmem:[#allocation464_spill] sm:$0xff] }
 0x572   :  { %v3473_v32 = vadd.f32 %v12558_v26, %v3425_v36  ;;  %v3428_v54 = vadd.f32 %v12559_v4, %v3356_v6  ;;  %v12560_v23 = vld [vmem:[#allocation463_spill] sm:$0xff]  ;;  %12561 = vst [vmem:[#allocation373_spill] sm:$0xff] %v9034_v10  ;;  %v3357_v18 = vadd.f32 %v12563_v39, %v3285_v48  ;;  %v12564_v34 = vld [vmem:[#allocation465_spill] sm:$0xff]  ;;  %v12565_v40 = vld [vmem:[#allocation16_spill] sm:$0xff]  ;;  %v9043_v36 = vmul.f32 0.10936069, %v8422_v31 }
 0x573   :  { %v3358_v59 = vadd.f32 %v12560_v23, %v3286_v20  ;;  %12562 = vst [vmem:[#allocation122_spill] sm:$0xff] %v9037_v27  ;;  %v3431_v52 = vadd.f32 %v12564_v34, %v3359_v62  ;;  %v12567_v45 = vld [vmem:[#allocation466_spill] sm:$0xff]  ;;  %v12568_v6 = vld [vmem:[#allocation467_spill] sm:$0xff]  ;;  %v12569_v20 = vld [vmem:[#allocation468_spill] sm:$0xff]  ;;  %4231 = vrot.lane.b32.xlu2 %v9034_v10, %s5468_s20  ;;  %4229 = vrot.lane.b32.xlu1 %v9037_v27, %s5468_s20 }
 0x574   :  { %v3521_v15 = vadd.f32 %v12565_v40, %v3473_v32  ;;  %12566 = vst [vmem:[#allocation124_spill] sm:$0xff] %v9043_v36  ;;  %v3361_v5 = vadd.f32 %v12567_v45, %v3289_v33  ;;  %v3360_v56 = vadd.f32 %v12568_v6, %v3288_v58  ;;  %v3434_v26 = vadd.f32 %v12569_v20, %v3362_v63  ;;  %v12570_v4 = vld [vmem:[#allocation469_spill] sm:$0xff]  ;;  %v12571_v30 = vld [vmem:[#allocation470_spill] sm:$0xff]  ;;  %v12572_v55 = vld [vmem:[#allocation472_spill] sm:$0xff]  ;;  %v3650_v20 = vpop.permute.xlu2 %3649 }
 0x575   :  { %v3424_v23 = vadd.f32 %v12570_v4, %v3352_v35  ;;  %v3423_v9 = vadd.f32 %v12571_v30, %v3351_v17  ;;  %v3427_v21 = vadd.f32 %v12572_v55, %v3355_v51  ;;  %v12573_v48 = vld [vmem:[#allocation473_spill] sm:$0xff]  ;;  %v12574_v62 = vld [vmem:[#allocation46_spill] sm:$0xff]  ;;  %v12576_v38 = vld [vmem:[#allocation475_spill] sm:$0xff]  ;;  %v9061_v30 = vmul.f32 0.007598758, %v12477_v12  ;;  %4227 = vrot.lane.b32.xlu0 %v9043_v36, %s5468_s20  ;;  %v9073_v4 = vpop.permute.xlu1 %3593 }
 0x576   :  { %v3426_v39 = vadd.f32 %v12573_v48, %v3354_v42  ;;  %v3569_v34 = vadd.f32 %v12574_v62, %v3521_v15  ;;  %v12575_v32 = vld [vmem:[#allocation474_spill] sm:$0xff]  ;;  %v3430_v1 = vadd.f32 %v12576_v38, %v3358_v59  ;;  %v12577_v47 = vld [vmem:[#allocation476_spill] sm:$0xff]  ;;  %v12579_v55 = vld [vmem:[#allocation477_spill] sm:$0xff] }
 0x577   :  { %v3476_v40 = vadd.f32 %v12575_v32, %v3428_v54  ;;  %v3429_v33 = vadd.f32 %v12577_v47, %v3357_v18  ;;  %12578 = vst [vmem:[#allocation123_spill] sm:$0xff] %v9061_v30  ;;  %v3479_v58 = vadd.f32 %v12579_v55, %v3431_v52  ;;  %v12580_v35 = vld [vmem:[#allocation478_spill] sm:$0xff]  ;;  %v12581_v63 = vld [vmem:[#allocation479_spill] sm:$0xff]  ;;  %v12583_v54 = vld [vmem:[#allocation20_spill] sm:$0xff]  ;;  %v9078_v32 = vpop.permute.xlu0 %3591 }
 0x578   :  { %v3433_v17 = vadd.f32 %v12580_v35, %v3361_v5  ;;  %v3432_v51 = vadd.f32 %v12581_v63, %v3360_v56  ;;  %v3617_v42 = vadd.f32 %v8723_v41, %v3569_v34  ;;  %v12582_v47 = vld [vmem:[#allocation11_spill] sm:$0xff]  ;;  %v3472_v59 = vadd.f32 %v12583_v54, %v3424_v23  ;;  %v12584_v18 = vld [vmem:[#allocation86_spill] sm:$0xff]  ;;  %v12586_v52 = vld [vmem:[#allocation17_spill] sm:$0xff] }
 0x579   :  { %v3482_v38 = vadd.f32 %v12582_v47, %v3434_v26  ;;  %v3471_v15 = vadd.f32 %v12584_v18, %v3423_v9  ;;  %v12585_v45 = vld [vmem:[#allocation87_spill] sm:$0xff]  ;;  %v3474_v5 = vadd.f32 %v12586_v52, %v3426_v39  ;;  %v12588_v62 = vld [vmem:[#allocation82_spill] sm:$0xff]  ;;  %v12589_v55 = vld [vmem:[#allocation21_spill] sm:$0xff]  ;;  %v9083_v9 = vmul.f32 0.10936069, %v12439_v22 }
 0x57a   :  { %v3475_v6 = vadd.f32 %v12585_v45, %v3427_v21  ;;  %v12587_v48 = vld [vmem:[#allocation19_spill] sm:$0xff]  ;;  %v3478_v41 = vadd.f32 %v12588_v62, %v3430_v1  ;;  %v3677_v34 = vadd.f32 %v3644_v57, %v3617_v42  ;;  %v3477_v26 = vadd.f32 %v12589_v55, %v3429_v33  ;;  %v12590_v35 = vld [vmem:[#allocation12_spill] sm:$0xff]  ;;  %v12594_v39 = vld [vmem:[#allocation25_spill] sm:$0xff] }
 0x57b   :  { %v3524_v56 = vadd.f32 %v12587_v48, %v3476_v40  ;;  %v3527_v23 = vadd.f32 %v12590_v35, %v3479_v58  ;;  %12591 = vst [vmem:[#allocation125_spill] sm:$0xff] %v9083_v9  ;;  %v9086_v21 = vmul.f32 0.10936069, %v12441_v50  ;;  %v12593_v63 = vld [vmem:[#allocation24_spill] sm:$0xff]  ;;  %v3480_v54 = vadd.f32 %v12594_v39, %v3432_v51  ;;  %v12597_v57 = vld [vmem:[#allocation30_spill] sm:$0xff]  ;;  %v12599_v58 = vld [vmem:[#allocation39_spill] sm:$0xff]  ;;  %4237 = vrot.lane.b32.xlu2 %v9083_v9, %s5468_s20 }
 0x57c   :  { %v3481_v47 = vadd.f32 %v12593_v63, %v3433_v17  ;;  %v12595_v40 = vld [vmem:[#allocation100_spill] sm:$0xff]  ;;  %v9092_v1 = vmul.f32 0.10936069, %v12447_v7  ;;  %v3520_v42 = vadd.f32 %v12597_v57, %v3472_v59  ;;  %v12598_v33 = vld [vmem:[#allocation34_spill] sm:$0xff]  ;;  %v3523_v52 = vadd.f32 %v12599_v58, %v3475_v6  ;;  %v12600_v48 = vld [vmem:[#allocation41_spill] sm:$0xff] }
 0x57d   :  { %12592 = vst [vmem:[#allocation126_spill] sm:$0xff] %v9086_v21  ;;  %v3530_v18 = vadd.f32 %v12595_v40, %v3482_v38  ;;  %v3519_v45 = vadd.f32 %v12598_v33, %v3471_v15  ;;  %v3522_v62 = vadd.f32 %v12600_v48, %v3474_v5  ;;  %v12601_v55 = vld [vmem:[#allocation48_spill] sm:$0xff]  ;;  %v12602_v27 = vld [vmem:[#allocation49_spill] sm:$0xff]  ;;  %v3694_v51 = vmul.f32 0.007598758, %v3677_v34  ;;  %v12604_v39 = vld [vmem:[#allocation50_spill] sm:$0xff]  ;;  %4235 = vrot.lane.b32.xlu1 %v9086_v21, %s5468_s20  ;;  %v9121_v57 = vpop.permute.xlu1 %3599 }
 0x57e   :  { %12596 = vst [vmem:[#allocation133_spill] sm:$0xff] %v9092_v1  ;;  %v3572_v35 = vadd.f32 %v12601_v55, %v3524_v56  ;;  %v3526_v36 = vadd.f32 %v12602_v27, %v3478_v41  ;;  %v12603_v17 = vld [vmem:[#allocation60_spill] sm:$0xff]  ;;  %v3525_v38 = vadd.f32 %v12604_v39, %v3477_v26  ;;  %v12605_v40 = vld [vmem:[#allocation13_spill] sm:$0xff]  ;;  %v9109_v59 = vmul.f32 0.0010283801, %v12477_v12  ;;  %4233 = vrot.lane.b32.xlu0 %v9092_v1, %s5468_s20 }
 0x57f   :  { %v3575_v63 = vadd.f32 %v12603_v17, %v3527_v23  ;;  %v3529_v10 = vadd.f32 %v12605_v40, %v3481_v47  ;;  %v12606_v30 = vld [vmem:[#allocation385_spill] sm:$0xff]  ;;  %v12608_v15 = vld [vmem:[#allocation68_spill] sm:$0xff]  ;;  %v3570_v23 = vadd.f32 %v8731_v14, %v3522_v62  ;;  %v9131_v14 = vmul.f32 0.21300554, %v3677_v34 }
 0x580   :  { %v3528_v7 = vadd.f32 %v12606_v30, %v3480_v54  ;;  %12607 = vst [vmem:[#allocation127_spill] sm:$0xff] %v9109_v59  ;;  %v3578_v27 = vadd.f32 %v12608_v15, %v3530_v18  ;;  %v12609_v6 = vld [vmem:[#allocation69_spill] sm:$0xff]  ;;  %v12610_v56 = vld [vmem:[#allocation72_spill] sm:$0xff]  ;;  %v3571_v30 = vadd.f32 %v8725_v46, %v3523_v52  ;;  %v3620_v47 = vadd.f32 %v8810_v0, %v3572_v35  ;;  %v3656_v54 = vpop.permute.xlu2 %3655 }
 0x581   :  { %v3568_v5 = vadd.f32 %v12609_v6, %v3520_v42  ;;  %v3567_v41 = vadd.f32 %v12610_v56, %v3519_v45  ;;  %v3623_v26 = vadd.f32 %v8885_v43, %v3575_v63  ;;  %v3574_v12 = vadd.f32 %v8812_v44, %v3526_v36  ;;  %v9123_v45 = vpop.permute.xlu0 %3597 }
 0x582   :  { %v3706_v18 = vrot.slane %v3694_v51, 1  ;;  %v3724_v42 = vmul.f32 0.036000773, %v3677_v34  ;;  %v9126_v43 = vmul.f32 0.10936069, %v12472_v28  ;;  %v3573_v58 = vadd.f32 %v8819_v61, %v3525_v38 }
 0x583   :  { %v3683_v33 = vadd.f32 %v3656_v54, %v3623_v26  ;;  %v9129_v46 = vmul.f32 0.10936069, %v3677_v34  ;;  %v9134_v0 = vmul.f32 0.10936069, %v12474_v37  ;;  %v3577_v44 = vadd.f32 %v8887_v8, %v3529_v10 }
 0x584   :  { %12611 = vst [vmem:[#allocation128_spill] sm:$0xff] %v9126_v43  ;;  %v3688_v36 = vmul.f32 0.0010283801, %v3677_v34  ;;  %v3680_v52 = vadd.f32 %v3650_v20, %v3620_v47  ;;  %v9138_v48 = vmul.f32 0.10936069, %v12478_v19  ;;  %v9141_v62 = vadd.f32 %v8890_v16, %v3528_v7  ;;  %4243 = vrot.lane.b32.xlu2 %v9126_v43, %s5468_s20 }
 0x585   :  { %12612 = vst [vmem:[#allocation136_spill] sm:$0xff] %v9134_v0  ;;  %v3626_v55 = vadd.f32 %v8972_v29, %v3578_v27  ;;  %v3616_v61 = vadd.f32 %v8974_v13, %v3568_v5  ;;  %v9145_v35 = vmul.f32 0.26601171, %v3677_v34  ;;  %v3615_v17 = vadd.f32 %v8981_v49, %v3567_v41  ;;  %4241 = vrot.lane.b32.xlu1 %v9134_v0, %s5468_s20  ;;  %v3642_v15 = vpop.permute.xlu1 %3641 }
 0x586   :  { %12613 = vst [vmem:[#allocation129_spill] sm:$0xff] %v9138_v48  ;;  %v3718_v63 = vadd.f32 %v3706_v18, %v3688_v36  ;;  %v3736_v51 = vrot.slane %v3724_v42, 2  ;;  %v9149_v8 = vadd.f32 %v9023_v2, %v3571_v30  ;;  %v9158_v7 = vmul.f32 0.10936069, %v12527_v60  ;;  %4239 = vrot.lane.b32.xlu0 %v9138_v48, %s5468_s20 }
 0x587   :  { %v9161_v49 = vmul.f32 0.10936069, %v12529_v3  ;;  %v9164_v16 = vadd.f32 %v9029_v53, %v3570_v23  ;;  %v9166_v29 = vmul.f32 0.10936069, %v3680_v52  ;;  %v9168_v13 = vmul.f32 0.21300554, %v3680_v52 }
 0x588   :  { %12614 = vst [vmem:[#allocation131_spill] sm:$0xff] %v9158_v7  ;;  %v9170_v2 = vmul.f32 0.26601171, %v3680_v52  ;;  %v3662_v40 = vpop.permute.xlu2 %3661  ;;  %v9178_v53 = vmul.f32 0.10936069, %v12534_v11  ;;  %v9180_v27 = vadd.f32 %v3736_v51, %v3718_v63  ;;  %v9185_v5 = vadd.f32 %v9073_v4, %v3574_v12 }
 0x589   :  { %12615 = vst [vmem:[#allocation132_spill] sm:$0xff] %v9161_v49  ;;  %v9182_v6 = vmul.f32 0.036000773, %v3680_v52  ;;  %v9187_v56 = vadd.f32 %v3662_v40, %v3626_v55  ;;  %v3640_v41 = vpop.permute.xlu0 %3639  ;;  %v9189_v26 = vmul.f32 0.007598758, %v3680_v52  ;;  %v9193_v47 = vadd.f32 %v3642_v15, %v3616_v61 }
 0x58a   :  { %12616 = vst [vmem:[#allocation134_spill] sm:$0xff] %v9178_v53  ;;  %v3697_v30 = vmul.f32 0.007598758, %v3683_v33  ;;  %v9191_v23 = vmul.f32 0.036000773, %v3683_v33  ;;  %v9208_v61 = vadd.f32 %v9078_v32, %v3573_v58  ;;  %v3675_v20 = vadd.f32 %v3640_v41, %v3615_v17 }
 0x58b   :  { %12617 = vst [vmem:[#allocation135_spill] sm:$0xff] %v9182_v6  ;;  %v9198_v36 = vmul.f32 0.0010283801, %v3680_v52  ;;  %v9202_v55 = vmul.f32 0.10936069, %v3683_v33  ;;  %v9221_v32 = vadd.f32 %v9121_v57, %v3577_v44  ;;  %v9241_v54 = vadd.f32 %v9123_v45, %v9141_v62 }
 0x58c   :  { %v9205_v63 = vmul.f32 0.0010283801, %v8405_v24  ;;  %v3691_v51 = vmul.f32 0.0010283801, %v3683_v33  ;;  %v9210_v40 = vmul.f32 0.21300554, %v3683_v33  ;;  %4249 = vrot.lane.b32.xlu2 %v9158_v7, %s5468_s20 }
 0x58d   :  { %v9212_v15 = vmul.f32 0.26601171, %v3683_v33  ;;  %v3709_v39 = vrot.slane %v3697_v30, 1  ;;  %v3754_v34 = vmul.f32 0.10936069, %v9193_v47  ;;  %4247 = vrot.lane.b32.xlu1 %v9161_v49, %s5468_s20  ;;  %v3648_v38 = vpop.permute.xlu1 %3647 }
 0x58e   :  { %12618 = vst [vmem:[#allocation139_spill] sm:$0xff] %v9205_v63  ;;  %v3808_v58 = vmul.f32 0.21300554, %v9193_v47  ;;  %v3862_v33 = vmul.f32 0.26601171, %v9193_v47  ;;  %4245 = vrot.lane.b32.xlu0 %v9178_v53, %s5468_s20  ;;  %v3679_v21 = vadd.f32 %v3648_v38, %v9149_v8 }
 0x58f   :  { %v9228_v30 = vmul.f32 0.21300554, %v8405_v24  ;;  %v3778_v41 = vrot.slane %v3754_v34, 3  ;;  %v9234_v10 = vmul.f32 0.21300554, %v8411_v25  ;;  %v3946_v42 = vrot.slane %v3754_v34, 7 }
 0x590   :  { %v9231_v52 = vpop.permute.xlu2 %4087  ;;  %v9237_v57 = vmul.f32 0.21300554, %v8422_v31  ;;  %v3832_v44 = vrot.slane %v3808_v58, 4  ;;  %v3886_v12 = vrot.slane %v3862_v33, 5  ;;  %v3916_v4 = vrot.slane %v3808_v58, 6 }
 0x591   :  { %12619 = vst [vmem:[#allocation141_spill] sm:$0xff] %v9228_v30  ;;  %v3646_v18 = vpop.permute.xlu0 %3645  ;;  %v3687_v17 = vmul.f32 0.0010283801, %v3675_v20  ;;  %v3693_v7 = vmul.f32 0.007598758, %v3675_v20  ;;  %v9243_v49 = vadd.f32 %v3709_v39, %v3691_v51 }
 0x592   :  { %12620 = vst [vmem:[#allocation137_spill] sm:$0xff] %v9234_v10  ;;  %v3723_v53 = vmul.f32 0.036000773, %v3675_v20  ;;  %v3753_v0 = vmul.f32 0.10936069, %v3675_v20  ;;  %v9247_v58 = vadd.f32 %v3646_v18, %v9164_v16 }
 0x593   :  { %12621 = vst [vmem:[#allocation140_spill] sm:$0xff] %v9237_v57  ;;  %v3807_v43 = vmul.f32 0.21300554, %v3675_v20  ;;  %v3861_v9 = vmul.f32 0.26601171, %v3675_v20  ;;  %v3705_v48 = vrot.slane %v3693_v7, 1 }
 0x594   :  { %v3735_v1 = vrot.slane %v3723_v53, 2  ;;  %v3777_v34 = vrot.slane %v3753_v0, 3  ;;  %v3945_v59 = vrot.slane %v3753_v0, 7  ;;  %v3689_v6 = vmul.f32 0.0010283801, %v3679_v21  ;;  %4303 = vrot.lane.b32.xlu2 %v9228_v30, %s5469_s21 }
 0x595   :  { %v3831_v33 = vrot.slane %v3807_v43, 4  ;;  %v3885_v3 = vrot.slane %v3861_v9, 5  ;;  %v3915_v45 = vrot.slane %v3807_v43, 6  ;;  %v3717_v62 = vadd.f32 %v3705_v48, %v3687_v17  ;;  %4301 = vrot.lane.b32.xlu1 %v9234_v10, %s5469_s21  ;;  %v3654_v38 = vpop.permute.xlu1 %3653 }
 0x596   :  { %v3695_v25 = vmul.f32 0.007598758, %v3679_v21  ;;  %v3779_v20 = vsel %vm820_vm0, %v3777_v34, %v3778_v41  ;;  %4299 = vrot.lane.b32.xlu0 %v9237_v57, %s5469_s21  ;;  %v9260_v43 = vsel %vm992_vm4, %v3945_v59, %v3946_v42  ;;  %v3725_v48 = vmul.f32 0.036000773, %v3679_v21 }
 0x597   :  { %v3833_v8 = vsel %vm875_vm1, %v3831_v33, %v3832_v44  ;;  %v3887_v7 = vsel %vm930_vm2, %v3885_v3, %v3886_v12  ;;  %v3917_v16 = vsel %vm961_vm3, %v3915_v45, %v3916_v4  ;;  %v3747_v9 = vadd.f32 %v3735_v1, %v3717_v62 }
 0x598   :  { %v3707_v0 = vrot.slane %v3695_v25, 1  ;;  %v9262_v39 = vpop.permute.xlu2 %4093  ;;  %v3757_v53 = vmul.f32 0.10936069, %v3679_v21  ;;  %v3811_v18 = vmul.f32 0.21300554, %v3679_v21  ;;  %v9265_v17 = vadd.f32 %v3654_v38, %v9185_v5 }
 0x599   :  { %v3865_v51 = vmul.f32 0.26601171, %v3679_v21  ;;  %v3652_v3 = vpop.permute.xlu0 %3651  ;;  %v3801_v4 = vadd.f32 %v3779_v20, %v3747_v9  ;;  %v3737_v41 = vrot.slane %v3725_v48, 2  ;;  %v3756_v1 = vmul.f32 0.10936069, %v9247_v58 }
 0x59a   :  { %v3719_v12 = vadd.f32 %v3707_v0, %v3689_v6  ;;  %v3783_v44 = vrot.slane %v3757_v53, 3  ;;  %v3837_v59 = vrot.slane %v3811_v18, 4  ;;  %v3921_v25 = vrot.slane %v3811_v18, 6 }
 0x59b   :  { %v3891_v42 = vrot.slane %v3865_v51, 5  ;;  %v3855_v34 = vadd.f32 %v3833_v8, %v3801_v4  ;;  %v3951_v45 = vrot.slane %v3757_v53, 7  ;;  %v3781_v62 = vrot.slane %v3756_v1, 3 }
 0x59c   :  { %v3749_v33 = vadd.f32 %v3737_v41, %v3719_v12  ;;  %v12622_v10 = vrot.slane %v9166_v29, 3  ;;  %v12623_v5 = vrot.slane %v9168_v13, 4  ;;  %v12624_v6 = vrot.slane %v9170_v2, 5 }
 0x59d   :  { %v12625_v0 = vrot.slane %v9168_v13, 6  ;;  %v3909_v8 = vadd.f32 %v3887_v7, %v3855_v34  ;;  %v12626_v53 = vrot.slane %v9166_v29, 7  ;;  %v3810_v2 = vmul.f32 0.21300554, %v9247_v58 }
 0x59e   :  { %v3785_v21 = vsel %vm820_vm0, %v3783_v44, %v12622_v10  ;;  %v3839_v20 = vsel %vm875_vm1, %v3837_v59, %v12623_v5  ;;  %v3893_v9 = vsel %vm930_vm2, %v3891_v42, %v12624_v6  ;;  %v12627_v10 = vrot.slane %v9129_v46, 3  ;;  %v3660_v42 = vpop.permute.xlu1 %3659 }
 0x59f   :  { %v3923_v48 = vsel %vm961_vm3, %v3921_v25, %v12625_v0  ;;  %v3803_v38 = vadd.f32 %v3785_v21, %v3749_v33  ;;  %v9283_v18 = vsel %vm992_vm4, %v3951_v45, %v12626_v53  ;;  %v3864_v12 = vmul.f32 0.26601171, %v9247_v58 }
 0x5a0   :  { %v3782_v51 = vsel %vm820_vm0, %v12627_v10, %v3781_v62  ;;  %v3949_v13 = vrot.slane %v3756_v1, 7  ;;  %v9292_v41 = vmul.f32 0.10936069, %v9187_v56  ;;  %v9295_v7 = vmul.f32 0.21300554, %v9187_v56  ;;  %v9299_v59 = vpop.permute.xlu2 %4099 }
 0x5a1   :  { %v3802_v4 = vadd.f32 %v3782_v51, %v9180_v27  ;;  %v9297_v29 = vadd.f32 %v3917_v16, %v3909_v8  ;;  %v3857_v44 = vadd.f32 %v3839_v20, %v3803_v38  ;;  %v3835_v25 = vrot.slane %v3810_v2, 4  ;;  %v9304_v1 = vpop.permute.xlu0 %3657 }
 0x5a2   :  { %v3889_v34 = vrot.slane %v3864_v12, 5  ;;  %v3919_v27 = vrot.slane %v3810_v2, 6  ;;  %v12628_v33 = vrot.slane %v9129_v46, 7  ;;  %v9308_v21 = vmul.f32 0.26601171, %v9187_v56 }
 0x5a3   :  { %v3911_v16 = vadd.f32 %v3893_v9, %v3857_v44  ;;  %v3988_v5 = vmul.f32 0.007598758, %v9247_v58  ;;  %v12629_v20 = vrot.slane %v9131_v14, 4  ;;  %v12630_v0 = vrot.slane %v9145_v35, 5 }
 0x5a4   :  { %v3950_v45 = vsel %vm992_vm4, %v12628_v33, %v3949_v13  ;;  %v12631_v8 = vrot.slane %v9131_v14, 6  ;;  %v3760_v53 = vmul.f32 0.10936069, %v9265_v17  ;;  %v12632_v10 = vrot.slane %v9191_v23, 2 }
 0x5a5   :  { %v3836_v6 = vsel %vm875_vm1, %v12629_v20, %v3835_v25  ;;  %v3890_v46 = vsel %vm930_vm2, %v12630_v0, %v3889_v34  ;;  %v9327_v2 = vadd.f32 %v3923_v48, %v3911_v16  ;;  %v3814_v14 = vmul.f32 0.21300554, %v9265_v17  ;;  %v12636_v25 = vld [vmem:[#allocation47_spill] sm:$0xff] }
 0x5a6   :  { %v3920_v38 = vsel %vm961_vm3, %v12631_v8, %v3919_v27  ;;  %v9324_v9 = vadd.f32 %v12632_v10, %v9243_v49  ;;  %v3856_v12 = vadd.f32 %v3836_v6, %v3802_v4  ;;  %v3868_v44 = vmul.f32 0.26601171, %v9265_v17  ;;  %v9342_v10 = vpop.permute.xlu1 %4085 }
 0x5a7   :  { %v3976_v49 = vmul.f32 0.036000773, %v9247_v58  ;;  %v4000_v27 = vrot.slane %v3988_v5, 1  ;;  %v3787_v33 = vrot.slane %v3760_v53, 3  ;;  %v3955_v48 = vrot.slane %v3760_v53, 7 }
 0x5a8   :  { %v3910_v23 = vadd.f32 %v3890_v46, %v3856_v12  ;;  %v3681_v4 = vadd.f32 %v3652_v3, %v9208_v61  ;;  %v3841_v20 = vrot.slane %v3814_v14, 4  ;;  %v3895_v6 = vrot.slane %v3868_v44, 5  ;;  %v9340_v8 = vpop.permute.xlu2 %4105 }
 0x5a9   :  { %v9338_v0 = vmul.f32 0.21300554, %v12439_v22  ;;  %v3685_v12 = vadd.f32 %v3660_v42, %v9221_v32  ;;  %v9345_v5 = vpop.permute.xlu0 %4083  ;;  %v9353_v13 = vmul.f32 0.21300554, %v12636_v25 }
 0x5aa   :  { %v3940_v16 = vadd.f32 %v3920_v38, %v3910_v23  ;;  %v3690_v51 = vmul.f32 0.0010283801, %v3681_v4  ;;  %v3696_v62 = vmul.f32 0.007598758, %v3681_v4  ;;  %v3726_v46 = vmul.f32 0.036000773, %v3681_v4 }
 0x5ab   :  { %12633 = vst [vmem:[#allocation138_spill] sm:$0xff] %v9338_v0  ;;  %v3759_v34 = vmul.f32 0.10936069, %v3681_v4  ;;  %v3813_v61 = vmul.f32 0.21300554, %v3681_v4  ;;  %4309 = vrot.lane.b32.xlu2 %v9338_v0, %s5469_s21  ;;  %v3925_v38 = vrot.slane %v3814_v14, 6  ;;  %4305 = vrot.lane.b32.xlu0 %v9353_v13, %s5469_s21 }
 0x5ac   :  { %12634 = vst [vmem:[#allocation365_spill] sm:$0xff] %v9345_v5  ;;  %v3970_v53 = vadd.f32 %v3950_v45, %v3940_v16  ;;  %v3867_v3 = vmul.f32 0.26601171, %v3681_v4  ;;  %v3708_v44 = vrot.slane %v3696_v62, 1  ;;  %v9350_v23 = vmul.f32 0.21300554, %v12441_v50 }
 0x5ad   :  { %12637 = vst [vmem:[#allocation143_spill] sm:$0xff] %v9353_v13  ;;  %v3786_v57 = vrot.slane %v3759_v34, 3  ;;  %v3840_v32 = vrot.slane %v3813_v61, 4  ;;  %v3738_v45 = vrot.slane %v3726_v46, 2  ;;  %v3924_v16 = vrot.slane %v3813_v61, 6 }
 0x5ae   :  { %12635 = vst [vmem:[#allocation366_spill] sm:$0xff] %v9350_v23  ;;  %v3982_v35 = vadd.f32 %v3976_v49, %v3970_v53  ;;  %v3894_v42 = vrot.slane %v3867_v3, 5  ;;  %v3720_v30 = vadd.f32 %v3708_v44, %v3690_v51  ;;  %v3954_v5 = vrot.slane %v3759_v34, 7  ;;  %4307 = vrot.lane.b32.xlu1 %v9350_v23, %s5469_s21 }
 0x5af   :  { %v3788_v14 = vsel %vm820_vm0, %v3786_v57, %v3787_v33  ;;  %v3842_v4 = vsel %vm875_vm1, %v3840_v32, %v3841_v20  ;;  %v3961_v53 = vrot.slane %v9292_v41, 7  ;;  %v3926_v46 = vsel %vm961_vm3, %v3924_v16, %v3925_v38 }
 0x5b0   :  { %v9359_v62 = vadd.f32 %v4000_v27, %v3982_v35  ;;  %v3896_v49 = vsel %vm930_vm2, %v3894_v42, %v3895_v6  ;;  %v3750_v51 = vadd.f32 %v3738_v45, %v3720_v30  ;;  %v9367_v34 = vsel %vm992_vm4, %v3954_v5, %v3955_v48  ;;  %v4160_v57 = vpop.permute.xlu2 %4159  ;;  %v9373_v27 = vpop.permute.xlu1 %4091 }
 0x5b1   :  { %v3692_v61 = vmul.f32 0.0010283801, %v3685_v12  ;;  %v3698_v3 = vmul.f32 0.007598758, %v3685_v12  ;;  %v3728_v44 = vmul.f32 0.036000773, %v3685_v12  ;;  %v9371_v35 = vadd.f32 %v9304_v1, %v9241_v54  ;;  %v9375_v30 = vpop.permute.xlu0 %4089 }
 0x5b2   :  { %12638 = vst [vmem:[#allocation368_spill] sm:$0xff] %v9373_v27  ;;  %v3804_v33 = vadd.f32 %v3788_v14, %v3750_v51  ;;  %v3763_v20 = vmul.f32 0.10936069, %v3685_v12  ;;  %v3817_v6 = vmul.f32 0.21300554, %v3685_v12  ;;  %v12640_v51 = vrot.slane %v9292_v41, 3 }
 0x5b3   :  { %v3871_v32 = vmul.f32 0.26601171, %v3685_v12  ;;  %12639 = vst [vmem:[#allocation213_spill] sm:$0xff] %v9375_v30  ;;  %v3710_v38 = vrot.slane %v3698_v3, 1  ;;  %v3740_v42 = vrot.slane %v3728_v44, 2  ;;  %v12641_v3 = vrot.slane %v9295_v7, 4 }
 0x5b4   :  { %v3762_v48 = vmul.f32 0.10936069, %v9371_v35  ;;  %v3816_v5 = vmul.f32 0.21300554, %v9371_v35  ;;  %v3858_v45 = vadd.f32 %v3842_v4, %v3804_v33  ;;  %v3792_v16 = vrot.slane %v3763_v20, 3 }
 0x5b5   :  { %v3846_v0 = vrot.slane %v3817_v6, 4  ;;  %v3900_v54 = vrot.slane %v3871_v32, 5  ;;  %v3722_v1 = vadd.f32 %v3710_v38, %v3692_v61  ;;  %v3930_v13 = vrot.slane %v3817_v6, 6 }
 0x5b6   :  { %v3960_v23 = vrot.slane %v3763_v20, 7  ;;  %v3790_v27 = vrot.slane %v3762_v48, 3  ;;  %v3912_v14 = vadd.f32 %v3896_v49, %v3858_v45  ;;  %v3794_v12 = vsel %vm820_vm0, %v3792_v16, %v12640_v51 }
 0x5b7   :  { %v3848_v44 = vsel %vm875_vm1, %v3846_v0, %v12641_v3  ;;  %v12642_v30 = vrot.slane %v9308_v21, 5  ;;  %v3752_v33 = vadd.f32 %v3740_v42, %v3722_v1  ;;  %v12643_v32 = vrot.slane %v9295_v7, 6 }
 0x5b8   :  { %v9392_v20 = vsel %vm992_vm4, %v3960_v23, %v3961_v53  ;;  %v12644_v41 = vrot.slane %v9202_v55, 3  ;;  %v9397_v6 = vadd.f32 %v3926_v46, %v3912_v14  ;;  %v3844_v38 = vrot.slane %v3816_v5, 4  ;;  %v9402_v16 = vpop.permute.xlu1 %4097 }
 0x5b9   :  { %v3902_v4 = vsel %vm930_vm2, %v3900_v54, %v12642_v30  ;;  %v3932_v61 = vsel %vm961_vm3, %v3930_v13, %v12643_v32  ;;  %v3870_v21 = vmul.f32 0.26601171, %v9371_v35  ;;  %v3957_v30 = vrot.slane %v9202_v55, 7  ;;  %v4166_v13 = vpop.permute.xlu2 %4165  ;;  %v9410_v54 = vpop.permute.xlu0 %4095 }
 0x5ba   :  { %v3791_v49 = vsel %vm820_vm0, %v12644_v41, %v3790_v27  ;;  %v3806_v42 = vadd.f32 %v3794_v12, %v3752_v33  ;;  %v3928_v7 = vrot.slane %v3816_v5, 6  ;;  %v3958_v45 = vrot.slane %v3762_v48, 7 }
 0x5bb   :  { %v3805_v0 = vadd.f32 %v3791_v49, %v9324_v9  ;;  %v3897_v23 = vrot.slane %v9212_v15, 5  ;;  %v4121_v53 = vadd.f32 %v9231_v52, %v9205_v63  ;;  %v12645_v46 = vrot.slane %v9210_v40, 4 }
 0x5bc   :  { %v3898_v27 = vrot.slane %v3870_v21, 5  ;;  %v3860_v1 = vadd.f32 %v3848_v44, %v3806_v42  ;;  %v12646_v5 = vrot.slane %v9210_v40, 6  ;;  %v3959_v14 = vsel %vm992_vm4, %v3957_v30, %v3958_v45 }
 0x5bd   :  { %v3845_v9 = vsel %vm875_vm1, %v12645_v46, %v3844_v38  ;;  %v9417_v15 = vmul.f32 0.0010283801, %v12439_v22  ;;  %v9420_v52 = vmul.f32 0.0010283801, %v12472_v28  ;;  %v9424_v12 = vmul.f32 0.21300554, %v12472_v28 }
 0x5be   :  { %v3859_v55 = vadd.f32 %v3845_v9, %v3805_v0  ;;  %v3929_v48 = vsel %vm961_vm3, %v12646_v5, %v3928_v7  ;;  %v3899_v51 = vsel %vm930_vm2, %v3897_v23, %v3898_v27  ;;  %v3914_v3 = vadd.f32 %v3902_v4, %v3860_v1 }
 0x5bf   :  { %12647 = vst [vmem:[#allocation142_spill] sm:$0xff] %v9417_v15  ;;  %v9427_v33 = vmul.f32 0.21300554, %v12474_v37  ;;  %v9430_v40 = vmul.f32 0.21300554, %v12478_v19  ;;  %v4001_v32 = vrot.slane %v9189_v26, 1  ;;  %4315 = vrot.lane.b32.xlu2 %v9424_v12, %s5469_s21  ;;  %v9437_v0 = vadd.f32 %v4160_v57, %v4121_v53 }
 0x5c0   :  { %12648 = vst [vmem:[#allocation144_spill] sm:$0xff] %v9420_v52  ;;  %v3913_v44 = vadd.f32 %v3899_v51, %v3859_v55  ;;  %v3991_v49 = vmul.f32 0.007598758, %v9371_v35  ;;  %v9440_v4 = vmul.f32 0.036000773, %v9187_v56  ;;  %v3944_v21 = vadd.f32 %v3932_v61, %v3914_v3  ;;  %v9458_v27 = vpop.permute.xlu1 %4103 }
 0x5c1   :  { %v9443_v38 = vmul.f32 0.007598758, %v9187_v56  ;;  %4313 = vrot.lane.b32.xlu1 %v9427_v33, %s5469_s21  ;;  %4311 = vrot.lane.b32.xlu0 %v9430_v40, %s5469_s21  ;;  %v3975_v42 = vmul.f32 0.036000773, %v9193_v47  ;;  %v3987_v7 = vmul.f32 0.007598758, %v9193_v47  ;;  %v4124_v45 = vadd.f32 %v9262_v39, %v9417_v15  ;;  %v4172_v9 = vpop.permute.xlu2 %4171 }
 0x5c2   :  { %v3943_v30 = vadd.f32 %v3929_v48, %v3913_v44  ;;  %v4018_v57 = vmul.f32 0.0010283801, %v9247_v58  ;;  %v4017_v23 = vmul.f32 0.0010283801, %v9193_v47  ;;  %v4127_v61 = vadd.f32 %v9299_v59, %v9420_v52  ;;  %v9464_v48 = vpop.permute.xlu0 %4101  ;;  %v12651_v44 = vld [vmem:[#allocation38_spill] sm:$0xff]  ;;  %v12772_v15 = vld [vmem:[#allocation199_spill] sm:$0xff] }
 0x5c3   :  { %v3979_v46 = vmul.f32 0.036000773, %v9371_v35  ;;  %v4003_v1 = vrot.slane %v3991_v49, 1  ;;  %v4021_v55 = vmul.f32 0.0010283801, %v9371_v35  ;;  %v9462_v58 = vadd.f32 %v4166_v13, %v4124_v45  ;;  %v12742_v52 = vld [vmem:[#allocation178_spill] sm:$0xff] }
 0x5c4   :  { %v3973_v53 = vadd.f32 %v3959_v14, %v3943_v30  ;;  %v4349_v5 = vmul.f32 0.26601171, %v8405_v24  ;;  %v9467_v47 = vmul.f32 0.0010283801, %v12527_v60  ;;  %v4347_v59 = vmul.f32 0.26601171, %v8422_v31 }
 0x5c5   :  { %v9471_v14 = vmul.f32 0.21300554, %v12534_v11  ;;  %v3999_v51 = vrot.slane %v3987_v7, 1  ;;  %v4030_v3 = vrot.slane %v4018_v57, 2  ;;  %v9474_v49 = vmul.f32 0.0010283801, %v12651_v44 }
 0x5c6   :  { %v3985_v39 = vadd.f32 %v3979_v46, %v3973_v53  ;;  %12649 = vst [vmem:[#allocation372_spill] sm:$0xff] %v9467_v47  ;;  %v9476_v35 = vadd.f32 %v4172_v9, %v4127_v61  ;;  %v3990_v24 = vmul.f32 0.007598758, %v9265_v17  ;;  %v4020_v13 = vmul.f32 0.0010283801, %v9265_v17 }
 0x5c7   :  { %12650 = vst [vmem:[#allocation147_spill] sm:$0xff] %v9471_v14  ;;  %v9481_v45 = vmul.f32 0.0010283801, %v8422_v31  ;;  %v4033_v53 = vrot.slane %v4021_v55, 2  ;;  %4375 = vrot.lane.b32.xlu2 %v4349_v5, %s5470_s22  ;;  %v3971_v7 = vadd.f32 %v9283_v18, %v9327_v2  ;;  %v9487_v57 = vadd.f32 %v4030_v3, %v9359_v62  ;;  %v12655_v2 = vld [vmem:[#allocation135_spill] sm:$0xff] }
 0x5c8   :  { %12652 = vst [vmem:[#allocation146_spill] sm:$0xff] %v9474_v49  ;;  %v4015_v30 = vadd.f32 %v4003_v1, %v3985_v39  ;;  %v3969_v61 = vadd.f32 %v9260_v43, %v9297_v29  ;;  %v4029_v46 = vrot.slane %v4017_v23, 2  ;;  %v3978_v9 = vmul.f32 0.036000773, %v9265_v17  ;;  %v12657_v23 = vld [vmem:[#allocation365_spill] sm:$0xff]  ;;  %v4158_v5 = vpop.permute.xlu1 %4157 }
 0x5c9   :  { %12653 = vst [vmem:[#allocation218_spill] sm:$0xff] %v9481_v45  ;;  %v4130_v1 = vadd.f32 %v9340_v8, %v9467_v47  ;;  %4371 = vrot.lane.b32.xlu1 %v4347_v59, %s5470_s22  ;;  %4317 = vrot.lane.b32.xlu0 %v9471_v14, %s5469_s21  ;;  %v3972_v31 = vadd.f32 %v9367_v34, %v9397_v6  ;;  %v4002_v17 = vrot.slane %v3990_v24, 1  ;;  %v4178_v55 = vpop.permute.xlu2 %4177  ;;  %v4032_v3 = vrot.slane %v4020_v13, 2 }
 0x5ca   :  { %12654 = vst [vmem:[#allocation145_spill] sm:$0xff] %v9487_v57  ;;  %v4120_v18 = vadd.f32 %v9342_v10, %v9474_v49  ;;  %v3983_v62 = vadd.f32 %v12655_v2, %v3971_v7  ;;  %v3981_v43 = vadd.f32 %v3975_v42, %v3969_v61  ;;  %v9502_v29 = vadd.f32 %v4033_v53, %v4015_v30  ;;  %v4156_v10 = vpop.permute.xlu0 %4155  ;;  %v12668_v2 = vld [vmem:[#allocation141_spill] sm:$0xff]  ;;  %v12733_v57 = vld [vmem:[#allocation171_spill] sm:$0xff] }
 0x5cb   :  { %v4119_v8 = vadd.f32 %v12657_v23, %v9481_v45  ;;  %v3984_v39 = vadd.f32 %v3978_v9, %v3972_v31  ;;  %v3974_v59 = vadd.f32 %v9392_v20, %v3944_v21  ;;  %v9507_v41 = vadd.f32 %v4178_v55, %v4130_v1  ;;  %v12665_v1 = vld [vmem:[#allocation112_spill] sm:$0xff]  ;;  %v12674_v55 = vld [vmem:[#allocation105_spill] sm:$0xff] }
 0x5cc   :  { %12656 = vst [vmem:[#allocation149_spill] sm:$0xff] %v9502_v29  ;;  %v9509_v34 = vadd.f32 %v4158_v5, %v4120_v18  ;;  %v4013_v6 = vadd.f32 %v4001_v32, %v3983_v62  ;;  %v4351_v42 = vmul.f32 0.26601171, %v12441_v50  ;;  %v4011_v30 = vadd.f32 %v3999_v51, %v3981_v43  ;;  %v12664_v51 = vld [vmem:[#allocation110_spill] sm:$0xff]  ;;  %v12667_v18 = vld [vmem:[#allocation160_spill] sm:$0xff]  ;;  %v12675_v5 = vld [vmem:[#allocation85_spill] sm:$0xff] }
 0x5cd   :  { %v9514_v24 = vadd.f32 %v4156_v10, %v4119_v8  ;;  %v4014_v53 = vadd.f32 %v4002_v17, %v3984_v39  ;;  %v4004_v7 = vrot.slane %v9443_v38, 1  ;;  %v9518_v61 = vmul.f32 0.0010283801, %v12441_v50  ;;  %v12666_v38 = vld [vmem:[#allocation75_spill] sm:$0xff]  ;;  %v12671_v43 = vld [vmem:[#allocation102_spill] sm:$0xff]  ;;  %v12673_v8 = vld [vmem:[#allocation140_spill] sm:$0xff] }
 0x5ce   :  { %v12659_v20 = vrot.slane %v9198_v36, 2  ;;  %v3986_v13 = vadd.f32 %v9440_v4, %v3974_v59  ;;  %v9526_v26 = vmul.f32 0.0010283801, %v12636_v25  ;;  %v9528_v32 = vadd.f32 %v4029_v46, %v4011_v30  ;;  %v12669_v4 = vld [vmem:[#allocation32_spill] sm:$0xff]  ;;  %v12679_v10 = vld [vmem:[#allocation127_spill] sm:$0xff]  ;;  %v12680_v30 = vld [vmem:[#allocation113_spill] sm:$0xff] }
 0x5cf   :  { %12658 = vst [vmem:[#allocation150_spill] sm:$0xff] %v9518_v61  ;;  %v9530_v9 = vadd.f32 %v4032_v3, %v4014_v53  ;;  %v990_v31 = vadd.f32 %v12665_v1, %v12664_v51  ;;  %v9536_v50 = vadd.f32 %v12667_v18, %v12666_v38  ;;  %v4022_v36 = vmul.f32 0.0010283801, %v9187_v56  ;;  %4423 = vrot.lane.b32.xlu2 %v12668_v2, %s5471_s0  ;;  %v12678_v56 = vld [vmem:[#allocation123_spill] sm:$0xff]  ;;  %v12687_v18 = vld [vmem:[#allocation96_spill] sm:$0xff] }
 0x5d0   :  { %v9522_v21 = vadd.f32 %v12659_v20, %v4013_v6  ;;  %12661 = vst [vmem:[#allocation148_spill] sm:$0xff] %v9526_v26  ;;  %v12670_v62 = vrot.slane %v12669_v4, 6  ;;  %v12672_v17 = vrot.slane %v12671_v43, 6  ;;  %v4016_v23 = vadd.f32 %v4004_v7, %v3986_v13  ;;  %v12681_v20 = vld [vmem:[#allocation368_spill] sm:$0xff]  ;;  %v12682_v7 = vld [vmem:[#allocation107_spill] sm:$0xff]  ;;  %v12683_v13 = vld [vmem:[#allocation14_spill] sm:$0xff] }
 0x5d1   :  { %12662 = vst [vmem:[#allocation230_spill] sm:$0xff] %v9528_v32  ;;  %4419 = vrot.lane.b32.xlu1 %v12673_v8, %s5471_s0  ;;  %4379 = vrot.lane.b32.xlu0 %v4351_v42, %s5470_s22  ;;  %v12676_v39 = vrot.slane %v12675_v5, 2  ;;  %v1050_v3 = vrot.slane %v12678_v56, 1  ;;  %v1080_v6 = vrot.slane %v12679_v10, 2  ;;  %v4123_v51 = vadd.f32 %v12681_v20, %v9518_v61  ;;  %v12686_v42 = vld [vmem:[#allocation108_spill] sm:$0xff]  ;;  %v4164_v56 = vpop.permute.xlu1 %4163  ;;  %v12695_v10 = vld [vmem:[#allocation109_spill] sm:$0xff] }
 0x5d2   :  { %12660 = vst [vmem:[#allocation224_spill] sm:$0xff] %v9522_v21  ;;  %v979_v46 = vsel %vm961_vm3, %v12672_v17, %v12670_v62  ;;  %v12684_v1 = vrot.slane %v12683_v13, 2  ;;  %v12688_v2 = vrot.slane %v12687_v18, 2  ;;  %v12690_v62 = vld [vmem:[#allocation71_spill] sm:$0xff]  ;;  %v12692_v17 = vld [vmem:[#allocation94_spill] sm:$0xff]  ;;  %v12725_v32 = vld [vmem:[#allocation168_spill] sm:$0xff] }
 0x5d3   :  { %12663 = vst [vmem:[#allocation151_spill] sm:$0xff] %v9530_v9  ;;  %v9552_v59 = vadd.f32 %v12676_v39, %v12674_v55  ;;  %v991_v53 = vadd.f32 %v979_v46, %v12680_v30  ;;  %v12691_v43 = vrot.slane %v12690_v62, 7  ;;  %v12693_v8 = vrot.slane %v12692_v17, 7  ;;  %v12694_v46 = vld [vmem:[#allocation213_spill] sm:$0xff]  ;;  %v4232_v39 = vpop.permute.xlu2 %4231  ;;  %v12721_v9 = vld [vmem:[#allocation166_spill] sm:$0xff]  ;;  %v12732_v21 = vld [vmem:[#allocation95_spill] sm:$0xff] }
 0x5d4   :  { %v9562_v38 = vadd.f32 %v12684_v1, %v12682_v7  ;;  %v9567_v4 = vadd.f32 %v12688_v2, %v12686_v42  ;;  %v4122_v5 = vadd.f32 %v12694_v46, %v9526_v26  ;;  %v1062_v30 = vadd.f32 %v1050_v3, %v12695_v10  ;;  %v12696_v7 = vld [vmem:[#allocation31_spill] sm:$0xff]  ;;  %v12853_v26 = vld [vmem:[#allocation345_spill] sm:$0xff] }
 0x5d5   :  { %12677 = vst [vmem:[#allocation101_spill] sm:$0xff] %v9552_v59  ;;  %v1007_v55 = vsel %vm992_vm4, %v12693_v8, %v12691_v43  ;;  %v12697_v13 = vrot.slane %v12696_v7, 7  ;;  %v12698_v1 = vld [vmem:[#allocation67_spill] sm:$0xff]  ;;  %v4034_v2 = vrot.slane %v4022_v36, 2  ;;  %v4353_v62 = vmul.f32 0.26601171, %v12478_v19  ;;  %v4162_v8 = vpop.permute.xlu0 %4161 }
 0x5d6   :  { %12685 = vst [vmem:[#allocation152_spill] sm:$0xff] %v9562_v38  ;;  %v1021_v20 = vadd.f32 %v1007_v55, %v990_v31  ;;  %v12699_v18 = vrot.slane %v12698_v1, 7  ;;  %v9584_v17 = vadd.f32 %v4232_v39, %v9437_v0  ;;  %v9586_v43 = vadd.f32 %v4164_v56, %v4123_v51  ;;  %v12701_v7 = vld [vmem:[#allocation64_spill] sm:$0xff]  ;;  %v12703_v0 = vld [vmem:[#allocation231_spill] sm:$0xff]  ;;  %v12704_v51 = vld [vmem:[#allocation161_spill] sm:$0xff] }
 0x5d7   :  { %12689 = vst [vmem:[#allocation214_spill] sm:$0xff] %v9567_v4  ;;  %v4350_v46 = vmul.f32 0.26601171, %v12636_v25  ;;  %v4348_v3 = vmul.f32 0.26601171, %v12651_v44  ;;  %v9590_v31 = vadd.f32 %v4162_v8, %v4122_v5  ;;  %v9597_v1 = vadd.f32 %v4034_v2, %v4016_v23  ;;  %v12705_v56 = vld [vmem:[#allocation232_spill] sm:$0xff]  ;;  %4383 = vrot.lane.b32.xlu2 %v4353_v62, %s5470_s22 }
 0x5d8   :  { %v1010_v42 = vsel %vm992_vm4, %v12699_v18, %v12697_v13  ;;  %v9593_v10 = vmul.f32 0.0010283801, %v12474_v37  ;;  %v1027_v36 = vmul.f32 0.036000773, %v12701_v7  ;;  %v1039_v13 = vmul.f32 0.007598758, %v12701_v7 }
 0x5d9   :  { %v1022_v55 = vadd.f32 %v1010_v42, %v991_v53  ;;  %12702 = vst [vmem:[#allocation154_spill] sm:$0xff] %v9597_v1  ;;  %v1177_v39 = vadd.f32 %v12704_v51, %v12703_v0  ;;  %v12706_v18 = vld [vmem:[#allocation162_spill] sm:$0xff]  ;;  %v9604_v44 = vmul.f32 0.0010283801, %v12478_v19  ;;  %v9606_v5 = vadd.f32 %v1080_v6, %v1062_v30  ;;  %v12713_v19 = vld [vmem:[#allocation163_spill] sm:$0xff]  ;;  %v12714_v6 = vld [vmem:[#allocation80_spill] sm:$0xff]  ;;  %4377 = vrot.lane.b32.xlu1 %v4350_v46, %s5470_s22 }
 0x5da   :  { %12700 = vst [vmem:[#allocation153_spill] sm:$0xff] %v9593_v10  ;;  %v1176_v25 = vadd.f32 %v12706_v18, %v12705_v56  ;;  %v9611_v53 = vmul.f32 %v9562_v38, %v9562_v38  ;;  %v9615_v23 = vmul.f32 %v9552_v59, %v9552_v59  ;;  %v9619_v42 = vmul.f32 %v9567_v4, %v9567_v4  ;;  %v12712_v8 = vld [vmem:[#allocation78_spill] sm:$0xff]  ;;  %v12715_v30 = vld [vmem:[#allocation164_spill] sm:$0xff]  ;;  %v12716_v62 = vld [vmem:[#allocation97_spill] sm:$0xff] }
 0x5db   :  { %12707 = vst [vmem:[#allocation219_spill] sm:$0xff] %v9604_v44  ;;  %v1033_v2 = vadd.f32 %v1027_v36, %v1021_v20  ;;  %v1250_v0 = vadd.f32 %v12713_v19, %v12712_v8  ;;  %v1240_v51 = vadd.f32 %v12715_v30, %v12714_v6  ;;  %4373 = vrot.lane.b32.xlu0 %v4348_v3, %s5470_s22  ;;  %v12717_v18 = vld [vmem:[#allocation114_spill] sm:$0xff]  ;;  %v12719_v1 = vld [vmem:[#allocation165_spill] sm:$0xff]  ;;  %v12720_v4 = vld [vmem:[#allocation367_spill] sm:$0xff]  ;;  %v1051_v8 = vrot.slane %v1039_v13, 1 }
 0x5dc   :  { %12708 = vst [vmem:[#allocation155_spill] sm:$0xff] %v9606_v5  ;;  %v1034_v56 = vadd.f32 %v12716_v62, %v1022_v55  ;;  %v1052_v59 = vrot.slane %v12717_v18, 1  ;;  %v12718_v38 = vld [vmem:[#allocation130_spill] sm:$0xff]  ;;  %v1313_v20 = vadd.f32 %v12721_v9, %v12720_v4  ;;  %v4126_v36 = vadd.f32 %v9402_v16, %v9593_v10  ;;  %v12722_v19 = vld [vmem:[#allocation81_spill] sm:$0xff]  ;;  %v12723_v6 = vld [vmem:[#allocation167_spill] sm:$0xff]  ;;  %v4238_v62 = vpop.permute.xlu2 %4237  ;;  %v4170_v18 = vpop.permute.xlu1 %4169 }
 0x5dd   :  { %12709 = vst [vmem:[#allocation45_spill] sm:$0xff] %v9611_v53  ;;  %v1239_v29 = vadd.f32 %v12719_v1, %v12718_v38  ;;  %v1243_v30 = vadd.f32 %v12723_v6, %v12722_v19  ;;  %v12724_v46 = vld [vmem:[#allocation89_spill] sm:$0xff]  ;;  %v4125_v55 = vadd.f32 %v9410_v54, %v9604_v44  ;;  %v9643_v38 = vmul.f32 %v9606_v5, %v9606_v5  ;;  %v12727_v9 = vld [vmem:[#allocation90_spill] sm:$0xff]  ;;  %v4168_v19 = vpop.permute.xlu0 %4167  ;;  %v12776_v44 = vld [vmem:[#allocation203_spill] sm:$0xff] }
 0x5de   :  { %12710 = vst [vmem:[#allocation58_spill] sm:$0xff] %v9615_v23  ;;  %v1242_v3 = vadd.f32 %v12725_v32, %v12724_v46  ;;  %v12728_v4 = vld [vmem:[#allocation169_spill] sm:$0xff]  ;;  %v9648_v16 = vadd.f32 %v4238_v62, %v9462_v58  ;;  %v9650_v13 = vadd.f32 %v4170_v18, %v4126_v36  ;;  %v9652_v6 = vadd.f32 %v1051_v8, %v1033_v2  ;;  %v12730_v32 = vld [vmem:[#allocation91_spill] sm:$0xff]  ;;  %v12731_v46 = vld [vmem:[#allocation170_spill] sm:$0xff] }
 0x5df   :  { %12711 = vst [vmem:[#allocation35_spill] sm:$0xff] %v9619_v42  ;;  %v1316_v1 = vadd.f32 %v12728_v4, %v12727_v9  ;;  %v1246_v54 = vadd.f32 %v12731_v46, %v12730_v32  ;;  %v1245_v47 = vadd.f32 %v12733_v57, %v12732_v21  ;;  %v9658_v10 = vadd.f32 %v4168_v19, %v4125_v55  ;;  %v12735_v9 = vld [vmem:[#allocation172_spill] sm:$0xff]  ;;  %v12736_v58 = vld [vmem:[#allocation173_spill] sm:$0xff]  ;;  %v12737_v36 = vld [vmem:[#allocation174_spill] sm:$0xff] }
 0x5e0   :  { %12726 = vst [vmem:[#allocation40_spill] sm:$0xff] %v9643_v38  ;;  %v9660_v5 = vadd.f32 %v1052_v59, %v1034_v56  ;;  %v1319_v4 = vadd.f32 %v12735_v9, %v9536_v50  ;;  %v1249_v62 = vadd.f32 %v12736_v58, %v1177_v39  ;;  %v1248_v18 = vadd.f32 %v12737_v36, %v1176_v25  ;;  %v12738_v38 = vld [vmem:[#allocation65_spill] sm:$0xff]  ;;  %v12740_v8 = vld [vmem:[#allocation175_spill] sm:$0xff]  ;;  %v12741_v32 = vld [vmem:[#allocation176_spill] sm:$0xff] }
 0x5e1   :  { %12729 = vst [vmem:[#allocation384_spill] sm:$0xff] %v9652_v6  ;;  %v9667_v2 = vmul.f32 0.0010283801, %v12738_v38  ;;  %v1322_v6 = vadd.f32 %v12740_v8, %v1250_v0  ;;  %v1312_v46 = vadd.f32 %v12741_v32, %v1240_v51  ;;  %v1385_v57 = vadd.f32 %v12742_v52, %v1313_v20  ;;  %v12744_v59 = vld [vmem:[#allocation177_spill] sm:$0xff]  ;;  %v12745_v55 = vld [vmem:[#allocation179_spill] sm:$0xff]  ;;  %v12746_v19 = vld [vmem:[#allocation180_spill] sm:$0xff] }
 0x5e2   :  { %12734 = vst [vmem:[#allocation220_spill] sm:$0xff] %v9660_v5  ;;  %v9673_v21 = vmul.f32 0.0010283801, %v12534_v11  ;;  %v1311_v56 = vadd.f32 %v12744_v59, %v1239_v29  ;;  %v1315_v50 = vadd.f32 %v12745_v55, %v1243_v30  ;;  %v1314_v39 = vadd.f32 %v12746_v19, %v1242_v3  ;;  %v12747_v9 = vld [vmem:[#allocation181_spill] sm:$0xff]  ;;  %v12749_v36 = vld [vmem:[#allocation182_spill] sm:$0xff]  ;;  %v12750_v8 = vld [vmem:[#allocation183_spill] sm:$0xff] }
 0x5e3   :  { %12739 = vst [vmem:[#allocation156_spill] sm:$0xff] %v9667_v2  ;;  %v1388_v25 = vadd.f32 %v12747_v9, %v1316_v1  ;;  %v12748_v58 = vld [vmem:[#allocation373_spill] sm:$0xff]  ;;  %v1318_v0 = vadd.f32 %v12749_v36, %v1246_v54  ;;  %v1317_v51 = vadd.f32 %v12750_v8, %v1245_v47  ;;  %v12751_v32 = vld [vmem:[#allocation190_spill] sm:$0xff]  ;;  %v12752_v20 = vld [vmem:[#allocation124_spill] sm:$0xff]  ;;  %v4129_v47 = vadd.f32 %v9458_v27, %v9667_v2 }
 0x5e4   :  { %12743 = vst [vmem:[#allocation29_spill] sm:$0xff] %v9673_v21  ;;  %4471 = vrot.lane.b32.xlu2 %v12748_v58, %s5472_s23  ;;  %v1457_v52 = vadd.f32 %v12751_v32, %v1385_v57  ;;  %4467 = vrot.lane.b32.xlu1 %v12752_v20, %s5472_s23  ;;  %v12753_v29 = vld [vmem:[#allocation366_spill] sm:$0xff]  ;;  %v12754_v30 = vld [vmem:[#allocation99_spill] sm:$0xff]  ;;  %v12756_v3 = vld [vmem:[#allocation184_spill] sm:$0xff]  ;;  %v4176_v5 = vpop.permute.xlu1 %4175 }
 0x5e5   :  { %4427 = vrot.lane.b32.xlu0 %v12753_v29, %s5471_s0  ;;  %v9689_v59 = vmul.f32 0.0010283801, %v12754_v30  ;;  %v1391_v1 = vadd.f32 %v12756_v3, %v1319_v4  ;;  %v12757_v55 = vld [vmem:[#allocation185_spill] sm:$0xff]  ;;  %v12758_v9 = vld [vmem:[#allocation186_spill] sm:$0xff]  ;;  %v12759_v54 = vld [vmem:[#allocation187_spill] sm:$0xff]  ;;  %v4128_v29 = vadd.f32 %v9464_v48, %v9673_v21  ;;  %v4244_v30 = vpop.permute.xlu2 %4243  ;;  %v4174_v27 = vpop.permute.xlu0 %4173 }
 0x5e6   :  { %v1321_v19 = vadd.f32 %v12757_v55, %v1249_v62  ;;  %v1320_v58 = vadd.f32 %v12758_v9, %v1248_v18  ;;  %v1394_v57 = vadd.f32 %v12759_v54, %v1322_v6  ;;  %v12760_v36 = vld [vmem:[#allocation188_spill] sm:$0xff]  ;;  %v12761_v32 = vld [vmem:[#allocation202_spill] sm:$0xff]  ;;  %v12763_v3 = vld [vmem:[#allocation191_spill] sm:$0xff]  ;;  %v9704_v18 = vadd.f32 %v4244_v30, %v9476_v35 }
 0x5e7   :  { %12755 = vst [vmem:[#allocation56_spill] sm:$0xff] %v9689_v59  ;;  %v1384_v8 = vadd.f32 %v12760_v36, %v1312_v46  ;;  %v1505_v20 = vadd.f32 %v12761_v32, %v1457_v52  ;;  %v12762_v59 = vld [vmem:[#allocation189_spill] sm:$0xff]  ;;  %v1387_v62 = vadd.f32 %v12763_v3, %v1315_v50  ;;  %v9706_v55 = vadd.f32 %v4176_v5, %v4129_v47  ;;  %v12764_v6 = vld [vmem:[#allocation192_spill] sm:$0xff]  ;;  %v12765_v46 = vld [vmem:[#allocation115_spill] sm:$0xff] }
 0x5e8   :  { %v1383_v4 = vadd.f32 %v12762_v59, %v1311_v56  ;;  %v1386_v9 = vadd.f32 %v12764_v6, %v1314_v39  ;;  %v4352_v52 = vmul.f32 0.26601171, %v12439_v22  ;;  %v9711_v36 = vadd.f32 %v4174_v27, %v4128_v29  ;;  %v12766_v48 = vld [vmem:[#allocation193_spill] sm:$0xff]  ;;  %v12767_v21 = vld [vmem:[#allocation194_spill] sm:$0xff]  ;;  %v12768_v59 = vld [vmem:[#allocation195_spill] sm:$0xff] }
 0x5e9   :  { %v1553_v54 = vadd.f32 %v12765_v46, %v1505_v20  ;;  %v1460_v32 = vadd.f32 %v12766_v48, %v1388_v25  ;;  %v1390_v56 = vadd.f32 %v12767_v21, %v1318_v0  ;;  %v1389_v50 = vadd.f32 %v12768_v59, %v1317_v51  ;;  %v12769_v3 = vld [vmem:[#allocation196_spill] sm:$0xff]  ;;  %v12770_v30 = vld [vmem:[#allocation197_spill] sm:$0xff]  ;;  %v12771_v47 = vld [vmem:[#allocation198_spill] sm:$0xff] }
 0x5ea   :  { %v1463_v35 = vadd.f32 %v12769_v3, %v1391_v1  ;;  %v1393_v5 = vadd.f32 %v12770_v30, %v1321_v19  ;;  %v1392_v2 = vadd.f32 %v12771_v47, %v1320_v58  ;;  %v1466_v39 = vadd.f32 %v12772_v15, %v1394_v57  ;;  %v12773_v6 = vld [vmem:[#allocation234_spill] sm:$0xff]  ;;  %v12774_v46 = vld [vmem:[#allocation200_spill] sm:$0xff]  ;;  %v12775_v29 = vld [vmem:[#allocation201_spill] sm:$0xff] }
 0x5eb   :  { %v1601_v20 = vadd.f32 %v12773_v6, %v1553_v54  ;;  %v1456_v22 = vadd.f32 %v12774_v46, %v1384_v8  ;;  %v1455_v27 = vadd.f32 %v12775_v29, %v1383_v4  ;;  %v1459_v25 = vadd.f32 %v12776_v44, %v1387_v62  ;;  %v12777_v48 = vld [vmem:[#allocation204_spill] sm:$0xff]  ;;  %v12778_v0 = vld [vmem:[#allocation143_spill] sm:$0xff]  ;;  %v12779_v51 = vld [vmem:[#allocation205_spill] sm:$0xff] }
 0x5ec   :  { %v1458_v21 = vadd.f32 %v12777_v48, %v1386_v9  ;;  %4425 = vrot.lane.b32.xlu2 %v12778_v0, %s5471_s0  ;;  %v1508_v1 = vadd.f32 %v12779_v51, %v1460_v32  ;;  %v12780_v19 = vld [vmem:[#allocation206_spill] sm:$0xff]  ;;  %v12782_v15 = vld [vmem:[#allocation137_spill] sm:$0xff]  ;;  %v9734_v57 = vmul.f32 0.0010283801, %v12701_v7  ;;  %v12784_v44 = vld [vmem:[#allocation207_spill] sm:$0xff]  ;;  %v4230_v51 = vpop.permute.xlu1 %4229 }
 0x5ed   :  { %v1462_v59 = vadd.f32 %v12780_v19, %v1390_v56  ;;  %v12781_v58 = vld [vmem:[#allocation250_spill] sm:$0xff]  ;;  %4421 = vrot.lane.b32.xlu1 %v12782_v15, %s5471_s0  ;;  %4381 = vrot.lane.b32.xlu0 %v4352_v52, %s5470_s22  ;;  %v1461_v8 = vadd.f32 %v12784_v44, %v1389_v50  ;;  %v12785_v4 = vld [vmem:[#allocation208_spill] sm:$0xff]  ;;  %v12786_v9 = vld [vmem:[#allocation209_spill] sm:$0xff]  ;;  %v4250_v52 = vpop.permute.xlu2 %4249 }
 0x5ee   :  { %v1649_v3 = vadd.f32 %v12781_v58, %v1601_v20  ;;  %12783 = vst [vmem:[#allocation157_spill] sm:$0xff] %v9734_v57  ;;  %v1511_v62 = vadd.f32 %v12785_v4, %v1463_v35  ;;  %v1465_v54 = vadd.f32 %v12786_v9, %v1393_v5  ;;  %v12787_v30 = vld [vmem:[#allocation210_spill] sm:$0xff]  ;;  %v12788_v47 = vld [vmem:[#allocation111_spill] sm:$0xff]  ;;  %v12790_v46 = vld [vmem:[#allocation212_spill] sm:$0xff]  ;;  %v9747_v35 = vadd.f32 %v4250_v52, %v9507_v41 }
 0x5ef   :  { %v1464_v32 = vadd.f32 %v12787_v30, %v1392_v2  ;;  %v1514_v56 = vadd.f32 %v12788_v47, %v1466_v39  ;;  %v12789_v6 = vld [vmem:[#allocation211_spill] sm:$0xff]  ;;  %v1503_v29 = vadd.f32 %v12790_v46, %v1455_v27  ;;  %v12791_v48 = vld [vmem:[#allocation262_spill] sm:$0xff]  ;;  %v12792_v7 = vld [vmem:[#allocation116_spill] sm:$0xff]  ;;  %v9750_v5 = vadd.f32 %v4230_v51, %v9509_v34  ;;  %v4228_v2 = vpop.permute.xlu0 %4227 }
 0x5f0   :  { %v1504_v20 = vadd.f32 %v12789_v6, %v1456_v22  ;;  %v1709_v0 = vadd.f32 %v12791_v48, %v1649_v3  ;;  %v1507_v19 = vadd.f32 %v12792_v7, %v1459_v25  ;;  %v12793_v58 = vld [vmem:[#allocation117_spill] sm:$0xff]  ;;  %12794 = vst [vmem:[#allocation225_spill] sm:$0xff] %v9747_v35  ;;  %v12795_v39 = vld [vmem:[#allocation215_spill] sm:$0xff]  ;;  %v4355_v22 = vmul.f32 0.26601171, %v12472_v28  ;;  %v12796_v25 = vld [vmem:[#allocation216_spill] sm:$0xff] }
 0x5f1   :  { %v1506_v50 = vadd.f32 %v12793_v58, %v1458_v21  ;;  %v1556_v15 = vadd.f32 %v12795_v39, %v1508_v1  ;;  %v9755_v27 = vmul.f32 0.21300554, %v12738_v38  ;;  %v9758_v3 = vadd.f32 %v4228_v2, %v9514_v24  ;;  %v12797_v21 = vld [vmem:[#allocation217_spill] sm:$0xff]  ;;  %v12799_v30 = vld [vmem:[#allocation222_spill] sm:$0xff]  ;;  %v12800_v47 = vld [vmem:[#allocation223_spill] sm:$0xff] }
 0x5f2   :  { %v1510_v44 = vadd.f32 %v12796_v25, %v1462_v59  ;;  %v1509_v4 = vadd.f32 %v12797_v21, %v1461_v8  ;;  %v12798_v41 = vld [vmem:[#allocation221_spill] sm:$0xff]  ;;  %v1513_v34 = vadd.f32 %v12799_v30, %v1465_v54  ;;  %v1512_v6 = vadd.f32 %v12800_v47, %v1464_v32  ;;  %v12801_v46 = vld [vmem:[#allocation227_spill] sm:$0xff]  ;;  %v12802_v48 = vld [vmem:[#allocation228_spill] sm:$0xff] }
 0x5f3   :  { %v1559_v9 = vadd.f32 %v12798_v41, %v1511_v62  ;;  %v1562_v1 = vadd.f32 %v12801_v46, %v1514_v56  ;;  %v1552_v28 = vadd.f32 %v12802_v48, %v1504_v20  ;;  %v1726_v52 = vmul.f32 0.007598758, %v1709_v0  ;;  %v12803_v51 = vld [vmem:[#allocation229_spill] sm:$0xff]  ;;  %v12804_v58 = vld [vmem:[#allocation235_spill] sm:$0xff]  ;;  %v12805_v2 = vld [vmem:[#allocation236_spill] sm:$0xff] }
 0x5f4   :  { %v1551_v7 = vadd.f32 %v12803_v51, %v1503_v29  ;;  %v1555_v24 = vadd.f32 %v12804_v58, %v1507_v19  ;;  %v1554_v39 = vadd.f32 %v12805_v2, %v1506_v50  ;;  %v12806_v59 = vld [vmem:[#allocation240_spill] sm:$0xff]  ;;  %4431 = vrot.lane.b32.xlu2 %v9430_v40, %s5471_s0  ;;  %v12807_v8 = vld [vmem:[#allocation237_spill] sm:$0xff]  ;;  %v12808_v54 = vld [vmem:[#allocation238_spill] sm:$0xff]  ;;  %v4236_v2 = vpop.permute.xlu1 %4235 }
 0x5f5   :  { %v1607_v25 = vadd.f32 %v12806_v59, %v1559_v9  ;;  %v1604_v62 = vadd.f32 %v12807_v8, %v1556_v15  ;;  %v1558_v32 = vadd.f32 %v12808_v54, %v1510_v44  ;;  %v12809_v21 = vld [vmem:[#allocation239_spill] sm:$0xff]  ;;  %4387 = vrot.lane.b32.xlu1 %v4355_v22, %s5470_s22  ;;  %4319 = vrot.lane.b32.xlu0 %v9755_v27, %s5469_s21  ;;  %v12810_v29 = vld [vmem:[#allocation241_spill] sm:$0xff]  ;;  %v12811_v50 = vld [vmem:[#allocation242_spill] sm:$0xff]  ;;  %v1738_v22 = vrot.slane %v1726_v52, 1  ;;  %v4304_v58 = vpop.permute.xlu2 %4303 }
 0x5f6   :  { %v1557_v56 = vadd.f32 %v12809_v21, %v1509_v4  ;;  %v1561_v19 = vadd.f32 %v12810_v29, %v1513_v34  ;;  %v1560_v41 = vadd.f32 %v12811_v50, %v1512_v6  ;;  %v12812_v9 = vld [vmem:[#allocation244_spill] sm:$0xff]  ;;  %v12814_v15 = vld [vmem:[#allocation245_spill] sm:$0xff]  ;;  %v12815_v44 = vld [vmem:[#allocation246_spill] sm:$0xff]  ;;  %v9790_v34 = vadd.f32 %v4304_v58, %v9584_v17 }
 0x5f7   :  { %v1610_v30 = vadd.f32 %v12812_v9, %v1562_v1  ;;  %v12813_v40 = vld [vmem:[#allocation256_spill] sm:$0xff]  ;;  %v1600_v46 = vadd.f32 %v12814_v15, %v1552_v28  ;;  %v1599_v48 = vadd.f32 %v12815_v44, %v1551_v7  ;;  %v12816_v4 = vld [vmem:[#allocation251_spill] sm:$0xff]  ;;  %v9793_v6 = vadd.f32 %v4236_v2, %v9586_v43  ;;  %v4234_v1 = vpop.permute.xlu0 %4233  ;;  %v12820_v52 = vld [vmem:[#allocation254_spill] sm:$0xff] }
 0x5f8   :  { %v1655_v47 = vadd.f32 %v12813_v40, %v1607_v25  ;;  %v1603_v51 = vadd.f32 %v12816_v4, %v1555_v24  ;;  %v12817_v59 = vld [vmem:[#allocation252_spill] sm:$0xff]  ;;  %v12819_v25 = vld [vmem:[#allocation253_spill] sm:$0xff]  ;;  %v1720_v29 = vmul.f32 0.0010283801, %v1709_v0  ;;  %v1756_v7 = vmul.f32 0.036000773, %v1709_v0 }
 0x5f9   :  { %v1602_v8 = vadd.f32 %v12817_v59, %v1554_v39  ;;  %v12818_v54 = vld [vmem:[#allocation268_spill] sm:$0xff]  ;;  %v1652_v28 = vadd.f32 %v12819_v25, %v1604_v62  ;;  %v9797_v24 = vadd.f32 %v4234_v1, %v9590_v31  ;;  %v1606_v50 = vadd.f32 %v12820_v52, %v1558_v32  ;;  %v12821_v17 = vld [vmem:[#allocation255_spill] sm:$0xff]  ;;  %v12822_v43 = vld [vmem:[#allocation257_spill] sm:$0xff] }
 0x5fa   :  { %v1715_v21 = vadd.f32 %v12818_v54, %v1655_v47  ;;  %v9800_v9 = vmul.f32 0.10936069, %v1709_v0  ;;  %v9802_v39 = vmul.f32 0.21300554, %v1709_v0  ;;  %v9804_v40 = vmul.f32 0.26601171, %v1709_v0 }
 0x5fb   :  { %v1605_v47 = vadd.f32 %v12821_v17, %v1557_v56  ;;  %v1609_v15 = vadd.f32 %v12822_v43, %v1561_v19  ;;  %v1750_v44 = vadd.f32 %v1738_v22, %v1720_v29  ;;  %v12823_v4 = vld [vmem:[#allocation265_spill] sm:$0xff]  ;;  %v12824_v58 = vld [vmem:[#allocation258_spill] sm:$0xff]  ;;  %v12825_v31 = vld [vmem:[#allocation259_spill] sm:$0xff]  ;;  %v1768_v20 = vrot.slane %v1756_v7, 2 }
 0x5fc   :  { %v9809_v62 = vadd.f32 %v12823_v4, %v1652_v28  ;;  %v1608_v2 = vadd.f32 %v12824_v58, %v1560_v41  ;;  %v1658_v59 = vadd.f32 %v12825_v31, %v1610_v30  ;;  %v12826_v54 = vld [vmem:[#allocation260_spill] sm:$0xff]  ;;  %v1729_v1 = vmul.f32 0.007598758, %v1715_v21  ;;  %v12828_v0 = vld [vmem:[#allocation261_spill] sm:$0xff]  ;;  %v12829_v56 = vld [vmem:[#allocation263_spill] sm:$0xff]  ;;  %v4242_v4 = vpop.permute.xlu1 %4241 }
 0x5fd   :  { %v1648_v32 = vadd.f32 %v12826_v54, %v1600_v46  ;;  %v12827_v25 = vld [vmem:[#allocation76_spill] sm:$0xff]  ;;  %v1647_v52 = vadd.f32 %v12828_v0, %v1599_v48  ;;  %v1651_v17 = vadd.f32 %v12829_v56, %v1603_v51  ;;  %v12831_v28 = vld [vmem:[#allocation79_spill] sm:$0xff]  ;;  %v12832_v41 = vld [vmem:[#allocation126_spill] sm:$0xff]  ;;  %v9829_v7 = vadd.f32 %v1768_v20, %v1750_v44 }
 0x5fe   :  { %4519 = vrot.lane.b32.xlu2 %v12827_v25, %s5473_s2  ;;  %v12830_v19 = vld [vmem:[#allocation264_spill] sm:$0xff]  ;;  %4515 = vrot.lane.b32.xlu1 %v12831_v28, %s5473_s2  ;;  %v9836_v43 = vmul.f32 0.21300554, %v9809_v62  ;;  %v9839_v58 = vmul.f32 0.26601171, %v9809_v62  ;;  %v12833_v31 = vld [vmem:[#allocation266_spill] sm:$0xff]  ;;  %v9845_v0 = vadd.f32 %v4242_v4, %v9650_v13 }
 0x5ff   :  { %v9819_v22 = vadd.f32 %v12830_v19, %v1602_v8  ;;  %4475 = vrot.lane.b32.xlu0 %v12832_v41, %s5472_s23  ;;  %v9833_v8 = vmul.f32 0.10936069, %v9809_v62  ;;  %v9842_v54 = vadd.f32 %v12833_v31, %v1606_v50  ;;  %v1741_v25 = vrot.slane %v1729_v1, 1  ;;  %v4240_v20 = vpop.permute.xlu0 %4239  ;;  %v12836_v41 = vld [vmem:[#allocation267_spill] sm:$0xff]  ;;  %v12839_v1 = vld [vmem:[#allocation273_spill] sm:$0xff]  ;;  %v12843_v4 = vld [vmem:[#allocation272_spill] sm:$0xff] }
 0x600   :  { %12834 = vst [vmem:[#allocation158_spill] sm:$0xff] %v9845_v0  ;;  %v1759_v44 = vmul.f32 0.036000773, %v1715_v21  ;;  %v9847_v56 = vmul.f32 0.10936069, %v1715_v21  ;;  %v9851_v28 = vadd.f32 %v4240_v20, %v9658_v10  ;;  %v9854_v51 = vadd.f32 %v12836_v41, %v1605_v47  ;;  %v12837_v29 = vld [vmem:[#allocation271_spill] sm:$0xff] }
 0x601   :  { %v4354_v19 = vmul.f32 0.26601171, %v12474_v37  ;;  %v1723_v48 = vmul.f32 0.0010283801, %v1715_v21  ;;  %v9857_v50 = vadd.f32 %v12837_v29, %v1658_v59  ;;  %v1707_v31 = vadd.f32 %v12839_v1, %v1647_v52  ;;  %v12841_v59 = vld [vmem:[#allocation122_spill] sm:$0xff]  ;;  %v12842_v41 = vld [vmem:[#allocation269_spill] sm:$0xff] }
 0x602   :  { %12835 = vst [vmem:[#allocation59_spill] sm:$0xff] %v9851_v28  ;;  %v9862_v46 = vmul.f32 0.21300554, %v1715_v21  ;;  %v9864_v30 = vmul.f32 0.26601171, %v1715_v21  ;;  %v1771_v29 = vrot.slane %v1759_v44, 2  ;;  %v9873_v1 = vadd.f32 %v12842_v41, %v1609_v15 }
 0x603   :  { %12838 = vst [vmem:[#allocation226_spill] sm:$0xff] %v9857_v50  ;;  %v1753_v20 = vadd.f32 %v1741_v25, %v1723_v48  ;;  %v9876_v13 = vadd.f32 %v12843_v4, %v1648_v32  ;;  %v12844_v21 = vld [vmem:[#allocation138_spill] sm:$0xff]  ;;  %v9885_v48 = vmul.f32 0.10936069, %v9857_v50  ;;  %v9888_v25 = vmul.f32 0.21300554, %v9857_v50 }
 0x604   :  { %12840 = vst [vmem:[#allocation159_spill] sm:$0xff] %v9864_v30  ;;  %v12845_v10 = vld [vmem:[#allocation270_spill] sm:$0xff]  ;;  %v1725_v44 = vmul.f32 0.007598758, %v1707_v31  ;;  %v4357_v4 = vmul.f32 0.26601171, %v12738_v38 }
 0x605   :  { %v9882_v47 = vadd.f32 %v12845_v10, %v1608_v2  ;;  %v9896_v41 = vadd.f32 %v1771_v29, %v1753_v20  ;;  %v12847_v10 = vld [vmem:[#allocation275_spill] sm:$0xff]  ;;  %v9904_v15 = vmul.f32 0.10936069, %v9876_v13  ;;  %v9907_v32 = vmul.f32 0.21300554, %v9876_v13  ;;  %v12852_v20 = vld [vmem:[#allocation133_spill] sm:$0xff] }
 0x606   :  { %4469 = vrot.lane.b32.xlu2 %v12841_v59, %s5472_s23  ;;  %4429 = vrot.lane.b32.xlu1 %v12844_v21, %s5471_s0  ;;  %v9894_v59 = vmul.f32 0.26601171, %v9857_v50  ;;  %v1711_v21 = vadd.f32 %v12847_v10, %v1651_v17  ;;  %v9916_v17 = vmul.f32 0.26601171, %v9876_v13  ;;  %v1719_v35 = vmul.f32 0.0010283801, %v1707_v31 }
 0x607   :  { %4385 = vrot.lane.b32.xlu0 %v4354_v19, %s5470_s22  ;;  %v4248_v19 = vpop.permute.xlu1 %4247  ;;  %v4246_v37 = vpop.permute.xlu0 %4245  ;;  %v1755_v38 = vmul.f32 0.036000773, %v1707_v31  ;;  %v1864_v10 = vrot.slane %v9907_v32, 4  ;;  %v9934_v2 = vmul.f32 0.21300554, %v1707_v31  ;;  %v12871_v0 = vld [vmem:[#allocation350_spill] sm:$0xff] }
 0x608   :  { %12846 = vst [vmem:[#allocation54_spill] sm:$0xff] %v9894_v59  ;;  %v9901_v52 = vadd.f32 %v4248_v19, %v9706_v55  ;;  %v9911_v57 = vadd.f32 %v4246_v37, %v9711_v36  ;;  %v1737_v55 = vrot.slane %v1725_v44, 1  ;;  %v1727_v49 = vmul.f32 0.007598758, %v1711_v21  ;;  %v12850_v36 = vld [vmem:[#allocation276_spill] sm:$0xff]  ;;  %v12872_v50 = vld [vmem:[#allocation277_spill] sm:$0xff] }
 0x609   :  { %v9923_v37 = vadd.f32 %v12850_v36, %v9819_v22  ;;  %v1810_v44 = vrot.slane %v9904_v15, 3  ;;  %v9932_v19 = vmul.f32 0.10936069, %v1707_v31  ;;  %v9942_v36 = vmul.f32 0.26601171, %v1707_v31 }
 0x60a   :  { %12848 = vst [vmem:[#allocation55_spill] sm:$0xff] %v9901_v52  ;;  %v4310_v52 = vpop.permute.xlu2 %4309  ;;  %v9948_v42 = vmul.f32 0.10936069, %v1711_v21  ;;  %v9950_v53 = vmul.f32 0.21300554, %v1711_v21  ;;  %v10031_v45 = vadd.f32 %v12872_v50, %v12871_v0 }
 0x60b   :  { %12849 = vst [vmem:[#allocation70_spill] sm:$0xff] %v9911_v57  ;;  %v9928_v29 = vadd.f32 %v4310_v52, %v9648_v16  ;;  %v1749_v52 = vadd.f32 %v1737_v55, %v1719_v35  ;;  %v1767_v57 = vrot.slane %v1755_v38, 2  ;;  %v9953_v22 = vmul.f32 0.10936069, %v9923_v37 }
 0x60c   :  { %v1809_v31 = vrot.slane %v9932_v19, 3  ;;  %v1863_v55 = vrot.slane %v9934_v2, 4  ;;  %v1721_v38 = vmul.f32 0.0010283801, %v1711_v21  ;;  %v9965_v59 = vmul.f32 0.26601171, %v1711_v21 }
 0x60d   :  { %12851 = vst [vmem:[#allocation57_spill] sm:$0xff] %v9928_v29  ;;  %v12854_v29 = vld [vmem:[#allocation274_spill] sm:$0xff]  ;;  %v1779_v23 = vadd.f32 %v1767_v57, %v1749_v52  ;;  %v12858_v57 = vld [vmem:[#allocation44_spill] sm:$0xff] }
 0x60e   :  { %4435 = vrot.lane.b32.xlu2 %v9424_v12, %s5471_s0  ;;  %4391 = vrot.lane.b32.xlu1 %v4357_v4, %s5470_s22  ;;  %v9946_v61 = vadd.f32 %v12854_v29, %v12853_v26  ;;  %v12856_v26 = vld [vmem:[#allocation279_spill] sm:$0xff]  ;;  %v9980_v52 = vsel %vm875_vm1, %v1863_v55, %v1864_v10  ;;  %v12863_v10 = vrot.slane %v9833_v8, 3  ;;  %12873 = vst [vmem:[#allocation93_spill] sm:$0xff] %v10031_v45  ;;  %v12877_v45 = vld [vmem:[#allocation282_spill] sm:$0xff] }
 0x60f   :  { %4473 = vrot.lane.b32.xlu0 %v12852_v20, %s5472_s23  ;;  %v4302_v4 = vpop.permute.xlu1 %4301  ;;  %v1739_v20 = vrot.slane %v1727_v49, 1  ;;  %v4300_v35 = vpop.permute.xlu0 %4299  ;;  %v1713_v29 = vadd.f32 %v12856_v26, %v9854_v51  ;;  %v1757_v49 = vmul.f32 0.036000773, %v1711_v21  ;;  %v1813_v51 = vrot.slane %v9953_v22, 3 }
 0x610   :  { %v9956_v12 = vadd.f32 %v4302_v4, %v9750_v5  ;;  %v9963_v16 = vadd.f32 %v4300_v35, %v9758_v3  ;;  %v1815_v4 = vrot.slane %v9948_v42, 3  ;;  %v9974_v3 = vmul.f32 0.21300554, %v9923_v37  ;;  %v12859_v35 = vld [vmem:[#allocation278_spill] sm:$0xff] }
 0x611   :  { %v1751_v30 = vadd.f32 %v1739_v20, %v1721_v38  ;;  %v1811_v21 = vsel %vm820_vm0, %v1809_v31, %v1810_v44  ;;  %v9984_v26 = vadd.f32 %v12859_v35, %v9842_v54  ;;  %v1728_v5 = vmul.f32 0.007598758, %v1713_v29  ;;  %v12861_v20 = vld [vmem:[#allocation83_spill] sm:$0xff]  ;;  %v12862_v38 = vld [vmem:[#allocation129_spill] sm:$0xff] }
 0x612   :  { %12855 = vst [vmem:[#allocation28_spill] sm:$0xff] %v9956_v12  ;;  %v1869_v12 = vrot.slane %v9950_v53, 4  ;;  %v9990_v14 = vadd.f32 %v1811_v21, %v1779_v23  ;;  %v1769_v63 = vrot.slane %v1757_v49, 2  ;;  %v1817_v31 = vsel %vm820_vm0, %v1815_v4, %v12863_v10 }
 0x613   :  { %12857 = vst [vmem:[#allocation33_spill] sm:$0xff] %v9963_v16  ;;  %v12864_v54 = vrot.slane %v9836_v43, 4  ;;  %v12865_v23 = vrot.slane %v9800_v9, 3  ;;  %v4356_v21 = vmul.f32 0.26601171, %v12534_v11  ;;  %v1740_v10 = vrot.slane %v1728_v5, 1 }
 0x614   :  { %12860 = vst [vmem:[#allocation92_spill] sm:$0xff] %v9984_v26  ;;  %v10009_v4 = vmul.f32 0.10936069, %v9984_v26  ;;  %v1722_v35 = vmul.f32 0.0010283801, %v1713_v29  ;;  %v10057_v0 = vadd.f32 %v12877_v45, %v9882_v47 }
 0x615   :  { %v1871_v55 = vsel %vm875_vm1, %v1869_v12, %v12864_v54  ;;  %v1814_v49 = vsel %vm820_vm0, %v12865_v23, %v1813_v51  ;;  %v10012_v12 = vmul.f32 0.21300554, %v12527_v60  ;;  %v1951_v54 = vrot.slane %v9974_v3, 6  ;;  %v12869_v51 = vld [vmem:[#allocation281_spill] sm:$0xff] }
 0x616   :  { %4563 = vrot.lane.b32.xlu2 %v12858_v57, %s5474_s24  ;;  %4523 = vrot.lane.b32.xlu1 %v12861_v20, %s5473_s2  ;;  %v1923_v57 = vrot.slane %v9965_v59, 5  ;;  %v1896_v20 = vmul.f32 0.26601171, %v9923_v37  ;;  %v1867_v59 = vrot.slane %v9974_v3, 4  ;;  %v1717_v11 = vadd.f32 %v12869_v51, %v9873_v1 }
 0x617   :  { %4479 = vrot.lane.b32.xlu0 %v12862_v38, %s5472_s23  ;;  %v1781_v38 = vadd.f32 %v1769_v63, %v1751_v30  ;;  %12866 = vst [vmem:[#allocation411_spill] sm:$0xff] %v10012_v12  ;;  %v10016_v63 = vmul.f32 0.21300554, %v9984_v26  ;;  %v10019_v30 = vmul.f32 0.26601171, %v9984_v26  ;;  %v1834_v23 = vadd.f32 %v1814_v49, %v9829_v7  ;;  %v12876_v26 = vld [vmem:[#allocation280_spill] sm:$0xff] }
 0x618   :  { %v1758_v44 = vmul.f32 0.036000773, %v1713_v29  ;;  %v10024_v16 = vmul.f32 0.10936069, %v1713_v29  ;;  %v12870_v60 = vrot.slane %v9802_v39, 4  ;;  %v1921_v28 = vrot.slane %v1896_v20, 5 }
 0x619   :  { %12867 = vst [vmem:[#allocation22_spill] sm:$0xff] %v10016_v63  ;;  %v1835_v5 = vadd.f32 %v1817_v31, %v1781_v38  ;;  %v1819_v1 = vrot.slane %v10009_v4, 3  ;;  %v1752_v51 = vadd.f32 %v1740_v10, %v1722_v35  ;;  %v10035_v7 = vmul.f32 0.21300554, %v1713_v29  ;;  %v12874_v31 = vld [vmem:[#allocation42_spill] sm:$0xff]  ;;  %v4316_v38 = vpop.permute.xlu2 %4315 }
 0x61a   :  { %12868 = vst [vmem:[#allocation414_spill] sm:$0xff] %v10019_v30  ;;  %v1868_v3 = vsel %vm875_vm1, %v12870_v60, %v1867_v59  ;;  %v10037_v49 = vmul.f32 0.26601171, %v1713_v29  ;;  %v1873_v60 = vrot.slane %v10016_v63, 4  ;;  %v1730_v20 = vmul.f32 0.007598758, %v1717_v11 }
 0x61b   :  { %v1770_v59 = vrot.slane %v1758_v44, 2  ;;  %v1818_v35 = vrot.slane %v10024_v16, 3  ;;  %v10048_v29 = vadd.f32 %v4316_v38, %v9704_v18  ;;  %v1889_v50 = vadd.f32 %v1871_v55, %v1835_v5 }
 0x61c   :  { %v1872_v44 = vrot.slane %v10035_v7, 4  ;;  %v1926_v30 = vrot.slane %v10037_v49, 5  ;;  %v10063_v38 = vmul.f32 0.10936069, %v1717_v11  ;;  %v1724_v47 = vmul.f32 0.0010283801, %v1717_v11 }
 0x61d   :  { %v1782_v63 = vadd.f32 %v1770_v59, %v1752_v51  ;;  %v1820_v45 = vsel %vm820_vm0, %v1818_v35, %v1819_v1  ;;  %v12879_v55 = vrot.slane %v9839_v58, 5  ;;  %v1760_v59 = vmul.f32 0.036000773, %v1717_v11  ;;  %v12881_v35 = vld [vmem:[#allocation125_spill] sm:$0xff] }
 0x61e   :  { %4389 = vrot.lane.b32.xlu2 %v4356_v21, %s5470_s22  ;;  %4321 = vrot.lane.b32.xlu1 %v10012_v12, %s5469_s21  ;;  %v1888_v21 = vadd.f32 %v1868_v3, %v1834_v23  ;;  %v12875_v12 = vld [vmem:[#allocation356_spill] sm:$0xff]  ;;  %v1956_v23 = vrot.slane %v10035_v7, 6  ;;  %v1742_v3 = vrot.slane %v1730_v20, 1  ;;  %v10073_v18 = vmul.f32 0.10936069, %v10057_v0  ;;  %v12880_v20 = vld [vmem:[#allocation77_spill] sm:$0xff] }
 0x61f   :  { %4567 = vrot.lane.b32.xlu0 %v12874_v31, %s5474_s24  ;;  %v10053_v31 = vadd.f32 %v12876_v26, %v12875_v12  ;;  %v12878_v26 = vrot.slane %v9804_v40, 5  ;;  %v1925_v5 = vsel %vm930_vm2, %v1923_v57, %v12879_v55  ;;  %v1887_v40 = vadd.f32 %v9980_v52, %v9990_v14  ;;  %s5311_s21 = sshll.u32 %s11445_s3, 4  ;;  %s5312_s21 = int_to_ptr.hbm [resolvable:$true] %s5311_s21 }
 0x620   :  { %v1943_v10 = vadd.f32 %v1925_v5, %v1889_v50  ;;  %v10082_v1 = vsel %vm875_vm1, %v1872_v44, %v1873_v60  ;;  %v10084_v58 = vmul.f32 0.21300554, %v1717_v11  ;;  %v10086_v57 = vmul.f32 0.26601171, %v1717_v11  ;;  %v4308_v14 = vpop.permute.xlu1 %4307 }
 0x621   :  { %v1922_v12 = vsel %vm930_vm2, %v12878_v26, %v1921_v28  ;;  %v10079_v28 = vadd.f32 %v1820_v45, %v1782_v63  ;;  %v1824_v50 = vrot.slane %v10063_v38, 3  ;;  %v4376_v26 = vpop.permute.xlu2 %4375  ;;  %v12882_v52 = vrot.slane %v9802_v39, 6 }
 0x622   :  { %v1942_v51 = vadd.f32 %v1922_v12, %v1888_v21  ;;  %v1754_v21 = vadd.f32 %v1742_v3, %v1724_v47  ;;  %v12883_v60 = vrot.slane %v9916_v17, 5  ;;  %v12884_v11 = vrot.slane %v9942_v36, 5 }
 0x623   :  { %v1952_v63 = vsel %vm961_vm3, %v12882_v52, %v1951_v54  ;;  %v4409_v12 = vadd.f32 %v4376_v26, %v9790_v34  ;;  %v10103_v45 = vadd.f32 %v4308_v14, %v9793_v6  ;;  %v12885_v3 = vrot.slane %v9836_v43, 6 }
 0x624   :  { %v1919_v44 = vsel %vm930_vm2, %v12884_v11, %v12883_v60  ;;  %v12886_v47 = vrot.slane %v9950_v53, 6  ;;  %v1972_v55 = vadd.f32 %v1952_v63, %v1942_v51  ;;  %v1822_v54 = vrot.slane %v10073_v18, 3 }
 0x625   :  { %v1941_v5 = vadd.f32 %v1919_v44, %v1887_v40  ;;  %v1878_v34 = vrot.slane %v10084_v58, 4  ;;  %v1932_v6 = vrot.slane %v10086_v57, 5  ;;  %v12887_v53 = vrot.slane %v9885_v48, 3 }
 0x626   :  { %4517 = vrot.lane.b32.xlu2 %v12880_v20, %s5473_s2  ;;  %4477 = vrot.lane.b32.xlu1 %v12881_v35, %s5472_s23  ;;  %v1955_v39 = vsel %vm961_vm3, %v12886_v47, %v12885_v3  ;;  %v1772_v20 = vrot.slane %v1760_v59, 2  ;;  %v10117_v35 = vmul.f32 0.21300554, %v10057_v0  ;;  %v1962_v51 = vrot.slane %v10084_v58, 6  ;;  %v12895_v3 = vld [vmem:[#allocation128_spill] sm:$0xff]  ;;  %v12964_v58 = vld [vmem:[#allocation297_spill] sm:$0xff] }
 0x627   :  { %4433 = vrot.lane.b32.xlu0 %v9427_v33, %s5471_s0  ;;  %v4306_v33 = vpop.permute.xlu0 %4305  ;;  %v1973_v36 = vadd.f32 %v1955_v39, %v1943_v10  ;;  %v1826_v43 = vsel %vm820_vm0, %v1824_v50, %v12887_v53  ;;  %v1992_v26 = vrot.slane %v10063_v38, 7  ;;  %v12889_v10 = vrot.slane %v9800_v9, 7 }
 0x628   :  { %v10112_v17 = vadd.f32 %v4306_v33, %v9797_v24  ;;  %v12888_v24 = vrot.slane %v9953_v22, 7  ;;  %v10130_v40 = vmul.f32 0.26601171, %v10057_v0  ;;  %v12890_v14 = vrot.slane %v9833_v8, 7 }
 0x629   :  { %v12891_v52 = vrot.slane %v9948_v42, 7  ;;  %v12892_v60 = vrot.slane %v9907_v32, 6  ;;  %v12893_v11 = vrot.slane %v9934_v2, 6  ;;  %v1784_v44 = vadd.f32 %v1772_v20, %v1754_v21  ;;  %v12897_v2 = vld [vmem:[#allocation84_spill] sm:$0xff] }
 0x62a   :  { %v1982_v59 = vsel %vm992_vm4, %v12889_v10, %v12888_v24  ;;  %v12894_v9 = vrot.slane %v9847_v56, 3  ;;  %v12896_v42 = vrot.slane %v9888_v25, 4  ;;  %v1876_v32 = vrot.slane %v10117_v35, 4 }
 0x62b   :  { %v1985_v63 = vsel %vm992_vm4, %v12891_v52, %v12890_v14  ;;  %v2002_v50 = vadd.f32 %v1982_v59, %v1972_v55  ;;  %v1949_v22 = vsel %vm961_vm3, %v12893_v11, %v12892_v60  ;;  %v2008_v21 = vmul.f32 0.036000773, %v9923_v37 }
 0x62c   :  { %v1823_v33 = vsel %vm820_vm0, %v12894_v9, %v1822_v54  ;;  %v2003_v8 = vadd.f32 %v1985_v63, %v1973_v36  ;;  %v1971_v47 = vadd.f32 %v1949_v22, %v1941_v5  ;;  %v10150_v39 = vsel %vm875_vm1, %v1878_v34, %v12896_v42  ;;  %v4424_v5 = vpop.permute.xlu2 %4423 }
 0x62d   :  { %v2020_v55 = vmul.f32 0.007598758, %v9923_v37  ;;  %v1960_v54 = vrot.slane %v10117_v35, 6  ;;  %v1990_v36 = vrot.slane %v10073_v18, 7  ;;  %v2009_v20 = vmul.f32 0.036000773, %v9809_v62 }
 0x62e   :  { %4483 = vrot.lane.b32.xlu2 %v12895_v3, %s5472_s23  ;;  %4439 = vrot.lane.b32.xlu1 %v9755_v27, %s5471_s0  ;;  %v2021_v34 = vmul.f32 0.007598758, %v9809_v62  ;;  %v1837_v53 = vadd.f32 %v1823_v33, %v9896_v41  ;;  %v10164_v24 = vadd.f32 %v4424_v5, %v4409_v12  ;;  %v2014_v27 = vadd.f32 %v2008_v21, %v2002_v50  ;;  %v12907_v21 = vld [vmem:[#allocation286_spill] sm:$0xff]  ;;  %v12908_v5 = vld [vmem:[#allocation351_spill] sm:$0xff] }
 0x62f   :  { %4521 = vrot.lane.b32.xlu0 %v12897_v2, %s5473_s2  ;;  %v12898_v10 = vrot.slane %v9904_v15, 7  ;;  %v12899_v59 = vrot.slane %v9932_v19, 7  ;;  %v1838_v52 = vadd.f32 %v1826_v43, %v1784_v44  ;;  %v1930_v63 = vrot.slane %v10130_v40, 5  ;;  %v12901_v40 = vld [vmem:[#allocation362_spill] sm:$0xff]  ;;  %v12902_v44 = vld [vmem:[#allocation283_spill] sm:$0xff] }
 0x630   :  { %v2015_v60 = vadd.f32 %v2009_v20, %v2003_v8  ;;  %v12900_v22 = vrot.slane %v9862_v46, 4  ;;  %v2051_v41 = vmul.f32 0.0010283801, %v9809_v62  ;;  %v2032_v12 = vrot.slane %v2020_v55, 1  ;;  %v12903_v8 = vld [vmem:[#allocation233_spill] sm:$0xff]  ;;  %v12905_v62 = vld [vmem:[#allocation346_spill] sm:$0xff] }
 0x631   :  { %v1979_v14 = vsel %vm992_vm4, %v12899_v59, %v12898_v10  ;;  %v2050_v50 = vmul.f32 0.0010283801, %v9923_v37  ;;  %v2033_v33 = vrot.slane %v2021_v34, 1  ;;  %v2007_v15 = vmul.f32 0.036000773, %v9876_v13  ;;  %v12909_v20 = vld [vmem:[#allocation287_spill] sm:$0xff] }
 0x632   :  { %v2001_v11 = vadd.f32 %v1979_v14, %v1971_v47  ;;  %v1877_v9 = vsel %vm875_vm1, %v12900_v22, %v1876_v32  ;;  %v2019_v19 = vmul.f32 0.007598758, %v9876_v13  ;;  %v1890_v43 = vadd.f32 %v10082_v1, %v10079_v28  ;;  %v12904_v47 = vld [vmem:[#allocation284_spill] sm:$0xff]  ;;  %v12906_v32 = vld [vmem:[#allocation285_spill] sm:$0xff]  ;;  %v12910_v1 = vld [vmem:[#allocation218_spill] sm:$0xff] }
 0x633   :  { %v10183_v3 = vadd.f32 %v12902_v44, %v12901_v40  ;;  %v10187_v42 = vadd.f32 %v12904_v47, %v12903_v8  ;;  %v10191_v2 = vadd.f32 %v12906_v32, %v12905_v62  ;;  %v2044_v37 = vadd.f32 %v2032_v12, %v2014_v27  ;;  %v12911_v59 = vld [vmem:[#allocation352_spill] sm:$0xff]  ;;  %v12914_v27 = vld [vmem:[#allocation106_spill] sm:$0xff]  ;;  %v12917_v32 = vld [vmem:[#allocation93_spill] sm:$0xff] }
 0x634   :  { %v10195_v55 = vadd.f32 %v12907_v21, %v9946_v61  ;;  %v10199_v28 = vadd.f32 %v12909_v20, %v12908_v5  ;;  %v2045_v34 = vadd.f32 %v2033_v33, %v2015_v60  ;;  %v2013_v10 = vadd.f32 %v2007_v15, %v2001_v11  ;;  %v12912_v14 = vld [vmem:[#allocation288_spill] sm:$0xff]  ;;  %v12915_v44 = vld [vmem:[#allocation414_spill] sm:$0xff]  ;;  %v4384_v11 = vpop.permute.xlu2 %4383  ;;  %v12918_v21 = vld [vmem:[#allocation289_spill] sm:$0xff] }
 0x635   :  { %v10205_v22 = vadd.f32 %v12912_v14, %v12911_v59  ;;  %v12913_v40 = vld [vmem:[#allocation52_spill] sm:$0xff]  ;;  %v2062_v61 = vrot.slane %v2050_v50, 2  ;;  %v2049_v12 = vmul.f32 0.0010283801, %v9876_v13  ;;  %v12916_v8 = vrot.slane %v12915_v44, 5  ;;  %v12919_v20 = vld [vmem:[#allocation357_spill] sm:$0xff]  ;;  %v4314_v13 = vpop.permute.xlu1 %4313  ;;  %v4312_v59 = vpop.permute.xlu0 %4311 }
 0x636   :  { %4623 = vrot.lane.b32.xlu2 %v12910_v1, %s5475_s25  ;;  %4571 = vrot.lane.b32.xlu1 %v12913_v40, %s5474_s24  ;;  %v2063_v33 = vrot.slane %v2051_v41, 2  ;;  %v2031_v15 = vrot.slane %v2019_v19, 1  ;;  %v1891_v62 = vadd.f32 %v1877_v9, %v1837_v53  ;;  %v10219_v5 = vadd.f32 %v12918_v21, %v12917_v32  ;;  %v12920_v1 = vld [vmem:[#allocation290_spill] sm:$0xff]  ;;  %v12925_v53 = vld [vmem:[#allocation59_spill] sm:$0xff] }
 0x637   :  { %4527 = vrot.lane.b32.xlu0 %v12914_v27, %s5473_s2  ;;  %v1928_v60 = vsel %vm930_vm2, %v1926_v30, %v12916_v8  ;;  %v10223_v50 = vadd.f32 %v12920_v1, %v12919_v20  ;;  %v10227_v49 = vadd.f32 %v2062_v61, %v2044_v37  ;;  %v12922_v30 = vld [vmem:[#allocation226_spill] sm:$0xff]  ;;  %v4341_v9 = vadd.f32 %v4312_v59, %v12925_v53  ;;  %v12930_v61 = vld [vmem:[#allocation159_spill] sm:$0xff] }
 0x638   :  { %v1944_v47 = vadd.f32 %v1928_v60, %v1890_v43  ;;  %v10230_v14 = vmul.f32 0.007598758, %v12922_v30  ;;  %v12924_v41 = vld [vmem:[#allocation158_spill] sm:$0xff]  ;;  %v10236_v43 = vadd.f32 %v2063_v33, %v2045_v34  ;;  %v2043_v40 = vadd.f32 %v2031_v15, %v2013_v10  ;;  %v12933_v33 = vld [vmem:[#allocation291_spill] sm:$0xff] }
 0x639   :  { %12921 = vst [vmem:[#allocation417_spill] sm:$0xff] %v10227_v49  ;;  %v10233_v19 = vadd.f32 %v4314_v13, %v12924_v41  ;;  %v12927_v27 = vld [vmem:[#allocation386_spill] sm:$0xff]  ;;  %v2061_v8 = vrot.slane %v2049_v12, 2  ;;  %v12931_v21 = vrot.slane %v12930_v61, 5  ;;  %v10247_v1 = vadd.f32 %v4384_v11, %v4341_v9  ;;  %v12941_v41 = vld [vmem:[#allocation139_spill] sm:$0xff] }
 0x63a   :  { %12923 = vst [vmem:[#allocation380_spill] sm:$0xff] %v10230_v14  ;;  %v4358_v44 = vmul.f32 0.26601171, %v12927_v27  ;;  %v12928_v60 = vld [vmem:[#allocation22_spill] sm:$0xff]  ;;  %v1892_v34 = vadd.f32 %v10150_v39, %v1838_v52  ;;  %v10254_v12 = vmul.f32 %v10227_v49, %v10227_v49  ;;  %v10257_v7 = vmul.f32 0.036000773, %v12922_v30 }
 0x63b   :  { %12926 = vst [vmem:[#allocation420_spill] sm:$0xff] %v10236_v43  ;;  %v12929_v32 = vrot.slane %v12928_v60, 6  ;;  %v1931_v20 = vsel %vm930_vm2, %v12931_v21, %v1930_v63  ;;  %v12932_v10 = vld [vmem:[#allocation358_spill] sm:$0xff]  ;;  %v12937_v63 = vld [vmem:[#allocation147_spill] sm:$0xff]  ;;  %v10266_v11 = vmul.f32 %v10236_v43, %v10236_v43  ;;  %v10268_v39 = vadd.f32 %v2061_v8, %v2043_v40  ;;  %v12940_v52 = vld [vmem:[#allocation92_spill] sm:$0xff] }
 0x63c   :  { %v1945_v59 = vadd.f32 %v1931_v20, %v1891_v62  ;;  %v2157_v15 = vadd.f32 %v12933_v33, %v12932_v10  ;;  %12934 = vst [vmem:[#allocation18_spill] sm:$0xff] %v10254_v12  ;;  %v2022_v62 = vmul.f32 0.007598758, %v12940_v52  ;;  %v12943_v53 = vrot.slane %v10024_v16, 7  ;;  %v12946_v60 = vld [vmem:[#allocation54_spill] sm:$0xff]  ;;  %v12948_v20 = vld [vmem:[#allocation292_spill] sm:$0xff] }
 0x63d   :  { %v1958_v37 = vsel %vm961_vm3, %v1956_v23, %v12929_v32  ;;  %12935 = vst [vmem:[#allocation421_spill] sm:$0xff] %v10257_v7  ;;  %v10260_v23 = vmul.f32 0.0010283801, %v12922_v30  ;;  %v12942_v30 = vrot.slane %v10009_v4, 7  ;;  %v10281_v27 = vmul.f32 0.0010283801, %v12940_v52 }
 0x63e   :  { %v1974_v13 = vadd.f32 %v1958_v37, %v1944_v47  ;;  %4437 = vrot.lane.b32.xlu2 %v12937_v63, %s5471_s0  ;;  %12938 = vst [vmem:[#allocation422_spill] sm:$0xff] %v10266_v11  ;;  %v2010_v47 = vmul.f32 0.036000773, %v12940_v52  ;;  %4393 = vrot.lane.b32.xlu1 %v4358_v44, %s5470_s22  ;;  %v12945_v40 = vrot.slane %v9862_v46, 6  ;;  %v12947_v44 = vrot.slane %v12946_v60, 5  ;;  %v4472_v4 = vpop.permute.xlu2 %4471  ;;  %v4372_v46 = vpop.permute.xlu1 %4371  ;;  %v12950_v63 = vld [vmem:[#allocation58_spill] sm:$0xff] }
 0x63f   :  { %12936 = vst [vmem:[#allocation98_spill] sm:$0xff] %v10260_v23  ;;  %4627 = vrot.lane.b32.xlu0 %v12941_v41, %s5475_s25  ;;  %v1988_v9 = vsel %vm992_vm4, %v12943_v53, %v12942_v30  ;;  %v2231_v10 = vadd.f32 %v12948_v20, %v10053_v31  ;;  %v10297_v35 = vadd.f32 %v4472_v4, %v10164_v24  ;;  %v10300_v33 = vstv %s10225_s1  ;;  %v12955_v24 = vld [vmem:[#allocation363_spill] sm:$0xff]  ;;  %v12956_v30 = vld [vmem:[#allocation293_spill] sm:$0xff]  ;;  %s5476_s22 = smov [#allocation7]  }
 0x640   :  { %12939 = vst [vmem:[#allocation425_spill] sm:$0xff] %v10268_v39  ;;  %v1961_v8 = vsel %vm961_vm3, %v12945_v40, %v1960_v54  ;;  %v1934_v32 = vsel %vm930_vm2, %v1932_v6, %v12947_v44  ;;  %v2004_v37 = vadd.f32 %v1988_v9, %v1974_v13  ;;  %v4318_v54 = vpop.permute.xlu0 %4317  ;;  %v5112_v57 = vadd.f32 %v10254_v12, %v12950_v63  ;;  %v12951_v6 = vld [vmem:[#allocation33_spill] sm:$0xff]  ;;  %v12952_v13 = vld [vmem:[#allocation70_spill] sm:$0xff]  ;;  %v12957_v9 = vld [vmem:[#allocation364_spill] sm:$0xff] }
 0x641   :  { %12944 = vst [vmem:[#allocation88_spill] sm:$0xff] %v10281_v27  ;;  %v1975_v16 = vadd.f32 %v1961_v8, %v1945_v59  ;;  %v1946_v61 = vadd.f32 %v1934_v32, %v1892_v34  ;;  %v4407_v52 = vadd.f32 %v4372_v46, %v12951_v6  ;;  %v10306_v59 = vadd.f32 %v4318_v54, %v12952_v13  ;;  %v12953_v34 = vld [vmem:[#allocation45_spill] sm:$0xff]  ;;  %v12958_v40 = vld [vmem:[#allocation294_spill] sm:$0xff]  ;;  %v12961_v13 = vld [vmem:[#allocation295_spill] sm:$0xff] }
 0x642   :  { %12949 = vst [vmem:[#allocation423_spill] sm:$0xff] %v10300_v33  ;;  %v5113_v41 = vadd.f32 %v10266_v11, %v12953_v34  ;;  %v10312_v31 = vmul.f32 %v10268_v39, %v10268_v39  ;;  %v2161_v53 = vadd.f32 %v12956_v30, %v12955_v24  ;;  %v2160_v8 = vadd.f32 %v12958_v40, %v12957_v9  ;;  %v13057_v39 = vld [vmem:[#allocation383_spill] sm:$0xff] }
 0x643   :  { %v12959_v60 = vrot.slane %v9847_v56, 7  ;;  %v12960_v32 = vrot.slane %v9888_v25, 6  ;;  %v2016_v20 = vadd.f32 %v2010_v47, %v2004_v37  ;;  %v2034_v46 = vrot.slane %v2022_v62, 1  ;;  %v12963_v25 = vld [vmem:[#allocation296_spill] sm:$0xff]  ;;  %v12965_v47 = vld [vmem:[#allocation43_spill] sm:$0xff] }
 0x644   :  { %12954 = vst [vmem:[#allocation23_spill] sm:$0xff] %v10312_v31  ;;  %v2234_v24 = vadd.f32 %v12961_v13, %v10183_v3  ;;  %v10331_v30 = vadd.f32 %v5112_v57, %v10300_v33  ;;  %v2011_v18 = vmul.f32 0.036000773, %v10057_v0  ;;  %v10342_v62 = vadd.f32 %v5113_v41, %v10300_v33  ;;  %v12967_v3 = vld [vmem:[#allocation35_spill] sm:$0xff]  ;;  %v12995_v56 = vld [vmem:[#allocation316_spill] sm:$0xff]  ;;  %v13096_v33 = vld [vmem:[#allocation142_spill] sm:$0xff] }
 0x645   :  { %v1991_v44 = vsel %vm992_vm4, %v12959_v60, %v1990_v36  ;;  %v1964_v4 = vsel %vm961_vm3, %v1962_v51, %v12960_v32  ;;  %v2224_v36 = vadd.f32 %v12963_v25, %v10187_v42  ;;  %v2223_v51 = vadd.f32 %v12964_v58, %v10191_v2  ;;  %v12970_v57 = vld [vmem:[#allocation299_spill] sm:$0xff]  ;;  %v12972_v2 = vld [vmem:[#allocation136_spill] sm:$0xff]  ;;  %v12979_v25 = vld [vmem:[#allocation301_spill] sm:$0xff] }
 0x646   :  { %v2005_v54 = vadd.f32 %v1991_v44, %v1975_v16  ;;  %v1976_v6 = vadd.f32 %v1964_v4, %v1946_v61  ;;  %12962 = vst [vmem:[#allocation424_spill] sm:$0xff] %v10331_v30  ;;  %4565 = vrot.lane.b32.xlu2 %v12965_v47, %s5474_s24  ;;  %v10346_v37 = vadd.f32 %v10312_v31, %v12967_v3  ;;  %v12969_v16 = vld [vmem:[#allocation298_spill] sm:$0xff]  ;;  %v12971_v42 = vld [vmem:[#allocation15_spill] sm:$0xff]  ;;  %v10357_v40 = vmul.f32 0.007598758, %v10057_v0  ;;  %v4426_v32 = vpop.permute.xlu2 %4425  ;;  %v13098_v3 = vld [vmem:[#allocation121_spill] sm:$0xff] }
 0x647   :  { %12966 = vst [vmem:[#allocation428_spill] sm:$0xff] %v10342_v62  ;;  %v2297_v61 = vadd.f32 %v12969_v16, %v10195_v55  ;;  %v2227_v9 = vadd.f32 %v12970_v57, %v10199_v28  ;;  %4525 = vrot.lane.b32.xlu1 %v12971_v42, %s5473_s2  ;;  %4481 = vrot.lane.b32.xlu0 %v12972_v2, %s5472_s23  ;;  %v12974_v41 = vrot.slane %v9885_v48, 7  ;;  %v12975_v55 = vld [vmem:[#allocation300_spill] sm:$0xff]  ;;  %v12980_v47 = vld [vmem:[#allocation302_spill] sm:$0xff]  ;;  %v12981_v16 = vld [vmem:[#allocation303_spill] sm:$0xff]  ;;  %v4420_v42 = vpop.permute.xlu1 %4419 }
 0x648   :  { %12968 = vst [vmem:[#allocation26_spill] sm:$0xff] %v10346_v37  ;;  %v2226_v44 = vadd.f32 %v12975_v55, %v10205_v22  ;;  %v10366_v28 = vadd.f32 %v2034_v46, %v2016_v20  ;;  %v10368_v4 = vadd.f32 %v2011_v18, %v2005_v54  ;;  %v2300_v58 = vadd.f32 %v12979_v25, %v10219_v5  ;;  %v12982_v57 = vld [vmem:[#allocation304_spill] sm:$0xff]  ;;  %v4380_v2 = vpop.permute.xlu0 %4379  ;;  %v12983_v22 = vld [vmem:[#allocation305_spill] sm:$0xff]  ;;  %v12984_v20 = vld [vmem:[#allocation310_spill] sm:$0xff] }
 0x649   :  { %12973 = vst [vmem:[#allocation426_spill] sm:$0xff] %v10357_v40  ;;  %v1994_v60 = vsel %vm992_vm4, %v1992_v26, %v12974_v41  ;;  %v2230_v48 = vadd.f32 %v12980_v47, %v10223_v50  ;;  %v2229_v38 = vadd.f32 %v12981_v16, %v2157_v15  ;;  %v2303_v26 = vadd.f32 %v12982_v57, %v2231_v10  ;;  %v12985_v18 = vld [vmem:[#allocation306_spill] sm:$0xff]  ;;  %v12987_v50 = vld [vmem:[#allocation308_spill] sm:$0xff]  ;;  %v12988_v15 = vld [vmem:[#allocation309_spill] sm:$0xff] }
 0x64a   :  { %12976 = vst [vmem:[#allocation27_spill] sm:$0xff] %v10366_v28  ;;  %v10370_v13 = vadd.f32 %v1994_v60, %v1976_v6  ;;  %v2233_v41 = vadd.f32 %v12983_v22, %v2161_v53  ;;  %v2369_v46 = vadd.f32 %v12984_v20, %v2297_v61  ;;  %v10380_v54 = vadd.f32 %v4420_v42, %v4407_v52  ;;  %v12986_v60 = vld [vmem:[#allocation307_spill] sm:$0xff]  ;;  %v12990_v57 = vld [vmem:[#allocation312_spill] sm:$0xff]  ;;  %v12991_v53 = vld [vmem:[#allocation313_spill] sm:$0xff] }
 0x64b   :  { %12977 = vst [vmem:[#allocation427_spill] sm:$0xff] %v10368_v4  ;;  %v10383_v6 = vadd.f32 %v4380_v2, %v10103_v45  ;;  %v2232_v5 = vadd.f32 %v12985_v18, %v2160_v8  ;;  %v2306_v55 = vadd.f32 %v12986_v60, %v2234_v24  ;;  %v2296_v25 = vadd.f32 %v12987_v50, %v2224_v36  ;;  %v12989_v10 = vld [vmem:[#allocation311_spill] sm:$0xff]  ;;  %v12992_v61 = vld [vmem:[#allocation322_spill] sm:$0xff]  ;;  %v12996_v18 = vld [vmem:[#allocation317_spill] sm:$0xff] }
 0x64c   :  { %12978 = vst [vmem:[#allocation431_spill] sm:$0xff] %v10370_v13  ;;  %v2295_v47 = vadd.f32 %v12988_v15, %v2223_v51  ;;  %v2299_v16 = vadd.f32 %v12989_v10, %v2227_v9  ;;  %v2298_v21 = vadd.f32 %v12990_v57, %v2226_v44  ;;  %v2372_v22 = vadd.f32 %v12991_v53, %v2300_v58  ;;  %v12993_v42 = vld [vmem:[#allocation314_spill] sm:$0xff]  ;;  %v12994_v45 = vld [vmem:[#allocation315_spill] sm:$0xff]  ;;  %v12999_v15 = vld [vmem:[#allocation320_spill] sm:$0xff] }
 0x64d   :  { %v2441_v52 = vadd.f32 %v12992_v61, %v2369_v46  ;;  %v2302_v20 = vadd.f32 %v12993_v42, %v2230_v48  ;;  %v2301_v2 = vadd.f32 %v12994_v45, %v2229_v38  ;;  %v2375_v8 = vadd.f32 %v12995_v56, %v2303_v26  ;;  %v12997_v60 = vld [vmem:[#allocation318_spill] sm:$0xff]  ;;  %v12998_v50 = vld [vmem:[#allocation319_spill] sm:$0xff]  ;;  %v13002_v46 = vld [vmem:[#allocation321_spill] sm:$0xff] }
 0x64e   :  { %v2305_v24 = vadd.f32 %v12996_v18, %v2233_v41  ;;  %v2304_v36 = vadd.f32 %v12997_v60, %v2232_v5  ;;  %v2378_v51 = vadd.f32 %v12998_v50, %v2306_v55  ;;  %v2368_v9 = vadd.f32 %v12999_v15, %v2296_v25  ;;  %v13000_v10 = vld [vmem:[#allocation334_spill] sm:$0xff]  ;;  %v13001_v58 = vld [vmem:[#allocation103_spill] sm:$0xff]  ;;  %v13004_v38 = vld [vmem:[#allocation324_spill] sm:$0xff]  ;;  %v4432_v60 = vpop.permute.xlu2 %4431 }
 0x64f   :  { %v2489_v44 = vadd.f32 %v13000_v10, %v2441_v52  ;;  %4531 = vrot.lane.b32.xlu2 %v13001_v58, %s5473_s2  ;;  %v2367_v57 = vadd.f32 %v13002_v46, %v2295_v47  ;;  %v13003_v48 = vld [vmem:[#allocation323_spill] sm:$0xff]  ;;  %v2370_v61 = vadd.f32 %v13004_v38, %v2298_v21  ;;  %v13005_v56 = vld [vmem:[#allocation132_spill] sm:$0xff]  ;;  %v13006_v26 = vld [vmem:[#allocation53_spill] sm:$0xff]  ;;  %v10419_v46 = vadd.f32 %v4432_v60, %v10247_v1 }
 0x650   :  { %v2371_v53 = vadd.f32 %v13003_v48, %v2299_v16  ;;  %4487 = vrot.lane.b32.xlu1 %v13005_v56, %s5472_s23  ;;  %4569 = vrot.lane.b32.xlu0 %v13006_v26, %s5474_s24  ;;  %v13007_v5 = vld [vmem:[#allocation325_spill] sm:$0xff]  ;;  %v13008_v25 = vld [vmem:[#allocation326_spill] sm:$0xff]  ;;  %v13009_v42 = vld [vmem:[#allocation327_spill] sm:$0xff]  ;;  %v4378_v48 = vpop.permute.xlu1 %4377  ;;  %v4374_v38 = vpop.permute.xlu0 %4373 }
 0x651   :  { %v2444_v55 = vadd.f32 %v13007_v5, %v2372_v22  ;;  %v2374_v52 = vadd.f32 %v13008_v25, %v2302_v20  ;;  %v2373_v45 = vadd.f32 %v13009_v42, %v2301_v2  ;;  %v13010_v18 = vld [vmem:[#allocation247_spill] sm:$0xff]  ;;  %v13011_v16 = vld [vmem:[#allocation328_spill] sm:$0xff]  ;;  %v13012_v21 = vld [vmem:[#allocation329_spill] sm:$0xff]  ;;  %v4410_v2 = vadd.f32 %v4378_v48, %v10112_v17 }
 0x652   :  { %v2537_v47 = vadd.f32 %v13010_v18, %v2489_v44  ;;  %v2447_v50 = vadd.f32 %v13011_v16, %v2375_v8  ;;  %v2377_v15 = vadd.f32 %v13012_v21, %v2305_v24  ;;  %v13013_v10 = vld [vmem:[#allocation330_spill] sm:$0xff]  ;;  %v13014_v56 = vld [vmem:[#allocation331_spill] sm:$0xff]  ;;  %v13015_v26 = vld [vmem:[#allocation369_spill] sm:$0xff] }
 0x653   :  { %v2376_v58 = vadd.f32 %v13013_v10, %v2304_v36  ;;  %v2450_v22 = vadd.f32 %v13014_v56, %v2378_v51  ;;  %v13016_v5 = vld [vmem:[#allocation28_spill] sm:$0xff]  ;;  %v13018_v42 = vld [vmem:[#allocation333_spill] sm:$0xff]  ;;  %v13019_v18 = vld [vmem:[#allocation335_spill] sm:$0xff] }
 0x654   :  { %v2585_v20 = vadd.f32 %v13015_v26, %v2537_v47  ;;  %v10425_v44 = vadd.f32 %v4374_v38, %v13016_v5  ;;  %v13017_v25 = vld [vmem:[#allocation332_spill] sm:$0xff]  ;;  %v2439_v24 = vadd.f32 %v13018_v42, %v2367_v57  ;;  %v2443_v36 = vadd.f32 %v13019_v18, %v2371_v53  ;;  %v13021_v60 = vld [vmem:[#allocation337_spill] sm:$0xff]  ;;  %v13022_v10 = vld [vmem:[#allocation338_spill] sm:$0xff] }
 0x655   :  { %v2440_v8 = vadd.f32 %v13017_v25, %v2368_v9  ;;  %v13020_v16 = vld [vmem:[#allocation336_spill] sm:$0xff]  ;;  %v2492_v21 = vadd.f32 %v13021_v60, %v2444_v55  ;;  %v2446_v41 = vadd.f32 %v13022_v10, %v2374_v52  ;;  %v13023_v51 = vld [vmem:[#allocation387_spill] sm:$0xff]  ;;  %v10434_v47 = vadd.f32 %v4426_v32, %v4410_v2  ;;  %v13026_v5 = vld [vmem:[#allocation341_spill] sm:$0xff] }
 0x656   :  { %v2442_v1 = vadd.f32 %v13020_v16, %v2370_v61  ;;  %v2633_v56 = vadd.f32 %v13023_v51, %v2585_v20  ;;  %v13024_v17 = vld [vmem:[#allocation339_spill] sm:$0xff]  ;;  %v13025_v38 = vld [vmem:[#allocation340_spill] sm:$0xff]  ;;  %v2449_v9 = vadd.f32 %v13026_v5, %v2377_v15  ;;  %v13027_v25 = vld [vmem:[#allocation342_spill] sm:$0xff] }
 0x657   :  { %v2445_v48 = vadd.f32 %v13024_v17, %v2373_v45  ;;  %v2495_v26 = vadd.f32 %v13025_v38, %v2447_v50  ;;  %v2448_v57 = vadd.f32 %v13027_v25, %v2376_v58  ;;  %v13028_v42 = vld [vmem:[#allocation243_spill] sm:$0xff]  ;;  %v13030_v16 = vld [vmem:[#allocation344_spill] sm:$0xff]  ;;  %v13034_v45 = vld [vmem:[#allocation249_spill] sm:$0xff] }
 0x658   :  { %v2498_v53 = vadd.f32 %v13028_v42, %v2450_v22  ;;  %v13029_v18 = vld [vmem:[#allocation343_spill] sm:$0xff]  ;;  %v2487_v55 = vadd.f32 %v13030_v16, %v2439_v24  ;;  %v13033_v32 = vld [vmem:[#allocation248_spill] sm:$0xff]  ;;  %v2490_v10 = vadd.f32 %v13034_v45, %v2442_v1  ;;  %v13036_v15 = vld [vmem:[#allocation150_spill] sm:$0xff]  ;;  %v10454_v22 = vmul.f32 0.0010283801, %v10057_v0  ;;  %v4520_v1 = vpop.permute.xlu2 %4519  ;;  %v4468_v0 = vpop.permute.xlu1 %4467 }
 0x659   :  { %v2488_v61 = vadd.f32 %v13029_v18, %v2440_v8  ;;  %v13031_v60 = vld [vmem:[#allocation399_spill] sm:$0xff]  ;;  %v2491_v2 = vadd.f32 %v13033_v32, %v2443_v36  ;;  %4631 = vrot.lane.b32.xlu1 %v13036_v15, %s5475_s25  ;;  %v13039_v8 = vld [vmem:[#allocation348_spill] sm:$0xff]  ;;  %v13041_v38 = vld [vmem:[#allocation353_spill] sm:$0xff]  ;;  %v10464_v32 = vadd.f32 %v4520_v1, %v10297_v35  ;;  %v4428_v45 = vpop.permute.xlu0 %4427 }
 0x65a   :  { %v2693_v52 = vadd.f32 %v13031_v60, %v2633_v56  ;;  %v13032_v20 = vld [vmem:[#allocation411_spill] sm:$0xff]  ;;  %13038 = vst [vmem:[#allocation36_spill] sm:$0xff] %v10454_v22  ;;  %v2494_v24 = vadd.f32 %v13039_v8, %v2446_v41  ;;  %v13040_v56 = vld [vmem:[#allocation349_spill] sm:$0xff]  ;;  %v2543_v5 = vadd.f32 %v13041_v38, %v2495_v26  ;;  %v13042_v36 = vld [vmem:[#allocation354_spill] sm:$0xff]  ;;  %v10471_v26 = vadd.f32 %v4428_v45, %v10383_v6 }
 0x65b   :  { %4441 = vrot.lane.b32.xlu2 %v13032_v20, %s5471_s0  ;;  %v13035_v50 = vld [vmem:[#allocation347_spill] sm:$0xff]  ;;  %v2493_v17 = vadd.f32 %v13040_v56, %v2445_v48  ;;  %v2497_v25 = vadd.f32 %v13042_v36, %v2449_v9  ;;  %v13045_v60 = vld [vmem:[#allocation360_spill] sm:$0xff]  ;;  %v10468_v48 = vadd.f32 %v4468_v0, %v10380_v54  ;;  %v13047_v9 = vld [vmem:[#allocation370_spill] sm:$0xff]  ;;  %s5309_s0 = sshll.u32 %s5476_s22, 4  ;;  %s5310_s0 = int_to_ptr.vmem [resolvable:$true] %s5309_s0 }
 0x65c   :  { %v2540_v51 = vadd.f32 %v13035_v50, %v2492_v21  ;;  %v13037_v58 = vld [vmem:[#allocation63_spill] sm:$0xff]  ;;  %v2536_v20 = vadd.f32 %v13045_v60, %v2488_v61  ;;  %v13046_v50 = vld [vmem:[#allocation361_spill] sm:$0xff]  ;;  %v2710_v15 = vmul.f32 0.007598758, %v2693_v52  ;;  %v13049_v8 = vld [vmem:[#allocation374_spill] sm:$0xff] }
 0x65d   :  { %4575 = vrot.lane.b32.xlu0 %v13037_v58, %s5474_s24  ;;  %v13043_v42 = vld [vmem:[#allocation355_spill] sm:$0xff]  ;;  %v2535_v41 = vadd.f32 %v13046_v50, %v2487_v55  ;;  %v13051_v38 = vld [vmem:[#allocation376_spill] sm:$0xff]  ;;  %v13052_v1 = vld [vmem:[#allocation377_spill] sm:$0xff] }
 0x65e   :  { %v2496_v21 = vadd.f32 %v13043_v42, %v2448_v57  ;;  %v13044_v18 = vld [vmem:[#allocation359_spill] sm:$0xff]  ;;  %v2539_v57 = vadd.f32 %v13047_v9, %v2491_v2  ;;  %v2588_v61 = vadd.f32 %v13049_v8, %v2540_v51  ;;  %v2541_v36 = vadd.f32 %v13051_v38, %v2493_v17  ;;  %v13053_v55 = vld [vmem:[#allocation378_spill] sm:$0xff]  ;;  %v13055_v0 = vld [vmem:[#allocation381_spill] sm:$0xff] }
 0x65f   :  { %v2546_v16 = vadd.f32 %v13044_v18, %v2498_v53  ;;  %v13048_v58 = vld [vmem:[#allocation371_spill] sm:$0xff]  ;;  %v2591_v42 = vadd.f32 %v13052_v1, %v2543_v5  ;;  %v2545_v18 = vadd.f32 %v13053_v55, %v2497_v25  ;;  %v13056_v6 = vld [vmem:[#allocation382_spill] sm:$0xff]  ;;  %v2583_v2 = vadd.f32 %v13057_v39, %v2535_v41  ;;  %v13058_v9 = vld [vmem:[#allocation388_spill] sm:$0xff] }
 0x660   :  { %v2538_v53 = vadd.f32 %v13048_v58, %v2490_v10  ;;  %v13050_v56 = vld [vmem:[#allocation375_spill] sm:$0xff]  ;;  %v2584_v45 = vadd.f32 %v13056_v6, %v2536_v20  ;;  %v2587_v10 = vadd.f32 %v13058_v9, %v2539_v57  ;;  %v13059_v58 = vld [vmem:[#allocation389_spill] sm:$0xff]  ;;  %v13060_v8 = vld [vmem:[#allocation390_spill] sm:$0xff]  ;;  %v2722_v38 = vrot.slane %v2710_v15, 1 }
 0x661   :  { %v2542_v35 = vadd.f32 %v13050_v56, %v2494_v24  ;;  %v13054_v60 = vld [vmem:[#allocation379_spill] sm:$0xff]  ;;  %v2594_v50 = vadd.f32 %v13055_v0, %v2546_v16  ;;  %v2636_v24 = vadd.f32 %v13060_v8, %v2588_v61  ;;  %v13063_v25 = vld [vmem:[#allocation392_spill] sm:$0xff]  ;;  %v13064_v1 = vld [vmem:[#allocation393_spill] sm:$0xff]  ;;  %v2740_v39 = vmul.f32 0.036000773, %v2693_v52  ;;  %v4470_v0 = vpop.permute.xlu2 %4469 }
 0x662   :  { %v2544_v54 = vadd.f32 %v13054_v60, %v2496_v21  ;;  %v2586_v51 = vadd.f32 %v13059_v58, %v2538_v53  ;;  %v13061_v56 = vld [vmem:[#allocation391_spill] sm:$0xff]  ;;  %v2589_v21 = vadd.f32 %v13063_v25, %v2541_v36  ;;  %v2639_v16 = vadd.f32 %v13064_v1, %v2591_v42  ;;  %v13065_v55 = vld [vmem:[#allocation394_spill] sm:$0xff]  ;;  %v13066_v41 = vld [vmem:[#allocation104_spill] sm:$0xff] }
 0x663   :  { %v2590_v17 = vadd.f32 %v13061_v56, %v2542_v35  ;;  %v13062_v5 = vld [vmem:[#allocation51_spill] sm:$0xff]  ;;  %v10493_v20 = vadd.f32 %v13065_v55, %v2545_v18  ;;  %4529 = vrot.lane.b32.xlu1 %v13066_v41, %s5473_s2  ;;  %v13067_v57 = vld [vmem:[#allocation134_spill] sm:$0xff]  ;;  %v2704_v15 = vmul.f32 0.0010283801, %v2693_v52  ;;  %v10502_v35 = vmul.f32 0.10936069, %v2693_v52  ;;  %v4422_v56 = vpop.permute.xlu1 %4421 }
 0x664   :  { %4573 = vrot.lane.b32.xlu2 %v13062_v5, %s5474_s24  ;;  %v13068_v53 = vld [vmem:[#allocation395_spill] sm:$0xff]  ;;  %v13069_v60 = vld [vmem:[#allocation402_spill] sm:$0xff]  ;;  %v13070_v42 = vld [vmem:[#allocation396_spill] sm:$0xff]  ;;  %v10507_v58 = vmul.f32 0.21300554, %v2693_v52  ;;  %v4382_v5 = vpop.permute.xlu0 %4381  ;;  %v4456_v55 = vadd.f32 %v4422_v56, %v10425_v44 }
 0x665   :  { %4485 = vrot.lane.b32.xlu0 %v13067_v57, %s5472_s23  ;;  %v10500_v61 = vadd.f32 %v13068_v53, %v2544_v54  ;;  %v2696_v36 = vadd.f32 %v13069_v60, %v2636_v24  ;;  %v2642_v6 = vadd.f32 %v13070_v42, %v2594_v50  ;;  %v13071_v18 = vld [vmem:[#allocation397_spill] sm:$0xff]  ;;  %v10509_v8 = vmul.f32 0.26601171, %v2693_v52  ;;  %v13072_v25 = vld [vmem:[#allocation398_spill] sm:$0xff]  ;;  %v13074_v53 = vld [vmem:[#allocation400_spill] sm:$0xff] }
 0x666   :  { %v2632_v9 = vadd.f32 %v13071_v18, %v2584_v45  ;;  %v2631_v1 = vadd.f32 %v13072_v25, %v2583_v2  ;;  %v2734_v54 = vadd.f32 %v2722_v38, %v2704_v15  ;;  %v13073_v41 = vld [vmem:[#allocation57_spill] sm:$0xff]  ;;  %v2752_v24 = vrot.slane %v2740_v39, 2  ;;  %v13077_v56 = vld [vmem:[#allocation403_spill] sm:$0xff] }
 0x667   :  { %v10514_v57 = vadd.f32 %v4382_v5, %v13073_v41  ;;  %v2635_v60 = vadd.f32 %v13074_v53, %v2587_v10  ;;  %v13075_v50 = vld [vmem:[#allocation401_spill] sm:$0xff]  ;;  %v10522_v49 = vmul.f32 0.10936069, %v2696_v36  ;;  %v10524_v43 = vmul.f32 0.21300554, %v2696_v36  ;;  %v13080_v41 = vld [vmem:[#allocation404_spill] sm:$0xff] }
 0x668   :  { %v10518_v42 = vadd.f32 %v13075_v50, %v2586_v51  ;;  %v13076_v45 = vld [vmem:[#allocation405_spill] sm:$0xff]  ;;  %v10526_v2 = vadd.f32 %v4470_v0, %v4456_v55  ;;  %v10531_v10 = vmul.f32 0.26601171, %v2696_v36  ;;  %v10533_v51 = vadd.f32 %v2752_v24, %v2734_v54  ;;  %v13078_v0 = vld [vmem:[#allocation120_spill] sm:$0xff]  ;;  %v13082_v24 = vld [vmem:[#allocation146_spill] sm:$0xff] }
 0x669   :  { %v2699_v18 = vadd.f32 %v13076_v45, %v2639_v16  ;;  %v10536_v15 = vmul.f32 0.036000773, %v2696_v36  ;;  %v10539_v5 = vadd.f32 %v13077_v56, %v2590_v17  ;;  %v10543_v25 = vmul.f32 0.007598758, %v2696_v36  ;;  %v13081_v54 = vld [vmem:[#allocation148_spill] sm:$0xff]  ;;  %v13085_v16 = vld [vmem:[#allocation410_spill] sm:$0xff]  ;;  %v4436_v39 = vpop.permute.xlu2 %4435 }
 0x66a   :  { %v10545_v55 = vmul.f32 0.0010283801, %v2696_v36  ;;  %v10548_v53 = vadd.f32 %v13080_v41, %v2589_v21  ;;  %v13083_v56 = vld [vmem:[#allocation408_spill] sm:$0xff]  ;;  %v2691_v36 = vadd.f32 %v13085_v16, %v2631_v1  ;;  %v13087_v62 = vld [vmem:[#allocation409_spill] sm:$0xff]  ;;  %v13089_v16 = vld [vmem:[#allocation407_spill] sm:$0xff] }
 0x66b   :  { %v2713_v50 = vmul.f32 0.007598758, %v2699_v18  ;;  %4629 = vrot.lane.b32.xlu1 %v13081_v54, %s5475_s25  ;;  %v2743_v38 = vmul.f32 0.036000773, %v2699_v18  ;;  %v10562_v44 = vmul.f32 0.10936069, %v2699_v18  ;;  %v4388_v54 = vpop.permute.xlu1 %4387  ;;  %v10579_v14 = vadd.f32 %v13087_v62, %v2632_v9 }
 0x66c   :  { %4535 = vrot.lane.b32.xlu2 %v13078_v0, %s5473_s2  ;;  %13079 = vst [vmem:[#allocation429_spill] sm:$0xff] %v10545_v55  ;;  %v10557_v0 = vadd.f32 %v13083_v56, %v2642_v6  ;;  %v4320_v52 = vpop.permute.xlu0 %4319  ;;  %v10566_v17 = vmul.f32 0.26601171, %v2699_v18  ;;  %v4415_v45 = vadd.f32 %v4388_v54, %v10048_v29  ;;  %v13086_v6 = vld [vmem:[#allocation55_spill] sm:$0xff]  ;;  %v2709_v30 = vmul.f32 0.007598758, %v2691_v36 }
 0x66d   :  { %4625 = vrot.lane.b32.xlu0 %v13082_v24, %s5475_s25  ;;  %v10564_v24 = vmul.f32 0.21300554, %v2699_v18  ;;  %v10570_v56 = vadd.f32 %v4320_v52, %v13086_v6  ;;  %v2725_v21 = vrot.slane %v2713_v50, 1  ;;  %v2707_v29 = vmul.f32 0.0010283801, %v2699_v18  ;;  %v13088_v52 = vld [vmem:[#allocation406_spill] sm:$0xff] }
 0x66e   :  { %13084 = vst [vmem:[#allocation37_spill] sm:$0xff] %v10557_v0  ;;  %v10576_v23 = vmul.f32 0.10936069, %v10557_v0  ;;  %v10581_v22 = vadd.f32 %v4436_v39, %v4415_v45  ;;  %v2755_v54 = vrot.slane %v2743_v38, 2  ;;  %v10585_v6 = vadd.f32 %v13088_v52, %v10493_v20  ;;  %v13090_v9 = vld [vmem:[#allocation412_spill] sm:$0xff]  ;;  %v13091_v18 = vld [vmem:[#allocation131_spill] sm:$0xff] }
 0x66f   :  { %v10589_v1 = vadd.f32 %v13089_v16, %v10500_v61  ;;  %v10595_v7 = vadd.f32 %v13090_v9, %v2635_v60  ;;  %v2737_v38 = vadd.f32 %v2725_v21, %v2707_v29  ;;  %v10602_v61 = vmul.f32 0.21300554, %v10557_v0  ;;  %v13092_v45 = vld [vmem:[#allocation219_spill] sm:$0xff]  ;;  %v13093_v16 = vld [vmem:[#allocation61_spill] sm:$0xff] }
 0x670   :  { %v10610_v52 = vmul.f32 0.26601171, %v10557_v0  ;;  %v10613_v21 = vmul.f32 0.10936069, %v10579_v14  ;;  %v2721_v29 = vrot.slane %v2709_v30, 1 }
 0x671   :  { %v4564_v9 = vpop.permute.xlu2 %4563  ;;  %v2878_v39 = vmul.f32 0.26601171, %v10579_v14  ;;  %v2703_v20 = vmul.f32 0.0010283801, %v2691_v36  ;;  %v2739_v60 = vmul.f32 0.036000773, %v2691_v36  ;;  %v10628_v13 = vadd.f32 %v2755_v54, %v2737_v38 }
 0x672   :  { %13094 = vst [vmem:[#allocation430_spill] sm:$0xff] %v10610_v52  ;;  %v2711_v50 = vmul.f32 0.007598758, %v10595_v7  ;;  %v2769_v40 = vmul.f32 0.10936069, %v2691_v36  ;;  %v2794_v28 = vrot.slane %v10613_v21, 3 }
 0x673   :  { %4635 = vrot.lane.b32.xlu1 %v13092_v45, %s5475_s25  ;;  %v13095_v45 = vld [vmem:[#allocation413_spill] sm:$0xff]  ;;  %v2823_v4 = vmul.f32 0.21300554, %v2691_v36  ;;  %v2877_v37 = vmul.f32 0.26601171, %v2691_v36  ;;  %v2902_v54 = vrot.slane %v2878_v39, 5 }
 0x674   :  { %4489 = vrot.lane.b32.xlu2 %v13091_v18, %s5472_s23  ;;  %v10616_v18 = vmul.f32 0.21300554, %v10579_v14  ;;  %v10621_v62 = vadd.f32 %v13095_v45, %v10518_v42  ;;  %v4476_v41 = vpop.permute.xlu0 %4475  ;;  %v10632_v42 = vmul.f32 0.036000773, %v10579_v14  ;;  %v2733_v45 = vadd.f32 %v2721_v29, %v2703_v20 }
 0x675   :  { %4579 = vrot.lane.b32.xlu0 %v13093_v16, %s5474_s24  ;;  %v4516_v16 = vpop.permute.xlu1 %4515  ;;  %v10626_v30 = vadd.f32 %v4476_v41, %v10471_v26  ;;  %v10639_v26 = vmul.f32 0.007598758, %v10579_v14  ;;  %v2751_v38 = vrot.slane %v2739_v60, 2  ;;  %v2793_v20 = vrot.slane %v2769_v40, 3 }
 0x676   :  { %v4551_v0 = vadd.f32 %v4516_v16, %v10468_v48  ;;  %v2962_v48 = vrot.slane %v10613_v21, 7  ;;  %v10642_v41 = vmul.f32 0.10936069, %v10621_v62  ;;  %v2848_v36 = vrot.slane %v10616_v18, 4  ;;  %v13097_v21 = vld [vmem:[#allocation62_spill] sm:$0xff] }
 0x677   :  { %v2723_v16 = vrot.slane %v2711_v50, 1  ;;  %v2847_v29 = vrot.slane %v2823_v4, 4  ;;  %v2763_v34 = vadd.f32 %v2751_v38, %v2733_v45  ;;  %v2931_v31 = vrot.slane %v2823_v4, 6 }
 0x678   :  { %v10634_v27 = vadd.f32 %v4564_v9, %v4551_v0  ;;  %v2932_v0 = vrot.slane %v10616_v18, 6  ;;  %v2901_v9 = vrot.slane %v2877_v37, 5  ;;  %v2705_v39 = vmul.f32 0.0010283801, %v10595_v7  ;;  %v13099_v37 = vld [vmem:[#allocation416_spill] sm:$0xff] }
 0x679   :  { %v2741_v50 = vmul.f32 0.036000773, %v10595_v7  ;;  %v4390_v60 = vpop.permute.xlu2 %4389  ;;  %v2797_v18 = vrot.slane %v10642_v41, 3  ;;  %v10660_v63 = vadd.f32 %v13099_v37, %v10548_v53  ;;  %v2961_v4 = vrot.slane %v2769_v40, 7 }
 0x67a   :  { %v10663_v11 = vadd.f32 %v4390_v60, %v10306_v59  ;;  %v2735_v45 = vadd.f32 %v2723_v16, %v2705_v39  ;;  %v2795_v55 = vsel %vm820_vm0, %v2793_v20, %v2794_v28  ;;  %v2827_v52 = vmul.f32 0.21300554, %v10595_v7 }
 0x67b   :  { %4577 = vrot.lane.b32.xlu1 %v13097_v21, %s5474_s24  ;;  %v2881_v53 = vmul.f32 0.26601171, %v10595_v7  ;;  %v10675_v37 = vmul.f32 0.21300554, %v10621_v62  ;;  %v10679_v40 = vmul.f32 0.0010283801, %v10579_v14  ;;  %v2817_v16 = vadd.f32 %v2795_v55, %v2763_v34 }
 0x67c   :  { %4633 = vrot.lane.b32.xlu2 %v13096_v33, %s5475_s25  ;;  %v10655_v33 = vmul.f32 0.10936069, %v10595_v7  ;;  %v2849_v39 = vsel %vm875_vm1, %v2847_v29, %v2848_v36  ;;  %v13100_v28 = vrot.slane %v10502_v35, 3  ;;  %v2712_v7 = vmul.f32 0.007598758, %v10660_v63  ;;  %v13101_v34 = vld [vmem:[#allocation119_spill] sm:$0xff] }
 0x67d   :  { %4533 = vrot.lane.b32.xlu0 %v13098_v3, %s5473_s2  ;;  %v4430_v21 = vpop.permute.xlu1 %4429  ;;  %v4386_v3 = vpop.permute.xlu0 %4385  ;;  %v2903_v60 = vsel %vm930_vm2, %v2901_v9, %v2902_v54  ;;  %v2880_v14 = vmul.f32 0.26601171, %v10621_v62  ;;  %v10693_v55 = vsel %vm992_vm4, %v2961_v4, %v2962_v48  ;;  %v2853_v36 = vrot.slane %v2827_v52, 4  ;;  %v13103_v54 = vld [vmem:[#allocation74_spill] sm:$0xff] }
 0x67e   :  { %v10666_v38 = vadd.f32 %v4430_v21, %v10514_v57  ;;  %v10669_v12 = vadd.f32 %v4386_v3, %v10233_v19  ;;  %v2753_v57 = vrot.slane %v2741_v50, 2  ;;  %v2799_v19 = vrot.slane %v10655_v33, 3 }
 0x67f   :  { %v2798_v20 = vsel %vm820_vm0, %v13100_v28, %v2797_v18  ;;  %v2933_v21 = vsel %vm961_vm3, %v2931_v31, %v2932_v0  ;;  %v2907_v29 = vrot.slane %v2881_v53, 5  ;;  %v2851_v50 = vrot.slane %v10675_v37, 4  ;;  %v13102_v18 = vld [vmem:[#allocation144_spill] sm:$0xff] }
 0x680   :  { %v2765_v3 = vadd.f32 %v2753_v57, %v2735_v45  ;;  %v2871_v31 = vadd.f32 %v2849_v39, %v2817_v16  ;;  %v2937_v0 = vrot.slane %v2827_v52, 6  ;;  %v2818_v9 = vadd.f32 %v2798_v20, %v10533_v51  ;;  %v13104_v45 = vld [vmem:[#allocation415_spill] sm:$0xff] }
 0x681   :  { %v10703_v57 = vadd.f32 %v13104_v45, %v10539_v5  ;;  %v4518_v48 = vpop.permute.xlu2 %4517  ;;  %v13105_v4 = vrot.slane %v10522_v49, 3  ;;  %v2967_v28 = vrot.slane %v10655_v33, 7  ;;  %v2905_v39 = vrot.slane %v2880_v14, 5 }
 0x682   :  { %v10710_v59 = vadd.f32 %v4518_v48, %v10526_v2  ;;  %v13106_v20 = vrot.slane %v10507_v58, 4  ;;  %v2706_v33 = vmul.f32 0.0010283801, %v10660_v63  ;;  %v13107_v2 = vld [vmem:[#allocation418_spill] sm:$0xff]  ;;  %v10734_v45 = vmul.f32 0.10936069, %v10660_v63 }
 0x683   :  { %4639 = vrot.lane.b32.xlu1 %v13102_v18, %s5475_s25  ;;  %v2801_v53 = vsel %vm820_vm0, %v2799_v19, %v13105_v4  ;;  %v13110_v4 = vrot.slane %v10524_v43, 6 }
 0x684   :  { %4537 = vrot.lane.b32.xlu2 %v13101_v34, %s5473_s2  ;;  %v2724_v34 = vrot.slane %v2712_v7, 1  ;;  %v2819_v52 = vadd.f32 %v2801_v53, %v2765_v3  ;;  %v2852_v19 = vsel %vm875_vm1, %v13106_v20, %v2851_v50  ;;  %v2742_v7 = vmul.f32 0.036000773, %v10660_v63 }
 0x685   :  { %4583 = vrot.lane.b32.xlu0 %v13103_v54, %s5474_s24  ;;  %v4392_v18 = vpop.permute.xlu1 %4391  ;;  %v4474_v16 = vpop.permute.xlu0 %4473  ;;  %v10725_v54 = vadd.f32 %v13107_v2, %v10585_v6  ;;  %v13108_v3 = vrot.slane %v10524_v43, 4  ;;  %v2872_v14 = vadd.f32 %v2852_v19, %v2818_v9  ;;  %v13109_v50 = vrot.slane %v10531_v10, 5  ;;  %v13113_v10 = vld [vmem:[#allocation156_spill] sm:$0xff] }
 0x686   :  { %v10713_v51 = vadd.f32 %v4392_v18, %v10570_v56  ;;  %v10716_v5 = vadd.f32 %v4474_v16, %v10434_v47  ;;  %v10731_v47 = vmul.f32 0.10936069, %v10703_v57  ;;  %v2939_v6 = vsel %vm961_vm3, %v2937_v0, %v13110_v4  ;;  %v13111_v18 = vld [vmem:[#allocation419_spill] sm:$0xff] }
 0x687   :  { %v2855_v56 = vsel %vm875_vm1, %v2853_v36, %v13108_v3  ;;  %v2909_v48 = vsel %vm930_vm2, %v2907_v29, %v13109_v50  ;;  %v2736_v53 = vadd.f32 %v2724_v34, %v2706_v33  ;;  %v10744_v16 = vadd.f32 %v13111_v18, %v10589_v1 }
 0x688   :  { %v2925_v36 = vadd.f32 %v2903_v60, %v2871_v31  ;;  %v2873_v9 = vadd.f32 %v2855_v56, %v2819_v52  ;;  %v13112_v20 = vrot.slane %v10522_v49, 7  ;;  %v2935_v2 = vrot.slane %v10675_v37, 6  ;;  %v13115_v31 = vld [vmem:[#allocation153_spill] sm:$0xff]  ;;  %v13116_v49 = vld [vmem:[#allocation118_spill] sm:$0xff] }
 0x689   :  { %v13114_v43 = vrot.slane %v10509_v8, 5  ;;  %v10756_v0 = vmul.f32 0.21300554, %v10703_v57  ;;  %v2754_v1 = vrot.slane %v2742_v7, 2  ;;  %v2714_v60 = vmul.f32 0.007598758, %v10725_v54  ;;  %v4484_v52 = vpop.permute.xlu2 %4483 }
 0x68a   :  { %v2969_v19 = vsel %vm992_vm4, %v2967_v28, %v13112_v20  ;;  %v2803_v28 = vrot.slane %v10731_v47, 3  ;;  %v2802_v34 = vrot.slane %v10734_v45, 3  ;;  %v10766_v8 = vmul.f32 0.21300554, %v10660_v63 }
 0x68b   :  { %v2906_v29 = vsel %vm930_vm2, %v13114_v43, %v2905_v39  ;;  %4637 = vrot.lane.b32.xlu1 %v13115_v31, %s5475_s25  ;;  %v2965_v39 = vrot.slane %v10642_v41, 7  ;;  %v2766_v33 = vadd.f32 %v2754_v1, %v2736_v53  ;;  %v10770_v7 = vmul.f32 0.10936069, %v10744_v16 }
 0x68c   :  { %4643 = vrot.lane.b32.xlu2 %v13113_v10, %s5475_s25  ;;  %v2926_v37 = vadd.f32 %v2906_v29, %v2872_v14  ;;  %v10773_v56 = vadd.f32 %v4484_v52, %v10581_v22  ;;  %v2955_v14 = vadd.f32 %v2933_v21, %v2925_v36  ;;  %v2927_v4 = vadd.f32 %v2909_v48, %v2873_v9 }
 0x68d   :  { %4581 = vrot.lane.b32.xlu0 %v13116_v49, %s5474_s24  ;;  %v4524_v3 = vpop.permute.xlu1 %4523  ;;  %v4480_v50 = vpop.permute.xlu0 %4479  ;;  %v13117_v10 = vrot.slane %v10507_v58, 6  ;;  %v2857_v53 = vrot.slane %v10756_v0, 4  ;;  %v2884_v43 = vmul.f32 0.26601171, %v10703_v57  ;;  %v2726_v29 = vrot.slane %v2714_v60, 1  ;;  %v13118_v49 = vld [vmem:[#allocation372_spill] sm:$0xff] }
 0x68e   :  { %v10776_v18 = vadd.f32 %v4524_v3, %v10626_v30  ;;  %v10779_v20 = vadd.f32 %v4480_v50, %v10419_v46  ;;  %v2804_v1 = vsel %vm820_vm0, %v2802_v34, %v2803_v28  ;;  %v2856_v21 = vrot.slane %v10766_v8, 4 }
 0x68f   :  { %v2936_v41 = vsel %vm961_vm3, %v13117_v10, %v2935_v2  ;;  %v2883_v30 = vmul.f32 0.26601171, %v10660_v63  ;;  %v2820_v48 = vadd.f32 %v2804_v1, %v2766_v33  ;;  %v2708_v46 = vmul.f32 0.0010283801, %v10725_v54  ;;  %v13121_v33 = vld [vmem:[#allocation73_spill] sm:$0xff] }
 0x690   :  { %v2956_v22 = vadd.f32 %v2936_v41, %v2926_v37  ;;  %v2744_v36 = vmul.f32 0.036000773, %v10725_v54  ;;  %v2806_v58 = vrot.slane %v10770_v7, 3  ;;  %v2957_v9 = vadd.f32 %v2939_v6, %v2927_v4  ;;  %v13120_v6 = vld [vmem:[#allocation29_spill] sm:$0xff] }
 0x691   :  { %v2992_v2 = vmul.f32 0.036000773, %v10621_v62  ;;  %v3004_v31 = vmul.f32 0.007598758, %v10621_v62  ;;  %v10795_v60 = vmul.f32 0.10936069, %v10725_v54  ;;  %v2738_v34 = vadd.f32 %v2726_v29, %v2708_v46 }
 0x692   :  { %v13119_v63 = vrot.slane %v10502_v35, 7  ;;  %v2911_v28 = vrot.slane %v2884_v43, 5  ;;  %v10803_v52 = vmul.f32 0.21300554, %v10744_v16  ;;  %v2858_v50 = vsel %vm875_vm1, %v2856_v21, %v2857_v53  ;;  %v4624_v35 = vpop.permute.xlu2 %4623 }
 0x693   :  { %4641 = vrot.lane.b32.xlu1 %v13120_v6, %s5475_s25  ;;  %v2910_v4 = vrot.slane %v2883_v30, 5  ;;  %v10811_v10 = vmul.f32 0.21300554, %v10725_v54  ;;  %v2756_v41 = vrot.slane %v2744_v36, 2  ;;  %v13122_v43 = vrot.slane %v10562_v44, 3 }
 0x694   :  { %4645 = vrot.lane.b32.xlu2 %v13118_v49, %s5475_s25  ;;  %v2966_v37 = vsel %vm992_vm4, %v13119_v63, %v2965_v39  ;;  %v2874_v39 = vadd.f32 %v2858_v50, %v2820_v48  ;;  %v10817_v46 = vadd.f32 %v4624_v35, %v10634_v27  ;;  %v13123_v63 = vld [vmem:[#allocation225_spill] sm:$0xff]  ;;  %v2987_v30 = vadd.f32 %v2969_v19, %v2957_v9 }
 0x695   :  { %4585 = vrot.lane.b32.xlu0 %v13121_v33, %s5474_s24  ;;  %v2986_v3 = vadd.f32 %v2966_v37, %v2956_v22  ;;  %v2807_v29 = vsel %vm820_vm0, %v13122_v43, %v2806_v58  ;;  %v4322_v1 = vpop.permute.xlu1 %4321  ;;  %v4568_v49 = vpop.permute.xlu0 %4567  ;;  %v2808_v22 = vrot.slane %v10795_v60, 3  ;;  %v2768_v48 = vadd.f32 %v2756_v41, %v2738_v34 }
 0x696   :  { %v10821_v53 = vadd.f32 %v4322_v1, %v13123_v63  ;;  %v10824_v21 = vadd.f32 %v4568_v49, %v10464_v32  ;;  %v2860_v36 = vrot.slane %v10803_v52, 4  ;;  %v2886_v37 = vmul.f32 0.26601171, %v10744_v16 }
 0x697   :  { %v2985_v58 = vadd.f32 %v10693_v55, %v2955_v14  ;;  %v2941_v27 = vrot.slane %v10756_v0, 6  ;;  %v2912_v6 = vsel %vm930_vm2, %v2910_v4, %v2911_v28  ;;  %v2940_v33 = vrot.slane %v10766_v8, 6 }
 0x698   :  { %v2821_v50 = vadd.f32 %v2807_v29, %v10628_v13  ;;  %v2998_v35 = vadd.f32 %v2992_v2, %v2986_v3  ;;  %v3016_v43 = vrot.slane %v3004_v31, 1  ;;  %v3034_v32 = vmul.f32 0.0010283801, %v10621_v62 }
 0x699   :  { %v2928_v19 = vadd.f32 %v2912_v6, %v2874_v39  ;;  %v13124_v9 = vrot.slane %v10576_v23, 3  ;;  %v2862_v41 = vrot.slane %v10811_v10, 4  ;;  %v2887_v55 = vmul.f32 0.26601171, %v10725_v54 }
 0x69a   :  { %v2999_v0 = vadd.f32 %v10536_v15, %v2987_v30  ;;  %v13125_v8 = vrot.slane %v10564_v24, 4  ;;  %v2914_v2 = vrot.slane %v2886_v37, 5  ;;  %v2997_v31 = vadd.f32 %v10632_v42, %v2985_v58  ;;  %v4438_v39 = vpop.permute.xlu2 %4437 }
 0x69b   :  { %v2810_v34 = vsel %vm820_vm0, %v2808_v22, %v13124_v9  ;;  %v2971_v62 = vrot.slane %v10731_v47, 7  ;;  %v2942_v28 = vsel %vm961_vm3, %v2940_v33, %v2941_v27  ;;  %v2970_v3 = vrot.slane %v10734_v45, 7  ;;  %v13130_v33 = vld [vmem:[#allocation430_spill] sm:$0xff] }
 0x69c   :  { %v2822_v14 = vadd.f32 %v2810_v34, %v2768_v48  ;;  %v2861_v13 = vsel %vm875_vm1, %v13125_v8, %v2860_v36  ;;  %v3046_v29 = vrot.slane %v3034_v32, 2  ;;  %v2958_v54 = vadd.f32 %v2942_v28, %v2928_v19  ;;  %v13131_v34 = vld [vmem:[#allocation429_spill] sm:$0xff]  ;;  %v13134_v8 = vld [vmem:[#allocation18_spill] sm:$0xff] }
 0x69d   :  { %v2875_v4 = vadd.f32 %v2861_v13, %v2821_v50  ;;  %v10847_v1 = vpop.permute.xlu1 %4477  ;;  %v10850_v15 = vadd.f32 %v4438_v39, %v10663_v11  ;;  %v4434_v49 = vpop.permute.xlu0 %4433  ;;  %v3028_v22 = vadd.f32 %v3016_v43, %v2998_v35  ;;  %v13126_v63 = vrot.slane %v10602_v61, 4  ;;  %v13135_v13 = vld [vmem:[#allocation145_spill] sm:$0xff] }
 0x69e   :  { %v2916_v47 = vrot.slane %v2887_v55, 5  ;;  %v10856_v30 = vadd.f32 %v4434_v49, %v10669_v12  ;;  %v13127_v45 = vrot.slane %v10543_v25, 1  ;;  %v13128_v37 = vrot.slane %v10566_v17, 5 }
 0x69f   :  { %v2864_v42 = vsel %vm875_vm1, %v2862_v41, %v13126_v63  ;;  %v2944_v11 = vrot.slane %v10803_v52, 6  ;;  %v13129_v27 = vrot.slane %v10639_v26, 1  ;;  %v2917_v50 = vrot.slane %v13130_v33, 5  ;;  %v13139_v63 = vld [vmem:[#allocation23_spill] sm:$0xff] }
 0x6a0   :  { %v3029_v48 = vadd.f32 %v13127_v45, %v2999_v0  ;;  %v2876_v36 = vadd.f32 %v2864_v42, %v2822_v14  ;;  %v2915_v58 = vsel %vm930_vm2, %v13128_v37, %v2914_v2  ;;  %v3045_v35 = vrot.slane %v10679_v40, 2  ;;  %v13140_v42 = vld [vmem:[#allocation230_spill] sm:$0xff]  ;;  %v13143_v33 = vld [vmem:[#allocation35_spill] sm:$0xff] }
 0x6a1   :  { %v3027_v6 = vadd.f32 %v13129_v27, %v2997_v31  ;;  %v2972_v12 = vsel %vm992_vm4, %v2970_v3, %v2971_v62  ;;  %v2929_v43 = vadd.f32 %v2915_v58, %v2875_v4  ;;  %v2994_v25 = vmul.f32 0.036000773, %v10703_v57  ;;  %v13136_v3 = vld [vmem:[#allocation422_spill] sm:$0xff]  ;;  %v13137_v4 = vld [vmem:[#allocation224_spill] sm:$0xff] }
 0x6a2   :  { %v3006_v32 = vmul.f32 0.007598758, %v10703_v57  ;;  %v3058_v19 = vadd.f32 %v3046_v29, %v3028_v22  ;;  %v2988_v17 = vadd.f32 %v2972_v12, %v2958_v54  ;;  %v2918_v9 = vsel %vm930_vm2, %v2916_v47, %v2917_v50 }
 0x6a3   :  { %v2946_v52 = vrot.slane %v10811_v10, 6  ;;  %v2974_v26 = vrot.slane %v10770_v7, 7  ;;  %v13132_v41 = vrot.slane %v13131_v34, 2  ;;  %v2930_v55 = vadd.f32 %v2918_v9, %v2876_v36  ;;  %v10885_v7 = vpop.permute.xlu2 %4565  ;;  %v13141_v36 = vld [vmem:[#allocation45_spill] sm:$0xff]  ;;  %v13148_v9 = vld [vmem:[#allocation26_spill] sm:$0xff] }
 0x6a4   :  { %v13133_v0 = vrot.slane %v10564_v24, 6  ;;  %v5056_v2 = vsub.f32 %v13135_v13, %v13134_v8  ;;  %v3057_v31 = vadd.f32 %v3045_v35, %v3027_v6  ;;  %v2947_v62 = vrot.slane %v10602_v61, 6  ;;  %v13138_v24 = vld [vmem:[#allocation58_spill] sm:$0xff] }
 0x6a5   :  { %v3059_v40 = vadd.f32 %v13132_v41, %v3029_v48  ;;  %v3036_v10 = vmul.f32 0.0010283801, %v10703_v57  ;;  %v5057_v39 = vsub.f32 %v13137_v4, %v13136_v3  ;;  %v3018_v29 = vrot.slane %v3006_v32, 1  ;;  %v4440_v54 = vpop.permute.xlu1 %4439  ;;  %v10889_v49 = vpop.permute.xlu0 %4521  ;;  %v13150_v41 = vld [vmem:[#allocation426_spill] sm:$0xff]  ;;  %v13154_v3 = vld [vmem:[#allocation37_spill] sm:$0xff] }
 0x6a6   :  { %v2945_v14 = vsel %vm961_vm3, %v13133_v0, %v2944_v11  ;;  %v5050_v22 = vsub.f32 %v3058_v19, %v13138_v24  ;;  %v5055_v47 = vsub.f32 %v13140_v42, %v13139_v63  ;;  %v3000_v45 = vadd.f32 %v2994_v25, %v2988_v17  ;;  %v13144_v25 = vld [vmem:[#allocation27_spill] sm:$0xff] }
 0x6a7   :  { %v2959_v28 = vadd.f32 %v2945_v14, %v2929_v43  ;;  %v2948_v61 = vsel %vm961_vm3, %v2946_v52, %v2947_v62  ;;  %v2976_v57 = vrot.slane %v10795_v60, 7  ;;  %v10897_v48 = vadd.f32 %v4440_v54, %v10713_v51  ;;  %v13145_v60 = vld [vmem:[#allocation88_spill] sm:$0xff]  ;;  %v13147_v17 = vld [vmem:[#allocation423_spill] sm:$0xff] }
 0x6a8   :  { %v5051_v37 = vsub.f32 %v3059_v40, %v13141_v36  ;;  %v2960_v58 = vadd.f32 %v2948_v61, %v2930_v55  ;;  %v13142_v11 = vrot.slane %v10562_v44, 7  ;;  %v5081_v6 = vadd.f32 %v5056_v2, %v5050_v22  ;;  %v13149_v44 = vld [vmem:[#allocation427_spill] sm:$0xff] }
 0x6a9   :  { %v5049_v50 = vsub.f32 %v3057_v31, %v13143_v33  ;;  %v2977_v35 = vrot.slane %v10576_v23, 7  ;;  %v13146_v32 = vrot.slane %v13145_v60, 2  ;;  %v5117_v52 = vadd.f32 %v13148_v9, %v13147_v17  ;;  %v13152_v2 = vld [vmem:[#allocation431_spill] sm:$0xff]  ;;  %v13153_v31 = vld [vmem:[#allocation421_spill] sm:$0xff] }
 0x6aa   :  { %v2975_v27 = vsel %vm992_vm4, %v13142_v11, %v2974_v26  ;;  %v5082_v43 = vadd.f32 %v5057_v39, %v5051_v37  ;;  %v3030_v34 = vadd.f32 %v3018_v29, %v3000_v45  ;;  %v13151_v26 = vrot.slane %v13150_v41, 1  ;;  %v13155_v37 = vld [vmem:[#allocation36_spill] sm:$0xff] }
 0x6ab   :  { %v2989_v12 = vadd.f32 %v2975_v27, %v2959_v28  ;;  %v10908_v51 = vadd.f32 %v13146_v32, %v13144_v25  ;;  %v5080_v19 = vadd.f32 %v5055_v47, %v5049_v50  ;;  %v2978_v55 = vsel %vm992_vm4, %v2976_v57, %v2977_v35  ;;  %v4532_v29 = vpop.permute.xlu2 %4531  ;;  %v13156_v11 = vld [vmem:[#allocation424_spill] sm:$0xff]  ;;  %v13161_v32 = vld [vmem:[#allocation98_spill] sm:$0xff] }
 0x6ac   :  { %v2047_v40 = vadd.f32 %v13151_v26, %v13149_v44  ;;  %v2995_v23 = vmul.f32 0.036000773, %v10744_v16  ;;  %v3007_v0 = vmul.f32 0.007598758, %v10744_v16  ;;  %v10919_v14 = vstv %s10874_s27  ;;  %v13158_v50 = vld [vmem:[#allocation380_spill] sm:$0xff] }
 0x6ad   :  { %v3048_v8 = vrot.slane %v3036_v10, 2  ;;  %v5087_v13 = vadd.f32 %v5081_v6, %v10919_v14  ;;  %v2018_v62 = vadd.f32 %v13153_v31, %v13152_v2  ;;  %v2990_v28 = vadd.f32 %v2978_v55, %v2960_v58  ;;  %v10929_v63 = vpop.permute.xlu1 %4571  ;;  %v4528_v42 = vpop.permute.xlu0 %4527  ;;  %v13157_v6 = vld [vmem:[#allocation151_spill] sm:$0xff]  ;;  %v13162_v44 = vld [vmem:[#allocation40_spill] sm:$0xff] }
 0x6ae   :  { %v2996_v4 = vmul.f32 0.036000773, %v13154_v3  ;;  %v3001_v39 = vadd.f32 %v2995_v23, %v2989_v12  ;;  %v5088_v54 = vadd.f32 %v5082_v43, %v10919_v14  ;;  %v5040_v24 = vmul.f32 %v10908_v51, %v10908_v51  ;;  %v13160_v43 = vld [vmem:[#allocation428_spill] sm:$0xff]  ;;  %v13164_v23 = vld [vmem:[#allocation157_spill] sm:$0xff] }
 0x6af   :  { %v3008_v22 = vmul.f32 0.007598758, %v13154_v3  ;;  %v10932_v10 = vadd.f32 %v4532_v29, %v10773_v56  ;;  %v5086_v47 = vadd.f32 %v5080_v19, %v10919_v14  ;;  %v3060_v45 = vadd.f32 %v3048_v8, %v3030_v34  ;;  %v13163_v55 = vld [vmem:[#allocation384_spill] sm:$0xff] }
 0x6b0   :  { %v3019_v61 = vrot.slane %v3007_v0, 1  ;;  %v3037_v57 = vmul.f32 0.0010283801, %v10744_v16  ;;  %v10937_v36 = vadd.f32 %v4528_v42, %v10779_v20  ;;  %v2065_v58 = vrot.slane %v13155_v37, 2 }
 0x6b1   :  { %v10941_v27 = vmul.f32 %v13156_v11, %v5087_v13  ;;  %v5058_v33 = vsub.f32 %v13157_v6, %v5040_v24  ;;  %v13159_v56 = vrot.slane %v13158_v50, 1  ;;  %v3002_v12 = vadd.f32 %v2996_v4, %v2990_v28  ;;  %v13166_v13 = vld [vmem:[#allocation56_spill] sm:$0xff] }
 0x6b2   :  { %v10947_v25 = vmul.f32 %v13160_v43, %v5088_v54  ;;  %v10949_v60 = vadd.f32 %v2065_v58, %v2047_v40  ;;  %v3031_v16 = vadd.f32 %v3019_v61, %v3001_v39  ;;  %v2066_v20 = vrot.slane %v13161_v32, 2  ;;  %v13168_v61 = vld [vmem:[#allocation149_spill] sm:$0xff] }
 0x6b3   :  { %v2048_v35 = vadd.f32 %v13159_v56, %v2018_v62  ;;  %v3020_v19 = vrot.slane %v3008_v22, 1  ;;  %v3038_v9 = vmul.f32 0.0010283801, %v13154_v3  ;;  %v10953_v34 = vmul.f32 %v5117_v52, %v5086_v47  ;;  %v13167_v22 = vld [vmem:[#allocation220_spill] sm:$0xff] }
 0x6b4   :  { %v5052_v41 = vsub.f32 %v3060_v45, %v13162_v44  ;;  %v3049_v26 = vrot.slane %v3037_v57, 2  ;;  %v13165_v0 = vrot.slane %v13164_v23, 2  ;;  %v1082_v2 = vrot.slane %v13166_v13, 2 }
 0x6b5   :  { %5340 = vrcp.f32 %v10941_v27  ;;  %v10961_v31 = vadd.f32 %v2066_v20, %v2048_v35  ;;  %v3032_v62 = vadd.f32 %v3020_v19, %v3002_v12  ;;  %v4442_v28 = vpop.permute.xlu2 %4441  ;;  %v5041_v3 = vmul.f32 %v10949_v60, %v10949_v60  ;;  %v4394_v39 = vpop.permute.xlu1 %4393 }
 0x6b6   :  { %v1093_v8 = vadd.f32 %v13165_v0, %v13163_v55  ;;  %v5083_v40 = vadd.f32 %v5058_v33, %v5052_v41  ;;  %5342 = vrcp.f32 %v10947_v25  ;;  %v3061_v52 = vadd.f32 %v3049_v26, %v3031_v16  ;;  %v10966_v29 = vpop.permute.xlu0 %4627  ;;  %v13173_v26 = vld [vmem:[#allocation101_spill] sm:$0xff] }
 0x6b7   :  { %v3050_v4 = vrot.slane %v3038_v9, 2  ;;  %5344 = vrcp.f32 %v10953_v34  ;;  %v5114_v54 = vadd.f32 %v5040_v24, %v13162_v44  ;;  %v10971_v42 = vadd.f32 %v1082_v2, %v13167_v22  ;;  %v13171_v9 = vld [vmem:[#allocation152_spill] sm:$0xff]  ;;  %v13174_v55 = vld [vmem:[#allocation417_spill] sm:$0xff] }
 0x6b8   :  { %v4418_v47 = vadd.f32 %v4394_v39, %v10821_v53  ;;  %v5035_v45 = vmul.f32 %v1093_v8, %v1093_v8  ;;  %v5059_v57 = vsub.f32 %v13168_v61, %v5041_v3  ;;  %v5089_v37 = vadd.f32 %v5083_v40, %v10919_v14  ;;  %v13169_v53 = vld [vmem:[#allocation154_spill] sm:$0xff]  ;;  %v13172_v44 = vld [vmem:[#allocation420_spill] sm:$0xff]  ;;  %v13177_v39 = vld [vmem:[#allocation155_spill] sm:$0xff] }
 0x6b9   :  { %v3062_v58 = vadd.f32 %v3050_v4, %v3032_v62  ;;  %v5042_v11 = vmul.f32 %v10961_v31, %v10961_v31  ;;  %v5120_v24 = vadd.f32 %v5114_v54, %v13147_v17  ;;  %v5036_v56 = vmul.f32 %v10971_v42, %v10971_v42 }
 0x6ba   :  { %v10978_v6 = vadd.f32 %v4442_v28, %v4418_v47  ;;  %v5053_v33 = vsub.f32 %v3061_v52, %v5035_v45  ;;  %v10996_v41 = vmul.f32 %v13172_v44, %v13171_v9  ;;  %v11000_v23 = vmul.f32 %v13174_v55, %v13173_v26  ;;  %v13175_v28 = vld [vmem:[#allocation214_spill] sm:$0xff]  ;;  %v13176_v52 = vld [vmem:[#allocation425_spill] sm:$0xff] }
 0x6bb   :  { %v10980_v50 = vpop.eup %5340  ;;  %v5060_v35 = vsub.f32 %v13169_v53, %v5042_v11  ;;  %v10990_v32 = vmul.f32 %v5120_v24, %v5089_v37  ;;  %v5054_v20 = vsub.f32 %v3062_v58, %v5036_v56  ;;  %v5115_v13 = vadd.f32 %v5041_v3, %v5035_v45 }
 0x6bc   :  { %v10986_v12 = vpop.eup %5342  ;;  %v5084_v43 = vadd.f32 %v5059_v57, %v5053_v33  ;;  %v5144_v0 = vmul.f32 %v10980_v50, %v10941_v27  ;;  %v11012_v4 = vmul.f32 %v13176_v52, %v13175_v28  ;;  %v11016_v54 = vmul.f32 %v10908_v51, %v13177_v39 }
 0x6bd   :  { %v10988_v16 = vpop.eup %5344  ;;  %13170 = vst [vmem:[#allocation434_spill] sm:$0xff] %v10990_v32  ;;  %v11004_v2 = vpop.permute.xlu1 %4525  ;;  %v5158_v62 = vmul.f32 %v10986_v12, %v10947_v25  ;;  %v5085_v22 = vadd.f32 %v5060_v35, %v5054_v20  ;;  %5346 = vrcp.f32 %v10990_v32  ;;  %v5116_v45 = vadd.f32 %v5042_v11, %v5036_v56 }
 0x6be   :  { %v10992_v19 = vpop.permute.xlu2 %4573  ;;  %v11006_v40 = vpop.permute.xlu0 %4481  ;;  %13178 = vst [vmem:[#allocation432_spill] sm:$0xff] %v11016_v54  ;;  %v5130_v47 = vmul.f32 %v10988_v16, %v10953_v34  ;;  %v5090_v3 = vadd.f32 %v5084_v43, %v10919_v14  ;;  %v5094_v61 = vmul.f32 2.0, %v10996_v41  ;;  %v5093_v57 = vmul.f32 2.0, %v11000_v23 }
 0x6bf   :  { %v5145_v37 = vsub.f32 1.0, %v5144_v0  ;;  %v5121_v58 = vadd.f32 %v5115_v13, %v13147_v17  ;;  %v5159_v33 = vsub.f32 1.0, %v5158_v62  ;;  %v5092_v51 = vmul.f32 2.0, %v11012_v4 }
 0x6c0   :  { %v5095_v24 = vmul.f32 2.0, %v11016_v54  ;;  %v5091_v53 = vadd.f32 %v5085_v22, %v10919_v14  ;;  %v5131_v35 = vsub.f32 1.0, %v5130_v47  ;;  %v11029_v43 = vmul.f32 %v10949_v60, %v1093_v8 }
 0x6c1   :  { %v11031_v20 = vmul.f32 %v5121_v58, %v5090_v3  ;;  %v5122_v11 = vadd.f32 %v5116_v45, %v13147_v17  ;;  %v11037_v9 = vadd.f32 %v13147_v17, %v5094_v61  ;;  %v11040_v44 = vadd.f32 %v13147_v17, %v5093_v57 }
 0x6c2   :  { %13179 = vst [vmem:[#allocation433_spill] sm:$0xff] %v11029_v43  ;;  %v5146_v26 = vmul.f32 %v10980_v50, %v5145_v37  ;;  %v5160_v8 = vmul.f32 %v10986_v12, %v5159_v33  ;;  %v11051_v13 = vadd.f32 %v13147_v17, %v5092_v51  ;;  %v11054_v62 = vadd.f32 %v13147_v17, %v5095_v24 }
 0x6c3   :  { %13180 = vst [vmem:[#allocation437_spill] sm:$0xff] %v11031_v20  ;;  %v11043_v55 = vpop.eup %5346  ;;  %v11056_v28 = vmul.f32 %v5122_v11, %v5091_v53  ;;  %v5152_v52 = vand.u32 2147483647, %v10941_v27  ;;  %v5132_v39 = vmul.f32 %v10988_v16, %v5131_v35  ;;  %v11061_v22 = vmul.f32 2.0, %v11029_v43 }
 0x6c4   :  { %13181 = vst [vmem:[#allocation435_spill] sm:$0xff] %v11043_v55  ;;  %5348 = vrcp.f32 %v11031_v20  ;;  %v5166_v47 = vand.u32 2147483647, %v10947_v25  ;;  %vm5148_vm5 = vweird.f32 %v10941_v27  ;;  %v5154_v3 = vand.u32 2147483648, %v10941_v27 }
 0x6c5   :  { %v11045_v0 = vpop.permute.xlu1 %4487  ;;  %13182 = vst [vmem:[#allocation436_spill] sm:$0xff] %v11054_v62  ;;  %v11069_v45 = vmul.f32 %v10961_v31, %v10971_v42  ;;  %v5168_v61 = vand.u32 2147483648, %v10947_v25  ;;  %v5147_v57 = vadd.f32 %v10980_v50, %v5146_v26  ;;  %vm5149_vm6 = vweird.f32 %v10980_v50 }
 0x6c6   :  { %v11034_v56 = vpop.permute.xlu2 %4535  ;;  %v11047_v60 = vpop.permute.xlu0 %4569  ;;  %13183 = vst [vmem:[#allocation440_spill] sm:$0xff] %v11056_v28  ;;  %v5172_v37 = vmul.f32 %v11043_v55, %v10990_v32  ;;  %v5161_v58 = vadd.f32 %v10986_v12, %v5160_v8  ;;  %vm5163_vm7 = vweird.f32 %v10986_v12  ;;  %v5138_v33 = vand.u32 2147483647, %v10953_v34  ;;  %vm11094_vm12 = vmor %vm5148_vm5, %vm5149_vm6 }
 0x6c7   :  { %13184 = vst [vmem:[#allocation438_spill] sm:$0xff] %v11061_v22  ;;  %5350 = vrcp.f32 %v11056_v28  ;;  %vm11080_vm8 = vcmp.eq.f32.partialorder %v5152_v52, 8.507059e+37  ;;  %v5133_v42 = vadd.f32 %v10988_v16, %v5132_v39  ;;  %vm5135_vm9 = vweird.f32 %v10988_v16 }
 0x6c8   :  { %13185 = vst [vmem:[#allocation66_spill] sm:$0xff] %v11069_v45  ;;  %v5140_v51 = vand.u32 2147483648, %v10953_v34  ;;  %vm5162_vm10 = vweird.f32 %v10947_v25  ;;  %vm11088_vm11 = vcmp.eq.f32.partialorder %v5166_v47, 8.507059e+37  ;;  %v5155_v35 = vor.u32 1.1754944e-38, %v5154_v3 }
 0x6c9   :  { %vm5134_vm13 = vweird.f32 %v10953_v34  ;;  %v4677_v26 = vmul.f32 0.007598758, %v10817_v46  ;;  %v4603_v25 = vadd.f32 %v10929_v63, %v10776_v18  ;;  %vm11108_vm14 = vmor %vm5162_vm10, %vm5163_vm7  ;;  %v5151_v52 = vsel %vm11094_vm12, %v10980_v50, %v5147_v57 }
 0x6ca   :  { %v11099_v11 = vpop.eup %5348  ;;  %v5173_v34 = vsub.f32 1.0, %v5172_v37  ;;  %v4508_v39 = vadd.f32 %v10847_v1, %v10666_v38  ;;  %v5165_v18 = vsel %vm11108_vm14, %v10986_v12, %v5161_v58  ;;  %v5169_v63 = vor.u32 1.1754944e-38, %v5168_v61  ;;  %vm11124_vm15 = vmor %vm5134_vm13, %vm5135_vm9 }
 0x6cb   :  { %13192 = vst [vmem:[#allocation439_spill] sm:$0xff] %v11099_v11  ;;  %vm11128_vm5 = vcmp.eq.f32.partialorder %v5138_v33, 8.507059e+37  ;;  %v4661_v38 = vadd.f32 %v10966_v29, %v10824_v21  ;;  %v5137_v57 = vsel %vm11124_vm15, %v10988_v16, %v5133_v42  ;;  %v5141_v12 = vor.u32 1.1754944e-38, %v5140_v51 }
 0x6cc   :  { %v4707_v37 = vmul.f32 0.036000773, %v10817_v46  ;;  %v4556_v58 = vadd.f32 %v11004_v2, %v4508_v39  ;;  %v11143_v33 = vsel %vm11080_vm8, %v5155_v35, %v5151_v52  ;;  %v11147_v53 = vmul.f32 %v11099_v11, %v11031_v20 }
 0x6cd   :  { %v4632_v47 = vpop.permute.xlu1 %4631  ;;  %v11137_v61 = vpop.eup %5350  ;;  %v4689_v21 = vrot.slane %v4677_v26, 1  ;;  %v11151_v16 = vsel %vm11088_vm11, %v5169_v63, %v5165_v18  ;;  %v11154_v45 = vmul.f32 %v11043_v55, %v5173_v34  ;;  %v4671_v42 = vmul.f32 0.0010283801, %v10817_v46 }
 0x6ce   :  { %v11104_v8 = vpop.permute.xlu2 %4489  ;;  %v4663_v1 = vadd.f32 %v4632_v47, %v4603_v25  ;;  %13199 = vst [vmem:[#allocation443_spill] sm:$0xff] %v11137_v61  ;;  %v11158_v2 = vmul.f32 0.10936069, %v10817_v46  ;;  %v11161_v31 = vmul.f32 0.21300554, %v10817_v46  ;;  %v11165_v51 = vsel %vm11128_vm5, %v5141_v12, %v5137_v57 }
 0x6cf   :  { %v11117_v3 = vpop.permute.xlu0 %4575  ;;  %13200 = vst [vmem:[#allocation441_spill] sm:$0xff] %v11147_v53  ;;  %v4678_v35 = vmul.f32 0.007598758, %v4661_v38  ;;  %v11169_v25 = vmul.f32 %v11137_v61, %v11056_v28  ;;  %v4719_v27 = vrot.slane %v4707_v37, 2  ;;  %v11172_v52 = vmul.f32 0.26601171, %v10817_v46 }
 0x6d0   :  { %v4679_v29 = vmul.f32 0.007598758, %v4663_v1  ;;  %13201 = vst [vmem:[#allocation442_spill] sm:$0xff] %v11154_v45  ;;  %v4709_v24 = vmul.f32 0.036000773, %v4663_v1  ;;  %v4604_v34 = vadd.f32 %v10992_v19, %v4556_v58  ;;  %v4701_v47 = vadd.f32 %v4689_v21, %v4671_v42 }
 0x6d1   :  { %13202 = vst [vmem:[#allocation446_spill] sm:$0xff] %v11169_v25  ;;  %v4673_v39 = vmul.f32 0.0010283801, %v4663_v1  ;;  %v4741_v18 = vmul.f32 0.10936069, %v4663_v1  ;;  %v4690_v46 = vrot.slane %v4678_v35, 1  ;;  %v4554_v21 = vadd.f32 %v10889_v49, %v10716_v5 }
 0x6d2   :  { %v4691_v26 = vrot.slane %v4679_v29, 1  ;;  %v4795_v63 = vmul.f32 0.21300554, %v4663_v1  ;;  %v4849_v50 = vmul.f32 0.26601171, %v4663_v1  ;;  %v4721_v58 = vrot.slane %v4709_v24, 2 }
 0x6d3   :  { %v4672_v12 = vmul.f32 0.0010283801, %v4661_v38  ;;  %v4708_v62 = vmul.f32 0.036000773, %v4661_v38  ;;  %v11175_v29 = vmul.f32 0.10936069, %v4661_v38 }
 0x6d4   :  { %v11183_v61 = vmul.f32 0.21300554, %v4661_v38  ;;  %v4703_v19 = vadd.f32 %v4691_v26, %v4673_v39  ;;  %v4767_v17 = vrot.slane %v4741_v18, 3  ;;  %v4821_v22 = vrot.slane %v4795_v63, 4 }
 0x6d5   :  { %v11177_v43 = vpop.permute.xlu1 %4529  ;;  %v4847_v45 = vmul.f32 0.26601171, %v4661_v38  ;;  %v4935_v24 = vrot.slane %v4741_v18, 7  ;;  %v4731_v38 = vadd.f32 %v4719_v27, %v4701_v47  ;;  %v4761_v18 = vrot.slane %v11158_v2, 3 }
 0x6d6   :  { %v4634_v57 = vpop.permute.xlu2 %4633  ;;  %v4733_v26 = vadd.f32 %v4721_v58, %v4703_v19  ;;  %v4815_v19 = vrot.slane %v11161_v31, 4  ;;  %v4902_v27 = vrot.slane %v11183_v61, 6  ;;  %vm5219_vm6 = vcmask 46080  }
 0x6d7   :  { %v11179_v28 = vadd.f32 %v4634_v57, %v4604_v34  ;;  %v11181_v37 = vpop.permute.xlu0 %4485  ;;  %v4875_v34 = vrot.slane %v4849_v50, 5  ;;  %v4905_v57 = vrot.slane %v4795_v63, 6  ;;  %v4600_v50 = vadd.f32 %v10885_v7, %v10710_v59 }
 0x6d8   :  { %v4602_v63 = vadd.f32 %v11047_v60, %v4554_v21  ;;  %v4764_v59 = vrot.slane %v11175_v29, 3  ;;  %v4818_v7 = vrot.slane %v11183_v61, 4  ;;  %v4872_v60 = vrot.slane %v4847_v45, 5 }
 0x6d9   :  { %v4742_v1 = vmul.f32 0.10936069, %v11179_v28  ;;  %v4796_v42 = vmul.f32 0.21300554, %v11179_v28  ;;  %v4850_v20 = vmul.f32 0.26601171, %v11179_v28  ;;  %v4513_v45 = vadd.f32 %v11045_v0, %v10897_v48 }
 0x6da   :  { %v4605_v61 = vadd.f32 %v11117_v3, %v10937_v36  ;;  %vm5238_vm14 = vcmask 1045504   ;;  %vm5281_vm15 = vcmask 0  }
 0x6db   :  { %v4768_v11 = vrot.slane %v4742_v1, 3  ;;  %v4822_v54 = vrot.slane %v4796_v42, 4  ;;  %v4876_v35 = vrot.slane %v4850_v20, 5  ;;  %v4906_v25 = vrot.slane %v4796_v42, 6 }
 0x6dc   :  { %v4936_v39 = vrot.slane %v4742_v1, 7  ;;  %v4932_v42 = vrot.slane %v11175_v29, 7 }
 0x6dd   :  { %v4769_v5 = vsel %vm820_vm0, %v4767_v17, %v4768_v11  ;;  %v4823_v49 = vsel %vm875_vm1, %v4821_v22, %v4822_v54  ;;  %v4877_v55 = vsel %vm930_vm2, %v4875_v34, %v4876_v35  ;;  %v4907_v53 = vsel %vm961_vm3, %v4905_v57, %v4906_v25  ;;  %v4630_v11 = vpop.permute.xlu1 %4629 }
 0x6de   :  { %v4787_v32 = vadd.f32 %v4769_v5, %v4733_v26  ;;  %v4937_v20 = vsel %vm992_vm4, %v4935_v24, %v4936_v39  ;;  %v4702_v17 = vadd.f32 %v4690_v46, %v4672_v12  ;;  %v4720_v22 = vrot.slane %v4708_v62, 2 }
 0x6df   :  { %v4626_v54 = vpop.permute.xlu0 %4625  ;;  %v11200_v58 = vadd.f32 %v4630_v11, %v4602_v63 }
 0x6e0   :  { %v11202_v25 = vadd.f32 %v4626_v54, %v4600_v50  ;;  %v4841_v1 = vadd.f32 %v4823_v49, %v4787_v32  ;;  %v4732_v62 = vadd.f32 %v4720_v22, %v4702_v17  ;;  %v4961_v54 = vmul.f32 0.036000773, %v11179_v28 }
 0x6e1   :  { %v4740_v47 = vmul.f32 0.10936069, %v11200_v58  ;;  %v4794_v21 = vmul.f32 0.21300554, %v11200_v58  ;;  %v4848_v12 = vmul.f32 0.26601171, %v11200_v58 }
 0x6e2   :  { %v4895_v46 = vadd.f32 %v4877_v55, %v4841_v1  ;;  %v11212_v34 = vmul.f32 0.10936069, %v11202_v25  ;;  %v11215_v32 = vmul.f32 0.21300554, %v11202_v25  ;;  %v4846_v50 = vmul.f32 0.26601171, %v11202_v25 }
 0x6e3   :  { %v4765_v57 = vrot.slane %v4740_v47, 3  ;;  %v4819_v35 = vrot.slane %v4794_v21, 4  ;;  %v4873_v26 = vrot.slane %v4848_v12, 5  ;;  %v4903_v24 = vrot.slane %v4794_v21, 6 }
 0x6e4   :  { %v4762_v55 = vrot.slane %v11212_v34, 3  ;;  %v4816_v29 = vrot.slane %v11215_v32, 4  ;;  %v4933_v49 = vrot.slane %v4740_v47, 7  ;;  %v4925_v17 = vadd.f32 %v4907_v53, %v4895_v46 }
 0x6e5   :  { %v4766_v39 = vsel %vm820_vm0, %v4764_v59, %v4765_v57  ;;  %v4820_v5 = vsel %vm875_vm1, %v4818_v7, %v4819_v35  ;;  %v4636_v0 = vpop.permute.xlu1 %4635  ;;  %v4973_v22 = vmul.f32 0.007598758, %v11179_v28  ;;  %v5003_v1 = vmul.f32 0.0010283801, %v11179_v28 }
 0x6e6   :  { %v4786_v63 = vadd.f32 %v4766_v39, %v4732_v62  ;;  %v4763_v48 = vsel %vm820_vm0, %v4761_v18, %v4762_v55  ;;  %v4817_v36 = vsel %vm875_vm1, %v4815_v19, %v4816_v29  ;;  %v4955_v59 = vadd.f32 %v4937_v20, %v4925_v17 }
 0x6e7   :  { %v4580_v3 = vpop.permute.xlu0 %4579  ;;  %v4785_v11 = vadd.f32 %v4763_v48, %v4731_v38  ;;  %v4874_v47 = vsel %vm930_vm2, %v4872_v60, %v4873_v26  ;;  %v4904_v21 = vsel %vm961_vm3, %v4902_v27, %v4903_v24  ;;  %v4869_v18 = vrot.slane %v11172_v52, 5  ;;  %v4538_v27 = vpop.permute.xlu2 %4537 }
 0x6e8   :  { %v4840_v7 = vadd.f32 %v4820_v5, %v4786_v63  ;;  %v4899_v19 = vrot.slane %v11161_v31, 6  ;;  %v4665_v12 = vadd.f32 %v4636_v0, %v4605_v61  ;;  %v4934_v53 = vsel %vm992_vm4, %v4932_v42, %v4933_v49 }
 0x6e9   :  { %v4929_v38 = vrot.slane %v11158_v2, 7  ;;  %v4510_v46 = vadd.f32 %v11006_v40, %v10856_v30  ;;  %v4870_v62 = vrot.slane %v4846_v50, 5  ;;  %v4967_v28 = vadd.f32 %v4961_v54, %v4955_v59 }
 0x6ea   :  { %v4561_v20 = vadd.f32 %v11034_v56, %v4513_v45  ;;  %v4514_v60 = vadd.f32 %v11104_v8, %v10978_v6  ;;  %v4985_v57 = vrot.slane %v4973_v22, 1  ;;  %v4894_v52 = vadd.f32 %v4874_v47, %v4840_v7 }
 0x6eb   :  { %v4558_v31 = vadd.f32 %v11177_v43, %v4510_v46  ;;  %v11245_v42 = vadd.f32 %v11181_v37, %v10850_v15  ;;  %v4900_v2 = vrot.slane %v11215_v32, 6  ;;  %v5015_v61 = vrot.slane %v5003_v1, 2 }
 0x6ec   :  { %v4930_v30 = vrot.slane %v11212_v34, 7  ;;  %v4680_v40 = vmul.f32 0.007598758, %v4665_v12  ;;  %v4997_v35 = vadd.f32 %v4985_v57, %v4967_v28  ;;  %v4924_v56 = vadd.f32 %v4904_v21, %v4894_v52 }
 0x6ed   :  { %v11249_v45 = vadd.f32 %v4538_v27, %v4514_v60  ;;  %v4578_v6 = vpop.permute.xlu1 %4577  ;;  %v4972_v26 = vmul.f32 0.007598758, %v11200_v58  ;;  %v4839_v24 = vadd.f32 %v4817_v36, %v4785_v11  ;;  %v4871_v43 = vsel %vm930_vm2, %v4869_v18, %v4870_v62 }
 0x6ee   :  { %v4674_v55 = vmul.f32 0.0010283801, %v4665_v12  ;;  %v4710_v15 = vmul.f32 0.036000773, %v4665_v12  ;;  %v11253_v37 = vmul.f32 0.10936069, %v4665_v12  ;;  %v5027_v32 = vadd.f32 %v5015_v61, %v4997_v35 }
 0x6ef   :  { %v4534_v8 = vpop.permute.xlu0 %4533  ;;  %v4954_v29 = vadd.f32 %v4934_v53, %v4924_v56  ;;  %v4960_v34 = vmul.f32 0.036000773, %v11200_v58  ;;  %v5002_v39 = vmul.f32 0.0010283801, %v11200_v58  ;;  %v4893_v5 = vadd.f32 %v4871_v43, %v4839_v24 }
 0x6f0   :  { %v4692_v49 = vrot.slane %v4680_v40, 1  ;;  %v5063_v50 = vsub.f32 %v5027_v32, %v10996_v41  ;;  %v4901_v63 = vsel %vm961_vm3, %v4899_v19, %v4900_v2  ;;  %v4931_v48 = vsel %vm992_vm4, %v4929_v38, %v4930_v30  ;;  %v4644_v19 = vpop.permute.xlu2 %4643 }
 0x6f1   :  { %v4966_v36 = vadd.f32 %v4960_v34, %v4954_v29  ;;  %v4984_v0 = vrot.slane %v4972_v26, 1  ;;  %v4923_v17 = vadd.f32 %v4901_v63, %v4893_v5  ;;  %v4971_v11 = vmul.f32 0.007598758, %v11202_v25 }
 0x6f2   :  { %v11261_v54 = vmul.f32 0.21300554, %v4665_v12  ;;  %v11263_v22 = vmul.f32 0.26601171, %v4665_v12  ;;  %v4607_v1 = vadd.f32 %v4580_v3, %v10932_v10  ;;  %v5069_v58 = vmul.f32 2.0, %v5063_v50 }
 0x6f3   :  { %v4996_v59 = vadd.f32 %v4984_v0, %v4966_v36  ;;  %v5014_v7 = vrot.slane %v5002_v39, 2  ;;  %v4953_v47 = vadd.f32 %v4931_v48, %v4923_v17  ;;  %v4959_v41 = vmul.f32 0.036000773, %v11202_v25 }
 0x6f4   :  { %v4704_v21 = vadd.f32 %v4692_v49, %v4674_v55  ;;  %v4722_v18 = vrot.slane %v4710_v15, 2  ;;  %v5076_v53 = vadd.f32 %v10919_v14, %v5069_v58  ;;  %v4770_v38 = vrot.slane %v11253_v37, 3 }
 0x6f5   :  { %v4640_v46 = vpop.permute.xlu1 %4639  ;;  %v5026_v12 = vadd.f32 %v5014_v7, %v4996_v59  ;;  %v4965_v28 = vadd.f32 %v4959_v41, %v4953_v47  ;;  %v4983_v60 = vrot.slane %v4971_v11, 1  ;;  %v4824_v10 = vrot.slane %v11261_v54, 4 }
 0x6f6   :  { %v4667_v3 = vadd.f32 %v4640_v46, %v4607_v1  ;;  %v5107_v57 = vmul.f32 %v11037_v9, %v5076_v53  ;;  %v4878_v52 = vrot.slane %v11263_v22, 5  ;;  %v4908_v2 = vrot.slane %v11261_v54, 6 }
 0x6f7   :  { %v4584_v62 = vpop.permute.xlu0 %4583  ;;  %v4995_v61 = vadd.f32 %v4983_v60, %v4965_v28  ;;  %v5001_v30 = vmul.f32 0.0010283801, %v11202_v25  ;;  %v11274_v40 = vadd.f32 %v4722_v18, %v4704_v21  ;;  %v4938_v35 = vrot.slane %v11253_v37, 7 }
 0x6f8   :  { %v4609_v27 = vadd.f32 %v4584_v62, %v4561_v20  ;;  %v4681_v56 = vmul.f32 0.007598758, %v4667_v3  ;;  %v4606_v24 = vadd.f32 %v4578_v6, %v4558_v31  ;;  %v4675_v43 = vmul.f32 0.0010283801, %v4667_v3 }
 0x6f9   :  { %v4711_v55 = vmul.f32 0.036000773, %v4667_v3  ;;  %v5215_v20 = vmul.f32 %v11151_v16, %v5107_v57  ;;  %v4560_v9 = vadd.f32 %v4534_v8, %v11245_v42  ;;  %v11279_v32 = vmul.f32 0.10936069, %v4667_v3 }
 0x6fa   :  { %v4669_v26 = vadd.f32 %v4644_v19, %v4609_v27  ;;  %v4693_v15 = vrot.slane %v4681_v56, 1  ;;  %v11281_v34 = vmul.f32 0.21300554, %v4667_v3  ;;  %v11283_v25 = vmul.f32 0.26601171, %v4667_v3 }
 0x6fb   :  { %v5062_v39 = vsub.f32 %v5026_v12, %v11000_v23  ;;  %v5013_v5 = vrot.slane %v5001_v30, 2  ;;  %v4723_v0 = vrot.slane %v4711_v55, 2  ;;  %v4773_v17 = vrot.slane %v11279_v32, 3 }
 0x6fc   :  { %v4682_v29 = vmul.f32 0.007598758, %v4669_v26  ;;  %v4705_v49 = vadd.f32 %v4693_v15, %v4675_v43  ;;  %v4676_v50 = vmul.f32 0.0010283801, %v4669_v26  ;;  %v4712_v6 = vmul.f32 0.036000773, %v4669_v26  ;;  %v4646_v43 = vpop.permute.xlu2 %4645 }
 0x6fd   :  { %v11286_v63 = vmul.f32 0.10936069, %v4669_v26  ;;  %v11288_v16 = vmul.f32 0.21300554, %v4669_v26  ;;  %v11290_v42 = vmul.f32 0.26601171, %v4669_v26  ;;  %v4638_v8 = vpop.permute.xlu1 %4637  ;;  %v5025_v36 = vadd.f32 %v5013_v5, %v4995_v61 }
 0x6fe   :  { %v4694_v31 = vrot.slane %v4682_v29, 1  ;;  %v5226_v23 = vsel %vm5219_vm6, %v5215_v20, 0.0  ;;  %v4827_v1 = vrot.slane %v11281_v34, 4  ;;  %v4881_v58 = vrot.slane %v11283_v25, 5 }
 0x6ff   :  { %v4582_v48 = vpop.permute.xlu0 %4581  ;;  %v4911_v59 = vrot.slane %v11281_v34, 6  ;;  %v4941_v7 = vrot.slane %v11279_v32, 7  ;;  %5227 = vadd.xlane.f32.xlu2 %v5226_v23  ;;  %v4735_v47 = vadd.f32 %v4723_v0, %v4705_v49  ;;  %v4724_v41 = vrot.slane %v4712_v6, 2  ;;  %v13203_v32 = vld [vmem:[#allocation434_spill] sm:$0xff] }
 0x700   :  { %v4706_v11 = vadd.f32 %v4694_v31, %v4676_v50  ;;  %v4776_v21 = vrot.slane %v11286_v63, 3  ;;  %v11299_v18 = vadd.f32 %v4638_v8, %v4606_v24  ;;  %v4830_v19 = vrot.slane %v11288_v16, 4 }
 0x701   :  { %v4884_v53 = vrot.slane %v11290_v42, 5  ;;  %v5068_v46 = vmul.f32 2.0, %v5062_v39  ;;  %v5061_v62 = vsub.f32 %v5025_v36, %v11012_v4  ;;  %v4608_v27 = vadd.f32 %v4582_v48, %v4560_v9 }
 0x702   :  { %v4736_v12 = vadd.f32 %v4724_v41, %v4706_v11  ;;  %v4744_v28 = vmul.f32 0.10936069, %v11299_v18  ;;  %v4798_v60 = vmul.f32 0.21300554, %v11299_v18  ;;  %v4852_v3 = vmul.f32 0.26601171, %v11299_v18 }
 0x703   :  { %v5075_v57 = vadd.f32 %v10919_v14, %v5068_v46  ;;  %v5067_v61 = vmul.f32 2.0, %v5061_v62  ;;  %v11309_v30 = vmul.f32 0.036000773, %v11299_v18  ;;  %v11312_v4 = vmul.f32 0.007598758, %v11299_v18 }
 0x704   :  { %v4771_v56 = vrot.slane %v4744_v28, 3  ;;  %v4825_v26 = vrot.slane %v4798_v60, 4  ;;  %v4879_v24 = vrot.slane %v4852_v3, 5  ;;  %v4909_v55 = vrot.slane %v4798_v60, 6 }
 0x705   :  { %v4939_v20 = vrot.slane %v4744_v28, 7  ;;  %v5106_v15 = vmul.f32 %v11040_v44, %v5075_v57  ;;  %v5074_v29 = vadd.f32 %v10919_v14, %v5067_v61  ;;  %v4642_v9 = vpop.permute.xlu1 %4641 }
 0x706   :  { %v4772_v5 = vsel %vm820_vm0, %v4770_v38, %v4771_v56  ;;  %v4826_v49 = vsel %vm875_vm1, %v4824_v10, %v4825_v26  ;;  %v4668_v50 = vadd.f32 %v4642_v9, %v4608_v27  ;;  %v4880_v48 = vsel %vm930_vm2, %v4878_v52, %v4879_v24 }
 0x707   :  { %v4586_v39 = vpop.permute.xlu0 %4585  ;;  %v4788_v6 = vadd.f32 %v4772_v5, %v11274_v40  ;;  %v5214_v8 = vmul.f32 %v11143_v33, %v5106_v15  ;;  %v5105_v44 = vmul.f32 %v11051_v13, %v5074_v29  ;;  %v4910_v33 = vsel %vm961_vm3, %v4908_v2, %v4909_v55 }
 0x708   :  { %v4610_v31 = vadd.f32 %v4586_v39, %v11249_v45  ;;  %v4746_v36 = vmul.f32 0.10936069, %v4668_v50  ;;  %v4800_v0 = vmul.f32 0.21300554, %v4668_v50  ;;  %v4854_v38 = vmul.f32 0.26601171, %v4668_v50 }
 0x709   :  { %v5223_v10 = vsel %vm5219_vm6, %v5214_v8, 0.0  ;;  %v5213_v23 = vmul.f32 %v11165_v51, %v5105_v44  ;;  %v4842_v45 = vadd.f32 %v4826_v49, %v4788_v6  ;;  %v4975_v25 = vmul.f32 0.007598758, %v4668_v50  ;;  %v13205_v44 = vld [vmem:[#allocation435_spill] sm:$0xff] }
 0x70a   :  { %v11329_v11 = vadd.f32 %v4646_v43, %v4610_v31  ;;  %5224 = vadd.xlane.f32.xlu1 %v5223_v10  ;;  %v4774_v13 = vrot.slane %v4746_v36, 3  ;;  %v4828_v40 = vrot.slane %v4800_v0, 4  ;;  %v4882_v22 = vrot.slane %v4854_v38, 5  ;;  %v13207_v10 = vld [vmem:[#allocation446_spill] sm:$0xff] }
 0x70b   :  { %v4912_v41 = vrot.slane %v4800_v0, 6  ;;  %v5220_v52 = vsel %vm5219_vm6, %v5213_v23, 0.0  ;;  %v4942_v46 = vrot.slane %v4746_v36, 7  ;;  %v4896_v2 = vadd.f32 %v4880_v48, %v4842_v45  ;;  %v13206_v48 = vld [vmem:[#allocation442_spill] sm:$0xff]  ;;  %v13208_v45 = vld [vmem:[#allocation432_spill] sm:$0xff] }
 0x70c   :  { %v4748_v62 = vmul.f32 0.10936069, %v11329_v11  ;;  %v4802_v28 = vmul.f32 0.21300554, %v11329_v11  ;;  %5221 = vadd.xlane.f32.xlu0 %v5220_v52  ;;  %v4775_v51 = vsel %vm820_vm0, %v4773_v17, %v4774_v13  ;;  %v4829_v60 = vsel %vm875_vm1, %v4827_v1, %v4828_v40 }
 0x70d   :  { %v4856_v54 = vmul.f32 0.26601171, %v11329_v11  ;;  %v4789_v3 = vadd.f32 %v4775_v51, %v4735_v47  ;;  %v4926_v24 = vadd.f32 %v4910_v33, %v4896_v2  ;;  %v4940_v43 = vsel %vm992_vm4, %v4938_v35, %v4939_v20 }
 0x70e   :  { %v4777_v27 = vrot.slane %v4748_v62, 3  ;;  %v4831_v57 = vrot.slane %v4802_v28, 4  ;;  %v4915_v61 = vrot.slane %v4802_v28, 6  ;;  %v4945_v26 = vrot.slane %v4748_v62, 7 }
 0x70f   :  { %v4885_v56 = vrot.slane %v4856_v54, 5  ;;  %v5004_v47 = vmul.f32 0.0010283801, %v11299_v18  ;;  %v4843_v55 = vadd.f32 %v4829_v60, %v4789_v3  ;;  %v4956_v29 = vadd.f32 %v4940_v43, %v4926_v24 }
 0x710   :  { %v4778_v17 = vsel %vm820_vm0, %v4776_v21, %v4777_v27  ;;  %v4832_v1 = vsel %vm875_vm1, %v4830_v19, %v4831_v57  ;;  %v4883_v9 = vsel %vm930_vm2, %v4881_v58, %v4882_v22  ;;  %v4913_v37 = vsel %vm961_vm3, %v4911_v59, %v4912_v41  ;;  %v13212_v27 = vld [vmem:[#allocation438_spill] sm:$0xff]  ;;  %v13213_v57 = vld [vmem:[#allocation423_spill] sm:$0xff] }
 0x711   :  { %v4790_v15 = vadd.f32 %v4778_v17, %v4736_v12  ;;  %v4914_v35 = vrot.slane %v11288_v16, 6  ;;  %v4944_v21 = vrot.slane %v11286_v63, 7  ;;  %v4897_v20 = vadd.f32 %v4883_v9, %v4843_v55 }
 0x712   :  { %v4943_v18 = vsel %vm992_vm4, %v4941_v7, %v4942_v46  ;;  %v4968_v19 = vadd.f32 %v11309_v30, %v4956_v29  ;;  %v4986_v12 = vrot.slane %v11312_v4, 1  ;;  %v4886_v34 = vsel %vm930_vm2, %v4884_v53, %v4885_v56  ;;  %v13204_v4 = vld [vmem:[#allocation441_spill] sm:$0xff]  ;;  %v13209_v46 = vld [vmem:[#allocation439_spill] sm:$0xff] }
 0x713   :  { %v4844_v39 = vadd.f32 %v4832_v1, %v4790_v15  ;;  %v4927_v58 = vadd.f32 %v4913_v37, %v4897_v20  ;;  %v4916_v16 = vsel %vm961_vm3, %v4914_v35, %v4915_v61  ;;  %v4946_v63 = vsel %vm992_vm4, %v4944_v21, %v4945_v26  ;;  %v13214_v56 = vld [vmem:[#allocation437_spill] sm:$0xff]  ;;  %v13215_v1 = vld [vmem:[#allocation443_spill] sm:$0xff]  ;;  %v13217_v37 = vld [vmem:[#allocation436_spill] sm:$0xff] }
 0x714   :  { %v4998_v59 = vadd.f32 %v4986_v12, %v4968_v19  ;;  %v5016_v5 = vrot.slane %v5004_v47, 2  ;;  %vm5176_vm0 = vweird.f32 %v13203_v32  ;;  %v4963_v30 = vmul.f32 0.036000773, %v4668_v50  ;;  %v13216_v15 = vld [vmem:[#allocation433_spill] sm:$0xff]  ;;  %v13218_v20 = vld [vmem:[#allocation66_spill] sm:$0xff] }
 0x715   :  { %v4898_v7 = vadd.f32 %v4886_v34, %v4844_v39  ;;  %v4957_v49 = vadd.f32 %v4943_v18, %v4927_v58  ;;  %v5005_v31 = vmul.f32 0.0010283801, %v4668_v50  ;;  %v5187_v6 = vsub.f32 1.0, %v13204_v4 }
 0x716   :  { %v5028_v8 = vadd.f32 %v5016_v5, %v4998_v59  ;;  %vm5177_vm1 = vweird.f32 %v13205_v44  ;;  %v4976_v53 = vmul.f32 0.007598758, %v11329_v11  ;;  %v5175_v36 = vadd.f32 %v13205_v44, %v13206_v48 }
 0x717   :  { %v4928_v42 = vadd.f32 %v4916_v16, %v4898_v7  ;;  %v4969_v0 = vadd.f32 %v4963_v30, %v4957_v49  ;;  %v4987_v38 = vrot.slane %v4975_v25, 1  ;;  %v5201_v23 = vsub.f32 1.0, %v13207_v10  ;;  %vm11386_vm2 = vmor %vm5176_vm0, %vm5177_vm1 }
 0x718   :  { %v5064_v33 = vsub.f32 %v5028_v8, %v13208_v45  ;;  %v4964_v50 = vmul.f32 0.036000773, %v11329_v11  ;;  %v5006_v40 = vmul.f32 0.0010283801, %v11329_v11  ;;  %v5182_v22 = vand.u32 2147483648, %v13203_v32 }
 0x719   :  { %v4958_v13 = vadd.f32 %v4946_v63, %v4928_v42  ;;  %v4999_v41 = vadd.f32 %v4987_v38, %v4969_v0  ;;  %v5017_v52 = vrot.slane %v5005_v31, 2  ;;  %v5188_v62 = vmul.f32 %v13209_v46, %v5187_v6 }
 0x71a   :  { %v5070_v28 = vmul.f32 2.0, %v5064_v33  ;;  %v5180_v60 = vand.u32 2147483647, %v13203_v32  ;;  %v4988_v2 = vrot.slane %v4976_v53, 1  ;;  %v5179_v11 = vsel %vm11386_vm2, %v13205_v44, %v5175_v36  ;;  %v13221_v32 = vld [vmem:[#allocation440_spill] sm:$0xff] }
 0x71b   :  { %v4970_v54 = vadd.f32 %v4964_v50, %v4958_v13  ;;  %v5029_v3 = vadd.f32 %v5017_v52, %v4999_v41  ;;  %v5103_v61 = vadd.f32 %v13213_v57, %v13212_v27  ;;  %v5196_v26 = vand.u32 2147483648, %v13214_v56 }
 0x71c   :  { %v5077_v24 = vadd.f32 %v10919_v14, %v5070_v28  ;;  %v5018_v17 = vrot.slane %v5006_v40, 2  ;;  %v5202_v47 = vmul.f32 %v13215_v1, %v5201_v23  ;;  %v5183_v55 = vor.u32 1.1754944e-38, %v5182_v22 }
 0x71d   :  { %v5000_v43 = vadd.f32 %v4988_v2, %v4970_v54  ;;  %v5065_v29 = vsub.f32 %v5029_v3, %v13216_v15  ;;  %v5189_v9 = vadd.f32 %v13209_v46, %v5188_v62  ;;  %vm5191_vm3 = vweird.f32 %v13209_v46 }
 0x71e   :  { %v5108_v35 = vmul.f32 %v13217_v37, %v5077_v24  ;;  %vm5181_vm4 = vcmp.eq.f32.partialorder %v5180_v60, 8.507059e+37  ;;  %v5097_v18 = vmul.f32 2.0, %v13218_v20  ;;  %vm5190_vm7 = vweird.f32 %v13214_v56 }
 0x71f   :  { %v5030_v21 = vadd.f32 %v5018_v17, %v5000_v43  ;;  %v5184_v19 = vsel %vm5181_vm4, %v5183_v55, %v5179_v11  ;;  %v5071_v12 = vmul.f32 2.0, %v5065_v29  ;;  %v5194_v25 = vand.u32 2147483647, %v13214_v56  ;;  %vm11406_vm8 = vmor %vm5190_vm7, %vm5191_vm3 }
 0x720   :  { %v5216_v39 = vmul.f32 %v5184_v19, %v5108_v35  ;;  %v5203_v16 = vadd.f32 %v13215_v1, %v5202_v47  ;;  %vm5205_vm9 = vweird.f32 %v13215_v1  ;;  %v5193_v59 = vsel %vm11406_vm8, %v13209_v46, %v5189_v9 }
 0x721   :  { %v5066_v34 = vsub.f32 %v5030_v21, %v13218_v20  ;;  %v5078_v63 = vadd.f32 %v10919_v14, %v5071_v12  ;;  %v5197_v5 = vor.u32 1.1754944e-38, %v5196_v26  ;;  %v5210_v7 = vand.u32 2147483648, %v13221_v32 }
 0x722   :  { %v5229_v49 = vsel %vm5219_vm6, %v5216_v39, 0.0  ;;  %vm5204_vm10 = vweird.f32 %v13221_v32  ;;  %v5208_v31 = vand.u32 2147483647, %v13221_v32  ;;  %vm5195_vm11 = vcmp.eq.f32.partialorder %v5194_v25, 8.507059e+37 }
 0x723   :  { %v5072_v30 = vmul.f32 2.0, %v5066_v34  ;;  %5230 = vadd.xlane.f32.xlu2 %v5229_v49  ;;  %v5109_v4 = vmul.f32 %v5103_v61, %v5078_v63  ;;  %vm5206_vm12 = vmor %vm5204_vm10, %vm5205_vm9  ;;  %v5198_v6 = vsel %vm5195_vm11, %v5197_v5, %v5193_v59  ;;  %v5104_v44 = vadd.f32 %v13213_v57, %v5097_v18 }
 0x724   :  { %v5207_v42 = vsel %vm5206_vm12, %v13215_v1, %v5203_v16  ;;  %v5211_v48 = vor.u32 1.1754944e-38, %v5210_v7  ;;  %vm5209_vm13 = vcmp.eq.f32.partialorder %v5208_v31, 8.507059e+37 }
 0x725   :  { %v5079_v8 = vadd.f32 %v10919_v14, %v5072_v30  ;;  %v5217_v53 = vmul.f32 %v5198_v6, %v5109_v4 }
 0x726   :  { %v5212_v38 = vsel %vm5209_vm13, %v5211_v48, %v5207_v42 }
 0x727   :  { %v5110_v36 = vmul.f32 %v5104_v44, %v5079_v8  ;;  %v5232_v0 = vsel %vm5219_vm6, %v5217_v53, 0.0 }
 0x728   :  { %5233 = vadd.xlane.f32.xlu0 %v5232_v0 }
 0x729   :  { %v5218_v10 = vmul.f32 %v5212_v38, %v5110_v36 }
 0x72b   :  { %v5235_v23 = vsel %vm5219_vm6, %v5218_v10, 0.0 }
 0x72c   :  { %5236 = vadd.xlane.f32.xlu1 %v5235_v23 }
 0x772   :  { %v5228_v50 = vpop.xlane.xlu2 %5227 }
 0x773   :  { %v5253_v41 = vsel %vm5238_vm14, %v5228_v50, 0.0 }
 0x774   :  { %v5254_v62 = vrot.slane %v5253_v41, 4 }
 0x776   :  { %v5255_v60 = vadd.f32 %v5254_v62, %v5253_v41 }
 0x778   :  { %v5256_v11 = vrot.slane %v5255_v60, 2 }
 0x77a   :  { %v5257_v26 = vadd.f32 %v5256_v11, %v5255_v60 }
 0x77c   :  { %v5258_v15 = vrot.slane %v5257_v26, 1 }
 0x77d   :  { %v5225_v45 = vpop.xlane.xlu1 %5224 }
 0x77e   :  { %v5246_v14 = vsel %vm5238_vm14, %v5225_v45, 0.0  ;;  %v5259_v25 = vadd.f32 %v5258_v15, %v5257_v26 }
 0x77f   :  { %v5222_v33 = vpop.xlane.xlu0 %5221  ;;  %v5247_v40 = vrot.slane %v5246_v14, 4 }
 0x780   :  { %v5239_v13 = vsel %vm5238_vm14, %v5222_v33, 0.0  ;;  %v5285_v5 = vsel %vm5281_vm15, %v5259_v25, 0.0 }
 0x781   :  { %v5240_v22 = vrot.slane %v5239_v13, 4  ;;  %v5248_v52 = vadd.f32 %v5247_v40, %v5246_v14 }
 0x783   :  { %v5241_v46 = vadd.f32 %v5240_v22, %v5239_v13  ;;  %v5249_v28 = vrot.slane %v5248_v52, 2 }
 0x785   :  { %v5242_v51 = vrot.slane %v5241_v46, 2  ;;  %v5250_v54 = vadd.f32 %v5249_v28, %v5248_v52 }
 0x787   :  { %v5243_v2 = vadd.f32 %v5242_v51, %v5241_v46  ;;  %v5251_v27 = vrot.slane %v5250_v54, 1 }
 0x789   :  { %v5244_v57 = vrot.slane %v5243_v2, 1  ;;  %v5252_v43 = vadd.f32 %v5251_v27, %v5250_v54 }
 0x78b   :  { %v5245_v17 = vadd.f32 %v5244_v57, %v5243_v2  ;;  %v5283_v35 = vsel %vm5281_vm15, %v5252_v43, 0.0 }
 0x78d   :  { %v5282_v21 = vsel %vm5281_vm15, %v5245_v17, 0.0 }
 0x78e   :  { %v5284_v58 = vadd.f32 %v5283_v35, %v5282_v21 }
 0x790   :  { %v5286_v30 = vadd.f32 %v5285_v5, %v5284_v58 }
 0x796   :  { %v5231_v3 = vpop.xlane.xlu2 %5230 }
 0x797   :  { %v5260_v61 = vsel %vm5238_vm14, %v5231_v3, 0.0 }
 0x798   :  { %v5261_v56 = vrot.slane %v5260_v61, 4 }
 0x79a   :  { %v5262_v24 = vadd.f32 %v5261_v56, %v5260_v61 }
 0x79b   :  { %v5234_v1 = vpop.xlane.xlu0 %5233 }
 0x79c   :  { %v5263_v47 = vrot.slane %v5262_v24, 2  ;;  %v5267_v55 = vsel %vm5238_vm14, %v5234_v1, 0.0 }
 0x79d   :  { %v5268_v29 = vrot.slane %v5267_v55, 4 }
 0x79e   :  { %v5264_v9 = vadd.f32 %v5263_v47, %v5262_v24 }
 0x79f   :  { %v5237_v37 = vpop.xlane.xlu1 %5236  ;;  %v5269_v20 = vadd.f32 %v5268_v29, %v5267_v55 }
 0x7a0   :  { %v5274_v18 = vsel %vm5238_vm14, %v5237_v37, 0.0  ;;  %v5265_v19 = vrot.slane %v5264_v9, 1 }
 0x7a1   :  { %v5275_v12 = vrot.slane %v5274_v18, 4  ;;  %v5270_v39 = vrot.slane %v5269_v20, 2 }
 0x7a2   :  { %v5266_v34 = vadd.f32 %v5265_v19, %v5264_v9 }
 0x7a3   :  { %v5276_v16 = vadd.f32 %v5275_v12, %v5274_v18  ;;  %v5271_v63 = vadd.f32 %v5270_v39, %v5269_v20 }
 0x7a4   :  { %v5287_v32 = vsel %vm5281_vm15, %v5266_v34, 0.0 }
 0x7a5   :  { %v5277_v59 = vrot.slane %v5276_v16, 2  ;;  %v5272_v7 = vrot.slane %v5271_v63, 1  ;;  %v5288_v6 = vadd.f32 %v5287_v32, %v5286_v30 }
 0x7a7   :  { %v5278_v49 = vadd.f32 %v5277_v59, %v5276_v16  ;;  %v5273_v31 = vadd.f32 %v5272_v7, %v5271_v63 }
 0x7a9   :  { %v5279_v4 = vrot.slane %v5278_v49, 1  ;;  %v5289_v8 = vsel %vm5281_vm15, %v5273_v31, 0.0 }
 0x7aa   :  { %v5290_v42 = vadd.f32 %v5289_v8, %v5288_v6 }
 0x7ab   :  { %v5280_v44 = vadd.f32 %v5279_v4, %v5278_v49 }
 0x7ad   :  { %v5291_v53 = vsel %vm5281_vm15, %v5280_v44, 0.0 }
 0x7ae   :  { %v5292_v48 = vadd.f32 %v5291_v53, %v5290_v42 }
 0x7b0   :  { %5293 = vadd.xlane.f32.xlu2 %v5292_v48 }
 0x823   :  { %v5294_v36 = vpop.xlane.xlu2 %5293 }
 0x824   :  { %v5295_v0 = vrot.slane %v5294_v36, 4 }
 0x826   :  { %v5296_v38 = vadd.f32 %v5295_v0, %v5294_v36 }
 0x828   :  { %v5297_v10 = vrot.slane %v5296_v38, 2 }
 0x82a   :  { %v5298_v23 = vadd.f32 %v5297_v10, %v5296_v38 }
 0x82c   :  { %v5299_v45 = vrot.slane %v5298_v23, 1 }
 0x82e   :  { %v5300_v33 = vadd.f32 %v5299_v45, %v5298_v23 }
 0x830   :  { %5323 = vpush %v5300_v33 }
 0x861   :  { %s5324_s23 = spop %5323 }
 0x862   :  { %v5302_v14 = vstv %s5324_s23 }
 0x863   :  { %5303 = vst.msk [vmem:[#allocation7] sm:$0x1] %vm5281_vm15, %v5302_v14 }
 0x864   :  { %5314 = dma.vmem_to_hbm [thread:$0]  %s5310_s0, 16, %s5312_s21, [#allocation4]  }
 0x865   :  { %5460 = dma.done.wait [#allocation4], 16  }
 0x866   :  { %5461 = vsyncadd [#allocation4], 4294967280 }
 0x867   :  { %5319 = vsyncpa [#allocation3], 1 }
 0x868   :  { %5320 = vsyncpa [#allocation4], 1 }
 0x869   :  { %5321 = vsyncpa [#allocation5], 1 }

</bundles_post_ra>
